<compile_context>
chip_gen: v7x
topology: tpu7x:2x2x1
jax: 0.10.0
libtpu: 0.0.40
codegen_flags: <defaults>
</compile_context>

<pallas_src>
import jax
import jax.numpy as jnp
from jax import lax
from jax.experimental import pallas as pl
from jax.experimental.pallas import tpu as pltpu

# ----- scaled-down ViT config (ViT-B/32 analogue) -----
B = 2              # batch
C_IN = 3           # image channels
IMG = 32           # image size
PATCH = 8          # patch size
GRID = IMG // PATCH
N_PATCH = GRID * GRID          # 16
T = N_PATCH + 1                # 17 real tokens (cls + patches)
T_PAD = 24                     # padded token count (multiple of 8 sublanes)
W = 64                         # transformer width   (768 in real ViT-B/32)
H = 4                          # attention heads     (12 in real ViT-B/32)
DH = W // H                    # 16
LAYERS = 2                     # transformer layers  (12 in real ViT-B/32)
MLP = 4 * W                    # 256
EMBED = 512                    # CLIP embedding dim (kept: heads are 512->1 / 512->4)
HEAD_PAD = 128                 # lane-dense padded width for the fused heads (1 + 4 -> 128)
EPS = 1e-5


# ---------------- fused Pallas kernel (entire forward pass) ----------------

def _vad_clip_fused_kernel(
        patches_ref, conv_w_ref, tok_bias_ref,
        ln_pre_g_ref, ln_pre_b_ref,
        ln1_g_ref, ln1_b_ref,
        wq_ref, wk_ref, wv_ref, bq_ref, bk_ref, bv_ref,
        wo_ref, bo_ref,
        ln2_g_ref, ln2_b_ref,
        w1_ref, b1_ref, w2_ref, b2_ref,
        ln_post_g_ref, ln_post_b_ref,
        proj_ref, head_w_ref, head_b_ref,
        out_ref):
    f32 = jnp.float32
    bf16 = jnp.bfloat16

    def ln(x, g, b):
        mu = jnp.mean(x, axis=-1, keepdims=True)
        var = jnp.mean(jnp.square(x - mu), axis=-1, keepdims=True)
        return (x - mu) * lax.rsqrt(var + EPS) * g + b

    # patch embedding (conv1-as-matmul, bf16 MXU) + cls/positional bias.
    # Padded token rows of `patches` and `tok_bias` are zero, so they stay zero.
    x = jnp.dot(patches_ref[...], conv_w_ref[...],
                preferred_element_type=f32) + tok_bias_ref[...]     # [B*T_PAD, W] f32

    x = ln(x, ln_pre_g_ref[...], ln_pre_b_ref[...])

    # Additive key-padding mask (keys >= T are padding) — hoisted out of the layer loop.
    key_ids = lax.broadcasted_iota(jnp.int32, (T_PAD, T_PAD), 1)
    kbias = jnp.where(key_ids < T, jnp.float32(0.0), jnp.float32(-1e30))  # [T_PAD, T_PAD]
    scale = jnp.float32(1.0 / (DH ** 0.5))

    for l in range(LAYERS):                     # static unroll over layers (weights resident)
        # ---------- LayerNorm + multi-head self-attention + residual ----------
        xn = ln(x, ln1_g_ref[l], ln1_b_ref[l])
        xnb = xn.astype(bf16)
        attn = jnp.zeros((B * T_PAD, W), f32)
        for h in range(H):                      # static unroll; per-head weights => no lane slicing
            q = jnp.dot(xnb, wq_ref[l, h], preferred_element_type=f32) + bq_ref[l, h]
            k = jnp.dot(xnb, wk_ref[l, h], preferred_element_type=f32) + bk_ref[l, h]
            v = jnp.dot(xnb, wv_ref[l, h], preferred_element_type=f32) + bv_ref[l, h]
            q3 = q.reshape(B, T_PAD, DH)        # tile-aligned split: 48 -> 2 x 24 sublanes
            k3 = k.reshape(B, T_PAD, DH)
            v3 = v.reshape(B, T_PAD, DH)
            s = jnp.einsum('bqd,bkd->bqk', q3.astype(bf16), k3.astype(bf16),
                           preferred_element_type=f32) * scale + kbias[None]
            e = jnp.exp(s - jnp.max(s, axis=-1, keepdims=True))
            p = e * pl.reciprocal(jnp.sum(e, axis=-1, keepdims=True), approx=True)
            ctx = jnp.einsum('bqk,bkd->bqd', p.astype(bf16), v3.astype(bf16),
                             preferred_element_type=f32)            # [B, T_PAD, DH]
            # accumulate through this head's slice of the output projection
            # (replaces the lane-axis concatenate of head outputs)
            attn = attn + jnp.dot(ctx.reshape(B * T_PAD, DH).astype(bf16),
                                  wo_ref[l, h], preferred_element_type=f32)
        x = x + attn + bo_ref[l]

        # ---------- LayerNorm + MLP (QuickGELU) + residual ----------
        xn = ln(x, ln2_g_ref[l], ln2_b_ref[l])
        hdn = jnp.dot(xn.astype(bf16), w1_ref[l], preferred_element_type=f32) + b1_ref[l]
        hdn = hdn * jax.nn.sigmoid(1.702 * hdn)                      # QuickGELU (as in CLIP)
        x = x + jnp.dot(hdn.astype(bf16), w2_ref[l], preferred_element_type=f32) + b2_ref[l]

    # ---------- ln_post + CLIP projection + fused heads (lane-dense 128-wide output) ----------
    cls = jnp.concatenate([x[b * T_PAD:b * T_PAD + 1, :] for b in range(B)], axis=0)  # [B, W]
    cls = ln(cls, ln_post_g_ref[...], ln_post_b_ref[...])
    feat = jnp.dot(cls.astype(bf16), proj_ref[...], preferred_element_type=f32)       # [B, 512]
    out_ref[...] = jnp.dot(feat.astype(bf16), head_w_ref[...],
                           preferred_element_type=f32) + head_b_ref[...]              # [B, 128]


# ---------------- parameters (deterministic, already in kernel layout) ----------------

def init_params(key):
    ks = iter(jax.random.split(key, 64))
    bf16 = jnp.bfloat16

    def nrm(shape, scale=0.02):
        return scale * jax.random.normal(next(ks), shape, jnp.float32)

    def ones(shape):
        return jnp.ones(shape, jnp.float32)

    def zeros(shape):
        return jnp.zeros(shape, jnp.float32)

    def per_head_cols(w_full):          # [W, W] -> [H, W, DH]  (split output columns per head)
        return w_full.reshape(W, H, DH).transpose(1, 0, 2)

    ln1_g, ln1_b, ln2_g, ln2_b = [], [], [], []
    wq, wk, wv, bq, bk, bv = [], [], [], [], [], []
    wo, bo, w1, b1, w2, b2 = [], [], [], [], [], []
    for _ in range(LAYERS):
        ln1_g.append(ones((1, W))); ln1_b.append(zeros((1, W)))
        wq.append(per_head_cols(nrm((W, W)))); bq.append(zeros((H, 1, DH)))
        wk.append(per_head_cols(nrm((W, W)))); bk.append(zeros((H, 1, DH)))
        wv.append(per_head_cols(nrm((W, W)))); bv.append(zeros((H, 1, DH)))
        wo.append(nrm((W, W)).reshape(H, DH, W)); bo.append(zeros((1, W)))   # rows split per head
        ln2_g.append(ones((1, W))); ln2_b.append(zeros((1, W)))
        w1.append(nrm((W, MLP))); b1.append(zeros((1, MLP)))
        w2.append(nrm((MLP, W))); b2.append(zeros((1, W)))

    # fc_center (512->1) and fc_class (512->4) fused into one lane-dense [512, 128] weight.
    fc_center_w = nrm((EMBED, 1))
    fc_center_b = zeros((1,))
    fc_class_w = nrm((EMBED, 4))
    fc_class_b = zeros((4,))
    head_w = jnp.zeros((EMBED, HEAD_PAD), jnp.float32)
    head_w = head_w.at[:, 0:1].set(fc_center_w).at[:, 1:5].set(fc_class_w)
    head_b = jnp.zeros((1, HEAD_PAD), jnp.float32)
    head_b = head_b.at[0, 0].set(fc_center_b[0]).at[0, 1:5].set(fc_class_b)

    return {
        'conv_w': nrm((C_IN * PATCH * PATCH, W)).astype(bf16),   # Conv2d(3,W,k=P,s=P,bias=False)
        'class_emb': nrm((W,)),
        'pos_emb': nrm((T, W)),
        'ln_pre_g': ones((1, W)), 'ln_pre_b': zeros((1, W)),
        'ln1_g': jnp.stack(ln1_g), 'ln1_b': jnp.stack(ln1_b),
        'wq': jnp.stack(wq).astype(bf16), 'wk': jnp.stack(wk).astype(bf16),
        'wv': jnp.stack(wv).astype(bf16),
        'bq': jnp.stack(bq), 'bk': jnp.stack(bk), 'bv': jnp.stack(bv),
        'wo': jnp.stack(wo).astype(bf16), 'bo': jnp.stack(bo),
        'ln2_g': jnp.stack(ln2_g), 'ln2_b': jnp.stack(ln2_b),
        'w1': jnp.stack(w1).astype(bf16), 'b1': jnp.stack(b1),
        'w2': jnp.stack(w2).astype(bf16), 'b2': jnp.stack(b2),
        'ln_post_g': ones((1, W)), 'ln_post_b': zeros((1, W)),
        'proj': nrm((W, EMBED)).astype(bf16),
        'head_w': head_w.astype(bf16), 'head_b': head_b,
    }


# ---------------- forward (VADClipModel.forward) ----------------

def forward(waveform, p):
    # --- patchify NCHW -> [B*T_PAD, C*P*P]; row 0 and rows T..T_PAD-1 of every batch block are zero ---
    x = waveform.reshape(B, C_IN, GRID, PATCH, GRID, PATCH)
    x = x.transpose(0, 2, 4, 1, 3, 5).reshape(B, N_PATCH, C_IN * PATCH * PATCH)
    x = jnp.pad(x, ((0, 0), (1, T_PAD - 1 - N_PATCH), (0, 0)))          # cls slot + pad tokens
    patches = x.reshape(B * T_PAD, C_IN * PATCH * PATCH).astype(jnp.bfloat16)

    # --- cls-token + positional-embedding bias table (padded rows stay zero) ---
    cls_row = (p['class_emb'] + p['pos_emb'][0])[None, :]
    tok_bias = jnp.concatenate(
        [cls_row, p['pos_emb'][1:], jnp.zeros((T_PAD - T, W), jnp.float32)], axis=0)
    tok_bias = jnp.tile(tok_bias, (B, 1))                                # [B*T_PAD, W]

    args = (patches, p['conv_w'], tok_bias,
            p['ln_pre_g'], p['ln_pre_b'],
            p['ln1_g'], p['ln1_b'],
            p['wq'], p['wk'], p['wv'], p['bq'], p['bk'], p['bv'],
            p['wo'], p['bo'],
            p['ln2_g'], p['ln2_b'],
            p['w1'], p['b1'], p['w2'], p['b2'],
            p['ln_post_g'], p['ln_post_b'],
            p['proj'], p['head_w'], p['head_b'])

    # Single fused pallas_call, no grid: all inputs fully VMEM-resident, single-buffered.
    vmem = pl.BlockSpec(memory_space=pltpu.MemorySpace.VMEM)
    out = pl.pallas_call(
        _vad_clip_fused_kernel,
        out_shape=jax.ShapeDtypeStruct((B, HEAD_PAD), jnp.float32),
        in_specs=[vmem] * len(args),
        out_specs=vmem,
    )(*args)

    center_pred = out[:, 0:1]      # fc_center(image_features)   [B, 1]
    class_pred = out[:, 1:1 + 4]   # fc_class(image_features)    [B, 4]
    return center_pred, class_pred


if __name__ == "__main__":
    key = jax.random.PRNGKey(0)
    waveform = jax.random.normal(key, (B, C_IN, IMG, IMG), jnp.float32)
    params = init_params(jax.random.PRNGKey(42))

    fwd = jax.jit(lambda x: forward(x, params))
    center_pred, class_pred = fwd(waveform)
    jax.block_until_ready((center_pred, class_pred))

    assert center_pred.shape == (B, 1), center_pred.shape
    assert class_pred.shape == (B, 4), class_pred.shape
    assert bool(jnp.all(jnp.isfinite(center_pred))) and bool(jnp.all(jnp.isfinite(class_pred)))
    print("KERNEL_OK")
</pallas_src>

<mosaic_0001>
module attributes {stable_mosaic.version = 11 : i64} {
  func.func @_vad_clip_fused_kernel(%arg0: memref<48x192xbf16, #tpu.memory_space<vmem>>, %arg1: memref<192x64xbf16, #tpu.memory_space<vmem>>, %arg2: memref<48x64xf32, #tpu.memory_space<vmem>>, %arg3: memref<1x64xf32, #tpu.memory_space<vmem>>, %arg4: memref<1x64xf32, #tpu.memory_space<vmem>>, %arg5: memref<2x1x64xf32, #tpu.memory_space<vmem>>, %arg6: memref<2x1x64xf32, #tpu.memory_space<vmem>>, %arg7: memref<2x4x64x16xbf16, #tpu.memory_space<vmem>>, %arg8: memref<2x4x64x16xbf16, #tpu.memory_space<vmem>>, %arg9: memref<2x4x64x16xbf16, #tpu.memory_space<vmem>>, %arg10: memref<2x4x1x16xf32, #tpu.memory_space<vmem>>, %arg11: memref<2x4x1x16xf32, #tpu.memory_space<vmem>>, %arg12: memref<2x4x1x16xf32, #tpu.memory_space<vmem>>, %arg13: memref<2x4x16x64xbf16, #tpu.memory_space<vmem>>, %arg14: memref<2x1x64xf32, #tpu.memory_space<vmem>>, %arg15: memref<2x1x64xf32, #tpu.memory_space<vmem>>, %arg16: memref<2x1x64xf32, #tpu.memory_space<vmem>>, %arg17: memref<2x64x256xbf16, #tpu.memory_space<vmem>>, %arg18: memref<2x1x256xf32, #tpu.memory_space<vmem>>, %arg19: memref<2x256x64xbf16, #tpu.memory_space<vmem>>, %arg20: memref<2x1x64xf32, #tpu.memory_space<vmem>>, %arg21: memref<1x64xf32, #tpu.memory_space<vmem>>, %arg22: memref<1x64xf32, #tpu.memory_space<vmem>>, %arg23: memref<64x512xbf16, #tpu.memory_space<vmem>>, %arg24: memref<512x128xbf16, #tpu.memory_space<vmem>>, %arg25: memref<1x128xf32, #tpu.memory_space<vmem>>, %arg26: memref<2x128xf32, #tpu.memory_space<vmem>>) attributes {dimension_semantics = [], scalar_prefetch = 0 : i64, scratch_operands = 0 : i64, tpu.core_type = #tpu.core_type<tc>} {
    %c0 = arith.constant 0 : index
    %c0_0 = arith.constant 0 : index
    %0 = vector.load %arg0[%c0, %c0_0] : memref<48x192xbf16, #tpu.memory_space<vmem>>, vector<48x192xbf16>
    %c0_1 = arith.constant 0 : index
    %c0_2 = arith.constant 0 : index
    %1 = vector.load %arg1[%c0_1, %c0_2] : memref<192x64xbf16, #tpu.memory_space<vmem>>, vector<192x64xbf16>
    %cst = arith.constant dense<0.000000e+00> : vector<48x64xf32>
    %2 = tpu.matmul %0, %1, %cst {dimension_numbers = #tpu.dot_dimension_numbers<[1], [0], [0], [1], [0, 0, 1, 1], [], []>} : vector<48x192xbf16>, vector<192x64xbf16>, vector<48x64xf32> -> vector<48x64xf32>
    %c0_3 = arith.constant 0 : index
    %c0_4 = arith.constant 0 : index
    %3 = vector.load %arg2[%c0_3, %c0_4] : memref<48x64xf32, #tpu.memory_space<vmem>>, vector<48x64xf32>
    %4 = arith.addf %2, %3 : vector<48x64xf32>
    %c0_5 = arith.constant 0 : index
    %c0_6 = arith.constant 0 : index
    %5 = vector.load %arg3[%c0_5, %c0_6] : memref<1x64xf32, #tpu.memory_space<vmem>>, vector<1x64xf32>
    %c0_7 = arith.constant 0 : index
    %c0_8 = arith.constant 0 : index
    %6 = vector.load %arg4[%c0_7, %c0_8] : memref<1x64xf32, #tpu.memory_space<vmem>>, vector<1x64xf32>
    %cst_9 = arith.constant dense<0.000000e+00> : vector<48xf32>
    %7 = vector.multi_reduction <add>, %4, %cst_9 [1] : vector<48x64xf32> to vector<48xf32>
    %8 = vector.shape_cast %7 : vector<48xf32> to vector<48x1xf32>
    %cst_10 = arith.constant 6.400000e+01 : f32
    %9 = vector.broadcast %cst_10 : f32 to vector<48x1xf32>
    %10 = arith.divf %8, %9 : vector<48x1xf32>
    %11 = vector.broadcast %10 : vector<48x1xf32> to vector<48x64xf32>
    %12 = arith.subf %4, %11 : vector<48x64xf32>
    %13 = arith.mulf %12, %12 : vector<48x64xf32>
    %cst_11 = arith.constant dense<0.000000e+00> : vector<48xf32>
    %14 = vector.multi_reduction <add>, %13, %cst_11 [1] : vector<48x64xf32> to vector<48xf32>
    %15 = vector.shape_cast %14 : vector<48xf32> to vector<48x1xf32>
    %cst_12 = arith.constant 6.400000e+01 : f32
    %16 = vector.broadcast %cst_12 : f32 to vector<48x1xf32>
    %17 = arith.divf %15, %16 : vector<48x1xf32>
    %18 = vector.broadcast %10 : vector<48x1xf32> to vector<48x64xf32>
    %19 = arith.subf %4, %18 : vector<48x64xf32>
    %cst_13 = arith.constant 9.99999974E-6 : f32
    %20 = vector.broadcast %cst_13 : f32 to vector<48x1xf32>
    %21 = arith.addf %17, %20 : vector<48x1xf32>
    %22 = math.rsqrt %21 : vector<48x1xf32>
    %23 = vector.broadcast %22 : vector<48x1xf32> to vector<48x64xf32>
    %24 = arith.mulf %19, %23 : vector<48x64xf32>
    %25 = vector.broadcast %5 : vector<1x64xf32> to vector<48x64xf32>
    %26 = arith.mulf %24, %25 : vector<48x64xf32>
    %27 = vector.broadcast %6 : vector<1x64xf32> to vector<48x64xf32>
    %28 = arith.addf %26, %27 : vector<48x64xf32>
    %29 = tpu.iota {dimensions = array<i32: 1>} : vector<24x24xi32>
    %c17_i32 = arith.constant 17 : i32
    %30 = vector.broadcast %c17_i32 : i32 to vector<24x24xi32>
    %31 = arith.cmpi slt, %29, %30 : vector<24x24xi32>
    %cst_14 = arith.constant 0.000000e+00 : f32
    %cst_15 = arith.constant -1.000000e+30 : f32
    %32 = vector.broadcast %cst_14 : f32 to vector<24x24xf32>
    %33 = vector.broadcast %cst_15 : f32 to vector<24x24xf32>
    %34 = arith.select %31, %32, %33 : vector<24x24xi1>, vector<24x24xf32>
    %c0_16 = arith.constant 0 : index
    %c0_17 = arith.constant 0 : index
    %c0_18 = arith.constant 0 : index
    %35 = vector.load %arg5[%c0_16, %c0_17, %c0_18] : memref<2x1x64xf32, #tpu.memory_space<vmem>>, vector<1x1x64xf32>
    %36 = vector.shape_cast %35 : vector<1x1x64xf32> to vector<1x64xf32>
    %c0_19 = arith.constant 0 : index
    %c0_20 = arith.constant 0 : index
    %c0_21 = arith.constant 0 : index
    %37 = vector.load %arg6[%c0_19, %c0_20, %c0_21] : memref<2x1x64xf32, #tpu.memory_space<vmem>>, vector<1x1x64xf32>
    %38 = vector.shape_cast %37 : vector<1x1x64xf32> to vector<1x64xf32>
    %cst_22 = arith.constant dense<0.000000e+00> : vector<48xf32>
    %39 = vector.multi_reduction <add>, %28, %cst_22 [1] : vector<48x64xf32> to vector<48xf32>
    %40 = vector.shape_cast %39 : vector<48xf32> to vector<48x1xf32>
    %cst_23 = arith.constant 6.400000e+01 : f32
    %41 = vector.broadcast %cst_23 : f32 to vector<48x1xf32>
    %42 = arith.divf %40, %41 : vector<48x1xf32>
    %43 = vector.broadcast %42 : vector<48x1xf32> to vector<48x64xf32>
    %44 = arith.subf %28, %43 : vector<48x64xf32>
    %45 = arith.mulf %44, %44 : vector<48x64xf32>
    %cst_24 = arith.constant dense<0.000000e+00> : vector<48xf32>
    %46 = vector.multi_reduction <add>, %45, %cst_24 [1] : vector<48x64xf32> to vector<48xf32>
    %47 = vector.shape_cast %46 : vector<48xf32> to vector<48x1xf32>
    %cst_25 = arith.constant 6.400000e+01 : f32
    %48 = vector.broadcast %cst_25 : f32 to vector<48x1xf32>
    %49 = arith.divf %47, %48 : vector<48x1xf32>
    %50 = vector.broadcast %42 : vector<48x1xf32> to vector<48x64xf32>
    %51 = arith.subf %28, %50 : vector<48x64xf32>
    %cst_26 = arith.constant 9.99999974E-6 : f32
    %52 = vector.broadcast %cst_26 : f32 to vector<48x1xf32>
    %53 = arith.addf %49, %52 : vector<48x1xf32>
    %54 = math.rsqrt %53 : vector<48x1xf32>
    %55 = vector.broadcast %54 : vector<48x1xf32> to vector<48x64xf32>
    %56 = arith.mulf %51, %55 : vector<48x64xf32>
    %57 = vector.broadcast %36 : vector<1x64xf32> to vector<48x64xf32>
    %58 = arith.mulf %56, %57 : vector<48x64xf32>
    %59 = vector.broadcast %38 : vector<1x64xf32> to vector<48x64xf32>
    %60 = arith.addf %58, %59 : vector<48x64xf32>
    %61 = arith.truncf %60 : vector<48x64xf32> to vector<48x64xbf16>
    %cst_27 = arith.constant 0.000000e+00 : f32
    %62 = vector.broadcast %cst_27 : f32 to vector<48x64xf32>
    %c0_28 = arith.constant 0 : index
    %c0_29 = arith.constant 0 : index
    %c0_30 = arith.constant 0 : index
    %c0_31 = arith.constant 0 : index
    %63 = vector.load %arg7[%c0_28, %c0_29, %c0_30, %c0_31] : memref<2x4x64x16xbf16, #tpu.memory_space<vmem>>, vector<1x1x64x16xbf16>
    %64 = vector.shape_cast %63 : vector<1x1x64x16xbf16> to vector<64x16xbf16>
    %cst_32 = arith.constant dense<0.000000e+00> : vector<48x16xf32>
    %65 = tpu.matmul %61, %64, %cst_32 {dimension_numbers = #tpu.dot_dimension_numbers<[1], [0], [0], [1], [0, 0, 1, 1], [], []>} : vector<48x64xbf16>, vector<64x16xbf16>, vector<48x16xf32> -> vector<48x16xf32>
    %c0_33 = arith.constant 0 : index
    %c0_34 = arith.constant 0 : index
    %c0_35 = arith.constant 0 : index
    %c0_36 = arith.constant 0 : index
    %66 = vector.load %arg10[%c0_33, %c0_34, %c0_35, %c0_36] : memref<2x4x1x16xf32, #tpu.memory_space<vmem>>, vector<1x1x1x16xf32>
    %67 = vector.shape_cast %66 : vector<1x1x1x16xf32> to vector<1x16xf32>
    %68 = vector.broadcast %67 : vector<1x16xf32> to vector<48x16xf32>
    %69 = arith.addf %65, %68 : vector<48x16xf32>
    %c0_37 = arith.constant 0 : index
    %c0_38 = arith.constant 0 : index
    %c0_39 = arith.constant 0 : index
    %c0_40 = arith.constant 0 : index
    %70 = vector.load %arg8[%c0_37, %c0_38, %c0_39, %c0_40] : memref<2x4x64x16xbf16, #tpu.memory_space<vmem>>, vector<1x1x64x16xbf16>
    %71 = vector.shape_cast %70 : vector<1x1x64x16xbf16> to vector<64x16xbf16>
    %cst_41 = arith.constant dense<0.000000e+00> : vector<48x16xf32>
    %72 = tpu.matmul %61, %71, %cst_41 {dimension_numbers = #tpu.dot_dimension_numbers<[1], [0], [0], [1], [0, 0, 1, 1], [], []>} : vector<48x64xbf16>, vector<64x16xbf16>, vector<48x16xf32> -> vector<48x16xf32>
    %c0_42 = arith.constant 0 : index
    %c0_43 = arith.constant 0 : index
    %c0_44 = arith.constant 0 : index
    %c0_45 = arith.constant 0 : index
    %73 = vector.load %arg11[%c0_42, %c0_43, %c0_44, %c0_45] : memref<2x4x1x16xf32, #tpu.memory_space<vmem>>, vector<1x1x1x16xf32>
    %74 = vector.shape_cast %73 : vector<1x1x1x16xf32> to vector<1x16xf32>
    %75 = vector.broadcast %74 : vector<1x16xf32> to vector<48x16xf32>
    %76 = arith.addf %72, %75 : vector<48x16xf32>
    %c0_46 = arith.constant 0 : index
    %c0_47 = arith.constant 0 : index
    %c0_48 = arith.constant 0 : index
    %c0_49 = arith.constant 0 : index
    %77 = vector.load %arg9[%c0_46, %c0_47, %c0_48, %c0_49] : memref<2x4x64x16xbf16, #tpu.memory_space<vmem>>, vector<1x1x64x16xbf16>
    %78 = vector.shape_cast %77 : vector<1x1x64x16xbf16> to vector<64x16xbf16>
    %cst_50 = arith.constant dense<0.000000e+00> : vector<48x16xf32>
    %79 = tpu.matmul %61, %78, %cst_50 {dimension_numbers = #tpu.dot_dimension_numbers<[1], [0], [0], [1], [0, 0, 1, 1], [], []>} : vector<48x64xbf16>, vector<64x16xbf16>, vector<48x16xf32> -> vector<48x16xf32>
    %c0_51 = arith.constant 0 : index
    %c0_52 = arith.constant 0 : index
    %c0_53 = arith.constant 0 : index
    %c0_54 = arith.constant 0 : index
    %80 = vector.load %arg12[%c0_51, %c0_52, %c0_53, %c0_54] : memref<2x4x1x16xf32, #tpu.memory_space<vmem>>, vector<1x1x1x16xf32>
    %81 = vector.shape_cast %80 : vector<1x1x1x16xf32> to vector<1x16xf32>
    %82 = vector.broadcast %81 : vector<1x16xf32> to vector<48x16xf32>
    %83 = arith.addf %79, %82 : vector<48x16xf32>
    %84 = vector.shape_cast %69 : vector<48x16xf32> to vector<2x24x16xf32>
    %85 = vector.shape_cast %76 : vector<48x16xf32> to vector<2x24x16xf32>
    %86 = vector.shape_cast %83 : vector<48x16xf32> to vector<2x24x16xf32>
    %87 = arith.truncf %84 : vector<2x24x16xf32> to vector<2x24x16xbf16>
    %88 = arith.truncf %85 : vector<2x24x16xf32> to vector<2x24x16xbf16>
    "tpu.trace_start"() <{level = 10 : i32, message = "bqd,bkd->bqk"}> : () -> ()
    %cst_55 = arith.constant dense<0.000000e+00> : vector<2x24x24xf32>
    %89 = tpu.matmul %87, %88, %cst_55 {dimension_numbers = #tpu.dot_dimension_numbers<[2], [2], [1], [1], [0, 0, 0, 1, 1, 1], [0], [0]>} : vector<2x24x16xbf16>, vector<2x24x16xbf16>, vector<2x24x24xf32> -> vector<2x24x24xf32>
    "tpu.trace_stop"() : () -> ()
    %cst_56 = arith.constant 2.500000e-01 : f32
    %90 = vector.broadcast %cst_56 : f32 to vector<2x24x24xf32>
    %91 = arith.mulf %89, %90 : vector<2x24x24xf32>
    %92 = vector.shape_cast %34 : vector<24x24xf32> to vector<1x24x24xf32>
    %93 = vector.broadcast %92 : vector<1x24x24xf32> to vector<2x24x24xf32>
    %94 = arith.addf %91, %93 : vector<2x24x24xf32>
    %cst_57 = arith.constant dense<0xFF800000> : vector<2x24xf32>
    %95 = vector.multi_reduction <maximumf>, %94, %cst_57 [2] : vector<2x24x24xf32> to vector<2x24xf32>
    %96 = vector.shape_cast %95 : vector<2x24xf32> to vector<2x24x1xf32>
    %97 = vector.broadcast %96 : vector<2x24x1xf32> to vector<2x24x24xf32>
    %98 = arith.subf %94, %97 : vector<2x24x24xf32>
    %99 = math.exp %98 : vector<2x24x24xf32>
    %cst_58 = arith.constant dense<0.000000e+00> : vector<2x24xf32>
    %100 = vector.multi_reduction <add>, %99, %cst_58 [2] : vector<2x24x24xf32> to vector<2x24xf32>
    %101 = vector.shape_cast %100 : vector<2x24xf32> to vector<2x24x1xf32>
    %102 = tpu.reciprocal %101 {approx = true} : vector<2x24x1xf32> -> vector<2x24x1xf32>
    %103 = vector.broadcast %102 : vector<2x24x1xf32> to vector<2x24x24xf32>
    %104 = arith.mulf %99, %103 : vector<2x24x24xf32>
    %105 = arith.truncf %104 : vector<2x24x24xf32> to vector<2x24x24xbf16>
    %106 = arith.truncf %86 : vector<2x24x16xf32> to vector<2x24x16xbf16>
    "tpu.trace_start"() <{level = 10 : i32, message = "bqk,bkd->bqd"}> : () -> ()
    %cst_59 = arith.constant dense<0.000000e+00> : vector<2x24x16xf32>
    %107 = tpu.matmul %105, %106, %cst_59 {dimension_numbers = #tpu.dot_dimension_numbers<[2], [1], [1], [2], [0, 0, 0, 1, 1, 2], [0], [0]>} : vector<2x24x24xbf16>, vector<2x24x16xbf16>, vector<2x24x16xf32> -> vector<2x24x16xf32>
    "tpu.trace_stop"() : () -> ()
    %108 = vector.shape_cast %107 : vector<2x24x16xf32> to vector<48x16xf32>
    %109 = arith.truncf %108 : vector<48x16xf32> to vector<48x16xbf16>
    %c0_60 = arith.constant 0 : index
    %c0_61 = arith.constant 0 : index
    %c0_62 = arith.constant 0 : index
    %c0_63 = arith.constant 0 : index
    %110 = vector.load %arg13[%c0_60, %c0_61, %c0_62, %c0_63] : memref<2x4x16x64xbf16, #tpu.memory_space<vmem>>, vector<1x1x16x64xbf16>
    %111 = vector.shape_cast %110 : vector<1x1x16x64xbf16> to vector<16x64xbf16>
    %cst_64 = arith.constant dense<0.000000e+00> : vector<48x64xf32>
    %112 = tpu.matmul %109, %111, %cst_64 {dimension_numbers = #tpu.dot_dimension_numbers<[1], [0], [0], [1], [0, 0, 1, 1], [], []>} : vector<48x16xbf16>, vector<16x64xbf16>, vector<48x64xf32> -> vector<48x64xf32>
    %113 = arith.addf %62, %112 : vector<48x64xf32>
    %c0_65 = arith.constant 0 : index
    %c1 = arith.constant 1 : index
    %c0_66 = arith.constant 0 : index
    %c0_67 = arith.constant 0 : index
    %114 = vector.load %arg7[%c0_65, %c1, %c0_66, %c0_67] : memref<2x4x64x16xbf16, #tpu.memory_space<vmem>>, vector<1x1x64x16xbf16>
    %115 = vector.shape_cast %114 : vector<1x1x64x16xbf16> to vector<64x16xbf16>
    %cst_68 = arith.constant dense<0.000000e+00> : vector<48x16xf32>
    %116 = tpu.matmul %61, %115, %cst_68 {dimension_numbers = #tpu.dot_dimension_numbers<[1], [0], [0], [1], [0, 0, 1, 1], [], []>} : vector<48x64xbf16>, vector<64x16xbf16>, vector<48x16xf32> -> vector<48x16xf32>
    %c0_69 = arith.constant 0 : index
    %c1_70 = arith.constant 1 : index
    %c0_71 = arith.constant 0 : index
    %c0_72 = arith.constant 0 : index
    %117 = vector.load %arg10[%c0_69, %c1_70, %c0_71, %c0_72] : memref<2x4x1x16xf32, #tpu.memory_space<vmem>>, vector<1x1x1x16xf32>
    %118 = vector.shape_cast %117 : vector<1x1x1x16xf32> to vector<1x16xf32>
    %119 = vector.broadcast %118 : vector<1x16xf32> to vector<48x16xf32>
    %120 = arith.addf %116, %119 : vector<48x16xf32>
    %c0_73 = arith.constant 0 : index
    %c1_74 = arith.constant 1 : index
    %c0_75 = arith.constant 0 : index
    %c0_76 = arith.constant 0 : index
    %121 = vector.load %arg8[%c0_73, %c1_74, %c0_75, %c0_76] : memref<2x4x64x16xbf16, #tpu.memory_space<vmem>>, vector<1x1x64x16xbf16>
    %122 = vector.shape_cast %121 : vector<1x1x64x16xbf16> to vector<64x16xbf16>
    %cst_77 = arith.constant dense<0.000000e+00> : vector<48x16xf32>
    %123 = tpu.matmul %61, %122, %cst_77 {dimension_numbers = #tpu.dot_dimension_numbers<[1], [0], [0], [1], [0, 0, 1, 1], [], []>} : vector<48x64xbf16>, vector<64x16xbf16>, vector<48x16xf32> -> vector<48x16xf32>
    %c0_78 = arith.constant 0 : index
    %c1_79 = arith.constant 1 : index
    %c0_80 = arith.constant 0 : index
    %c0_81 = arith.constant 0 : index
    %124 = vector.load %arg11[%c0_78, %c1_79, %c0_80, %c0_81] : memref<2x4x1x16xf32, #tpu.memory_space<vmem>>, vector<1x1x1x16xf32>
    %125 = vector.shape_cast %124 : vector<1x1x1x16xf32> to vector<1x16xf32>
    %126 = vector.broadcast %125 : vector<1x16xf32> to vector<48x16xf32>
    %127 = arith.addf %123, %126 : vector<48x16xf32>
    %c0_82 = arith.constant 0 : index
    %c1_83 = arith.constant 1 : index
    %c0_84 = arith.constant 0 : index
    %c0_85 = arith.constant 0 : index
    %128 = vector.load %arg9[%c0_82, %c1_83, %c0_84, %c0_85] : memref<2x4x64x16xbf16, #tpu.memory_space<vmem>>, vector<1x1x64x16xbf16>
    %129 = vector.shape_cast %128 : vector<1x1x64x16xbf16> to vector<64x16xbf16>
    %cst_86 = arith.constant dense<0.000000e+00> : vector<48x16xf32>
    %130 = tpu.matmul %61, %129, %cst_86 {dimension_numbers = #tpu.dot_dimension_numbers<[1], [0], [0], [1], [0, 0, 1, 1], [], []>} : vector<48x64xbf16>, vector<64x16xbf16>, vector<48x16xf32> -> vector<48x16xf32>
    %c0_87 = arith.constant 0 : index
    %c1_88 = arith.constant 1 : index
    %c0_89 = arith.constant 0 : index
    %c0_90 = arith.constant 0 : index
    %131 = vector.load %arg12[%c0_87, %c1_88, %c0_89, %c0_90] : memref<2x4x1x16xf32, #tpu.memory_space<vmem>>, vector<1x1x1x16xf32>
    %132 = vector.shape_cast %131 : vector<1x1x1x16xf32> to vector<1x16xf32>
    %133 = vector.broadcast %132 : vector<1x16xf32> to vector<48x16xf32>
    %134 = arith.addf %130, %133 : vector<48x16xf32>
    %135 = vector.shape_cast %120 : vector<48x16xf32> to vector<2x24x16xf32>
    %136 = vector.shape_cast %127 : vector<48x16xf32> to vector<2x24x16xf32>
    %137 = vector.shape_cast %134 : vector<48x16xf32> to vector<2x24x16xf32>
    %138 = arith.truncf %135 : vector<2x24x16xf32> to vector<2x24x16xbf16>
    %139 = arith.truncf %136 : vector<2x24x16xf32> to vector<2x24x16xbf16>
    "tpu.trace_start"() <{level = 10 : i32, message = "bqd,bkd->bqk"}> : () -> ()
    %cst_91 = arith.constant dense<0.000000e+00> : vector<2x24x24xf32>
    %140 = tpu.matmul %138, %139, %cst_91 {dimension_numbers = #tpu.dot_dimension_numbers<[2], [2], [1], [1], [0, 0, 0, 1, 1, 1], [0], [0]>} : vector<2x24x16xbf16>, vector<2x24x16xbf16>, vector<2x24x24xf32> -> vector<2x24x24xf32>
    "tpu.trace_stop"() : () -> ()
    %cst_92 = arith.constant 2.500000e-01 : f32
    %141 = vector.broadcast %cst_92 : f32 to vector<2x24x24xf32>
    %142 = arith.mulf %140, %141 : vector<2x24x24xf32>
    %143 = vector.shape_cast %34 : vector<24x24xf32> to vector<1x24x24xf32>
    %144 = vector.broadcast %143 : vector<1x24x24xf32> to vector<2x24x24xf32>
    %145 = arith.addf %142, %144 : vector<2x24x24xf32>
    %cst_93 = arith.constant dense<0xFF800000> : vector<2x24xf32>
    %146 = vector.multi_reduction <maximumf>, %145, %cst_93 [2] : vector<2x24x24xf32> to vector<2x24xf32>
    %147 = vector.shape_cast %146 : vector<2x24xf32> to vector<2x24x1xf32>
    %148 = vector.broadcast %147 : vector<2x24x1xf32> to vector<2x24x24xf32>
    %149 = arith.subf %145, %148 : vector<2x24x24xf32>
    %150 = math.exp %149 : vector<2x24x24xf32>
    %cst_94 = arith.constant dense<0.000000e+00> : vector<2x24xf32>
    %151 = vector.multi_reduction <add>, %150, %cst_94 [2] : vector<2x24x24xf32> to vector<2x24xf32>
    %152 = vector.shape_cast %151 : vector<2x24xf32> to vector<2x24x1xf32>
    %153 = tpu.reciprocal %152 {approx = true} : vector<2x24x1xf32> -> vector<2x24x1xf32>
    %154 = vector.broadcast %153 : vector<2x24x1xf32> to vector<2x24x24xf32>
    %155 = arith.mulf %150, %154 : vector<2x24x24xf32>
    %156 = arith.truncf %155 : vector<2x24x24xf32> to vector<2x24x24xbf16>
    %157 = arith.truncf %137 : vector<2x24x16xf32> to vector<2x24x16xbf16>
    "tpu.trace_start"() <{level = 10 : i32, message = "bqk,bkd->bqd"}> : () -> ()
    %cst_95 = arith.constant dense<0.000000e+00> : vector<2x24x16xf32>
    %158 = tpu.matmul %156, %157, %cst_95 {dimension_numbers = #tpu.dot_dimension_numbers<[2], [1], [1], [2], [0, 0, 0, 1, 1, 2], [0], [0]>} : vector<2x24x24xbf16>, vector<2x24x16xbf16>, vector<2x24x16xf32> -> vector<2x24x16xf32>
    "tpu.trace_stop"() : () -> ()
    %159 = vector.shape_cast %158 : vector<2x24x16xf32> to vector<48x16xf32>
    %160 = arith.truncf %159 : vector<48x16xf32> to vector<48x16xbf16>
    %c0_96 = arith.constant 0 : index
    %c1_97 = arith.constant 1 : index
    %c0_98 = arith.constant 0 : index
    %c0_99 = arith.constant 0 : index
    %161 = vector.load %arg13[%c0_96, %c1_97, %c0_98, %c0_99] : memref<2x4x16x64xbf16, #tpu.memory_space<vmem>>, vector<1x1x16x64xbf16>
    %162 = vector.shape_cast %161 : vector<1x1x16x64xbf16> to vector<16x64xbf16>
    %cst_100 = arith.constant dense<0.000000e+00> : vector<48x64xf32>
    %163 = tpu.matmul %160, %162, %cst_100 {dimension_numbers = #tpu.dot_dimension_numbers<[1], [0], [0], [1], [0, 0, 1, 1], [], []>} : vector<48x16xbf16>, vector<16x64xbf16>, vector<48x64xf32> -> vector<48x64xf32>
    %164 = arith.addf %113, %163 : vector<48x64xf32>
    %c0_101 = arith.constant 0 : index
    %c2 = arith.constant 2 : index
    %c0_102 = arith.constant 0 : index
    %c0_103 = arith.constant 0 : index
    %165 = vector.load %arg7[%c0_101, %c2, %c0_102, %c0_103] : memref<2x4x64x16xbf16, #tpu.memory_space<vmem>>, vector<1x1x64x16xbf16>
    %166 = vector.shape_cast %165 : vector<1x1x64x16xbf16> to vector<64x16xbf16>
    %cst_104 = arith.constant dense<0.000000e+00> : vector<48x16xf32>
    %167 = tpu.matmul %61, %166, %cst_104 {dimension_numbers = #tpu.dot_dimension_numbers<[1], [0], [0], [1], [0, 0, 1, 1], [], []>} : vector<48x64xbf16>, vector<64x16xbf16>, vector<48x16xf32> -> vector<48x16xf32>
    %c0_105 = arith.constant 0 : index
    %c2_106 = arith.constant 2 : index
    %c0_107 = arith.constant 0 : index
    %c0_108 = arith.constant 0 : index
    %168 = vector.load %arg10[%c0_105, %c2_106, %c0_107, %c0_108] : memref<2x4x1x16xf32, #tpu.memory_space<vmem>>, vector<1x1x1x16xf32>
    %169 = vector.shape_cast %168 : vector<1x1x1x16xf32> to vector<1x16xf32>
    %170 = vector.broadcast %169 : vector<1x16xf32> to vector<48x16xf32>
    %171 = arith.addf %167, %170 : vector<48x16xf32>
    %c0_109 = arith.constant 0 : index
    %c2_110 = arith.constant 2 : index
    %c0_111 = arith.constant 0 : index
    %c0_112 = arith.constant 0 : index
    %172 = vector.load %arg8[%c0_109, %c2_110, %c0_111, %c0_112] : memref<2x4x64x16xbf16, #tpu.memory_space<vmem>>, vector<1x1x64x16xbf16>
    %173 = vector.shape_cast %172 : vector<1x1x64x16xbf16> to vector<64x16xbf16>
    %cst_113 = arith.constant dense<0.000000e+00> : vector<48x16xf32>
    %174 = tpu.matmul %61, %173, %cst_113 {dimension_numbers = #tpu.dot_dimension_numbers<[1], [0], [0], [1], [0, 0, 1, 1], [], []>} : vector<48x64xbf16>, vector<64x16xbf16>, vector<48x16xf32> -> vector<48x16xf32>
    %c0_114 = arith.constant 0 : index
    %c2_115 = arith.constant 2 : index
    %c0_116 = arith.constant 0 : index
    %c0_117 = arith.constant 0 : index
    %175 = vector.load %arg11[%c0_114, %c2_115, %c0_116, %c0_117] : memref<2x4x1x16xf32, #tpu.memory_space<vmem>>, vector<1x1x1x16xf32>
    %176 = vector.shape_cast %175 : vector<1x1x1x16xf32> to vector<1x16xf32>
    %177 = vector.broadcast %176 : vector<1x16xf32> to vector<48x16xf32>
    %178 = arith.addf %174, %177 : vector<48x16xf32>
    %c0_118 = arith.constant 0 : index
    %c2_119 = arith.constant 2 : index
    %c0_120 = arith.constant 0 : index
    %c0_121 = arith.constant 0 : index
    %179 = vector.load %arg9[%c0_118, %c2_119, %c0_120, %c0_121] : memref<2x4x64x16xbf16, #tpu.memory_space<vmem>>, vector<1x1x64x16xbf16>
    %180 = vector.shape_cast %179 : vector<1x1x64x16xbf16> to vector<64x16xbf16>
    %cst_122 = arith.constant dense<0.000000e+00> : vector<48x16xf32>
    %181 = tpu.matmul %61, %180, %cst_122 {dimension_numbers = #tpu.dot_dimension_numbers<[1], [0], [0], [1], [0, 0, 1, 1], [], []>} : vector<48x64xbf16>, vector<64x16xbf16>, vector<48x16xf32> -> vector<48x16xf32>
    %c0_123 = arith.constant 0 : index
    %c2_124 = arith.constant 2 : index
    %c0_125 = arith.constant 0 : index
    %c0_126 = arith.constant 0 : index
    %182 = vector.load %arg12[%c0_123, %c2_124, %c0_125, %c0_126] : memref<2x4x1x16xf32, #tpu.memory_space<vmem>>, vector<1x1x1x16xf32>
    %183 = vector.shape_cast %182 : vector<1x1x1x16xf32> to vector<1x16xf32>
    %184 = vector.broadcast %183 : vector<1x16xf32> to vector<48x16xf32>
    %185 = arith.addf %181, %184 : vector<48x16xf32>
    %186 = vector.shape_cast %171 : vector<48x16xf32> to vector<2x24x16xf32>
    %187 = vector.shape_cast %178 : vector<48x16xf32> to vector<2x24x16xf32>
    %188 = vector.shape_cast %185 : vector<48x16xf32> to vector<2x24x16xf32>
    %189 = arith.truncf %186 : vector<2x24x16xf32> to vector<2x24x16xbf16>
    %190 = arith.truncf %187 : vector<2x24x16xf32> to vector<2x24x16xbf16>
    "tpu.trace_start"() <{level = 10 : i32, message = "bqd,bkd->bqk"}> : () -> ()
    %cst_127 = arith.constant dense<0.000000e+00> : vector<2x24x24xf32>
    %191 = tpu.matmul %189, %190, %cst_127 {dimension_numbers = #tpu.dot_dimension_numbers<[2], [2], [1], [1], [0, 0, 0, 1, 1, 1], [0], [0]>} : vector<2x24x16xbf16>, vector<2x24x16xbf16>, vector<2x24x24xf32> -> vector<2x24x24xf32>
    "tpu.trace_stop"() : () -> ()
    %cst_128 = arith.constant 2.500000e-01 : f32
    %192 = vector.broadcast %cst_128 : f32 to vector<2x24x24xf32>
    %193 = arith.mulf %191, %192 : vector<2x24x24xf32>
    %194 = vector.shape_cast %34 : vector<24x24xf32> to vector<1x24x24xf32>
    %195 = vector.broadcast %194 : vector<1x24x24xf32> to vector<2x24x24xf32>
    %196 = arith.addf %193, %195 : vector<2x24x24xf32>
    %cst_129 = arith.constant dense<0xFF800000> : vector<2x24xf32>
    %197 = vector.multi_reduction <maximumf>, %196, %cst_129 [2] : vector<2x24x24xf32> to vector<2x24xf32>
    %198 = vector.shape_cast %197 : vector<2x24xf32> to vector<2x24x1xf32>
    %199 = vector.broadcast %198 : vector<2x24x1xf32> to vector<2x24x24xf32>
    %200 = arith.subf %196, %199 : vector<2x24x24xf32>
    %201 = math.exp %200 : vector<2x24x24xf32>
    %cst_130 = arith.constant dense<0.000000e+00> : vector<2x24xf32>
    %202 = vector.multi_reduction <add>, %201, %cst_130 [2] : vector<2x24x24xf32> to vector<2x24xf32>
    %203 = vector.shape_cast %202 : vector<2x24xf32> to vector<2x24x1xf32>
    %204 = tpu.reciprocal %203 {approx = true} : vector<2x24x1xf32> -> vector<2x24x1xf32>
    %205 = vector.broadcast %204 : vector<2x24x1xf32> to vector<2x24x24xf32>
    %206 = arith.mulf %201, %205 : vector<2x24x24xf32>
    %207 = arith.truncf %206 : vector<2x24x24xf32> to vector<2x24x24xbf16>
    %208 = arith.truncf %188 : vector<2x24x16xf32> to vector<2x24x16xbf16>
    "tpu.trace_start"() <{level = 10 : i32, message = "bqk,bkd->bqd"}> : () -> ()
    %cst_131 = arith.constant dense<0.000000e+00> : vector<2x24x16xf32>
    %209 = tpu.matmul %207, %208, %cst_131 {dimension_numbers = #tpu.dot_dimension_numbers<[2], [1], [1], [2], [0, 0, 0, 1, 1, 2], [0], [0]>} : vector<2x24x24xbf16>, vector<2x24x16xbf16>, vector<2x24x16xf32> -> vector<2x24x16xf32>
    "tpu.trace_stop"() : () -> ()
    %210 = vector.shape_cast %209 : vector<2x24x16xf32> to vector<48x16xf32>
    %211 = arith.truncf %210 : vector<48x16xf32> to vector<48x16xbf16>
    %c0_132 = arith.constant 0 : index
    %c2_133 = arith.constant 2 : index
    %c0_134 = arith.constant 0 : index
    %c0_135 = arith.constant 0 : index
    %212 = vector.load %arg13[%c0_132, %c2_133, %c0_134, %c0_135] : memref<2x4x16x64xbf16, #tpu.memory_space<vmem>>, vector<1x1x16x64xbf16>
    %213 = vector.shape_cast %212 : vector<1x1x16x64xbf16> to vector<16x64xbf16>
    %cst_136 = arith.constant dense<0.000000e+00> : vector<48x64xf32>
    %214 = tpu.matmul %211, %213, %cst_136 {dimension_numbers = #tpu.dot_dimension_numbers<[1], [0], [0], [1], [0, 0, 1, 1], [], []>} : vector<48x16xbf16>, vector<16x64xbf16>, vector<48x64xf32> -> vector<48x64xf32>
    %215 = arith.addf %164, %214 : vector<48x64xf32>
    %c0_137 = arith.constant 0 : index
    %c3 = arith.constant 3 : index
    %c0_138 = arith.constant 0 : index
    %c0_139 = arith.constant 0 : index
    %216 = vector.load %arg7[%c0_137, %c3, %c0_138, %c0_139] : memref<2x4x64x16xbf16, #tpu.memory_space<vmem>>, vector<1x1x64x16xbf16>
    %217 = vector.shape_cast %216 : vector<1x1x64x16xbf16> to vector<64x16xbf16>
    %cst_140 = arith.constant dense<0.000000e+00> : vector<48x16xf32>
    %218 = tpu.matmul %61, %217, %cst_140 {dimension_numbers = #tpu.dot_dimension_numbers<[1], [0], [0], [1], [0, 0, 1, 1], [], []>} : vector<48x64xbf16>, vector<64x16xbf16>, vector<48x16xf32> -> vector<48x16xf32>
    %c0_141 = arith.constant 0 : index
    %c3_142 = arith.constant 3 : index
    %c0_143 = arith.constant 0 : index
    %c0_144 = arith.constant 0 : index
    %219 = vector.load %arg10[%c0_141, %c3_142, %c0_143, %c0_144] : memref<2x4x1x16xf32, #tpu.memory_space<vmem>>, vector<1x1x1x16xf32>
    %220 = vector.shape_cast %219 : vector<1x1x1x16xf32> to vector<1x16xf32>
    %221 = vector.broadcast %220 : vector<1x16xf32> to vector<48x16xf32>
    %222 = arith.addf %218, %221 : vector<48x16xf32>
    %c0_145 = arith.constant 0 : index
    %c3_146 = arith.constant 3 : index
    %c0_147 = arith.constant 0 : index
    %c0_148 = arith.constant 0 : index
    %223 = vector.load %arg8[%c0_145, %c3_146, %c0_147, %c0_148] : memref<2x4x64x16xbf16, #tpu.memory_space<vmem>>, vector<1x1x64x16xbf16>
    %224 = vector.shape_cast %223 : vector<1x1x64x16xbf16> to vector<64x16xbf16>
    %cst_149 = arith.constant dense<0.000000e+00> : vector<48x16xf32>
    %225 = tpu.matmul %61, %224, %cst_149 {dimension_numbers = #tpu.dot_dimension_numbers<[1], [0], [0], [1], [0, 0, 1, 1], [], []>} : vector<48x64xbf16>, vector<64x16xbf16>, vector<48x16xf32> -> vector<48x16xf32>
    %c0_150 = arith.constant 0 : index
    %c3_151 = arith.constant 3 : index
    %c0_152 = arith.constant 0 : index
    %c0_153 = arith.constant 0 : index
    %226 = vector.load %arg11[%c0_150, %c3_151, %c0_152, %c0_153] : memref<2x4x1x16xf32, #tpu.memory_space<vmem>>, vector<1x1x1x16xf32>
    %227 = vector.shape_cast %226 : vector<1x1x1x16xf32> to vector<1x16xf32>
    %228 = vector.broadcast %227 : vector<1x16xf32> to vector<48x16xf32>
    %229 = arith.addf %225, %228 : vector<48x16xf32>
    %c0_154 = arith.constant 0 : index
    %c3_155 = arith.constant 3 : index
    %c0_156 = arith.constant 0 : index
    %c0_157 = arith.constant 0 : index
    %230 = vector.load %arg9[%c0_154, %c3_155, %c0_156, %c0_157] : memref<2x4x64x16xbf16, #tpu.memory_space<vmem>>, vector<1x1x64x16xbf16>
    %231 = vector.shape_cast %230 : vector<1x1x64x16xbf16> to vector<64x16xbf16>
    %cst_158 = arith.constant dense<0.000000e+00> : vector<48x16xf32>
    %232 = tpu.matmul %61, %231, %cst_158 {dimension_numbers = #tpu.dot_dimension_numbers<[1], [0], [0], [1], [0, 0, 1, 1], [], []>} : vector<48x64xbf16>, vector<64x16xbf16>, vector<48x16xf32> -> vector<48x16xf32>
    %c0_159 = arith.constant 0 : index
    %c3_160 = arith.constant 3 : index
    %c0_161 = arith.constant 0 : index
    %c0_162 = arith.constant 0 : index
    %233 = vector.load %arg12[%c0_159, %c3_160, %c0_161, %c0_162] : memref<2x4x1x16xf32, #tpu.memory_space<vmem>>, vector<1x1x1x16xf32>
    %234 = vector.shape_cast %233 : vector<1x1x1x16xf32> to vector<1x16xf32>
    %235 = vector.broadcast %234 : vector<1x16xf32> to vector<48x16xf32>
    %236 = arith.addf %232, %235 : vector<48x16xf32>
    %237 = vector.shape_cast %222 : vector<48x16xf32> to vector<2x24x16xf32>
    %238 = vector.shape_cast %229 : vector<48x16xf32> to vector<2x24x16xf32>
    %239 = vector.shape_cast %236 : vector<48x16xf32> to vector<2x24x16xf32>
    %240 = arith.truncf %237 : vector<2x24x16xf32> to vector<2x24x16xbf16>
    %241 = arith.truncf %238 : vector<2x24x16xf32> to vector<2x24x16xbf16>
    "tpu.trace_start"() <{level = 10 : i32, message = "bqd,bkd->bqk"}> : () -> ()
    %cst_163 = arith.constant dense<0.000000e+00> : vector<2x24x24xf32>
    %242 = tpu.matmul %240, %241, %cst_163 {dimension_numbers = #tpu.dot_dimension_numbers<[2], [2], [1], [1], [0, 0, 0, 1, 1, 1], [0], [0]>} : vector<2x24x16xbf16>, vector<2x24x16xbf16>, vector<2x24x24xf32> -> vector<2x24x24xf32>
    "tpu.trace_stop"() : () -> ()
    %cst_164 = arith.constant 2.500000e-01 : f32
    %243 = vector.broadcast %cst_164 : f32 to vector<2x24x24xf32>
    %244 = arith.mulf %242, %243 : vector<2x24x24xf32>
    %245 = vector.shape_cast %34 : vector<24x24xf32> to vector<1x24x24xf32>
    %246 = vector.broadcast %245 : vector<1x24x24xf32> to vector<2x24x24xf32>
    %247 = arith.addf %244, %246 : vector<2x24x24xf32>
    %cst_165 = arith.constant dense<0xFF800000> : vector<2x24xf32>
    %248 = vector.multi_reduction <maximumf>, %247, %cst_165 [2] : vector<2x24x24xf32> to vector<2x24xf32>
    %249 = vector.shape_cast %248 : vector<2x24xf32> to vector<2x24x1xf32>
    %250 = vector.broadcast %249 : vector<2x24x1xf32> to vector<2x24x24xf32>
    %251 = arith.subf %247, %250 : vector<2x24x24xf32>
    %252 = math.exp %251 : vector<2x24x24xf32>
    %cst_166 = arith.constant dense<0.000000e+00> : vector<2x24xf32>
    %253 = vector.multi_reduction <add>, %252, %cst_166 [2] : vector<2x24x24xf32> to vector<2x24xf32>
    %254 = vector.shape_cast %253 : vector<2x24xf32> to vector<2x24x1xf32>
    %255 = tpu.reciprocal %254 {approx = true} : vector<2x24x1xf32> -> vector<2x24x1xf32>
    %256 = vector.broadcast %255 : vector<2x24x1xf32> to vector<2x24x24xf32>
    %257 = arith.mulf %252, %256 : vector<2x24x24xf32>
    %258 = arith.truncf %257 : vector<2x24x24xf32> to vector<2x24x24xbf16>
    %259 = arith.truncf %239 : vector<2x24x16xf32> to vector<2x24x16xbf16>
    "tpu.trace_start"() <{level = 10 : i32, message = "bqk,bkd->bqd"}> : () -> ()
    %cst_167 = arith.constant dense<0.000000e+00> : vector<2x24x16xf32>
    %260 = tpu.matmul %258, %259, %cst_167 {dimension_numbers = #tpu.dot_dimension_numbers<[2], [1], [1], [2], [0, 0, 0, 1, 1, 2], [0], [0]>} : vector<2x24x24xbf16>, vector<2x24x16xbf16>, vector<2x24x16xf32> -> vector<2x24x16xf32>
    "tpu.trace_stop"() : () -> ()
    %261 = vector.shape_cast %260 : vector<2x24x16xf32> to vector<48x16xf32>
    %262 = arith.truncf %261 : vector<48x16xf32> to vector<48x16xbf16>
    %c0_168 = arith.constant 0 : index
    %c3_169 = arith.constant 3 : index
    %c0_170 = arith.constant 0 : index
    %c0_171 = arith.constant 0 : index
    %263 = vector.load %arg13[%c0_168, %c3_169, %c0_170, %c0_171] : memref<2x4x16x64xbf16, #tpu.memory_space<vmem>>, vector<1x1x16x64xbf16>
    %264 = vector.shape_cast %263 : vector<1x1x16x64xbf16> to vector<16x64xbf16>
    %cst_172 = arith.constant dense<0.000000e+00> : vector<48x64xf32>
    %265 = tpu.matmul %262, %264, %cst_172 {dimension_numbers = #tpu.dot_dimension_numbers<[1], [0], [0], [1], [0, 0, 1, 1], [], []>} : vector<48x16xbf16>, vector<16x64xbf16>, vector<48x64xf32> -> vector<48x64xf32>
    %266 = arith.addf %215, %265 : vector<48x64xf32>
    %267 = arith.addf %28, %266 : vector<48x64xf32>
    %c0_173 = arith.constant 0 : index
    %c0_174 = arith.constant 0 : index
    %c0_175 = arith.constant 0 : index
    %268 = vector.load %arg14[%c0_173, %c0_174, %c0_175] : memref<2x1x64xf32, #tpu.memory_space<vmem>>, vector<1x1x64xf32>
    %269 = vector.shape_cast %268 : vector<1x1x64xf32> to vector<1x64xf32>
    %270 = vector.broadcast %269 : vector<1x64xf32> to vector<48x64xf32>
    %271 = arith.addf %267, %270 : vector<48x64xf32>
    %c0_176 = arith.constant 0 : index
    %c0_177 = arith.constant 0 : index
    %c0_178 = arith.constant 0 : index
    %272 = vector.load %arg15[%c0_176, %c0_177, %c0_178] : memref<2x1x64xf32, #tpu.memory_space<vmem>>, vector<1x1x64xf32>
    %273 = vector.shape_cast %272 : vector<1x1x64xf32> to vector<1x64xf32>
    %c0_179 = arith.constant 0 : index
    %c0_180 = arith.constant 0 : index
    %c0_181 = arith.constant 0 : index
    %274 = vector.load %arg16[%c0_179, %c0_180, %c0_181] : memref<2x1x64xf32, #tpu.memory_space<vmem>>, vector<1x1x64xf32>
    %275 = vector.shape_cast %274 : vector<1x1x64xf32> to vector<1x64xf32>
    %cst_182 = arith.constant dense<0.000000e+00> : vector<48xf32>
    %276 = vector.multi_reduction <add>, %271, %cst_182 [1] : vector<48x64xf32> to vector<48xf32>
    %277 = vector.shape_cast %276 : vector<48xf32> to vector<48x1xf32>
    %cst_183 = arith.constant 6.400000e+01 : f32
    %278 = vector.broadcast %cst_183 : f32 to vector<48x1xf32>
    %279 = arith.divf %277, %278 : vector<48x1xf32>
    %280 = vector.broadcast %279 : vector<48x1xf32> to vector<48x64xf32>
    %281 = arith.subf %271, %280 : vector<48x64xf32>
    %282 = arith.mulf %281, %281 : vector<48x64xf32>
    %cst_184 = arith.constant dense<0.000000e+00> : vector<48xf32>
    %283 = vector.multi_reduction <add>, %282, %cst_184 [1] : vector<48x64xf32> to vector<48xf32>
    %284 = vector.shape_cast %283 : vector<48xf32> to vector<48x1xf32>
    %cst_185 = arith.constant 6.400000e+01 : f32
    %285 = vector.broadcast %cst_185 : f32 to vector<48x1xf32>
    %286 = arith.divf %284, %285 : vector<48x1xf32>
    %287 = vector.broadcast %279 : vector<48x1xf32> to vector<48x64xf32>
    %288 = arith.subf %271, %287 : vector<48x64xf32>
    %cst_186 = arith.constant 9.99999974E-6 : f32
    %289 = vector.broadcast %cst_186 : f32 to vector<48x1xf32>
    %290 = arith.addf %286, %289 : vector<48x1xf32>
    %291 = math.rsqrt %290 : vector<48x1xf32>
    %292 = vector.broadcast %291 : vector<48x1xf32> to vector<48x64xf32>
    %293 = arith.mulf %288, %292 : vector<48x64xf32>
    %294 = vector.broadcast %273 : vector<1x64xf32> to vector<48x64xf32>
    %295 = arith.mulf %293, %294 : vector<48x64xf32>
    %296 = vector.broadcast %275 : vector<1x64xf32> to vector<48x64xf32>
    %297 = arith.addf %295, %296 : vector<48x64xf32>
    %298 = arith.truncf %297 : vector<48x64xf32> to vector<48x64xbf16>
    %c0_187 = arith.constant 0 : index
    %c0_188 = arith.constant 0 : index
    %c0_189 = arith.constant 0 : index
    %299 = vector.load %arg17[%c0_187, %c0_188, %c0_189] : memref<2x64x256xbf16, #tpu.memory_space<vmem>>, vector<1x64x256xbf16>
    %300 = vector.shape_cast %299 : vector<1x64x256xbf16> to vector<64x256xbf16>
    %cst_190 = arith.constant dense<0.000000e+00> : vector<48x256xf32>
    %301 = tpu.matmul %298, %300, %cst_190 {dimension_numbers = #tpu.dot_dimension_numbers<[1], [0], [0], [1], [0, 0, 1, 1], [], []>} : vector<48x64xbf16>, vector<64x256xbf16>, vector<48x256xf32> -> vector<48x256xf32>
    %c0_191 = arith.constant 0 : index
    %c0_192 = arith.constant 0 : index
    %c0_193 = arith.constant 0 : index
    %302 = vector.load %arg18[%c0_191, %c0_192, %c0_193] : memref<2x1x256xf32, #tpu.memory_space<vmem>>, vector<1x1x256xf32>
    %303 = vector.shape_cast %302 : vector<1x1x256xf32> to vector<1x256xf32>
    %304 = vector.broadcast %303 : vector<1x256xf32> to vector<48x256xf32>
    %305 = arith.addf %301, %304 : vector<48x256xf32>
    %cst_194 = arith.constant 1.702000e+00 : f32
    %306 = vector.broadcast %cst_194 : f32 to vector<48x256xf32>
    %307 = arith.mulf %306, %305 : vector<48x256xf32>
    %308 = arith.negf %307 : vector<48x256xf32>
    %309 = math.exp %308 : vector<48x256xf32>
    %cst_195 = arith.constant 1.000000e+00 : f32
    %310 = vector.broadcast %cst_195 : f32 to vector<48x256xf32>
    %311 = arith.addf %310, %309 : vector<48x256xf32>
    %312 = arith.divf %310, %311 : vector<48x256xf32>
    %313 = arith.mulf %305, %312 : vector<48x256xf32>
    %314 = arith.truncf %313 : vector<48x256xf32> to vector<48x256xbf16>
    %c0_196 = arith.constant 0 : index
    %c0_197 = arith.constant 0 : index
    %c0_198 = arith.constant 0 : index
    %315 = vector.load %arg19[%c0_196, %c0_197, %c0_198] : memref<2x256x64xbf16, #tpu.memory_space<vmem>>, vector<1x256x64xbf16>
    %316 = vector.shape_cast %315 : vector<1x256x64xbf16> to vector<256x64xbf16>
    %cst_199 = arith.constant dense<0.000000e+00> : vector<48x64xf32>
    %317 = tpu.matmul %314, %316, %cst_199 {dimension_numbers = #tpu.dot_dimension_numbers<[1], [0], [0], [1], [0, 0, 1, 1], [], []>} : vector<48x256xbf16>, vector<256x64xbf16>, vector<48x64xf32> -> vector<48x64xf32>
    %318 = arith.addf %271, %317 : vector<48x64xf32>
    %c0_200 = arith.constant 0 : index
    %c0_201 = arith.constant 0 : index
    %c0_202 = arith.constant 0 : index
    %319 = vector.load %arg20[%c0_200, %c0_201, %c0_202] : memref<2x1x64xf32, #tpu.memory_space<vmem>>, vector<1x1x64xf32>
    %320 = vector.shape_cast %319 : vector<1x1x64xf32> to vector<1x64xf32>
    %321 = vector.broadcast %320 : vector<1x64xf32> to vector<48x64xf32>
    %322 = arith.addf %318, %321 : vector<48x64xf32>
    %c1_203 = arith.constant 1 : index
    %c0_204 = arith.constant 0 : index
    %c0_205 = arith.constant 0 : index
    %323 = vector.load %arg5[%c1_203, %c0_204, %c0_205] : memref<2x1x64xf32, #tpu.memory_space<vmem>>, vector<1x1x64xf32>
    %324 = vector.shape_cast %323 : vector<1x1x64xf32> to vector<1x64xf32>
    %c1_206 = arith.constant 1 : index
    %c0_207 = arith.constant 0 : index
    %c0_208 = arith.constant 0 : index
    %325 = vector.load %arg6[%c1_206, %c0_207, %c0_208] : memref<2x1x64xf32, #tpu.memory_space<vmem>>, vector<1x1x64xf32>
    %326 = vector.shape_cast %325 : vector<1x1x64xf32> to vector<1x64xf32>
    %cst_209 = arith.constant dense<0.000000e+00> : vector<48xf32>
    %327 = vector.multi_reduction <add>, %322, %cst_209 [1] : vector<48x64xf32> to vector<48xf32>
    %328 = vector.shape_cast %327 : vector<48xf32> to vector<48x1xf32>
    %cst_210 = arith.constant 6.400000e+01 : f32
    %329 = vector.broadcast %cst_210 : f32 to vector<48x1xf32>
    %330 = arith.divf %328, %329 : vector<48x1xf32>
    %331 = vector.broadcast %330 : vector<48x1xf32> to vector<48x64xf32>
    %332 = arith.subf %322, %331 : vector<48x64xf32>
    %333 = arith.mulf %332, %332 : vector<48x64xf32>
    %cst_211 = arith.constant dense<0.000000e+00> : vector<48xf32>
    %334 = vector.multi_reduction <add>, %333, %cst_211 [1] : vector<48x64xf32> to vector<48xf32>
    %335 = vector.shape_cast %334 : vector<48xf32> to vector<48x1xf32>
    %cst_212 = arith.constant 6.400000e+01 : f32
    %336 = vector.broadcast %cst_212 : f32 to vector<48x1xf32>
    %337 = arith.divf %335, %336 : vector<48x1xf32>
    %338 = vector.broadcast %330 : vector<48x1xf32> to vector<48x64xf32>
    %339 = arith.subf %322, %338 : vector<48x64xf32>
    %cst_213 = arith.constant 9.99999974E-6 : f32
    %340 = vector.broadcast %cst_213 : f32 to vector<48x1xf32>
    %341 = arith.addf %337, %340 : vector<48x1xf32>
    %342 = math.rsqrt %341 : vector<48x1xf32>
    %343 = vector.broadcast %342 : vector<48x1xf32> to vector<48x64xf32>
    %344 = arith.mulf %339, %343 : vector<48x64xf32>
    %345 = vector.broadcast %324 : vector<1x64xf32> to vector<48x64xf32>
    %346 = arith.mulf %344, %345 : vector<48x64xf32>
    %347 = vector.broadcast %326 : vector<1x64xf32> to vector<48x64xf32>
    %348 = arith.addf %346, %347 : vector<48x64xf32>
    %349 = arith.truncf %348 : vector<48x64xf32> to vector<48x64xbf16>
    %cst_214 = arith.constant 0.000000e+00 : f32
    %350 = vector.broadcast %cst_214 : f32 to vector<48x64xf32>
    %c1_215 = arith.constant 1 : index
    %c0_216 = arith.constant 0 : index
    %c0_217 = arith.constant 0 : index
    %c0_218 = arith.constant 0 : index
    %351 = vector.load %arg7[%c1_215, %c0_216, %c0_217, %c0_218] : memref<2x4x64x16xbf16, #tpu.memory_space<vmem>>, vector<1x1x64x16xbf16>
    %352 = vector.shape_cast %351 : vector<1x1x64x16xbf16> to vector<64x16xbf16>
    %cst_219 = arith.constant dense<0.000000e+00> : vector<48x16xf32>
    %353 = tpu.matmul %349, %352, %cst_219 {dimension_numbers = #tpu.dot_dimension_numbers<[1], [0], [0], [1], [0, 0, 1, 1], [], []>} : vector<48x64xbf16>, vector<64x16xbf16>, vector<48x16xf32> -> vector<48x16xf32>
    %c1_220 = arith.constant 1 : index
    %c0_221 = arith.constant 0 : index
    %c0_222 = arith.constant 0 : index
    %c0_223 = arith.constant 0 : index
    %354 = vector.load %arg10[%c1_220, %c0_221, %c0_222, %c0_223] : memref<2x4x1x16xf32, #tpu.memory_space<vmem>>, vector<1x1x1x16xf32>
    %355 = vector.shape_cast %354 : vector<1x1x1x16xf32> to vector<1x16xf32>
    %356 = vector.broadcast %355 : vector<1x16xf32> to vector<48x16xf32>
    %357 = arith.addf %353, %356 : vector<48x16xf32>
    %c1_224 = arith.constant 1 : index
    %c0_225 = arith.constant 0 : index
    %c0_226 = arith.constant 0 : index
    %c0_227 = arith.constant 0 : index
    %358 = vector.load %arg8[%c1_224, %c0_225, %c0_226, %c0_227] : memref<2x4x64x16xbf16, #tpu.memory_space<vmem>>, vector<1x1x64x16xbf16>
    %359 = vector.shape_cast %358 : vector<1x1x64x16xbf16> to vector<64x16xbf16>
    %cst_228 = arith.constant dense<0.000000e+00> : vector<48x16xf32>
    %360 = tpu.matmul %349, %359, %cst_228 {dimension_numbers = #tpu.dot_dimension_numbers<[1], [0], [0], [1], [0, 0, 1, 1], [], []>} : vector<48x64xbf16>, vector<64x16xbf16>, vector<48x16xf32> -> vector<48x16xf32>
    %c1_229 = arith.constant 1 : index
    %c0_230 = arith.constant 0 : index
    %c0_231 = arith.constant 0 : index
    %c0_232 = arith.constant 0 : index
    %361 = vector.load %arg11[%c1_229, %c0_230, %c0_231, %c0_232] : memref<2x4x1x16xf32, #tpu.memory_space<vmem>>, vector<1x1x1x16xf32>
    %362 = vector.shape_cast %361 : vector<1x1x1x16xf32> to vector<1x16xf32>
    %363 = vector.broadcast %362 : vector<1x16xf32> to vector<48x16xf32>
    %364 = arith.addf %360, %363 : vector<48x16xf32>
    %c1_233 = arith.constant 1 : index
    %c0_234 = arith.constant 0 : index
    %c0_235 = arith.constant 0 : index
    %c0_236 = arith.constant 0 : index
    %365 = vector.load %arg9[%c1_233, %c0_234, %c0_235, %c0_236] : memref<2x4x64x16xbf16, #tpu.memory_space<vmem>>, vector<1x1x64x16xbf16>
    %366 = vector.shape_cast %365 : vector<1x1x64x16xbf16> to vector<64x16xbf16>
    %cst_237 = arith.constant dense<0.000000e+00> : vector<48x16xf32>
    %367 = tpu.matmul %349, %366, %cst_237 {dimension_numbers = #tpu.dot_dimension_numbers<[1], [0], [0], [1], [0, 0, 1, 1], [], []>} : vector<48x64xbf16>, vector<64x16xbf16>, vector<48x16xf32> -> vector<48x16xf32>
    %c1_238 = arith.constant 1 : index
    %c0_239 = arith.constant 0 : index
    %c0_240 = arith.constant 0 : index
    %c0_241 = arith.constant 0 : index
    %368 = vector.load %arg12[%c1_238, %c0_239, %c0_240, %c0_241] : memref<2x4x1x16xf32, #tpu.memory_space<vmem>>, vector<1x1x1x16xf32>
    %369 = vector.shape_cast %368 : vector<1x1x1x16xf32> to vector<1x16xf32>
    %370 = vector.broadcast %369 : vector<1x16xf32> to vector<48x16xf32>
    %371 = arith.addf %367, %370 : vector<48x16xf32>
    %372 = vector.shape_cast %357 : vector<48x16xf32> to vector<2x24x16xf32>
    %373 = vector.shape_cast %364 : vector<48x16xf32> to vector<2x24x16xf32>
    %374 = vector.shape_cast %371 : vector<48x16xf32> to vector<2x24x16xf32>
    %375 = arith.truncf %372 : vector<2x24x16xf32> to vector<2x24x16xbf16>
    %376 = arith.truncf %373 : vector<2x24x16xf32> to vector<2x24x16xbf16>
    "tpu.trace_start"() <{level = 10 : i32, message = "bqd,bkd->bqk"}> : () -> ()
    %cst_242 = arith.constant dense<0.000000e+00> : vector<2x24x24xf32>
    %377 = tpu.matmul %375, %376, %cst_242 {dimension_numbers = #tpu.dot_dimension_numbers<[2], [2], [1], [1], [0, 0, 0, 1, 1, 1], [0], [0]>} : vector<2x24x16xbf16>, vector<2x24x16xbf16>, vector<2x24x24xf32> -> vector<2x24x24xf32>
    "tpu.trace_stop"() : () -> ()
    %cst_243 = arith.constant 2.500000e-01 : f32
    %378 = vector.broadcast %cst_243 : f32 to vector<2x24x24xf32>
    %379 = arith.mulf %377, %378 : vector<2x24x24xf32>
    %380 = vector.shape_cast %34 : vector<24x24xf32> to vector<1x24x24xf32>
    %381 = vector.broadcast %380 : vector<1x24x24xf32> to vector<2x24x24xf32>
    %382 = arith.addf %379, %381 : vector<2x24x24xf32>
    %cst_244 = arith.constant dense<0xFF800000> : vector<2x24xf32>
    %383 = vector.multi_reduction <maximumf>, %382, %cst_244 [2] : vector<2x24x24xf32> to vector<2x24xf32>
    %384 = vector.shape_cast %383 : vector<2x24xf32> to vector<2x24x1xf32>
    %385 = vector.broadcast %384 : vector<2x24x1xf32> to vector<2x24x24xf32>
    %386 = arith.subf %382, %385 : vector<2x24x24xf32>
    %387 = math.exp %386 : vector<2x24x24xf32>
    %cst_245 = arith.constant dense<0.000000e+00> : vector<2x24xf32>
    %388 = vector.multi_reduction <add>, %387, %cst_245 [2] : vector<2x24x24xf32> to vector<2x24xf32>
    %389 = vector.shape_cast %388 : vector<2x24xf32> to vector<2x24x1xf32>
    %390 = tpu.reciprocal %389 {approx = true} : vector<2x24x1xf32> -> vector<2x24x1xf32>
    %391 = vector.broadcast %390 : vector<2x24x1xf32> to vector<2x24x24xf32>
    %392 = arith.mulf %387, %391 : vector<2x24x24xf32>
    %393 = arith.truncf %392 : vector<2x24x24xf32> to vector<2x24x24xbf16>
    %394 = arith.truncf %374 : vector<2x24x16xf32> to vector<2x24x16xbf16>
    "tpu.trace_start"() <{level = 10 : i32, message = "bqk,bkd->bqd"}> : () -> ()
    %cst_246 = arith.constant dense<0.000000e+00> : vector<2x24x16xf32>
    %395 = tpu.matmul %393, %394, %cst_246 {dimension_numbers = #tpu.dot_dimension_numbers<[2], [1], [1], [2], [0, 0, 0, 1, 1, 2], [0], [0]>} : vector<2x24x24xbf16>, vector<2x24x16xbf16>, vector<2x24x16xf32> -> vector<2x24x16xf32>
    "tpu.trace_stop"() : () -> ()
    %396 = vector.shape_cast %395 : vector<2x24x16xf32> to vector<48x16xf32>
    %397 = arith.truncf %396 : vector<48x16xf32> to vector<48x16xbf16>
    %c1_247 = arith.constant 1 : index
    %c0_248 = arith.constant 0 : index
    %c0_249 = arith.constant 0 : index
    %c0_250 = arith.constant 0 : index
    %398 = vector.load %arg13[%c1_247, %c0_248, %c0_249, %c0_250] : memref<2x4x16x64xbf16, #tpu.memory_space<vmem>>, vector<1x1x16x64xbf16>
    %399 = vector.shape_cast %398 : vector<1x1x16x64xbf16> to vector<16x64xbf16>
    %cst_251 = arith.constant dense<0.000000e+00> : vector<48x64xf32>
    %400 = tpu.matmul %397, %399, %cst_251 {dimension_numbers = #tpu.dot_dimension_numbers<[1], [0], [0], [1], [0, 0, 1, 1], [], []>} : vector<48x16xbf16>, vector<16x64xbf16>, vector<48x64xf32> -> vector<48x64xf32>
    %401 = arith.addf %350, %400 : vector<48x64xf32>
    %c1_252 = arith.constant 1 : index
    %c1_253 = arith.constant 1 : index
    %c0_254 = arith.constant 0 : index
    %c0_255 = arith.constant 0 : index
    %402 = vector.load %arg7[%c1_252, %c1_253, %c0_254, %c0_255] : memref<2x4x64x16xbf16, #tpu.memory_space<vmem>>, vector<1x1x64x16xbf16>
    %403 = vector.shape_cast %402 : vector<1x1x64x16xbf16> to vector<64x16xbf16>
    %cst_256 = arith.constant dense<0.000000e+00> : vector<48x16xf32>
    %404 = tpu.matmul %349, %403, %cst_256 {dimension_numbers = #tpu.dot_dimension_numbers<[1], [0], [0], [1], [0, 0, 1, 1], [], []>} : vector<48x64xbf16>, vector<64x16xbf16>, vector<48x16xf32> -> vector<48x16xf32>
    %c1_257 = arith.constant 1 : index
    %c1_258 = arith.constant 1 : index
    %c0_259 = arith.constant 0 : index
    %c0_260 = arith.constant 0 : index
    %405 = vector.load %arg10[%c1_257, %c1_258, %c0_259, %c0_260] : memref<2x4x1x16xf32, #tpu.memory_space<vmem>>, vector<1x1x1x16xf32>
    %406 = vector.shape_cast %405 : vector<1x1x1x16xf32> to vector<1x16xf32>
    %407 = vector.broadcast %406 : vector<1x16xf32> to vector<48x16xf32>
    %408 = arith.addf %404, %407 : vector<48x16xf32>
    %c1_261 = arith.constant 1 : index
    %c1_262 = arith.constant 1 : index
    %c0_263 = arith.constant 0 : index
    %c0_264 = arith.constant 0 : index
    %409 = vector.load %arg8[%c1_261, %c1_262, %c0_263, %c0_264] : memref<2x4x64x16xbf16, #tpu.memory_space<vmem>>, vector<1x1x64x16xbf16>
    %410 = vector.shape_cast %409 : vector<1x1x64x16xbf16> to vector<64x16xbf16>
    %cst_265 = arith.constant dense<0.000000e+00> : vector<48x16xf32>
    %411 = tpu.matmul %349, %410, %cst_265 {dimension_numbers = #tpu.dot_dimension_numbers<[1], [0], [0], [1], [0, 0, 1, 1], [], []>} : vector<48x64xbf16>, vector<64x16xbf16>, vector<48x16xf32> -> vector<48x16xf32>
    %c1_266 = arith.constant 1 : index
    %c1_267 = arith.constant 1 : index
    %c0_268 = arith.constant 0 : index
    %c0_269 = arith.constant 0 : index
    %412 = vector.load %arg11[%c1_266, %c1_267, %c0_268, %c0_269] : memref<2x4x1x16xf32, #tpu.memory_space<vmem>>, vector<1x1x1x16xf32>
    %413 = vector.shape_cast %412 : vector<1x1x1x16xf32> to vector<1x16xf32>
    %414 = vector.broadcast %413 : vector<1x16xf32> to vector<48x16xf32>
    %415 = arith.addf %411, %414 : vector<48x16xf32>
    %c1_270 = arith.constant 1 : index
    %c1_271 = arith.constant 1 : index
    %c0_272 = arith.constant 0 : index
    %c0_273 = arith.constant 0 : index
    %416 = vector.load %arg9[%c1_270, %c1_271, %c0_272, %c0_273] : memref<2x4x64x16xbf16, #tpu.memory_space<vmem>>, vector<1x1x64x16xbf16>
    %417 = vector.shape_cast %416 : vector<1x1x64x16xbf16> to vector<64x16xbf16>
    %cst_274 = arith.constant dense<0.000000e+00> : vector<48x16xf32>
    %418 = tpu.matmul %349, %417, %cst_274 {dimension_numbers = #tpu.dot_dimension_numbers<[1], [0], [0], [1], [0, 0, 1, 1], [], []>} : vector<48x64xbf16>, vector<64x16xbf16>, vector<48x16xf32> -> vector<48x16xf32>
    %c1_275 = arith.constant 1 : index
    %c1_276 = arith.constant 1 : index
    %c0_277 = arith.constant 0 : index
    %c0_278 = arith.constant 0 : index
    %419 = vector.load %arg12[%c1_275, %c1_276, %c0_277, %c0_278] : memref<2x4x1x16xf32, #tpu.memory_space<vmem>>, vector<1x1x1x16xf32>
    %420 = vector.shape_cast %419 : vector<1x1x1x16xf32> to vector<1x16xf32>
    %421 = vector.broadcast %420 : vector<1x16xf32> to vector<48x16xf32>
    %422 = arith.addf %418, %421 : vector<48x16xf32>
    %423 = vector.shape_cast %408 : vector<48x16xf32> to vector<2x24x16xf32>
    %424 = vector.shape_cast %415 : vector<48x16xf32> to vector<2x24x16xf32>
    %425 = vector.shape_cast %422 : vector<48x16xf32> to vector<2x24x16xf32>
    %426 = arith.truncf %423 : vector<2x24x16xf32> to vector<2x24x16xbf16>
    %427 = arith.truncf %424 : vector<2x24x16xf32> to vector<2x24x16xbf16>
    "tpu.trace_start"() <{level = 10 : i32, message = "bqd,bkd->bqk"}> : () -> ()
    %cst_279 = arith.constant dense<0.000000e+00> : vector<2x24x24xf32>
    %428 = tpu.matmul %426, %427, %cst_279 {dimension_numbers = #tpu.dot_dimension_numbers<[2], [2], [1], [1], [0, 0, 0, 1, 1, 1], [0], [0]>} : vector<2x24x16xbf16>, vector<2x24x16xbf16>, vector<2x24x24xf32> -> vector<2x24x24xf32>
    "tpu.trace_stop"() : () -> ()
    %cst_280 = arith.constant 2.500000e-01 : f32
    %429 = vector.broadcast %cst_280 : f32 to vector<2x24x24xf32>
    %430 = arith.mulf %428, %429 : vector<2x24x24xf32>
    %431 = vector.shape_cast %34 : vector<24x24xf32> to vector<1x24x24xf32>
    %432 = vector.broadcast %431 : vector<1x24x24xf32> to vector<2x24x24xf32>
    %433 = arith.addf %430, %432 : vector<2x24x24xf32>
    %cst_281 = arith.constant dense<0xFF800000> : vector<2x24xf32>
    %434 = vector.multi_reduction <maximumf>, %433, %cst_281 [2] : vector<2x24x24xf32> to vector<2x24xf32>
    %435 = vector.shape_cast %434 : vector<2x24xf32> to vector<2x24x1xf32>
    %436 = vector.broadcast %435 : vector<2x24x1xf32> to vector<2x24x24xf32>
    %437 = arith.subf %433, %436 : vector<2x24x24xf32>
    %438 = math.exp %437 : vector<2x24x24xf32>
    %cst_282 = arith.constant dense<0.000000e+00> : vector<2x24xf32>
    %439 = vector.multi_reduction <add>, %438, %cst_282 [2] : vector<2x24x24xf32> to vector<2x24xf32>
    %440 = vector.shape_cast %439 : vector<2x24xf32> to vector<2x24x1xf32>
    %441 = tpu.reciprocal %440 {approx = true} : vector<2x24x1xf32> -> vector<2x24x1xf32>
    %442 = vector.broadcast %441 : vector<2x24x1xf32> to vector<2x24x24xf32>
    %443 = arith.mulf %438, %442 : vector<2x24x24xf32>
    %444 = arith.truncf %443 : vector<2x24x24xf32> to vector<2x24x24xbf16>
    %445 = arith.truncf %425 : vector<2x24x16xf32> to vector<2x24x16xbf16>
    "tpu.trace_start"() <{level = 10 : i32, message = "bqk,bkd->bqd"}> : () -> ()
    %cst_283 = arith.constant dense<0.000000e+00> : vector<2x24x16xf32>
    %446 = tpu.matmul %444, %445, %cst_283 {dimension_numbers = #tpu.dot_dimension_numbers<[2], [1], [1], [2], [0, 0, 0, 1, 1, 2], [0], [0]>} : vector<2x24x24xbf16>, vector<2x24x16xbf16>, vector<2x24x16xf32> -> vector<2x24x16xf32>
    "tpu.trace_stop"() : () -> ()
    %447 = vector.shape_cast %446 : vector<2x24x16xf32> to vector<48x16xf32>
    %448 = arith.truncf %447 : vector<48x16xf32> to vector<48x16xbf16>
    %c1_284 = arith.constant 1 : index
    %c1_285 = arith.constant 1 : index
    %c0_286 = arith.constant 0 : index
    %c0_287 = arith.constant 0 : index
    %449 = vector.load %arg13[%c1_284, %c1_285, %c0_286, %c0_287] : memref<2x4x16x64xbf16, #tpu.memory_space<vmem>>, vector<1x1x16x64xbf16>
    %450 = vector.shape_cast %449 : vector<1x1x16x64xbf16> to vector<16x64xbf16>
    %cst_288 = arith.constant dense<0.000000e+00> : vector<48x64xf32>
    %451 = tpu.matmul %448, %450, %cst_288 {dimension_numbers = #tpu.dot_dimension_numbers<[1], [0], [0], [1], [0, 0, 1, 1], [], []>} : vector<48x16xbf16>, vector<16x64xbf16>, vector<48x64xf32> -> vector<48x64xf32>
    %452 = arith.addf %401, %451 : vector<48x64xf32>
    %c1_289 = arith.constant 1 : index
    %c2_290 = arith.constant 2 : index
    %c0_291 = arith.constant 0 : index
    %c0_292 = arith.constant 0 : index
    %453 = vector.load %arg7[%c1_289, %c2_290, %c0_291, %c0_292] : memref<2x4x64x16xbf16, #tpu.memory_space<vmem>>, vector<1x1x64x16xbf16>
    %454 = vector.shape_cast %453 : vector<1x1x64x16xbf16> to vector<64x16xbf16>
    %cst_293 = arith.constant dense<0.000000e+00> : vector<48x16xf32>
    %455 = tpu.matmul %349, %454, %cst_293 {dimension_numbers = #tpu.dot_dimension_numbers<[1], [0], [0], [1], [0, 0, 1, 1], [], []>} : vector<48x64xbf16>, vector<64x16xbf16>, vector<48x16xf32> -> vector<48x16xf32>
    %c1_294 = arith.constant 1 : index
    %c2_295 = arith.constant 2 : index
    %c0_296 = arith.constant 0 : index
    %c0_297 = arith.constant 0 : index
    %456 = vector.load %arg10[%c1_294, %c2_295, %c0_296, %c0_297] : memref<2x4x1x16xf32, #tpu.memory_space<vmem>>, vector<1x1x1x16xf32>
    %457 = vector.shape_cast %456 : vector<1x1x1x16xf32> to vector<1x16xf32>
    %458 = vector.broadcast %457 : vector<1x16xf32> to vector<48x16xf32>
    %459 = arith.addf %455, %458 : vector<48x16xf32>
    %c1_298 = arith.constant 1 : index
    %c2_299 = arith.constant 2 : index
    %c0_300 = arith.constant 0 : index
    %c0_301 = arith.constant 0 : index
    %460 = vector.load %arg8[%c1_298, %c2_299, %c0_300, %c0_301] : memref<2x4x64x16xbf16, #tpu.memory_space<vmem>>, vector<1x1x64x16xbf16>
    %461 = vector.shape_cast %460 : vector<1x1x64x16xbf16> to vector<64x16xbf16>
    %cst_302 = arith.constant dense<0.000000e+00> : vector<48x16xf32>
    %462 = tpu.matmul %349, %461, %cst_302 {dimension_numbers = #tpu.dot_dimension_numbers<[1], [0], [0], [1], [0, 0, 1, 1], [], []>} : vector<48x64xbf16>, vector<64x16xbf16>, vector<48x16xf32> -> vector<48x16xf32>
    %c1_303 = arith.constant 1 : index
    %c2_304 = arith.constant 2 : index
    %c0_305 = arith.constant 0 : index
    %c0_306 = arith.constant 0 : index
    %463 = vector.load %arg11[%c1_303, %c2_304, %c0_305, %c0_306] : memref<2x4x1x16xf32, #tpu.memory_space<vmem>>, vector<1x1x1x16xf32>
    %464 = vector.shape_cast %463 : vector<1x1x1x16xf32> to vector<1x16xf32>
    %465 = vector.broadcast %464 : vector<1x16xf32> to vector<48x16xf32>
    %466 = arith.addf %462, %465 : vector<48x16xf32>
    %c1_307 = arith.constant 1 : index
    %c2_308 = arith.constant 2 : index
    %c0_309 = arith.constant 0 : index
    %c0_310 = arith.constant 0 : index
    %467 = vector.load %arg9[%c1_307, %c2_308, %c0_309, %c0_310] : memref<2x4x64x16xbf16, #tpu.memory_space<vmem>>, vector<1x1x64x16xbf16>
    %468 = vector.shape_cast %467 : vector<1x1x64x16xbf16> to vector<64x16xbf16>
    %cst_311 = arith.constant dense<0.000000e+00> : vector<48x16xf32>
    %469 = tpu.matmul %349, %468, %cst_311 {dimension_numbers = #tpu.dot_dimension_numbers<[1], [0], [0], [1], [0, 0, 1, 1], [], []>} : vector<48x64xbf16>, vector<64x16xbf16>, vector<48x16xf32> -> vector<48x16xf32>
    %c1_312 = arith.constant 1 : index
    %c2_313 = arith.constant 2 : index
    %c0_314 = arith.constant 0 : index
    %c0_315 = arith.constant 0 : index
    %470 = vector.load %arg12[%c1_312, %c2_313, %c0_314, %c0_315] : memref<2x4x1x16xf32, #tpu.memory_space<vmem>>, vector<1x1x1x16xf32>
    %471 = vector.shape_cast %470 : vector<1x1x1x16xf32> to vector<1x16xf32>
    %472 = vector.broadcast %471 : vector<1x16xf32> to vector<48x16xf32>
    %473 = arith.addf %469, %472 : vector<48x16xf32>
    %474 = vector.shape_cast %459 : vector<48x16xf32> to vector<2x24x16xf32>
    %475 = vector.shape_cast %466 : vector<48x16xf32> to vector<2x24x16xf32>
    %476 = vector.shape_cast %473 : vector<48x16xf32> to vector<2x24x16xf32>
    %477 = arith.truncf %474 : vector<2x24x16xf32> to vector<2x24x16xbf16>
    %478 = arith.truncf %475 : vector<2x24x16xf32> to vector<2x24x16xbf16>
    "tpu.trace_start"() <{level = 10 : i32, message = "bqd,bkd->bqk"}> : () -> ()
    %cst_316 = arith.constant dense<0.000000e+00> : vector<2x24x24xf32>
    %479 = tpu.matmul %477, %478, %cst_316 {dimension_numbers = #tpu.dot_dimension_numbers<[2], [2], [1], [1], [0, 0, 0, 1, 1, 1], [0], [0]>} : vector<2x24x16xbf16>, vector<2x24x16xbf16>, vector<2x24x24xf32> -> vector<2x24x24xf32>
    "tpu.trace_stop"() : () -> ()
    %cst_317 = arith.constant 2.500000e-01 : f32
    %480 = vector.broadcast %cst_317 : f32 to vector<2x24x24xf32>
    %481 = arith.mulf %479, %480 : vector<2x24x24xf32>
    %482 = vector.shape_cast %34 : vector<24x24xf32> to vector<1x24x24xf32>
    %483 = vector.broadcast %482 : vector<1x24x24xf32> to vector<2x24x24xf32>
    %484 = arith.addf %481, %483 : vector<2x24x24xf32>
    %cst_318 = arith.constant dense<0xFF800000> : vector<2x24xf32>
    %485 = vector.multi_reduction <maximumf>, %484, %cst_318 [2] : vector<2x24x24xf32> to vector<2x24xf32>
    %486 = vector.shape_cast %485 : vector<2x24xf32> to vector<2x24x1xf32>
    %487 = vector.broadcast %486 : vector<2x24x1xf32> to vector<2x24x24xf32>
    %488 = arith.subf %484, %487 : vector<2x24x24xf32>
    %489 = math.exp %488 : vector<2x24x24xf32>
    %cst_319 = arith.constant dense<0.000000e+00> : vector<2x24xf32>
    %490 = vector.multi_reduction <add>, %489, %cst_319 [2] : vector<2x24x24xf32> to vector<2x24xf32>
    %491 = vector.shape_cast %490 : vector<2x24xf32> to vector<2x24x1xf32>
    %492 = tpu.reciprocal %491 {approx = true} : vector<2x24x1xf32> -> vector<2x24x1xf32>
    %493 = vector.broadcast %492 : vector<2x24x1xf32> to vector<2x24x24xf32>
    %494 = arith.mulf %489, %493 : vector<2x24x24xf32>
    %495 = arith.truncf %494 : vector<2x24x24xf32> to vector<2x24x24xbf16>
    %496 = arith.truncf %476 : vector<2x24x16xf32> to vector<2x24x16xbf16>
    "tpu.trace_start"() <{level = 10 : i32, message = "bqk,bkd->bqd"}> : () -> ()
    %cst_320 = arith.constant dense<0.000000e+00> : vector<2x24x16xf32>
    %497 = tpu.matmul %495, %496, %cst_320 {dimension_numbers = #tpu.dot_dimension_numbers<[2], [1], [1], [2], [0, 0, 0, 1, 1, 2], [0], [0]>} : vector<2x24x24xbf16>, vector<2x24x16xbf16>, vector<2x24x16xf32> -> vector<2x24x16xf32>
    "tpu.trace_stop"() : () -> ()
    %498 = vector.shape_cast %497 : vector<2x24x16xf32> to vector<48x16xf32>
    %499 = arith.truncf %498 : vector<48x16xf32> to vector<48x16xbf16>
    %c1_321 = arith.constant 1 : index
    %c2_322 = arith.constant 2 : index
    %c0_323 = arith.constant 0 : index
    %c0_324 = arith.constant 0 : index
    %500 = vector.load %arg13[%c1_321, %c2_322, %c0_323, %c0_324] : memref<2x4x16x64xbf16, #tpu.memory_space<vmem>>, vector<1x1x16x64xbf16>
    %501 = vector.shape_cast %500 : vector<1x1x16x64xbf16> to vector<16x64xbf16>
    %cst_325 = arith.constant dense<0.000000e+00> : vector<48x64xf32>
    %502 = tpu.matmul %499, %501, %cst_325 {dimension_numbers = #tpu.dot_dimension_numbers<[1], [0], [0], [1], [0, 0, 1, 1], [], []>} : vector<48x16xbf16>, vector<16x64xbf16>, vector<48x64xf32> -> vector<48x64xf32>
    %503 = arith.addf %452, %502 : vector<48x64xf32>
    %c1_326 = arith.constant 1 : index
    %c3_327 = arith.constant 3 : index
    %c0_328 = arith.constant 0 : index
    %c0_329 = arith.constant 0 : index
    %504 = vector.load %arg7[%c1_326, %c3_327, %c0_328, %c0_329] : memref<2x4x64x16xbf16, #tpu.memory_space<vmem>>, vector<1x1x64x16xbf16>
    %505 = vector.shape_cast %504 : vector<1x1x64x16xbf16> to vector<64x16xbf16>
    %cst_330 = arith.constant dense<0.000000e+00> : vector<48x16xf32>
    %506 = tpu.matmul %349, %505, %cst_330 {dimension_numbers = #tpu.dot_dimension_numbers<[1], [0], [0], [1], [0, 0, 1, 1], [], []>} : vector<48x64xbf16>, vector<64x16xbf16>, vector<48x16xf32> -> vector<48x16xf32>
    %c1_331 = arith.constant 1 : index
    %c3_332 = arith.constant 3 : index
    %c0_333 = arith.constant 0 : index
    %c0_334 = arith.constant 0 : index
    %507 = vector.load %arg10[%c1_331, %c3_332, %c0_333, %c0_334] : memref<2x4x1x16xf32, #tpu.memory_space<vmem>>, vector<1x1x1x16xf32>
    %508 = vector.shape_cast %507 : vector<1x1x1x16xf32> to vector<1x16xf32>
    %509 = vector.broadcast %508 : vector<1x16xf32> to vector<48x16xf32>
    %510 = arith.addf %506, %509 : vector<48x16xf32>
    %c1_335 = arith.constant 1 : index
    %c3_336 = arith.constant 3 : index
    %c0_337 = arith.constant 0 : index
    %c0_338 = arith.constant 0 : index
    %511 = vector.load %arg8[%c1_335, %c3_336, %c0_337, %c0_338] : memref<2x4x64x16xbf16, #tpu.memory_space<vmem>>, vector<1x1x64x16xbf16>
    %512 = vector.shape_cast %511 : vector<1x1x64x16xbf16> to vector<64x16xbf16>
    %cst_339 = arith.constant dense<0.000000e+00> : vector<48x16xf32>
    %513 = tpu.matmul %349, %512, %cst_339 {dimension_numbers = #tpu.dot_dimension_numbers<[1], [0], [0], [1], [0, 0, 1, 1], [], []>} : vector<48x64xbf16>, vector<64x16xbf16>, vector<48x16xf32> -> vector<48x16xf32>
    %c1_340 = arith.constant 1 : index
    %c3_341 = arith.constant 3 : index
    %c0_342 = arith.constant 0 : index
    %c0_343 = arith.constant 0 : index
    %514 = vector.load %arg11[%c1_340, %c3_341, %c0_342, %c0_343] : memref<2x4x1x16xf32, #tpu.memory_space<vmem>>, vector<1x1x1x16xf32>
    %515 = vector.shape_cast %514 : vector<1x1x1x16xf32> to vector<1x16xf32>
    %516 = vector.broadcast %515 : vector<1x16xf32> to vector<48x16xf32>
    %517 = arith.addf %513, %516 : vector<48x16xf32>
    %c1_344 = arith.constant 1 : index
    %c3_345 = arith.constant 3 : index
    %c0_346 = arith.constant 0 : index
    %c0_347 = arith.constant 0 : index
    %518 = vector.load %arg9[%c1_344, %c3_345, %c0_346, %c0_347] : memref<2x4x64x16xbf16, #tpu.memory_space<vmem>>, vector<1x1x64x16xbf16>
    %519 = vector.shape_cast %518 : vector<1x1x64x16xbf16> to vector<64x16xbf16>
    %cst_348 = arith.constant dense<0.000000e+00> : vector<48x16xf32>
    %520 = tpu.matmul %349, %519, %cst_348 {dimension_numbers = #tpu.dot_dimension_numbers<[1], [0], [0], [1], [0, 0, 1, 1], [], []>} : vector<48x64xbf16>, vector<64x16xbf16>, vector<48x16xf32> -> vector<48x16xf32>
    %c1_349 = arith.constant 1 : index
    %c3_350 = arith.constant 3 : index
    %c0_351 = arith.constant 0 : index
    %c0_352 = arith.constant 0 : index
    %521 = vector.load %arg12[%c1_349, %c3_350, %c0_351, %c0_352] : memref<2x4x1x16xf32, #tpu.memory_space<vmem>>, vector<1x1x1x16xf32>
    %522 = vector.shape_cast %521 : vector<1x1x1x16xf32> to vector<1x16xf32>
    %523 = vector.broadcast %522 : vector<1x16xf32> to vector<48x16xf32>
    %524 = arith.addf %520, %523 : vector<48x16xf32>
    %525 = vector.shape_cast %510 : vector<48x16xf32> to vector<2x24x16xf32>
    %526 = vector.shape_cast %517 : vector<48x16xf32> to vector<2x24x16xf32>
    %527 = vector.shape_cast %524 : vector<48x16xf32> to vector<2x24x16xf32>
    %528 = arith.truncf %525 : vector<2x24x16xf32> to vector<2x24x16xbf16>
    %529 = arith.truncf %526 : vector<2x24x16xf32> to vector<2x24x16xbf16>
    "tpu.trace_start"() <{level = 10 : i32, message = "bqd,bkd->bqk"}> : () -> ()
    %cst_353 = arith.constant dense<0.000000e+00> : vector<2x24x24xf32>
    %530 = tpu.matmul %528, %529, %cst_353 {dimension_numbers = #tpu.dot_dimension_numbers<[2], [2], [1], [1], [0, 0, 0, 1, 1, 1], [0], [0]>} : vector<2x24x16xbf16>, vector<2x24x16xbf16>, vector<2x24x24xf32> -> vector<2x24x24xf32>
    "tpu.trace_stop"() : () -> ()
    %cst_354 = arith.constant 2.500000e-01 : f32
    %531 = vector.broadcast %cst_354 : f32 to vector<2x24x24xf32>
    %532 = arith.mulf %530, %531 : vector<2x24x24xf32>
    %533 = vector.shape_cast %34 : vector<24x24xf32> to vector<1x24x24xf32>
    %534 = vector.broadcast %533 : vector<1x24x24xf32> to vector<2x24x24xf32>
    %535 = arith.addf %532, %534 : vector<2x24x24xf32>
    %cst_355 = arith.constant dense<0xFF800000> : vector<2x24xf32>
    %536 = vector.multi_reduction <maximumf>, %535, %cst_355 [2] : vector<2x24x24xf32> to vector<2x24xf32>
    %537 = vector.shape_cast %536 : vector<2x24xf32> to vector<2x24x1xf32>
    %538 = vector.broadcast %537 : vector<2x24x1xf32> to vector<2x24x24xf32>
    %539 = arith.subf %535, %538 : vector<2x24x24xf32>
    %540 = math.exp %539 : vector<2x24x24xf32>
    %cst_356 = arith.constant dense<0.000000e+00> : vector<2x24xf32>
    %541 = vector.multi_reduction <add>, %540, %cst_356 [2] : vector<2x24x24xf32> to vector<2x24xf32>
    %542 = vector.shape_cast %541 : vector<2x24xf32> to vector<2x24x1xf32>
    %543 = tpu.reciprocal %542 {approx = true} : vector<2x24x1xf32> -> vector<2x24x1xf32>
    %544 = vector.broadcast %543 : vector<2x24x1xf32> to vector<2x24x24xf32>
    %545 = arith.mulf %540, %544 : vector<2x24x24xf32>
    %546 = arith.truncf %545 : vector<2x24x24xf32> to vector<2x24x24xbf16>
    %547 = arith.truncf %527 : vector<2x24x16xf32> to vector<2x24x16xbf16>
    "tpu.trace_start"() <{level = 10 : i32, message = "bqk,bkd->bqd"}> : () -> ()
    %cst_357 = arith.constant dense<0.000000e+00> : vector<2x24x16xf32>
    %548 = tpu.matmul %546, %547, %cst_357 {dimension_numbers = #tpu.dot_dimension_numbers<[2], [1], [1], [2], [0, 0, 0, 1, 1, 2], [0], [0]>} : vector<2x24x24xbf16>, vector<2x24x16xbf16>, vector<2x24x16xf32> -> vector<2x24x16xf32>
    "tpu.trace_stop"() : () -> ()
    %549 = vector.shape_cast %548 : vector<2x24x16xf32> to vector<48x16xf32>
    %550 = arith.truncf %549 : vector<48x16xf32> to vector<48x16xbf16>
    %c1_358 = arith.constant 1 : index
    %c3_359 = arith.constant 3 : index
    %c0_360 = arith.constant 0 : index
    %c0_361 = arith.constant 0 : index
    %551 = vector.load %arg13[%c1_358, %c3_359, %c0_360, %c0_361] : memref<2x4x16x64xbf16, #tpu.memory_space<vmem>>, vector<1x1x16x64xbf16>
    %552 = vector.shape_cast %551 : vector<1x1x16x64xbf16> to vector<16x64xbf16>
    %cst_362 = arith.constant dense<0.000000e+00> : vector<48x64xf32>
    %553 = tpu.matmul %550, %552, %cst_362 {dimension_numbers = #tpu.dot_dimension_numbers<[1], [0], [0], [1], [0, 0, 1, 1], [], []>} : vector<48x16xbf16>, vector<16x64xbf16>, vector<48x64xf32> -> vector<48x64xf32>
    %554 = arith.addf %503, %553 : vector<48x64xf32>
    %555 = arith.addf %322, %554 : vector<48x64xf32>
    %c1_363 = arith.constant 1 : index
    %c0_364 = arith.constant 0 : index
    %c0_365 = arith.constant 0 : index
    %556 = vector.load %arg14[%c1_363, %c0_364, %c0_365] : memref<2x1x64xf32, #tpu.memory_space<vmem>>, vector<1x1x64xf32>
    %557 = vector.shape_cast %556 : vector<1x1x64xf32> to vector<1x64xf32>
    %558 = vector.broadcast %557 : vector<1x64xf32> to vector<48x64xf32>
    %559 = arith.addf %555, %558 : vector<48x64xf32>
    %c1_366 = arith.constant 1 : index
    %c0_367 = arith.constant 0 : index
    %c0_368 = arith.constant 0 : index
    %560 = vector.load %arg15[%c1_366, %c0_367, %c0_368] : memref<2x1x64xf32, #tpu.memory_space<vmem>>, vector<1x1x64xf32>
    %561 = vector.shape_cast %560 : vector<1x1x64xf32> to vector<1x64xf32>
    %c1_369 = arith.constant 1 : index
    %c0_370 = arith.constant 0 : index
    %c0_371 = arith.constant 0 : index
    %562 = vector.load %arg16[%c1_369, %c0_370, %c0_371] : memref<2x1x64xf32, #tpu.memory_space<vmem>>, vector<1x1x64xf32>
    %563 = vector.shape_cast %562 : vector<1x1x64xf32> to vector<1x64xf32>
    %cst_372 = arith.constant dense<0.000000e+00> : vector<48xf32>
    %564 = vector.multi_reduction <add>, %559, %cst_372 [1] : vector<48x64xf32> to vector<48xf32>
    %565 = vector.shape_cast %564 : vector<48xf32> to vector<48x1xf32>
    %cst_373 = arith.constant 6.400000e+01 : f32
    %566 = vector.broadcast %cst_373 : f32 to vector<48x1xf32>
    %567 = arith.divf %565, %566 : vector<48x1xf32>
    %568 = vector.broadcast %567 : vector<48x1xf32> to vector<48x64xf32>
    %569 = arith.subf %559, %568 : vector<48x64xf32>
    %570 = arith.mulf %569, %569 : vector<48x64xf32>
    %cst_374 = arith.constant dense<0.000000e+00> : vector<48xf32>
    %571 = vector.multi_reduction <add>, %570, %cst_374 [1] : vector<48x64xf32> to vector<48xf32>
    %572 = vector.shape_cast %571 : vector<48xf32> to vector<48x1xf32>
    %cst_375 = arith.constant 6.400000e+01 : f32
    %573 = vector.broadcast %cst_375 : f32 to vector<48x1xf32>
    %574 = arith.divf %572, %573 : vector<48x1xf32>
    %575 = vector.broadcast %567 : vector<48x1xf32> to vector<48x64xf32>
    %576 = arith.subf %559, %575 : vector<48x64xf32>
    %cst_376 = arith.constant 9.99999974E-6 : f32
    %577 = vector.broadcast %cst_376 : f32 to vector<48x1xf32>
    %578 = arith.addf %574, %577 : vector<48x1xf32>
    %579 = math.rsqrt %578 : vector<48x1xf32>
    %580 = vector.broadcast %579 : vector<48x1xf32> to vector<48x64xf32>
    %581 = arith.mulf %576, %580 : vector<48x64xf32>
    %582 = vector.broadcast %561 : vector<1x64xf32> to vector<48x64xf32>
    %583 = arith.mulf %581, %582 : vector<48x64xf32>
    %584 = vector.broadcast %563 : vector<1x64xf32> to vector<48x64xf32>
    %585 = arith.addf %583, %584 : vector<48x64xf32>
    %586 = arith.truncf %585 : vector<48x64xf32> to vector<48x64xbf16>
    %c1_377 = arith.constant 1 : index
    %c0_378 = arith.constant 0 : index
    %c0_379 = arith.constant 0 : index
    %587 = vector.load %arg17[%c1_377, %c0_378, %c0_379] : memref<2x64x256xbf16, #tpu.memory_space<vmem>>, vector<1x64x256xbf16>
    %588 = vector.shape_cast %587 : vector<1x64x256xbf16> to vector<64x256xbf16>
    %cst_380 = arith.constant dense<0.000000e+00> : vector<48x256xf32>
    %589 = tpu.matmul %586, %588, %cst_380 {dimension_numbers = #tpu.dot_dimension_numbers<[1], [0], [0], [1], [0, 0, 1, 1], [], []>} : vector<48x64xbf16>, vector<64x256xbf16>, vector<48x256xf32> -> vector<48x256xf32>
    %c1_381 = arith.constant 1 : index
    %c0_382 = arith.constant 0 : index
    %c0_383 = arith.constant 0 : index
    %590 = vector.load %arg18[%c1_381, %c0_382, %c0_383] : memref<2x1x256xf32, #tpu.memory_space<vmem>>, vector<1x1x256xf32>
    %591 = vector.shape_cast %590 : vector<1x1x256xf32> to vector<1x256xf32>
    %592 = vector.broadcast %591 : vector<1x256xf32> to vector<48x256xf32>
    %593 = arith.addf %589, %592 : vector<48x256xf32>
    %cst_384 = arith.constant 1.702000e+00 : f32
    %594 = vector.broadcast %cst_384 : f32 to vector<48x256xf32>
    %595 = arith.mulf %594, %593 : vector<48x256xf32>
    %596 = arith.negf %595 : vector<48x256xf32>
    %597 = math.exp %596 : vector<48x256xf32>
    %cst_385 = arith.constant 1.000000e+00 : f32
    %598 = vector.broadcast %cst_385 : f32 to vector<48x256xf32>
    %599 = arith.addf %598, %597 : vector<48x256xf32>
    %600 = arith.divf %598, %599 : vector<48x256xf32>
    %601 = arith.mulf %593, %600 : vector<48x256xf32>
    %602 = arith.truncf %601 : vector<48x256xf32> to vector<48x256xbf16>
    %c1_386 = arith.constant 1 : index
    %c0_387 = arith.constant 0 : index
    %c0_388 = arith.constant 0 : index
    %603 = vector.load %arg19[%c1_386, %c0_387, %c0_388] : memref<2x256x64xbf16, #tpu.memory_space<vmem>>, vector<1x256x64xbf16>
    %604 = vector.shape_cast %603 : vector<1x256x64xbf16> to vector<256x64xbf16>
    %cst_389 = arith.constant dense<0.000000e+00> : vector<48x64xf32>
    %605 = tpu.matmul %602, %604, %cst_389 {dimension_numbers = #tpu.dot_dimension_numbers<[1], [0], [0], [1], [0, 0, 1, 1], [], []>} : vector<48x256xbf16>, vector<256x64xbf16>, vector<48x64xf32> -> vector<48x64xf32>
    %606 = arith.addf %559, %605 : vector<48x64xf32>
    %c1_390 = arith.constant 1 : index
    %c0_391 = arith.constant 0 : index
    %c0_392 = arith.constant 0 : index
    %607 = vector.load %arg20[%c1_390, %c0_391, %c0_392] : memref<2x1x64xf32, #tpu.memory_space<vmem>>, vector<1x1x64xf32>
    %608 = vector.shape_cast %607 : vector<1x1x64xf32> to vector<1x64xf32>
    %609 = vector.broadcast %608 : vector<1x64xf32> to vector<48x64xf32>
    %610 = arith.addf %606, %609 : vector<48x64xf32>
    %611 = vector.extract_strided_slice %610 {offsets = [0, 0], sizes = [1, 64], strides = [1, 1]} : vector<48x64xf32> to vector<1x64xf32>
    %612 = vector.extract_strided_slice %610 {offsets = [24, 0], sizes = [1, 64], strides = [1, 1]} : vector<48x64xf32> to vector<1x64xf32>
    %613 = tpu.concatenate %611, %612 in 0 : vector<1x64xf32>, vector<1x64xf32> -> vector<2x64xf32>
    %c0_393 = arith.constant 0 : index
    %c0_394 = arith.constant 0 : index
    %614 = vector.load %arg21[%c0_393, %c0_394] : memref<1x64xf32, #tpu.memory_space<vmem>>, vector<1x64xf32>
    %c0_395 = arith.constant 0 : index
    %c0_396 = arith.constant 0 : index
    %615 = vector.load %arg22[%c0_395, %c0_396] : memref<1x64xf32, #tpu.memory_space<vmem>>, vector<1x64xf32>
    %cst_397 = arith.constant dense<0.000000e+00> : vector<2xf32>
    %616 = vector.multi_reduction <add>, %613, %cst_397 [1] : vector<2x64xf32> to vector<2xf32>
    %617 = vector.shape_cast %616 : vector<2xf32> to vector<2x1xf32>
    %cst_398 = arith.constant 6.400000e+01 : f32
    %618 = vector.broadcast %cst_398 : f32 to vector<2x1xf32>
    %619 = arith.divf %617, %618 : vector<2x1xf32>
    %620 = vector.broadcast %619 : vector<2x1xf32> to vector<2x64xf32>
    %621 = arith.subf %613, %620 : vector<2x64xf32>
    %622 = arith.mulf %621, %621 : vector<2x64xf32>
    %cst_399 = arith.constant dense<0.000000e+00> : vector<2xf32>
    %623 = vector.multi_reduction <add>, %622, %cst_399 [1] : vector<2x64xf32> to vector<2xf32>
    %624 = vector.shape_cast %623 : vector<2xf32> to vector<2x1xf32>
    %cst_400 = arith.constant 6.400000e+01 : f32
    %625 = vector.broadcast %cst_400 : f32 to vector<2x1xf32>
    %626 = arith.divf %624, %625 : vector<2x1xf32>
    %627 = vector.broadcast %619 : vector<2x1xf32> to vector<2x64xf32>
    %628 = arith.subf %613, %627 : vector<2x64xf32>
    %cst_401 = arith.constant 9.99999974E-6 : f32
    %629 = vector.broadcast %cst_401 : f32 to vector<2x1xf32>
    %630 = arith.addf %626, %629 : vector<2x1xf32>
    %631 = math.rsqrt %630 : vector<2x1xf32>
    %632 = vector.broadcast %631 : vector<2x1xf32> to vector<2x64xf32>
    %633 = arith.mulf %628, %632 : vector<2x64xf32>
    %634 = vector.broadcast %614 : vector<1x64xf32> to vector<2x64xf32>
    %635 = arith.mulf %633, %634 : vector<2x64xf32>
    %636 = vector.broadcast %615 : vector<1x64xf32> to vector<2x64xf32>
    %637 = arith.addf %635, %636 : vector<2x64xf32>
    %638 = arith.truncf %637 : vector<2x64xf32> to vector<2x64xbf16>
    %c0_402 = arith.constant 0 : index
    %c0_403 = arith.constant 0 : index
    %639 = vector.load %arg23[%c0_402, %c0_403] : memref<64x512xbf16, #tpu.memory_space<vmem>>, vector<64x512xbf16>
    %cst_404 = arith.constant dense<0.000000e+00> : vector<2x512xf32>
    %640 = tpu.matmul %638, %639, %cst_404 {dimension_numbers = #tpu.dot_dimension_numbers<[1], [0], [0], [1], [0, 0, 1, 1], [], []>} : vector<2x64xbf16>, vector<64x512xbf16>, vector<2x512xf32> -> vector<2x512xf32>
    %641 = arith.truncf %640 : vector<2x512xf32> to vector<2x512xbf16>
    %c0_405 = arith.constant 0 : index
    %c0_406 = arith.constant 0 : index
    %642 = vector.load %arg24[%c0_405, %c0_406] : memref<512x128xbf16, #tpu.memory_space<vmem>>, vector<512x128xbf16>
    %cst_407 = arith.constant dense<0.000000e+00> : vector<2x128xf32>
    %643 = tpu.matmul %641, %642, %cst_407 {dimension_numbers = #tpu.dot_dimension_numbers<[1], [0], [0], [1], [0, 0, 1, 1], [], []>} : vector<2x512xbf16>, vector<512x128xbf16>, vector<2x128xf32> -> vector<2x128xf32>
    %c0_408 = arith.constant 0 : index
    %c0_409 = arith.constant 0 : index
    %644 = vector.load %arg25[%c0_408, %c0_409] : memref<1x128xf32, #tpu.memory_space<vmem>>, vector<1x128xf32>
    %645 = vector.broadcast %644 : vector<1x128xf32> to vector<2x128xf32>
    %646 = arith.addf %643, %645 : vector<2x128xf32>
    %c0_410 = arith.constant 0 : index
    %c0_411 = arith.constant 0 : index
    %647 = vector.load %arg26[%c0_410, %c0_411] : memref<2x128xf32, #tpu.memory_space<vmem>>, vector<2x128xf32>
    tpu.vector_store %arg26[%c0_410, %c0_411], %646 {strides = array<i32>} : memref<2x128xf32, #tpu.memory_space<vmem>>, vector<2x128xf32>,
    return
  }
}

</mosaic_0001>

<bundles_post_ra>
// kernel: _lambda_.1
= control target key start
LH: loop header
LB: loop body
LE: loop exit
PB: predicated region body
PF: predicated region fallthrough
CT: control target
= control target key end

     0   :  { %v10572_v0 = vmov 0   ;;  %vm219_vm0 = vcmask 523264   ;;  %vm10574_vm1 = vmmov 0   ;;  %vm807_vm2 = vcmask 130048   ;;  %s12934_s1 = inlined_call_operand.vmem [shape: bf16[192,64], index: 1, kind: input, shape index: {}]   ;;  %s12935_s0 = inlined_call_operand.vmem [shape: bf16[48,192], index: 0, kind: input, shape index: {}]   ;;  %s12936_s2 = inlined_call_operand.vmem [shape: f32[48,64], index: 2, kind: input, shape index: {}]   ;;  %s12937_s3 = inlined_call_operand.vmem [shape: f32[1,64], index: 3, kind: input, shape index: {}, may-alias: {3,21}]   ;;  %s12938_s4 = inlined_call_operand.vmem [shape: f32[1,64], index: 4, kind: input, shape index: {}, may-alias: {4,22}]   ;;  %s12939_s7 = inlined_call_operand.vmem [shape: bf16[2,4,64,16], index: 7, kind: input, shape index: {}]   ;;  %s12940_s8 = inlined_call_operand.vmem [shape: bf16[2,4,64,16], index: 8, kind: input, shape index: {}]   ;;  %s12941_s9 = inlined_call_operand.vmem [shape: bf16[2,4,64,16], index: 9, kind: input, shape index: {}]   ;;  %s12942_s5 = inlined_call_operand.vmem [shape: f32[2,1,64], index: 5, kind: input, shape index: {}, may-alias: {5,15}]   ;;  %s12943_s6 = inlined_call_operand.vmem [shape: f32[2,1,64], index: 6, kind: input, shape index: {}, may-alias: {6,14,16,20}]   ;;  %s12944_s10 = inlined_call_operand.vmem [shape: f32[2,4,1,16], index: 10, kind: input, shape index: {}, may-alias: {10,11,12}]   ;;  %s12945_s11 = inlined_call_operand.vmem [shape: f32[2,4,1,16], index: 11, kind: input, shape index: {}, may-alias: {10,11,12}]   ;;  %s12946_s12 = inlined_call_operand.vmem [shape: f32[2,4,1,16], index: 12, kind: input, shape index: {}, may-alias: {10,11,12}]   ;;  %s12947_s13 = inlined_call_operand.vmem [shape: bf16[2,4,16,64], index: 13, kind: input, shape index: {}]   ;;  %s12948_s14 = inlined_call_operand.vmem [shape: f32[2,1,64], index: 14, kind: input, shape index: {}, may-alias: {6,14,16,20}]   ;;  %s12949_s17 = inlined_call_operand.vmem [shape: bf16[2,64,256], index: 17, kind: input, shape index: {}]   ;;  %s12950_s15 = inlined_call_operand.vmem [shape: f32[2,1,64], index: 15, kind: input, shape index: {}, may-alias: {5,15}]   ;;  %s12951_s16 = inlined_call_operand.vmem [shape: f32[2,1,64], index: 16, kind: input, shape index: {}, may-alias: {6,14,16,20}]   ;;  %s12952_s19 = inlined_call_operand.vmem [shape: bf16[2,256,64], index: 19, kind: input, shape index: {}]   ;;  %s12953_s18 = inlined_call_operand.vmem [shape: f32[2,1,256], index: 18, kind: input, shape index: {}]   ;;  %s12954_s20 = inlined_call_operand.vmem [shape: f32[2,1,64], index: 20, kind: input, shape index: {}, may-alias: {6,14,16,20}]   ;;  %s12955_s23 = inlined_call_operand.vmem [shape: bf16[64,512], index: 23, kind: input, shape index: {}]   ;;  %s12956_s24 = inlined_call_operand.vmem [shape: bf16[512,128], index: 24, kind: input, shape index: {}]   ;;  %s12957_s21 = inlined_call_operand.vmem [shape: f32[1,64], index: 21, kind: input, shape index: {}, may-alias: {3,21}]   ;;  %s12958_s22 = inlined_call_operand.vmem [shape: f32[1,64], index: 22, kind: input, shape index: {}, may-alias: {4,22}]   ;;  %s12959_s25 = inlined_call_operand.vmem [shape: f32[1,128], index: 25, kind: input, shape index: {}]   ;;  %s12960_s26 = inlined_call_operand.vmem [shape: f32[2,128], index: 26, kind: output, shape index: {}]  }
   0x1   :  { %12970 = sst [smem:[#allocation2_spill]] %s12934_s1  ;;  %229 = vmatprep.subr.bf16.mxu0 %v10572_v0  ;;  %vm1021_vm3 = vcmask 1043456   ;;  %vm940_vm5 = vcmask 195584   ;;  %vm7375_vm6 = vcmask 1040384   ;;  %vm7379_vm7 = vcmask 517120  }
   0x2   :  { %12971 = sst [smem:[#allocation3_spill]] %s12935_s0 }
   0x3   :  { %12972 = sst [smem:[#allocation4_spill]] %s12936_s2 }
   0x4   :  { %12973 = sst [smem:[#allocation5_spill]] %s12937_s3 }
   0x5   :  { %12974 = sst [smem:[#allocation6_spill]] %s12938_s4  ;;  %s12985_s2 = sld [smem:[#allocation5_spill]] }
   0x6   :  { %12975 = sst [smem:[#allocation7_spill]] %s12939_s7  ;;  %s12983_s7 = sld [smem:[#allocation3_spill]] }
   0x7   :  { %12976 = sst [smem:[#allocation8_spill]] %s12940_s8  ;;  %s12984_s8 = sld [smem:[#allocation4_spill]] }
   0x8   :  { %12977 = sst [smem:[#allocation9_spill]] %s12941_s9  ;;  %s12982_s9 = sld [smem:[#allocation2_spill]] }
   0x9   :  { %12978 = sst [smem:[#allocation10_spill]] %s12942_s5  ;;  %s12986_s0 = sld [smem:[#allocation6_spill]] }
   0xa   :  { %12979 = sst [smem:[#allocation11_spill]] %s12943_s6  ;;  %s12990_s28 = sld [smem:[#allocation8_spill]] }
   0xb   :  { %12980 = sst [smem:[#allocation12_spill]] %s12944_s10 }
   0xc   :  { %12981 = sst [smem:[#allocation13_spill]] %s12960_s26  ;;  %v9999_v5 = vld [vmem:[%s12983_s7 + $0x4] ss:$8 sps:$4 sm:$0xff]   ;;  %v9997_v14 = vld [vmem:[%s12983_s7] ss:$8 sps:$4 sm:$0xff]   ;;  %s12992_s30 = sld [smem:[#allocation12_spill]] }
   0xd   :  { %7959 = vmatprep.mubr.msk.bf16.mxu0 %vm219_vm0, %v9999_v5  ;;  %v10000_v15 = vld [vmem:[%s12983_s7 + $0x14] ss:$8 sps:$4 sm:$0xff]   ;;  %v10002_v16 = vld [vmem:[%s12983_s7 + $0x10] ss:$8 sps:$4 sm:$0xff]   ;;  %v10003_v17 = vld [vmem:[%s12983_s7 + $0x24] ss:$8 sps:$4 sm:$0xff]  }
   0xe   :  { %v9985_v1 = vld [vmem:[%s12982_s9] sm:$0xff]   ;;  %v9986_v2 = vld [vmem:[%s12982_s9 + $0x8] sm:$0xff]   ;;  %v9987_v3 = vld [vmem:[%s12982_s9 + $0x10] sm:$0xff]   ;;  %s12993_s10 = sld [smem:[#allocation13_spill]] }
   0xf   :  { %230 = vmatpush1.bf16.msra.mxu0 %v9985_v1  ;;  %v9988_v4 = vld [vmem:[%s12982_s9 + $0x18] sm:$0xff]   ;;  %v9989_v6 = vld [vmem:[%s12982_s9 + $0x20] sm:$0xff]   ;;  %v9990_v7 = vld [vmem:[%s12982_s9 + $0x28] sm:$0xff]  }
  0x10   :  { %231 = vmatprep.subr.bf16.mxu0 %v10572_v0  ;;  %v9991_v8 = vld [vmem:[%s12982_s9 + $0x30] sm:$0xff]   ;;  %v9992_v9 = vld [vmem:[%s12982_s9 + $0x38] sm:$0xff]   ;;  %v9993_v10 = vld [vmem:[%s12982_s9 + $0x40] sm:$0xff]  }
  0x11   :  { %v9994_v11 = vld [vmem:[%s12982_s9 + $0x48] sm:$0xff]   ;;  %v9995_v12 = vld [vmem:[%s12982_s9 + $0x50] sm:$0xff]   ;;  %v9996_v13 = vld [vmem:[%s12982_s9 + $0x58] sm:$0xff]  }
  0x12   :  { %v10005_v18 = vld [vmem:[%s12983_s7 + $0x20] ss:$8 sps:$4 sm:$0xff]   ;;  %v116_v28 = vld [vmem:[%s12984_s8 + $0x10] sm:$0xff]  ;;  %v117_v31 = vld [vmem:[%s12984_s8 + $0x18] sm:$0xff]  ;;  %s12987_s7 = sld [smem:[#allocation7_spill]] }
  0x13   :  { %232 = vmatpush1.bf16.msra.mxu0 %v9986_v2  ;;  %v114_v19 = vld [vmem:[%s12984_s8] sm:$0xff]  ;;  %v115_v21 = vld [vmem:[%s12984_s8 + $0x8] sm:$0xff] }
  0x14   :  { %233 = vmatprep.subr.bf16.mxu0 %v10572_v0  ;;  %v118_v38 = vld [vmem:[%s12984_s8 + $0x20] sm:$0xff]  ;;  %v119_v41 = vld [vmem:[%s12984_s8 + $0x28] sm:$0xff]  ;;  %s12991_s8 = sld [smem:[#allocation9_spill]] }
  0x17   :  { %234 = vmatpush1.bf16.msra.mxu0 %v9987_v3 }
  0x18   :  { %235 = vmatprep.subr.bf16.mxu0 %v10572_v0 }
  0x1b   :  { %236 = vmatpush1.bf16.msra.mxu0 %v9988_v4 }
  0x1c   :  { %237 = vmatprep.subr.bf16.mxu0 %v10572_v0 }
  0x1f   :  { %238 = vmatpush1.bf16.msra.mxu0 %v9989_v6 }
  0x20   :  { %239 = vmatprep.subr.bf16.mxu0 %v10572_v0 }
  0x23   :  { %240 = vmatpush1.bf16.msra.mxu0 %v9990_v7 }
  0x24   :  { %241 = vmatprep.subr.bf16.mxu0 %v10572_v0 }
  0x27   :  { %242 = vmatpush1.bf16.msra.mxu0 %v9991_v8 }
  0x28   :  { %243 = vmatprep.subr.bf16.mxu0 %v10572_v0 }
  0x2b   :  { %244 = vmatpush1.bf16.msra.mxu0 %v9992_v9 }
  0x2c   :  { %245 = vmatprep.subr.bf16.mxu0 %v10572_v0 }
  0x2f   :  { %246 = vmatpush1.bf16.msra.mxu0 %v9993_v10 }
  0x30   :  { %247 = vmatprep.subr.bf16.mxu0 %v10572_v0 }
  0x33   :  { %248 = vmatpush1.bf16.msra.mxu0 %v9994_v11 }
  0x34   :  { %249 = vmatprep.subr.bf16.mxu0 %v10572_v0 }
  0x37   :  { %250 = vmatpush1.bf16.msra.mxu0 %v9995_v12 }
  0x38   :  { %251 = vmatprep.subr.bf16.mxu0 %v10572_v0 }
  0x3b   :  { %252 = vmatpush1.bf16.msra.mxu0 %v9996_v13 }
  0x3e   :  { %262 = vmatmul.mubr.bf16.vlgmr.msra.gmra.mrb[0].mxu0 %v9997_v14 }
  0x3f   :  { %7960 = vmatprep.mubr.msk.bf16.mxu0 %vm219_vm0, %v10000_v15 }
  0x46   :  { %270 = vmatmul.mubr.bf16.gmra.mrb[4].mxu0 %v10002_v16 }
  0x47   :  { %7961 = vmatprep.mubr.msk.bf16.mxu0 %vm219_vm0, %v10003_v17 }
  0x4e   :  { %278 = vmatmul.mubr.bf16.gmra.mrb[8].mxu0 %v10005_v18 }
 0x111   :  { %v263_v20 = vpop.f32.mrb[0].mxu0 }
 0x112   :  { %v265_v22 = vpop.f32.mrb[1].mxu0  ;;  %v264_v23 = vadd.f32 %v263_v20, %v114_v19 }
 0x113   :  { %v266_v24 = vpop.f32.mrb[2].mxu0 }
 0x114   :  { %v268_v25 = vpop.f32.mrb[3].mxu0  ;;  %v288_v26 = vsel %vm219_vm0, %v264_v23, 0.0  ;;  %v267_v27 = vadd.f32 %v266_v24, %v115_v21 }
 0x115   :  { %289 = vadd.xlane.f32.xlu0 %v288_v26 }
 0x116   :  { %v291_v29 = vsel %vm219_vm0, %v267_v27, 0.0 }
 0x119   :  { %v271_v30 = vpop.f32.mrb[4].mxu0  ;;  %292 = vadd.xlane.f32.xlu0 %v291_v29  ;;  %v7962_v29 = vld [vmem:[%s12985_s2] ss:$0 sm:$0xff]  ;;  %s12988_s2 = sld [smem:[#allocation10_spill]] }
 0x11a   :  { %v273_v32 = vpop.f32.mrb[5].mxu0  ;;  %v272_v33 = vadd.f32 %v271_v30, %v116_v28 }
 0x11b   :  { %v274_v34 = vpop.f32.mrb[6].mxu0 }
 0x11c   :  { %v276_v35 = vpop.f32.mrb[7].mxu0  ;;  %v294_v36 = vsel %vm219_vm0, %v272_v33, 0.0  ;;  %v275_v37 = vadd.f32 %v274_v34, %v117_v31 }
 0x11d   :  { %295 = vadd.xlane.f32.xlu1 %v294_v36 }
 0x11e   :  { %v297_v39 = vsel %vm219_vm0, %v275_v37, 0.0 }
 0x121   :  { %v279_v40 = vpop.f32.mrb[8].mxu0  ;;  %298 = vadd.xlane.f32.xlu1 %v297_v39 }
 0x122   :  { %v281_v42 = vpop.f32.mrb[9].mxu0  ;;  %v280_v43 = vadd.f32 %v279_v40, %v118_v38 }
 0x123   :  { %v282_v44 = vpop.f32.mrb[10].mxu0 }
 0x124   :  { %v284_v45 = vpop.f32.mrb[11].mxu0  ;;  %v300_v46 = vsel %vm219_vm0, %v280_v43, 0.0  ;;  %v283_v47 = vadd.f32 %v282_v44, %v119_v41 }
 0x125   :  { %301 = vadd.xlane.f32.xlu0 %v300_v46 }
 0x126   :  { %v303_v48 = vsel %vm219_vm0, %v283_v47, 0.0 }
 0x127   :  { %304 = vadd.xlane.f32.xlu1 %v303_v48 }
 0x1a2   :  { %v290_v49 = vpop.xlane.xlu0 %289 }
 0x1a3   :  { %v307_v50 = vmul.f32 0.015625, %v290_v49 }
 0x1a5   :  { %v313_v51 = vsub.f32 %v264_v23, %v307_v50 }
 0x1a6   :  { %v293_v52 = vpop.xlane.xlu0 %292 }
 0x1a7   :  { %v308_v53 = vmul.f32 0.015625, %v293_v52  ;;  %v319_v54 = vmul.f32 %v313_v51, %v313_v51 }
 0x1a9   :  { %v314_v55 = vsub.f32 %v267_v27, %v308_v53  ;;  %v325_v56 = vsel %vm219_vm0, %v319_v54, 0.0 }
 0x1aa   :  { %v296_v57 = vpop.xlane.xlu1 %295  ;;  %326 = vadd.xlane.f32.xlu0 %v325_v56 }
 0x1ab   :  { %v309_v58 = vmul.f32 0.015625, %v296_v57  ;;  %v320_v59 = vmul.f32 %v314_v55, %v314_v55 }
 0x1ad   :  { %v10805_v60 = vsub.f32 %v272_v33, %v309_v58  ;;  %v328_v61 = vsel %vm219_vm0, %v320_v59, 0.0  ;;  %v7963_v33 = vld [vmem:[%s12986_s0] ss:$0 sm:$0xff]  ;;  %s12989_s0 = sld [smem:[#allocation11_spill]] }
 0x1ae   :  { %v299_v62 = vpop.xlane.xlu1 %298  ;;  %329 = vadd.xlane.f32.xlu1 %v328_v61 }
 0x1af   :  { %v310_v63 = vmul.f32 0.015625, %v299_v62  ;;  %v321_v1 = vmul.f32 %v10805_v60, %v10805_v60 }
 0x1b1   :  { %v10810_v2 = vsub.f32 %v275_v37, %v310_v63  ;;  %v331_v3 = vsel %vm219_vm0, %v321_v1, 0.0 }
 0x1b2   :  { %332 = vadd.xlane.f32.xlu0 %v331_v3  ;;  %v302_v4 = vpop.xlane.xlu0 %301 }
 0x1b3   :  { %v311_v5 = vmul.f32 0.015625, %v302_v4  ;;  %v322_v6 = vmul.f32 %v10810_v2, %v10810_v2 }
 0x1b4   :  { %v305_v7 = vpop.xlane.xlu1 %304 }
 0x1b5   :  { %v317_v8 = vsub.f32 %v280_v43, %v311_v5  ;;  %v312_v9 = vmul.f32 0.015625, %v305_v7  ;;  %v334_v10 = vsel %vm219_vm0, %v322_v6, 0.0 }
 0x1b6   :  { %335 = vadd.xlane.f32.xlu1 %v334_v10 }
 0x1b7   :  { %v318_v11 = vsub.f32 %v283_v47, %v312_v9  ;;  %v323_v12 = vmul.f32 %v317_v8, %v317_v8 }
 0x1b9   :  { %v337_v13 = vsel %vm219_vm0, %v323_v12, 0.0  ;;  %v324_v14 = vmul.f32 %v318_v11, %v318_v11 }
 0x1ba   :  { %338 = vadd.xlane.f32.xlu0 %v337_v13 }
 0x1bb   :  { %v340_v15 = vsel %vm219_vm0, %v324_v14, 0.0 }
 0x1bc   :  { %341 = vadd.xlane.f32.xlu1 %v340_v15 }
 0x237   :  { %v327_v16 = vpop.xlane.xlu0 %326 }
 0x238   :  { %v343_v17 = vmul.f32 0.015625, %v327_v16 }
 0x23a   :  { %v349_v18 = vadd.f32 1e-05, %v343_v17 }
 0x23b   :  { %v330_v19 = vpop.xlane.xlu1 %329 }
 0x23c   :  { %10222 = vrsqrt.f32 %v349_v18  ;;  %v344_v20 = vmul.f32 0.015625, %v330_v19 }
 0x23e   :  { %v350_v21 = vadd.f32 1e-05, %v344_v20 }
 0x23f   :  { %v333_v22 = vpop.xlane.xlu0 %332 }
 0x240   :  { %10224 = vrsqrt.f32 %v350_v21  ;;  %v345_v23 = vmul.f32 0.015625, %v333_v22 }
 0x242   :  { %v351_v24 = vadd.f32 1e-05, %v345_v23 }
 0x243   :  { %v336_v25 = vpop.xlane.xlu1 %335 }
 0x244   :  { %10226 = vrsqrt.f32 %v351_v24  ;;  %v346_v26 = vmul.f32 0.015625, %v336_v25 }
 0x246   :  { %v10223_v27 = vpop.eup %10222  ;;  %v352_v28 = vadd.f32 1e-05, %v346_v26 }
 0x247   :  { %v339_v30 = vpop.xlane.xlu0 %338  ;;  %v361_v31 = vmul.f32 %v10223_v27, %v313_v51 }
 0x248   :  { %10228 = vrsqrt.f32 %v352_v28  ;;  %v347_v32 = vmul.f32 0.015625, %v339_v30 }
 0x249   :  { %v342_v34 = vpop.xlane.xlu1 %341  ;;  %v373_v35 = vmul.f32 %v7962_v29, %v361_v31 }
 0x24a   :  { %v10225_v36 = vpop.eup %10224  ;;  %v353_v37 = vadd.f32 1e-05, %v347_v32  ;;  %v348_v38 = vmul.f32 0.015625, %v342_v34  ;;  %v10573_v34 = vmov 0.0  }
 0x24b   :  { %v10824_v39 = vadd.f32 %v7963_v33, %v373_v35  ;;  %v362_v40 = vmul.f32 %v10225_v36, %v314_v55  ;;  %9085 = vmatprep.subr.bf16.mxu1 %v10573_v34  ;;  %v10007_v35 = vld [vmem:[%s12987_s7 + $0x8] sm:$0xff]   ;;  %v10008_v36 = vld [vmem:[%s12987_s7 + $0x10] sm:$0xff]   ;;  %9093 = vmatprep.mubr.msk.bf16.mxu1 %vm10574_vm1, %v10573_v34 }
 0x24c   :  { %10230 = vrsqrt.f32 %v353_v37  ;;  %v354_v41 = vadd.f32 1e-05, %v348_v38  ;;  %v10009_v37 = vld [vmem:[%s12987_s7 + $0x18] sm:$0xff]  }
 0x24d   :  { %v397_v42 = vsel %vm219_vm0, %v10824_v39, 0.0  ;;  %v374_v43 = vmul.f32 %v7962_v29, %v362_v40 }
 0x24e   :  { %v10227_v44 = vpop.eup %10226  ;;  %10232 = vrsqrt.f32 %v354_v41  ;;  %398 = vadd.xlane.f32.xlu0 %v397_v42 }
 0x24f   :  { %v10828_v45 = vadd.f32 %v7963_v33, %v374_v43  ;;  %v363_v46 = vmul.f32 %v10227_v44, %v10805_v60 }
 0x251   :  { %v400_v47 = vsel %vm219_vm0, %v10828_v45, 0.0  ;;  %v375_v48 = vmul.f32 %v7962_v29, %v363_v46 }
 0x252   :  { %v10229_v49 = vpop.eup %10228  ;;  %401 = vadd.xlane.f32.xlu1 %v400_v47 }
 0x253   :  { %v10833_v50 = vadd.f32 %v7963_v33, %v375_v48  ;;  %v364_v51 = vmul.f32 %v10229_v49, %v10810_v2 }
 0x255   :  { %v403_v52 = vsel %vm219_vm0, %v10833_v50, 0.0  ;;  %v376_v53 = vmul.f32 %v7962_v29, %v364_v51 }
 0x256   :  { %v10231_v54 = vpop.eup %10230  ;;  %404 = vadd.xlane.f32.xlu0 %v403_v52 }
 0x257   :  { %v10838_v55 = vadd.f32 %v7963_v33, %v376_v53  ;;  %v365_v56 = vmul.f32 %v10231_v54, %v317_v8 }
 0x258   :  { %v10233_v57 = vpop.eup %10232 }
 0x259   :  { %v406_v58 = vsel %vm219_vm0, %v10838_v55, 0.0  ;;  %v377_v59 = vmul.f32 %v7962_v29, %v365_v56  ;;  %v366_v60 = vmul.f32 %v10233_v57, %v318_v11  ;;  %v7964_v57 = vld [vmem:[%s12988_s2] ss:$0 sm:$0xff] }
 0x25a   :  { %407 = vadd.xlane.f32.xlu1 %v406_v58 }
 0x25b   :  { %v10842_v61 = vadd.f32 %v7963_v33, %v377_v59  ;;  %v378_v62 = vmul.f32 %v7962_v29, %v366_v60 }
 0x25d   :  { %v409_v63 = vsel %vm219_vm0, %v10842_v61, 0.0  ;;  %v10846_v1 = vadd.f32 %v7963_v33, %v378_v62  ;;  %v10006_v33 = vld [vmem:[%s12987_s7] sm:$0xff]  }
 0x25e   :  { %410 = vadd.xlane.f32.xlu0 %v409_v63  ;;  %9086 = vmatpush3.bf16.msra.mxu1 %v10006_v33  ;;  %v10015_v33 = vld [vmem:[%s12991_s8 + $0x8] sm:$0xff]  }
 0x25f   :  { %v412_v2 = vsel %vm219_vm0, %v10846_v1, 0.0  ;;  %9087 = vmatprep.subr.bf16.mxu1 %v10573_v34 }
 0x260   :  { %413 = vadd.xlane.f32.xlu1 %v412_v2 }
 0x262   :  { %9088 = vmatpush3.bf16.msra.mxu1 %v10007_v35  ;;  %v10016_v35 = vld [vmem:[%s12991_s8 + $0x10] sm:$0xff]  }
 0x263   :  { %9089 = vmatprep.subr.bf16.mxu1 %v10573_v34 }
 0x266   :  { %9090 = vmatpush3.bf16.msra.mxu1 %v10008_v36  ;;  %v10017_v36 = vld [vmem:[%s12991_s8 + $0x18] sm:$0xff]  }
 0x267   :  { %9091 = vmatprep.subr.bf16.mxu1 %v10573_v34 }
 0x26a   :  { %9092 = vmatpush3.bf16.msra.mxu1 %v10009_v37  ;;  %v10991_v37 = vld [vmem:[%s12992_s30] ss:$0 sm:$0xff] }
 0x26b   :  { %9105 = vmatprep.subr.bf16.mxu1 %v10573_v34 }
 0x2db   :  { %v399_v3 = vpop.xlane.xlu0 %398 }
 0x2dc   :  { %v415_v4 = vmul.f32 0.015625, %v399_v3 }
 0x2de   :  { %v10851_v5 = vsub.f32 %v10824_v39, %v415_v4  ;;  %v7965_v4 = vld [vmem:[%s12989_s0] ss:$0 sm:$0xff] }
 0x2df   :  { %v402_v6 = vpop.xlane.xlu1 %401 }
 0x2e0   :  { %v416_v7 = vmul.f32 0.015625, %v402_v6  ;;  %v427_v8 = vmul.f32 %v10851_v5, %v10851_v5 }
 0x2e2   :  { %v10856_v9 = vsub.f32 %v10828_v45, %v416_v7  ;;  %v433_v10 = vsel %vm219_vm0, %v427_v8, 0.0 }
 0x2e3   :  { %434 = vadd.xlane.f32.xlu0 %v433_v10  ;;  %v405_v11 = vpop.xlane.xlu0 %404 }
 0x2e4   :  { %v417_v12 = vmul.f32 0.015625, %v405_v11  ;;  %v428_v13 = vmul.f32 %v10856_v9, %v10856_v9 }
 0x2e6   :  { %v10862_v14 = vsub.f32 %v10833_v50, %v417_v12  ;;  %v436_v15 = vsel %vm219_vm0, %v428_v13, 0.0  ;;  %v10010_v12 = vld [vmem:[%s12990_s28] sm:$0xff]  }
 0x2e7   :  { %437 = vadd.xlane.f32.xlu1 %v436_v15  ;;  %v408_v16 = vpop.xlane.xlu1 %407 }
 0x2e8   :  { %v418_v17 = vmul.f32 0.015625, %v408_v16  ;;  %v429_v18 = vmul.f32 %v10862_v14, %v10862_v14 }
 0x2ea   :  { %v10868_v19 = vsub.f32 %v10838_v55, %v418_v17  ;;  %v439_v20 = vsel %vm219_vm0, %v429_v18, 0.0 }
 0x2eb   :  { %440 = vadd.xlane.f32.xlu0 %v439_v20  ;;  %v411_v21 = vpop.xlane.xlu0 %410 }
 0x2ec   :  { %v419_v22 = vmul.f32 0.015625, %v411_v21  ;;  %v430_v23 = vmul.f32 %v10868_v19, %v10868_v19 }
 0x2ed   :  { %v414_v24 = vpop.xlane.xlu1 %413 }
 0x2ee   :  { %v10874_v25 = vsub.f32 %v10842_v61, %v419_v22  ;;  %v420_v26 = vmul.f32 0.015625, %v414_v24  ;;  %v442_v27 = vsel %vm219_vm0, %v430_v23, 0.0  ;;  %v10012_v23 = vld [vmem:[%s12990_s28 + $0x10] sm:$0xff]  }
 0x2ef   :  { %443 = vadd.xlane.f32.xlu1 %v442_v27 }
 0x2f0   :  { %v10878_v28 = vsub.f32 %v10846_v1, %v420_v26  ;;  %v431_v29 = vmul.f32 %v10874_v25, %v10874_v25 }
 0x2f2   :  { %v445_v30 = vsel %vm219_vm0, %v431_v29, 0.0  ;;  %v432_v31 = vmul.f32 %v10878_v28, %v10878_v28 }
 0x2f3   :  { %446 = vadd.xlane.f32.xlu0 %v445_v30 }
 0x2f4   :  { %v448_v32 = vsel %vm219_vm0, %v432_v31, 0.0 }
 0x2f5   :  { %449 = vadd.xlane.f32.xlu1 %v448_v32  ;;  %v10014_v32 = vld [vmem:[%s12991_s8] sm:$0xff]  }
 0x370   :  { %v435_v38 = vpop.xlane.xlu0 %434 }
 0x371   :  { %v451_v40 = vmul.f32 0.015625, %v435_v38 }
 0x373   :  { %v457_v41 = vadd.f32 1e-05, %v451_v40 }
 0x374   :  { %v438_v42 = vpop.xlane.xlu1 %437 }
 0x375   :  { %10234 = vrsqrt.f32 %v457_v41  ;;  %v452_v43 = vmul.f32 0.015625, %v438_v42 }
 0x377   :  { %v458_v44 = vadd.f32 1e-05, %v452_v43 }
 0x378   :  { %v441_v46 = vpop.xlane.xlu0 %440 }
 0x379   :  { %10236 = vrsqrt.f32 %v458_v44  ;;  %v453_v47 = vmul.f32 0.015625, %v441_v46 }
 0x37b   :  { %v459_v48 = vadd.f32 1e-05, %v453_v47 }
 0x37c   :  { %v444_v49 = vpop.xlane.xlu1 %443 }
 0x37d   :  { %10238 = vrsqrt.f32 %v459_v48  ;;  %v454_v51 = vmul.f32 0.015625, %v444_v49 }
 0x37f   :  { %v10235_v52 = vpop.eup %10234  ;;  %v460_v53 = vadd.f32 1e-05, %v454_v51 }
 0x380   :  { %v469_v54 = vmul.f32 %v10235_v52, %v10851_v5  ;;  %v447_v56 = vpop.xlane.xlu0 %446 }
 0x381   :  { %10240 = vrsqrt.f32 %v460_v53  ;;  %v455_v58 = vmul.f32 0.015625, %v447_v56 }
 0x382   :  { %v450_v59 = vpop.xlane.xlu1 %449  ;;  %v481_v2 = vmul.f32 %v7964_v57, %v469_v54 }
 0x383   :  { %v10237_v60 = vpop.eup %10236  ;;  %v461_v62 = vadd.f32 1e-05, %v455_v58  ;;  %v456_v63 = vmul.f32 0.015625, %v450_v59 }
 0x384   :  { %v470_v3 = vmul.f32 %v10237_v60, %v10856_v9  ;;  %v493_v8 = vadd.f32 %v7965_v4, %v481_v2  ;;  %v7974_v60 = vld [vmem:[%s12945_s11] ss:$0 sm:$0xff] }
 0x385   :  { %10242 = vrsqrt.f32 %v461_v62  ;;  %v462_v5 = vadd.f32 1e-05, %v456_v63 }
 0x386   :  { %v482_v6 = vmul.f32 %v7964_v57, %v470_v3 }
 0x387   :  { %v10239_v7 = vpop.eup %10238  ;;  %10244 = vrsqrt.f32 %v462_v5 }
 0x388   :  { %v494_v10 = vadd.f32 %v7965_v4, %v482_v6  ;;  %v471_v11 = vmul.f32 %v10239_v7, %v10862_v14  ;;  %v10011_v14 = vld [vmem:[%s12990_s28 + $0x8] sm:$0xff]  }
 0x38a   :  { %v10917_v13 = vpack.c.bf16 %v494_v10, %v493_v8  ;;  %v483_v15 = vmul.f32 %v7964_v57, %v471_v11 }
 0x38b   :  { %v10241_v9 = vpop.eup %10240 }
 0x38c   :  { %v472_v16 = vmul.f32 %v10241_v9, %v10868_v19  ;;  %9094 = vmatmul.mubr.msk.bf16.vlgmr.msra.gmra.mrb[0].mxu1 %vm219_vm0, %v10917_v13  ;;  %v495_v20 = vadd.f32 %v7965_v4, %v483_v15 }
 0x38d   :  { %9097 = vmatprep.mubr.msk.bf16.mxu1 %vm10574_vm1, %v10573_v34  ;;  %9106 = vmatpush3.bf16.msra.mxu1 %v10010_v12 }
 0x38e   :  { %v484_v17 = vmul.f32 %v7964_v57, %v472_v16  ;;  %9107 = vmatprep.subr.bf16.mxu1 %v10573_v34 }
 0x38f   :  { %v10243_v18 = vpop.eup %10242 }
 0x390   :  { %v496_v21 = vadd.f32 %v7965_v4, %v484_v17  ;;  %v473_v22 = vmul.f32 %v10243_v18, %v10874_v25  ;;  %v10013_v25 = vld [vmem:[%s12990_s28 + $0x18] sm:$0xff]  }
 0x391   :  { %v10245_v19 = vpop.eup %10244  ;;  %9108 = vmatpush3.bf16.msra.mxu1 %v10011_v14 }
 0x392   :  { %v10932_v24 = vpack.c.bf16 %v496_v21, %v495_v20  ;;  %v474_v26 = vmul.f32 %v10245_v19, %v10878_v28  ;;  %9109 = vmatprep.subr.bf16.mxu1 %v10573_v34  ;;  %v485_v27 = vmul.f32 %v7964_v57, %v473_v22 }
 0x394   :  { %v486_v29 = vmul.f32 %v7964_v57, %v474_v26  ;;  %9098 = vmatmul.mubr.msk.bf16.gmra.mrb[4].mxu1 %vm219_vm0, %v10932_v24  ;;  %v497_v31 = vadd.f32 %v7965_v4, %v485_v27 }
 0x395   :  { %9101 = vmatprep.mubr.msk.bf16.mxu1 %vm10574_vm1, %v10573_v34  ;;  %9110 = vmatpush3.bf16.msra.mxu1 %v10012_v23 }
 0x396   :  { %v498_v30 = vadd.f32 %v7965_v4, %v486_v29  ;;  %9111 = vmatprep.subr.bf16.mxu1 %v10573_v34 }
 0x398   :  { %v10944_v28 = vpack.c.bf16 %v498_v30, %v497_v31  ;;  %v7982_v30 = vld [vmem:[%s12946_s12] ss:$0 sm:$0xff] }
 0x399   :  { %9112 = vmatpush3.bf16.msra.mxu1 %v10013_v25 }
 0x39a   :  { %9125 = vmatprep.subr.bf16.mxu1 %v10573_v34 }
 0x39c   :  { %9102 = vmatmul.mubr.msk.bf16.gmra.mrb[8].mxu1 %vm219_vm0, %v10944_v28 }
 0x39d   :  { %9113 = vmatprep.mubr.msk.bf16.mxu1 %vm10574_vm1, %v10573_v34 }
 0x3a4   :  { %9114 = vmatmul.mubr.msk.bf16.vlgmr.msra.gmra.mrb[12].mxu1 %vm219_vm0, %v10917_v13 }
 0x3a5   :  { %9117 = vmatprep.mubr.msk.bf16.mxu1 %vm10574_vm1, %v10573_v34  ;;  %9126 = vmatpush3.bf16.msra.mxu1 %v10014_v32 }
 0x3a6   :  { %9127 = vmatprep.subr.bf16.mxu1 %v10573_v34 }
 0x3a9   :  { %9128 = vmatpush3.bf16.msra.mxu1 %v10015_v33 }
 0x3aa   :  { %9129 = vmatprep.subr.bf16.mxu1 %v10573_v34 }
 0x3ac   :  { %9118 = vmatmul.mubr.msk.bf16.gmra.mrb[16].mxu1 %vm219_vm0, %v10932_v24 }
 0x3ad   :  { %9121 = vmatprep.mubr.msk.bf16.mxu1 %vm10574_vm1, %v10573_v34  ;;  %9130 = vmatpush3.bf16.msra.mxu1 %v10016_v35 }
 0x3ae   :  { %9131 = vmatprep.subr.bf16.mxu1 %v10573_v34 }
 0x3b1   :  { %9132 = vmatpush3.bf16.msra.mxu1 %v10017_v36 }
 0x3b4   :  { %9122 = vmatmul.mubr.msk.bf16.gmra.mrb[20].mxu1 %vm219_vm0, %v10944_v28 }
 0x3b5   :  { %9133 = vmatprep.mubr.msk.bf16.mxu1 %vm10574_vm1, %v10573_v34 }
 0x3bc   :  { %9134 = vmatmul.mubr.msk.bf16.vlgmr.msra.gmra.mrb[24].mxu1 %vm219_vm0, %v10917_v13 }
 0x3bd   :  { %9137 = vmatprep.mubr.msk.bf16.mxu1 %vm10574_vm1, %v10573_v34 }
 0x3c4   :  { %9138 = vmatmul.mubr.msk.bf16.gmra.mrb[28].mxu1 %vm219_vm0, %v10932_v24 }
 0x3c5   :  { %9141 = vmatprep.mubr.msk.bf16.mxu1 %vm10574_vm1, %v10573_v34 }
 0x3cc   :  { %9142 = vmatmul.mubr.msk.bf16.gmra.mrb[32].mxu1 %vm219_vm0, %v10944_v28 }
 0x45f   :  { %v584_v38 = vpop.f32.mrb[0].mxu1 }
 0x460   :  { %v9095_v40 = vpop.f32.mrb[1].mxu1  ;;  %v585_v42 = vadd.f32 %v10991_v37, %v584_v38 }
 0x461   :  { %v587_v41 = vpop.f32.mrb[2].mxu1 }
 0x462   :  { %v588_v43 = vadd.f32 %v10991_v37, %v587_v41  ;;  %v9096_v44 = vpop.f32.mrb[3].mxu1 }
 0x464   :  { %v799_v46 = vpack.c.bf16 %v588_v43, %v585_v42 }
 0x466   :  { %9149 = vmatprep.mubr.msk.bf16.mxu1 %vm807_vm2, %v799_v46 }
 0x467   :  { %v592_v47 = vpop.f32.mrb[4].mxu1 }
 0x468   :  { %v9099_v48 = vpop.f32.mrb[5].mxu1  ;;  %v593_v17 = vadd.f32 %v10991_v37, %v592_v47 }
 0x469   :  { %v595_v49 = vpop.f32.mrb[6].mxu1 }
 0x46a   :  { %v9100_v51 = vpop.f32.mrb[7].mxu1  ;;  %v596_v53 = vadd.f32 %v10991_v37, %v595_v49  ;;  %v800_v27 = vpack.c.bf16 %v593_v17, %v593_v17 }
 0x46f   :  { %v600_v52 = vpop.f32.mrb[8].mxu1 }
 0x470   :  { %v601_v54 = vadd.f32 %v10991_v37, %v600_v52  ;;  %v9103_v56 = vpop.f32.mrb[9].mxu1 }
 0x471   :  { %v603_v57 = vpop.f32.mrb[10].mxu1 }
 0x472   :  { %v801_v58 = vpack.c.bf16 %v601_v54, %v596_v53  ;;  %v9104_v59 = vpop.f32.mrb[11].mxu1  ;;  %v604_v42 = vadd.f32 %v10991_v37, %v603_v57 }
 0x474   :  { %9157 = vmatprep.mubr.msk.bf16.mxu0 %vm807_vm2, %v801_v58  ;;  %v802_v48 = vpack.c.bf16 %v604_v42, %v604_v42 }
 0x477   :  { %v680_v62 = vpop.f32.mrb[12].mxu1 }
 0x478   :  { %v9115_v63 = vpop.f32.mrb[13].mxu1  ;;  %v681_v3 = vadd.f32 %v7974_v60, %v680_v62 }
 0x479   :  { %v683_v2 = vpop.f32.mrb[14].mxu1 }
 0x47a   :  { %v684_v4 = vadd.f32 %v7974_v60, %v683_v2  ;;  %v9116_v5 = vpop.f32.mrb[15].mxu1 }
 0x47c   :  { %v803_v6 = vpack.c.bf16 %v684_v4, %v681_v3 }
 0x47e   :  { %9933 = vmatprep.subr.msk.bf16.mxu1 %vm807_vm2, %v803_v6  ;;  %v815_v7 = vsel %vm807_vm2, %v803_v6, 0  ;;  %v391_v6 = vlaneseq }
 0x47f   :  { %v688_v8 = vpop.f32.mrb[16].mxu1  ;;  %9146 = vmatpush3.bf16.xpose.msra.mxu1 %v815_v7 }
 0x480   :  { %v689_v10 = vadd.f32 %v7974_v60, %v688_v8  ;;  %v9119_v11 = vpop.f32.mrb[17].mxu1  ;;  %v392_v7 = vand.u32 127, %v391_v6 }
 0x481   :  { %v691_v12 = vpop.f32.mrb[18].mxu1 }
 0x482   :  { %v804_v9 = vpack.c.bf16 %v689_v10, %v689_v10  ;;  %v9120_v15 = vpop.f32.mrb[19].mxu1  ;;  %v692_v18 = vadd.f32 %v7974_v60, %v691_v12  ;;  %vm393_vm4 = vcmp.lt.s32.totalorder %v392_v7, 17 }
 0x484   :  { %9934 = vmatprep.subr.msk.bf16.mxu1 %vm807_vm2, %v804_v9  ;;  %v818_v16 = vsel %vm807_vm2, %v804_v9, 0 }
 0x487   :  { %v696_v14 = vpop.f32.mrb[20].mxu1  ;;  %9148 = vmatpush3.bf16.xpose.msra.mxu1 %v818_v16  ;;  %v10575_v16 = vmov -1e+30  }
 0x488   :  { %v697_v20 = vadd.f32 %v7974_v60, %v696_v14  ;;  %v9123_v21 = vpop.f32.mrb[21].mxu1  ;;  %v11024_v14 = vsel %vm393_vm4, 0.0, %v10575_v16 }
 0x489   :  { %v699_v22 = vpop.f32.mrb[22].mxu1 }
 0x48a   :  { %v805_v19 = vpack.c.bf16 %v697_v20, %v692_v18  ;;  %v700_v23 = vadd.f32 %v7974_v60, %v699_v22  ;;  %v9124_v26 = vpop.f32.mrb[23].mxu1 }
 0x48c   :  { %v806_v29 = vpack.c.bf16 %v700_v23, %v700_v23  ;;  %9935 = vmatprep.subr.msk.bf16.mxu0 %vm807_vm2, %v805_v19  ;;  %v875_v25 = vsel %vm807_vm2, %v805_v19, 0 }
 0x48d   :  { %9154 = vmatpush3.bf16.xpose.msra.mxu0 %v875_v25 }
 0x48e   :  { %9150 = vmatmul.mubr.msk.bf16.vlgmr.msra.gmra.mrb[36].mxu1 %vm807_vm2, %v800_v27  ;;  %9936 = vmatprep.subr.msk.bf16.mxu0 %vm807_vm2, %v806_v29  ;;  %v878_v40 = vsel %vm807_vm2, %v806_v29, 0 }
 0x48f   :  { %v776_v31 = vpop.f32.mrb[24].mxu1 }
 0x490   :  { %v9135_v32 = vpop.f32.mrb[25].mxu1  ;;  %v777_v35 = vadd.f32 %v7982_v30, %v776_v31 }
 0x491   :  { %v779_v33 = vpop.f32.mrb[26].mxu1 }
 0x492   :  { %v780_v36 = vadd.f32 %v7982_v30, %v779_v33  ;;  %v9136_v38 = vpop.f32.mrb[27].mxu1 }
 0x494   :  { %v1011_v41 = vpack.c.bf16 %v780_v36, %v777_v35 }
 0x495   :  { %9156 = vmatpush3.bf16.xpose.msra.mxu0 %v878_v40 }
 0x496   :  { %9161 = vmatprep.subr.bf16.mxu1 %v1011_v41 }
 0x497   :  { %v784_v43 = vpop.f32.mrb[28].mxu1  ;;  %9162 = vmatpush3.bf16.msra.mxu1 %v1011_v41 }
 0x498   :  { %v785_v44 = vadd.f32 %v7982_v30, %v784_v43  ;;  %v9139_v46 = vpop.f32.mrb[29].mxu1 }
 0x499   :  { %v787_v47 = vpop.f32.mrb[30].mxu1 }
 0x49a   :  { %v1012_v49 = vpack.c.bf16 %v785_v44, %v785_v44  ;;  %v9140_v51 = vpop.f32.mrb[31].mxu1  ;;  %v788_v53 = vadd.f32 %v7982_v30, %v787_v47 }
 0x49c   :  { %9158 = vmatmul.mubr.msk.bf16.vlgmr.msra.gmra.mrb[12].mxu0 %vm807_vm2, %v802_v48  ;;  %9937 = vmatprep.subr.msk.bf16.mxu1 %vm1021_vm3, %v1012_v49  ;;  %v1023_v52 = vsel %vm1021_vm3, %v1012_v49, 0 }
 0x49d   :  { %9164 = vmatpush3.bf16.msra.mxu1 %v1023_v52 }
 0x49e   :  { %9177 = vmatprep.subr.bf16.mxu1 %v10573_v34 }
 0x49f   :  { %v792_v37 = vpop.f32.mrb[32].mxu1 }
 0x4a0   :  { %v793_v54 = vadd.f32 %v7982_v30, %v792_v37  ;;  %v9143_v56 = vpop.f32.mrb[33].mxu1 }
 0x4a1   :  { %v795_v57 = vpop.f32.mrb[34].mxu1 }
 0x4a2   :  { %v796_v58 = vadd.f32 %v7982_v30, %v795_v57  ;;  %v9144_v59 = vpop.f32.mrb[35].mxu1  ;;  %v1013_v60 = vpack.c.bf16 %v793_v54, %v788_v53 }
 0x4a4   :  { %v1014_v62 = vpack.c.bf16 %v796_v58, %v796_v58  ;;  %9169 = vmatprep.subr.bf16.mxu0 %v1013_v60 }
 0x4a5   :  { %9170 = vmatpush3.bf16.msra.mxu0 %v1013_v60 }
 0x4a6   :  { %9938 = vmatprep.subr.msk.bf16.mxu0 %vm1021_vm3, %v1014_v62  ;;  %v1080_v63 = vsel %vm1021_vm3, %v1014_v62, 0 }
 0x4a9   :  { %9172 = vmatpush3.bf16.msra.mxu0 %v1080_v63 }
 0x4aa   :  { %9197 = vmatprep.subr.bf16.mxu0 %v10573_v34 }
 0x561   :  { %v9151_v2 = vpop.f32.mrb[36].mxu1 }
 0x562   :  { %v854_v3 = vpop.f32.mrb[37].mxu1  ;;  %v930_v26 = vmul.f32 0.25, %v9151_v2 }
 0x563   :  { %v9152_v4 = vpop.f32.mrb[38].mxu1  ;;  %v928_v17 = vmul.f32 0.25, %v854_v3 }
 0x564   :  { %v857_v5 = vpop.f32.mrb[39].mxu1  ;;  %v936_v32 = vadd.f32 %v930_v26, %v11024_v14 }
 0x565   :  { %v929_v21 = vmul.f32 0.25, %v857_v5  ;;  %v934_v29 = vadd.f32 %v928_v17, %v11024_v14 }
 0x566   :  { %v947_v35 = vsel %vm940_vm5, %v936_v32, -inf }
 0x567   :  { %v935_v30 = vadd.f32 %v929_v21, %v11024_v14  ;;  %v941_v31 = vsel %vm940_vm5, %v934_v29, -inf }
 0x569   :  { %v944_v33 = vsel %vm940_vm5, %v935_v30, -inf }
 0x56f   :  { %v9159_v8 = vpop.f32.mrb[12].mxu0 }
 0x570   :  { %v914_v10 = vpop.f32.mrb[13].mxu0  ;;  %v933_v11 = vmul.f32 0.25, %v9159_v8 }
 0x571   :  { %v931_v12 = vmul.f32 0.25, %v914_v10  ;;  %v9160_v9 = vpop.f32.mrb[14].mxu0 }
 0x572   :  { %v917_v15 = vpop.f32.mrb[15].mxu0  ;;  %v939_v23 = vadd.f32 %v933_v11, %v11024_v14 }
 0x573   :  { %v932_v18 = vmul.f32 0.25, %v917_v15  ;;  %v937_v20 = vadd.f32 %v931_v12, %v11024_v14 }
 0x574   :  { %v956_v25 = vsel %vm940_vm5, %v939_v23, -inf }
 0x575   :  { %v950_v22 = vsel %vm940_vm5, %v937_v20, -inf  ;;  %v938_v19 = vadd.f32 %v932_v18, %v11024_v14 }
 0x576   :  { %951 = vmax.xlane.f32.xlu0 %v950_v22 }
 0x577   :  { %v953_v27 = vsel %vm940_vm5, %v938_v19, -inf }
 0x578   :  { %954 = vmax.xlane.f32.xlu1 %v953_v27 }
 0x57a   :  { %957 = vmax.xlane.f32.xlu0 %v956_v25 }
 0x57c   :  { %942 = vmax.xlane.f32.xlu1 %v941_v31 }
 0x57e   :  { %945 = vmax.xlane.f32.xlu0 %v944_v33 }
 0x580   :  { %948 = vmax.xlane.f32.xlu1 %v947_v35  ;;  %v10019_v35 = vld [vmem:[%s12990_s28 + $0x28] sm:$0xff]  }
 0x603   :  { %v952_v36 = vpop.xlane.xlu0 %951 }
 0x604   :  { %v962_v38 = vsub.f32 %v937_v20, %v952_v36 }
 0x605   :  { %v955_v40 = vpop.xlane.xlu1 %954 }
 0x606   :  { %v971_v41 = vmul.f32 1.442695, %v962_v38  ;;  %v963_v42 = vsub.f32 %v938_v19, %v955_v40  ;;  %v10020_v40 = vld [vmem:[%s12987_s7 + $0x20] sm:$0xff]  }
 0x607   :  { %v958_v43 = vpop.xlane.xlu0 %957 }
 0x608   :  { %10246 = vpow2.f32 %v971_v41  ;;  %v973_v44 = vmul.f32 1.442695, %v963_v42  ;;  %v964_v46 = vsub.f32 %v939_v23, %v958_v43  ;;  %v10021_v42 = vld [vmem:[%s12990_s28 + $0x30] sm:$0xff]   ;;  %v10022_v43 = vld [vmem:[%s12987_s7 + $0x28] sm:$0xff]  }
 0x609   :  { %v943_v47 = vpop.xlane.xlu1 %942 }
 0x60a   :  { %10248 = vpow2.f32 %v973_v44  ;;  %v975_v48 = vmul.f32 1.442695, %v964_v46  ;;  %v959_v49 = vsub.f32 %v934_v29, %v943_v47  ;;  %v10018_v29 = vld [vmem:[%s12990_s28 + $0x20] sm:$0xff]   ;;  %v10023_v44 = vld [vmem:[%s12990_s28 + $0x38] sm:$0xff]   ;;  %v10024_v46 = vld [vmem:[%s12987_s7 + $0x30] sm:$0xff]  }
 0x60b   :  { %v946_v51 = vpop.xlane.xlu0 %945  ;;  %v10025_v47 = vld [vmem:[%s12987_s7 + $0x38] sm:$0xff]  }
 0x60c   :  { %10250 = vpow2.f32 %v975_v48  ;;  %v965_v52 = vmul.f32 1.442695, %v959_v49  ;;  %v960_v37 = vsub.f32 %v935_v30, %v946_v51  ;;  %v10026_v48 = vld [vmem:[%s12991_s8 + $0x20] sm:$0xff]   ;;  %v10027_v49 = vld [vmem:[%s12991_s8 + $0x28] sm:$0xff]   ;;  %v10028_v51 = vld [vmem:[%s12991_s8 + $0x30] sm:$0xff]  }
 0x60d   :  { %v949_v53 = vpop.xlane.xlu1 %948 }
 0x60e   :  { %10252 = vpow2.f32 %v965_v52  ;;  %v967_v54 = vmul.f32 1.442695, %v960_v37  ;;  %v961_v56 = vsub.f32 %v936_v32, %v949_v53  ;;  %v10029_v52 = vld [vmem:[%s12991_s8 + $0x38] sm:$0xff]  }
 0x610   :  { %10254 = vpow2.f32 %v967_v54  ;;  %v969_v57 = vmul.f32 1.442695, %v961_v56 }
 0x612   :  { %v10247_v58 = vpop.eup %10246  ;;  %10256 = vpow2.f32 %v969_v57 }
 0x613   :  { %v986_v59 = vsel %vm940_vm5, %v10247_v58, 0.0 }
 0x614   :  { %v10249_v60 = vpop.eup %10248  ;;  %987 = vadd.xlane.f32.xlu0 %v986_v59 }
 0x615   :  { %v989_v62 = vsel %vm940_vm5, %v10249_v60, 0.0 }
 0x616   :  { %v10251_v63 = vpop.eup %10250  ;;  %990 = vadd.xlane.f32.xlu1 %v989_v62 }
 0x617   :  { %v992_v2 = vsel %vm940_vm5, %v10251_v63, 0.0 }
 0x618   :  { %v10253_v3 = vpop.eup %10252  ;;  %993 = vadd.xlane.f32.xlu0 %v992_v2 }
 0x619   :  { %v977_v4 = vsel %vm940_vm5, %v10253_v3, 0.0 }
 0x61a   :  { %v10255_v5 = vpop.eup %10254  ;;  %978 = vadd.xlane.f32.xlu1 %v977_v4 }
 0x61b   :  { %v980_v7 = vsel %vm940_vm5, %v10255_v5, 0.0 }
 0x61c   :  { %v10257_v8 = vpop.eup %10256  ;;  %981 = vadd.xlane.f32.xlu0 %v980_v7 }
 0x61d   :  { %v983_v10 = vsel %vm940_vm5, %v10257_v8, 0.0 }
 0x61e   :  { %984 = vadd.xlane.f32.xlu1 %v983_v10 }
 0x6a1   :  { %v988_v11 = vpop.xlane.xlu0 %987 }
 0x6a2   :  { %10258 = vrcp.f32 %v988_v11 }
 0x6a3   :  { %v991_v12 = vpop.xlane.xlu1 %990 }
 0x6a4   :  { %10260 = vrcp.f32 %v991_v12 }
 0x6a5   :  { %v994_v9 = vpop.xlane.xlu0 %993 }
 0x6a6   :  { %10262 = vrcp.f32 %v994_v9  ;;  %v8007_v9 = vld [vmem:[%s12992_s30 + $0x1] ss:$0 sm:$0xff] }
 0x6a7   :  { %v979_v15 = vpop.xlane.xlu1 %978 }
 0x6a8   :  { %10264 = vrcp.f32 %v979_v15 }
 0x6a9   :  { %v982_v16 = vpop.xlane.xlu0 %981 }
 0x6aa   :  { %10266 = vrcp.f32 %v982_v16 }
 0x6ab   :  { %v985_v17 = vpop.xlane.xlu1 %984 }
 0x6ac   :  { %v10259_v18 = vpop.eup %10258  ;;  %10268 = vrcp.f32 %v985_v17 }
 0x6ad   :  { %v1004_v21 = vmul.f32 %v10259_v18, %v10247_v58 }
 0x6ae   :  { %v10261_v20 = vpop.eup %10260 }
 0x6af   :  { %v1005_v22 = vmul.f32 %v10261_v20, %v10249_v60 }
 0x6b0   :  { %v10263_v19 = vpop.eup %10262 }
 0x6b1   :  { %v1009_v23 = vpack.c.bf16 %v1005_v22, %v1004_v21  ;;  %v1006_v26 = vmul.f32 %v10263_v19, %v10251_v63 }
 0x6b2   :  { %v10265_v27 = vpop.eup %10264 }
 0x6b3   :  { %9173 = vmatprep.mubr.msk.bf16.mxu0 %vm940_vm5, %v1009_v23  ;;  %v1010_v25 = vpack.c.bf16 %v1006_v26, %v1006_v26  ;;  %v1001_v31 = vmul.f32 %v10265_v27, %v10253_v3  ;;  %v8024_v3 = vld [vmem:[%s12945_s11 + $0x1] ss:$0 sm:$0xff] }
 0x6b4   :  { %v10267_v30 = vpop.eup %10266 }
 0x6b5   :  { %9174 = vmatmul.mubr.msk.bf16.vlgmr.msra.gmra.mrb[16].mxu0 %vm940_vm5, %v1010_v25  ;;  %v1002_v32 = vmul.f32 %v10267_v30, %v10255_v5 }
 0x6b6   :  { %v10269_v33 = vpop.eup %10268  ;;  %9198 = vmatpush3.bf16.msra.mxu0 %v10018_v29  ;;  %9205 = vmatprep.mubr.msk.bf16.mxu0 %vm10574_vm1, %v10573_v34 }
 0x6b7   :  { %9199 = vmatprep.subr.bf16.mxu0 %v10573_v34  ;;  %v1007_v36 = vpack.c.bf16 %v1002_v32, %v1001_v31  ;;  %v1003_v38 = vmul.f32 %v10269_v33, %v10257_v8 }
 0x6b9   :  { %9165 = vmatprep.mubr.msk.bf16.mxu1 %vm940_vm5, %v1007_v36  ;;  %v1008_v41 = vpack.c.bf16 %v1003_v38, %v1003_v38 }
 0x6ba   :  { %9200 = vmatpush3.bf16.msra.mxu0 %v10019_v35 }
 0x6bb   :  { %9166 = vmatmul.mubr.msk.bf16.vlgmr.msra.gmra.mrb[40].mxu1 %vm940_vm5, %v1008_v41  ;;  %9201 = vmatprep.subr.bf16.mxu0 %v10573_v34 }
 0x6bc   :  { %9178 = vmatpush3.bf16.msra.mxu1 %v10020_v40  ;;  %9185 = vmatprep.mubr.msk.bf16.mxu1 %vm10574_vm1, %v10573_v34 }
 0x6bd   :  { %9179 = vmatprep.subr.bf16.mxu1 %v10573_v34 }
 0x6be   :  { %9202 = vmatpush3.bf16.msra.mxu0 %v10021_v42 }
 0x6bf   :  { %9203 = vmatprep.subr.bf16.mxu0 %v10573_v34 }
 0x6c0   :  { %9180 = vmatpush3.bf16.msra.mxu1 %v10022_v43 }
 0x6c1   :  { %9181 = vmatprep.subr.bf16.mxu1 %v10573_v34 }
 0x6c2   :  { %9204 = vmatpush3.bf16.msra.mxu0 %v10023_v44 }
 0x6c4   :  { %9182 = vmatpush3.bf16.msra.mxu1 %v10024_v46 }
 0x6c5   :  { %9206 = vmatmul.mubr.msk.bf16.vlgmr.msra.gmra.mrb[20].mxu0 %vm219_vm0, %v10917_v13  ;;  %9183 = vmatprep.subr.bf16.mxu1 %v10573_v34 }
 0x6c6   :  { %9209 = vmatprep.mubr.msk.bf16.mxu0 %vm10574_vm1, %v10573_v34 }
 0x6c8   :  { %9184 = vmatpush3.bf16.msra.mxu1 %v10025_v47 }
 0x6c9   :  { %9217 = vmatprep.subr.bf16.mxu1 %v10573_v34 }
 0x6cb   :  { %9186 = vmatmul.mubr.msk.bf16.vlgmr.msra.gmra.mrb[44].mxu1 %vm219_vm0, %v10917_v13 }
 0x6cc   :  { %9189 = vmatprep.mubr.msk.bf16.mxu1 %vm10574_vm1, %v10573_v34  ;;  %9218 = vmatpush3.bf16.msra.mxu1 %v10026_v48 }
 0x6cd   :  { %9210 = vmatmul.mubr.msk.bf16.gmra.mrb[24].mxu0 %vm219_vm0, %v10932_v24  ;;  %9219 = vmatprep.subr.bf16.mxu1 %v10573_v34 }
 0x6ce   :  { %9213 = vmatprep.mubr.msk.bf16.mxu0 %vm10574_vm1, %v10573_v34 }
 0x6d0   :  { %9220 = vmatpush3.bf16.msra.mxu1 %v10027_v49 }
 0x6d1   :  { %9221 = vmatprep.subr.bf16.mxu1 %v10573_v34 }
 0x6d3   :  { %9190 = vmatmul.mubr.msk.bf16.gmra.mrb[48].mxu1 %vm219_vm0, %v10932_v24 }
 0x6d4   :  { %9193 = vmatprep.mubr.msk.bf16.mxu1 %vm10574_vm1, %v10573_v34  ;;  %9222 = vmatpush3.bf16.msra.mxu1 %v10028_v51 }
 0x6d5   :  { %9214 = vmatmul.mubr.msk.bf16.gmra.mrb[28].mxu0 %vm219_vm0, %v10944_v28  ;;  %9223 = vmatprep.subr.bf16.mxu1 %v10573_v34 }
 0x6d8   :  { %9224 = vmatpush3.bf16.msra.mxu1 %v10029_v52 }
 0x6db   :  { %9194 = vmatmul.mubr.msk.bf16.gmra.mrb[52].mxu1 %vm219_vm0, %v10944_v28 }
 0x6dc   :  { %9225 = vmatprep.mubr.msk.bf16.mxu1 %vm10574_vm1, %v10573_v34 }
 0x6e3   :  { %9226 = vmatmul.mubr.msk.bf16.vlgmr.msra.gmra.mrb[56].mxu1 %vm219_vm0, %v10917_v13 }
 0x6e4   :  { %9229 = vmatprep.mubr.msk.bf16.mxu1 %vm10574_vm1, %v10573_v34 }
 0x6eb   :  { %9230 = vmatmul.mubr.msk.bf16.gmra.mrb[60].mxu1 %vm219_vm0, %v10932_v24 }
 0x6ec   :  { %9233 = vmatprep.mubr.msk.bf16.mxu1 %vm10574_vm1, %v10573_v34 }
 0x6f3   :  { %9234 = vmatmul.mubr.msk.bf16.gmra.mrb[64].mxu1 %vm219_vm0, %v10944_v28 }
 0x788   :  { %v11130_v37 = vpop.f32.mrb[16].mxu0 }
 0x789   :  { %v11132_v53 = vpop.f32.mrb[17].mxu0 }
 0x78a   :  { %v9176_v54 = vpop.f32.mrb[18].mxu0 }
 0x78b   :  { %v11134_v56 = vpop.f32.mrb[19].mxu0 }
 0x78c   :  { %v1132_v57 = vpack.c.bf16 %v11130_v37, %v11134_v56  ;;  %v10035_v37 = vld [vmem:[%s12947_s13 + $0x8] sm:$0xff]  }
 0x78e   :  { %v11138_v58 = vpop.f32.mrb[40].mxu1 }
 0x78f   :  { %v1131_v59 = vpack.c.bf16 %v11132_v53, %v11138_v58  ;;  %v11142_v60 = vpop.f32.mrb[41].mxu1 }
 0x790   :  { %v9168_v62 = vpop.f32.mrb[42].mxu1 }
 0x791   :  { %v11144_v63 = vpop.f32.mrb[43].mxu1 }
 0x792   :  { %v1130_v2 = vpack.c.bf16 %v11144_v63, %v11142_v60  ;;  %v10034_v60 = vld [vmem:[%s12990_s28 + $0x58] sm:$0xff]  }
 0x798   :  { %v1308_v4 = vpop.f32.mrb[20].mxu0 }
 0x799   :  { %v9207_v5 = vpop.f32.mrb[21].mxu0  ;;  %v1309_v8 = vadd.f32 %v8024_v3, %v1308_v4 }
 0x79a   :  { %v1311_v7 = vpop.f32.mrb[22].mxu0 }
 0x79b   :  { %v1312_v10 = vadd.f32 %v8024_v3, %v1311_v7  ;;  %v9208_v11 = vpop.f32.mrb[23].mxu0 }
 0x79d   :  { %v1433_v12 = vpack.c.bf16 %v1312_v10, %v1309_v8 }
 0x79e   :  { %v1210_v15 = vpop.f32.mrb[44].mxu1 }
 0x79f   :  { %v9187_v16 = vpop.f32.mrb[45].mxu1  ;;  %9939 = vmatprep.subr.msk.bf16.mxu0 %vm807_vm2, %v1433_v12  ;;  %v1444_v17 = vsel %vm807_vm2, %v1433_v12, 0  ;;  %v1211_v21 = vadd.f32 %v8007_v9, %v1210_v15 }
 0x7a0   :  { %v1213_v18 = vpop.f32.mrb[46].mxu1  ;;  %v1316_v20 = vpop.f32.mrb[24].mxu0  ;;  %9238 = vmatpush3.bf16.xpose.msra.mxu0 %v1444_v17 }
 0x7a1   :  { %v1214_v22 = vadd.f32 %v8007_v9, %v1213_v18  ;;  %v1317_v19 = vadd.f32 %v8024_v3, %v1316_v20  ;;  %v9188_v23 = vpop.f32.mrb[47].mxu1  ;;  %v9211_v26 = vpop.f32.mrb[25].mxu0 }
 0x7a2   :  { %v1319_v27 = vpop.f32.mrb[26].mxu0 }
 0x7a3   :  { %v1429_v29 = vpack.c.bf16 %v1214_v22, %v1211_v21  ;;  %v1434_v25 = vpack.c.bf16 %v1317_v19, %v1317_v19  ;;  %v9212_v30 = vpop.f32.mrb[27].mxu0  ;;  %v1320_v38 = vadd.f32 %v8024_v3, %v1319_v27 }
 0x7a5   :  { %9940 = vmatprep.subr.msk.bf16.mxu0 %vm807_vm2, %v1434_v25  ;;  %9241 = vmatprep.mubr.msk.bf16.mxu0 %vm807_vm2, %v1429_v29  ;;  %v1447_v32 = vsel %vm807_vm2, %v1434_v25, 0 }
 0x7a6   :  { %v1218_v31 = vpop.f32.mrb[48].mxu1 }
 0x7a7   :  { %v9191_v33 = vpop.f32.mrb[49].mxu1  ;;  %v1219_v40 = vadd.f32 %v8007_v9, %v1218_v31 }
 0x7a8   :  { %v1221_v35 = vpop.f32.mrb[50].mxu1  ;;  %v1324_v36 = vpop.f32.mrb[28].mxu0  ;;  %9240 = vmatpush3.bf16.xpose.msra.mxu0 %v1447_v32 }
 0x7a9   :  { %v1325_v41 = vadd.f32 %v8024_v3, %v1324_v36  ;;  %v9192_v42 = vpop.f32.mrb[51].mxu1  ;;  %v9215_v43 = vpop.f32.mrb[29].mxu0  ;;  %v1430_v49 = vpack.c.bf16 %v1219_v40, %v1219_v40  ;;  %v1222_v52 = vadd.f32 %v8007_v9, %v1221_v35 }
 0x7aa   :  { %v1327_v44 = vpop.f32.mrb[30].mxu0 }
 0x7ab   :  { %v1435_v46 = vpack.c.bf16 %v1325_v41, %v1320_v38  ;;  %v1328_v47 = vadd.f32 %v8024_v3, %v1327_v44  ;;  %v9216_v48 = vpop.f32.mrb[31].mxu0  ;;  %v8041_v3 = vld [vmem:[%s12946_s12 + $0x1] ss:$0 sm:$0xff] }
 0x7ad   :  { %9941 = vmatprep.subr.msk.bf16.mxu0 %vm807_vm2, %v1435_v46  ;;  %v1436_v54 = vpack.c.bf16 %v1328_v47, %v1328_v47  ;;  %v1504_v5 = vsel %vm807_vm2, %v1435_v46, 0 }
 0x7ae   :  { %v1226_v51 = vpop.f32.mrb[52].mxu1 }
 0x7af   :  { %v1227_v62 = vadd.f32 %v8007_v9, %v1226_v51  ;;  %v9195_v4 = vpop.f32.mrb[53].mxu1  ;;  %9242 = vmatmul.mubr.msk.bf16.vlgmr.msra.gmra.mrb[32].mxu0 %vm807_vm2, %v1430_v49  ;;  %v1507_v12 = vsel %vm807_vm2, %v1436_v54, 0 }
 0x7b0   :  { %v1229_v7 = vpop.f32.mrb[54].mxu1  ;;  %9246 = vmatpush3.bf16.xpose.msra.mxu0 %v1504_v5 }
 0x7b1   :  { %v1431_v8 = vpack.c.bf16 %v1227_v62, %v1222_v52  ;;  %v9196_v10 = vpop.f32.mrb[55].mxu1  ;;  %9942 = vmatprep.subr.msk.bf16.mxu0 %vm807_vm2, %v1436_v54  ;;  %v1230_v17 = vadd.f32 %v8007_v9, %v1229_v7 }
 0x7b3   :  { %9249 = vmatprep.mubr.msk.bf16.mxu0 %vm807_vm2, %v1431_v8  ;;  %v1432_v19 = vpack.c.bf16 %v1230_v17, %v1230_v17 }
 0x7b6   :  { %v1406_v11 = vpop.f32.mrb[56].mxu1 }
 0x7b7   :  { %v9227_v15 = vpop.f32.mrb[57].mxu1  ;;  %v1407_v18 = vadd.f32 %v8041_v3, %v1406_v11 }
 0x7b8   :  { %v1409_v16 = vpop.f32.mrb[58].mxu1  ;;  %9248 = vmatpush3.bf16.xpose.msra.mxu0 %v1507_v12 }
 0x7b9   :  { %v1410_v20 = vadd.f32 %v8041_v3, %v1409_v16  ;;  %v9228_v21 = vpop.f32.mrb[59].mxu1 }
 0x7bb   :  { %v1639_v22 = vpack.c.bf16 %v1410_v20, %v1407_v18 }
 0x7bd   :  { %9253 = vmatprep.subr.bf16.mxu1 %v1639_v22 }
 0x7be   :  { %v1414_v23 = vpop.f32.mrb[60].mxu1  ;;  %9254 = vmatpush3.bf16.msra.mxu1 %v1639_v22 }
 0x7bf   :  { %v1415_v26 = vadd.f32 %v8041_v3, %v1414_v23  ;;  %v9231_v27 = vpop.f32.mrb[61].mxu1  ;;  %9250 = vmatmul.mubr.msk.bf16.vlgmr.msra.gmra.mrb[36].mxu0 %vm807_vm2, %v1432_v19 }
 0x7c0   :  { %v1417_v29 = vpop.f32.mrb[62].mxu1 }
 0x7c1   :  { %v1640_v25 = vpack.c.bf16 %v1415_v26, %v1415_v26  ;;  %v9232_v30 = vpop.f32.mrb[63].mxu1  ;;  %v1418_v32 = vadd.f32 %v8041_v3, %v1417_v29 }
 0x7c3   :  { %v1650_v31 = vsel %vm1021_vm3, %v1640_v25, 0  ;;  %9943 = vmatprep.subr.msk.bf16.mxu1 %vm1021_vm3, %v1640_v25 }
 0x7c4   :  { %9256 = vmatpush3.bf16.msra.mxu1 %v1650_v31 }
 0x7c5   :  { %9269 = vmatprep.subr.bf16.mxu1 %v10573_v34 }
 0x7c6   :  { %v1422_v9 = vpop.f32.mrb[64].mxu1 }
 0x7c7   :  { %v1423_v33 = vadd.f32 %v8041_v3, %v1422_v9  ;;  %v9235_v35 = vpop.f32.mrb[65].mxu1 }
 0x7c8   :  { %v1425_v36 = vpop.f32.mrb[66].mxu1 }
 0x7c9   :  { %v1641_v38 = vpack.c.bf16 %v1423_v33, %v1418_v32  ;;  %v1426_v40 = vadd.f32 %v8041_v3, %v1425_v36  ;;  %v9236_v41 = vpop.f32.mrb[67].mxu1 }
 0x7cb   :  { %v1642_v42 = vpack.c.bf16 %v1426_v40, %v1426_v40  ;;  %9261 = vmatprep.subr.bf16.mxu0 %v1641_v38 }
 0x7cc   :  { %9262 = vmatpush3.bf16.msra.mxu0 %v1641_v38 }
 0x7cd   :  { %9944 = vmatprep.subr.msk.bf16.mxu0 %vm1021_vm3, %v1642_v42  ;;  %v1707_v43 = vsel %vm1021_vm3, %v1642_v42, 0 }
 0x7d0   :  { %9264 = vmatpush3.bf16.msra.mxu0 %v1707_v43 }
 0x7d1   :  { %9283 = vmatprep.subr.bf16.mxu0 %v10573_v34 }
 0x882   :  { %v9243_v44 = vpop.f32.mrb[32].mxu0 }
 0x883   :  { %v1483_v46 = vpop.f32.mrb[33].mxu0  ;;  %v1559_v47 = vmul.f32 0.25, %v9243_v44 }
 0x884   :  { %v1557_v48 = vmul.f32 0.25, %v1483_v46  ;;  %v9244_v49 = vpop.f32.mrb[34].mxu0 }
 0x885   :  { %v1486_v51 = vpop.f32.mrb[35].mxu0  ;;  %v1565_v5 = vadd.f32 %v1559_v47, %v11024_v14 }
 0x886   :  { %v1558_v52 = vmul.f32 0.25, %v1486_v51  ;;  %v1563_v54 = vadd.f32 %v1557_v48, %v11024_v14 }
 0x887   :  { %v1575_v8 = vsel %vm940_vm5, %v1565_v5, -inf }
 0x888   :  { %v1569_v62 = vsel %vm940_vm5, %v1563_v54, -inf  ;;  %v1564_v4 = vadd.f32 %v1558_v52, %v11024_v14 }
 0x889   :  { %1570 = vmax.xlane.f32.xlu0 %v1569_v62 }
 0x88a   :  { %v1572_v7 = vsel %vm940_vm5, %v1564_v4, -inf }
 0x88b   :  { %1573 = vmax.xlane.f32.xlu1 %v1572_v7 }
 0x88d   :  { %1576 = vmax.xlane.f32.xlu0 %v1575_v8 }
 0x892   :  { %v9251_v10 = vpop.f32.mrb[36].mxu0 }
 0x893   :  { %v1543_v3 = vpop.f32.mrb[37].mxu0  ;;  %v1562_v11 = vmul.f32 0.25, %v9251_v10 }
 0x894   :  { %v1560_v12 = vmul.f32 0.25, %v1543_v3  ;;  %v9252_v15 = vpop.f32.mrb[38].mxu0 }
 0x895   :  { %v1546_v16 = vpop.f32.mrb[39].mxu0  ;;  %v1568_v22 = vadd.f32 %v1562_v11, %v11024_v14 }
 0x896   :  { %v1561_v17 = vmul.f32 0.25, %v1546_v16  ;;  %v1566_v18 = vadd.f32 %v1560_v12, %v11024_v14 }
 0x897   :  { %v1584_v23 = vsel %vm940_vm5, %v1568_v22, -inf }
 0x898   :  { %v1578_v20 = vsel %vm940_vm5, %v1566_v18, -inf  ;;  %v1567_v21 = vadd.f32 %v1561_v17, %v11024_v14 }
 0x899   :  { %1579 = vmax.xlane.f32.xlu1 %v1578_v20 }
 0x89a   :  { %v1581_v19 = vsel %vm940_vm5, %v1567_v21, -inf }
 0x89b   :  { %1582 = vmax.xlane.f32.xlu0 %v1581_v19 }
 0x89d   :  { %1585 = vmax.xlane.f32.xlu1 %v1584_v23 }
 0x916   :  { %v1571_v26 = vpop.xlane.xlu0 %1570 }
 0x917   :  { %v1587_v27 = vsub.f32 %v1563_v54, %v1571_v26 }
 0x918   :  { %v1574_v29 = vpop.xlane.xlu1 %1573 }
 0x919   :  { %v1593_v25 = vmul.f32 1.442695, %v1587_v27  ;;  %v1588_v30 = vsub.f32 %v1564_v4, %v1574_v29 }
 0x91a   :  { %v1577_v31 = vpop.xlane.xlu0 %1576 }
 0x91b   :  { %10270 = vpow2.f32 %v1593_v25  ;;  %v1595_v9 = vmul.f32 1.442695, %v1588_v30  ;;  %v1589_v32 = vsub.f32 %v1565_v5, %v1577_v31 }
 0x91d   :  { %10272 = vpow2.f32 %v1595_v9  ;;  %v1597_v33 = vmul.f32 1.442695, %v1589_v32 }
 0x91f   :  { %10274 = vpow2.f32 %v1597_v33 }
 0x925   :  { %v10271_v35 = vpop.eup %10270 }
 0x926   :  { %v1580_v36 = vpop.xlane.xlu1 %1579  ;;  %v1605_v38 = vsel %vm940_vm5, %v10271_v35, 0.0 }
 0x927   :  { %v10273_v40 = vpop.eup %10272  ;;  %v1590_v41 = vsub.f32 %v1566_v18, %v1580_v36  ;;  %1606 = vadd.xlane.f32.xlu0 %v1605_v38  ;;  %v10031_v38 = vld [vmem:[%s12990_s28 + $0x40] sm:$0xff]  }
 0x928   :  { %v1583_v42 = vpop.xlane.xlu0 %1582  ;;  %v1608_v43 = vsel %vm940_vm5, %v10273_v40, 0.0 }
 0x929   :  { %v10275_v44 = vpop.eup %10274  ;;  %v1599_v46 = vmul.f32 1.442695, %v1590_v41  ;;  %v1591_v47 = vsub.f32 %v1567_v21, %v1583_v42  ;;  %1609 = vadd.xlane.f32.xlu1 %v1608_v43  ;;  %v10033_v41 = vld [vmem:[%s12990_s28 + $0x50] sm:$0xff]   ;;  %v10039_v43 = vld [vmem:[%s12987_s7 + $0x58] sm:$0xff]  }
 0x92a   :  { %v1586_v48 = vpop.xlane.xlu1 %1585  ;;  %v1611_v49 = vsel %vm940_vm5, %v10275_v44, 0.0  ;;  %v10038_v42 = vld [vmem:[%s12987_s7 + $0x50] sm:$0xff]  }
 0x92b   :  { %10276 = vpow2.f32 %v1599_v46  ;;  %v1601_v51 = vmul.f32 1.442695, %v1591_v47  ;;  %v1592_v52 = vsub.f32 %v1568_v22, %v1586_v48  ;;  %1612 = vadd.xlane.f32.xlu0 %v1611_v49 }
 0x92d   :  { %10278 = vpow2.f32 %v1601_v51  ;;  %v1603_v54 = vmul.f32 1.442695, %v1592_v52 }
 0x92f   :  { %10280 = vpow2.f32 %v1603_v54 }
 0x935   :  { %v10277_v62 = vpop.eup %10276 }
 0x936   :  { %v1614_v4 = vsel %vm940_vm5, %v10277_v62, 0.0 }
 0x937   :  { %v10279_v5 = vpop.eup %10278  ;;  %1615 = vadd.xlane.f32.xlu1 %v1614_v4 }
 0x938   :  { %v1617_v7 = vsel %vm940_vm5, %v10279_v5, 0.0 }
 0x939   :  { %v10281_v8 = vpop.eup %10280  ;;  %1618 = vadd.xlane.f32.xlu0 %v1617_v7 }
 0x93a   :  { %v1620_v10 = vsel %vm940_vm5, %v10281_v8, 0.0 }
 0x93b   :  { %1621 = vadd.xlane.f32.xlu1 %v1620_v10 }
 0x9b4   :  { %v1607_v3 = vpop.xlane.xlu0 %1606 }
 0x9b5   :  { %10282 = vrcp.f32 %v1607_v3 }
 0x9b6   :  { %v1610_v11 = vpop.xlane.xlu1 %1609 }
 0x9b7   :  { %10284 = vrcp.f32 %v1610_v11  ;;  %v10041_v11 = vld [vmem:[%s12991_s8 + $0x48] sm:$0xff]  }
 0x9b8   :  { %v1613_v12 = vpop.xlane.xlu0 %1612 }
 0x9b9   :  { %10286 = vrcp.f32 %v1613_v12 }
 0x9bf   :  { %v10283_v15 = vpop.eup %10282 }
 0x9c0   :  { %v1629_v17 = vmul.f32 %v10283_v15, %v10271_v35  ;;  %v10030_v35 = vld [vmem:[%s12947_s13] sm:$0xff]  }
 0x9c1   :  { %v10285_v16 = vpop.eup %10284 }
 0x9c2   :  { %v1630_v18 = vmul.f32 %v10285_v16, %v10273_v40  ;;  %v10032_v40 = vld [vmem:[%s12990_s28 + $0x48] sm:$0xff]   ;;  %v10042_v16 = vld [vmem:[%s12991_s8 + $0x50] sm:$0xff]  }
 0x9c3   :  { %v10287_v20 = vpop.eup %10286 }
 0x9c4   :  { %v1631_v21 = vmul.f32 %v10287_v20, %v10275_v44  ;;  %v1616_v22 = vpop.xlane.xlu1 %1615  ;;  %v1635_v19 = vpack.c.bf16 %v1630_v18, %v1629_v17  ;;  %v10043_v20 = vld [vmem:[%s12991_s8 + $0x58] sm:$0xff]  }
 0x9c5   :  { %10288 = vrcp.f32 %v1616_v22 }
 0x9c6   :  { %v1636_v23 = vpack.c.bf16 %v1631_v21, %v1631_v21  ;;  %9257 = vmatprep.mubr.msk.bf16.mxu1 %vm940_vm5, %v1635_v19  ;;  %v1619_v26 = vpop.xlane.xlu0 %1618  ;;  %v8093_v21 = vld [vmem:[%s12945_s11 + $0x2] ss:$0 sm:$0xff] }
 0x9c7   :  { %10290 = vrcp.f32 %v1619_v26 }
 0x9c8   :  { %v1622_v27 = vpop.xlane.xlu1 %1621  ;;  %9258 = vmatmul.mubr.msk.bf16.vlgmr.msra.gmra.mrb[68].mxu1 %vm940_vm5, %v1636_v23 }
 0x9c9   :  { %10292 = vrcp.f32 %v1622_v27  ;;  %9271 = vmatprep.mubr.msk.bf16.mxu1 %vm10574_vm1, %v10573_v34  ;;  %9270 = vmatpush3.bf16.msra.mxu1 %v10035_v37 }
 0x9ca   :  { %9297 = vmatprep.subr.bf16.mxu1 %v10573_v34 }
 0x9cf   :  { %v10289_v29 = vpop.eup %10288 }
 0x9d0   :  { %v1632_v30 = vmul.f32 %v10289_v29, %v10277_v62 }
 0x9d1   :  { %v10291_v25 = vpop.eup %10290 }
 0x9d2   :  { %v1633_v31 = vmul.f32 %v10291_v25, %v10279_v5 }
 0x9d3   :  { %v10293_v9 = vpop.eup %10292 }
 0x9d4   :  { %v1637_v32 = vpack.c.bf16 %v1633_v31, %v1632_v30  ;;  %v1634_v33 = vmul.f32 %v10293_v9, %v10281_v8  ;;  %v10040_v8 = vld [vmem:[%s12991_s8 + $0x40] sm:$0xff]  }
 0x9d6   :  { %9265 = vmatprep.mubr.msk.bf16.mxu0 %vm940_vm5, %v1637_v32  ;;  %v1638_v36 = vpack.c.bf16 %v1634_v33, %v1634_v33 }
 0x9d8   :  { %9266 = vmatmul.mubr.msk.bf16.vlgmr.msra.gmra.mrb[40].mxu0 %vm940_vm5, %v1638_v36 }
 0x9d9   :  { %9284 = vmatpush3.bf16.msra.mxu0 %v10030_v35  ;;  %9285 = vmatprep.mubr.msk.bf16.mxu0 %vm10574_vm1, %v10573_v34 }
 0x9da   :  { %9317 = vmatprep.subr.bf16.mxu0 %v10573_v34 }
 0x9e0   :  { %9286 = vmatmul.mubr.msk.bf16.vlgmr.msra.gmra.mrb[44].mxu0 %vm807_vm2, %v1130_v2  ;;  %v10037_v2 = vld [vmem:[%s12987_s7 + $0x48] sm:$0xff]  }
 0x9e1   :  { %9289 = vmatprep.mubr.msk.bf16.mxu0 %vm10574_vm1, %v10573_v34  ;;  %9318 = vmatpush3.bf16.msra.mxu0 %v10031_v38 }
 0x9e2   :  { %9319 = vmatprep.subr.bf16.mxu0 %v10573_v34 }
 0x9e5   :  { %9320 = vmatpush3.bf16.msra.mxu0 %v10032_v40 }
 0x9e6   :  { %9321 = vmatprep.subr.bf16.mxu0 %v10573_v34 }
 0x9e8   :  { %9290 = vmatmul.mubr.msk.bf16.gmra.mrb[48].mxu0 %vm807_vm2, %v1131_v59  ;;  %v10036_v59 = vld [vmem:[%s12987_s7 + $0x40] sm:$0xff]  }
 0x9e9   :  { %9293 = vmatprep.mubr.msk.bf16.mxu0 %vm10574_vm1, %v10573_v34  ;;  %9322 = vmatpush3.bf16.msra.mxu0 %v10033_v41 }
 0x9ea   :  { %9323 = vmatprep.subr.bf16.mxu0 %v10573_v34 }
 0x9ed   :  { %9324 = vmatpush3.bf16.msra.mxu0 %v10034_v60 }
 0x9f0   :  { %9294 = vmatmul.mubr.msk.bf16.gmra.mrb[52].mxu0 %vm807_vm2, %v1132_v57 }
 0x9f1   :  { %9325 = vmatprep.mubr.msk.bf16.mxu0 %vm10574_vm1, %v10573_v34 }
 0x9f8   :  { %9326 = vmatmul.mubr.msk.bf16.vlgmr.msra.gmra.mrb[56].mxu0 %vm219_vm0, %v10917_v13 }
 0x9f9   :  { %9329 = vmatprep.mubr.msk.bf16.mxu0 %vm10574_vm1, %v10573_v34 }
 0xa00   :  { %9330 = vmatmul.mubr.msk.bf16.gmra.mrb[60].mxu0 %vm219_vm0, %v10932_v24 }
 0xa01   :  { %9333 = vmatprep.mubr.msk.bf16.mxu0 %vm10574_vm1, %v10573_v34 }
 0xa08   :  { %9334 = vmatmul.mubr.msk.bf16.gmra.mrb[64].mxu0 %vm219_vm0, %v10944_v28 }
 0xa9b   :  { %v9259_v53 = vpop.f32.mrb[68].mxu1 }
 0xa9c   :  { %v1686_v56 = vpop.f32.mrb[69].mxu1 }
 0xa9d   :  { %v9260_v57 = vpop.f32.mrb[70].mxu1 }
 0xa9e   :  { %v1689_v58 = vpop.f32.mrb[71].mxu1 }
 0xa9f   :  { %v1757_v63 = vpack.c.bf16 %v1689_v58, %v1686_v56 }
 0xaa1   :  { %9272 = vmatmul.mubr.msk.bf16.vlgmr.msra.gmra.mrb[72].mxu1 %vm807_vm2, %v1757_v63 }
 0xaa2   :  { %9275 = vmatprep.mubr.msk.bf16.mxu1 %vm10574_vm1, %v10573_v34  ;;  %9298 = vmatpush3.bf16.msra.mxu1 %v10036_v59 }
 0xaa3   :  { %9299 = vmatprep.subr.bf16.mxu1 %v10573_v34 }
 0xaa6   :  { %9300 = vmatpush3.bf16.msra.mxu1 %v10037_v2 }
 0xaa7   :  { %9301 = vmatprep.subr.bf16.mxu1 %v10573_v34 }
 0xaaa   :  { %9302 = vmatpush3.bf16.msra.mxu1 %v10038_v42 }
 0xaab   :  { %v9267_v44 = vpop.f32.mrb[40].mxu0  ;;  %9303 = vmatprep.subr.bf16.mxu1 %v10573_v34 }
 0xaac   :  { %v1743_v46 = vpop.f32.mrb[41].mxu0 }
 0xaad   :  { %v1758_v47 = vpack.c.bf16 %v1743_v46, %v9259_v53  ;;  %v9268_v48 = vpop.f32.mrb[42].mxu0 }
 0xaae   :  { %v1746_v49 = vpop.f32.mrb[43].mxu0  ;;  %9304 = vmatpush3.bf16.msra.mxu1 %v10039_v43 }
 0xaaf   :  { %v1759_v51 = vpack.c.bf16 %v9267_v44, %v1746_v49  ;;  %9276 = vmatmul.mubr.msk.bf16.gmra.mrb[76].mxu1 %vm807_vm2, %v1758_v47  ;;  %9337 = vmatprep.subr.bf16.mxu1 %v10573_v34 }
 0xab0   :  { %9279 = vmatprep.mubr.msk.bf16.mxu1 %vm10574_vm1, %v10573_v34 }
 0xab3   :  { %v11274_v52 = vpop.f32.mrb[44].mxu0 }
 0xab4   :  { %v9287_v54 = vpop.f32.mrb[45].mxu0 }
 0xab5   :  { %v11276_v62 = vpop.f32.mrb[46].mxu0 }
 0xab6   :  { %v9288_v4 = vpop.f32.mrb[47].mxu0 }
 0xab7   :  { %9280 = vmatmul.mubr.msk.bf16.gmra.mrb[80].mxu1 %vm807_vm2, %v1759_v51 }
 0xab8   :  { %9305 = vmatprep.mubr.msk.bf16.mxu1 %vm10574_vm1, %v10573_v34 }
 0xabb   :  { %v11281_v5 = vpop.f32.mrb[48].mxu0 }
 0xabc   :  { %v9291_v7 = vpop.f32.mrb[49].mxu0 }
 0xabd   :  { %v11286_v10 = vpop.f32.mrb[50].mxu0 }
 0xabe   :  { %v9292_v3 = vpop.f32.mrb[51].mxu0 }
 0xabf   :  { %9306 = vmatmul.mubr.msk.bf16.vlgmr.msra.gmra.mrb[84].mxu1 %vm219_vm0, %v10917_v13 }
 0xac0   :  { %9309 = vmatprep.mubr.msk.bf16.mxu1 %vm10574_vm1, %v10573_v34  ;;  %9338 = vmatpush3.bf16.msra.mxu1 %v10040_v8 }
 0xac1   :  { %9339 = vmatprep.subr.bf16.mxu1 %v10573_v34 }
 0xac3   :  { %v1900_v12 = vpop.f32.mrb[52].mxu0 }
 0xac4   :  { %v9295_v15 = vpop.f32.mrb[53].mxu0  ;;  %9340 = vmatpush3.bf16.msra.mxu1 %v10041_v11  ;;  %v8076_v11 = vld [vmem:[%s12992_s30 + $0x2] ss:$0 sm:$0xff] }
 0xac5   :  { %v1903_v17 = vpop.f32.mrb[54].mxu0  ;;  %9341 = vmatprep.subr.bf16.mxu1 %v10573_v34 }
 0xac6   :  { %v9296_v18 = vpop.f32.mrb[55].mxu0 }
 0xac7   :  { %9310 = vmatmul.mubr.msk.bf16.gmra.mrb[88].mxu1 %vm219_vm0, %v10932_v24 }
 0xac8   :  { %9313 = vmatprep.mubr.msk.bf16.mxu1 %vm10574_vm1, %v10573_v34  ;;  %9342 = vmatpush3.bf16.msra.mxu1 %v10042_v16 }
 0xac9   :  { %9343 = vmatprep.subr.bf16.mxu1 %v10573_v34 }
 0xacb   :  { %v2080_v22 = vpop.f32.mrb[56].mxu0 }
 0xacc   :  { %v9327_v19 = vpop.f32.mrb[57].mxu0  ;;  %9344 = vmatpush3.bf16.msra.mxu1 %v10043_v20  ;;  %v2081_v26 = vadd.f32 %v8093_v21, %v2080_v22 }
 0xacd   :  { %v2083_v23 = vpop.f32.mrb[58].mxu0 }
 0xace   :  { %v2084_v27 = vadd.f32 %v8093_v21, %v2083_v23  ;;  %v9328_v29 = vpop.f32.mrb[59].mxu0 }
 0xacf   :  { %9314 = vmatmul.mubr.msk.bf16.gmra.mrb[92].mxu1 %vm219_vm0, %v10944_v28 }
 0xad0   :  { %v2205_v25 = vpack.c.bf16 %v2084_v27, %v2081_v26  ;;  %9345 = vmatprep.mubr.msk.bf16.mxu1 %vm10574_vm1, %v10573_v34 }
 0xad2   :  { %9945 = vmatprep.subr.msk.bf16.mxu0 %vm807_vm2, %v2205_v25  ;;  %v2216_v30 = vsel %vm807_vm2, %v2205_v25, 0 }
 0xad3   :  { %v2088_v31 = vpop.f32.mrb[60].mxu0  ;;  %9358 = vmatpush3.bf16.xpose.msra.mxu0 %v2216_v30 }
 0xad4   :  { %v2089_v9 = vadd.f32 %v8093_v21, %v2088_v31  ;;  %v9331_v32 = vpop.f32.mrb[61].mxu0 }
 0xad5   :  { %v2091_v33 = vpop.f32.mrb[62].mxu0 }
 0xad6   :  { %v2206_v35 = vpack.c.bf16 %v2089_v9, %v2089_v9  ;;  %v9332_v36 = vpop.f32.mrb[63].mxu0  ;;  %v2092_v41 = vadd.f32 %v8093_v21, %v2091_v33 }
 0xad7   :  { %9346 = vmatmul.mubr.msk.bf16.vlgmr.msra.gmra.mrb[96].mxu1 %vm219_vm0, %v10917_v13 }
 0xad8   :  { %9946 = vmatprep.subr.msk.bf16.mxu0 %vm807_vm2, %v2206_v35  ;;  %9349 = vmatprep.mubr.msk.bf16.mxu1 %vm10574_vm1, %v10573_v34  ;;  %v2219_v38 = vsel %vm807_vm2, %v2206_v35, 0 }
 0xadb   :  { %v2096_v40 = vpop.f32.mrb[64].mxu0  ;;  %9360 = vmatpush3.bf16.xpose.msra.mxu0 %v2219_v38 }
 0xadc   :  { %v2097_v60 = vadd.f32 %v8093_v21, %v2096_v40  ;;  %v9335_v37 = vpop.f32.mrb[65].mxu0  ;;  %v8110_v40 = vld [vmem:[%s12946_s12 + $0x2] ss:$0 sm:$0xff] }
 0xadd   :  { %v2099_v53 = vpop.f32.mrb[66].mxu0 }
 0xade   :  { %v2207_v56 = vpack.c.bf16 %v2097_v60, %v2092_v41  ;;  %v2100_v57 = vadd.f32 %v8093_v21, %v2099_v53  ;;  %v9336_v58 = vpop.f32.mrb[67].mxu0 }
 0xadf   :  { %9350 = vmatmul.mubr.msk.bf16.gmra.mrb[100].mxu1 %vm219_vm0, %v10932_v24 }
 0xae0   :  { %9947 = vmatprep.subr.msk.bf16.mxu0 %vm807_vm2, %v2207_v56  ;;  %9353 = vmatprep.mubr.msk.bf16.mxu1 %vm10574_vm1, %v10573_v34  ;;  %v2208_v27 = vpack.c.bf16 %v2100_v57, %v2100_v57  ;;  %v2276_v29 = vsel %vm807_vm2, %v2207_v56, 0 }
 0xae2   :  { %v2279_v36 = vsel %vm807_vm2, %v2208_v27, 0 }
 0xae7   :  { %9354 = vmatmul.mubr.msk.bf16.gmra.mrb[104].mxu1 %vm219_vm0, %v10944_v28 }
 0xb74   :  { %v1812_v59 = vpop.f32.mrb[72].mxu1 }
 0xb75   :  { %v11331_v63 = vadd.f32 %v11274_v52, %v1812_v59  ;;  %v9273_v2 = vpop.f32.mrb[73].mxu1 }
 0xb76   :  { %v1815_v42 = vpop.f32.mrb[74].mxu1 }
 0xb77   :  { %v11334_v43 = vadd.f32 %v11276_v62, %v1815_v42  ;;  %v9274_v44 = vpop.f32.mrb[75].mxu1 }
 0xb82   :  { %v1820_v46 = vpop.f32.mrb[76].mxu1 }
 0xb83   :  { %v11337_v47 = vadd.f32 %v11281_v5, %v1820_v46  ;;  %v9277_v48 = vpop.f32.mrb[77].mxu1 }
 0xb84   :  { %v1823_v49 = vpop.f32.mrb[78].mxu1 }
 0xb85   :  { %v11340_v51 = vadd.f32 %v11286_v10, %v1823_v49  ;;  %v9278_v54 = vpop.f32.mrb[79].mxu1 }
 0xb8a   :  { %v1828_v4 = vpop.f32.mrb[80].mxu1 }
 0xb8b   :  { %v11342_v7 = vadd.f32 %v1900_v12, %v1828_v4  ;;  %v9281_v52 = vpop.f32.mrb[81].mxu1 }
 0xb8c   :  { %v1831_v8 = vpop.f32.mrb[82].mxu1 }
 0xb8d   :  { %v11344_v3 = vadd.f32 %v1903_v17, %v1831_v8  ;;  %v9282_v62 = vpop.f32.mrb[83].mxu1 }
 0xb92   :  { %v1982_v5 = vpop.f32.mrb[84].mxu1 }
 0xb93   :  { %v9307_v15 = vpop.f32.mrb[85].mxu1  ;;  %v1983_v18 = vadd.f32 %v8076_v11, %v1982_v5 }
 0xb94   :  { %v1985_v16 = vpop.f32.mrb[86].mxu1 }
 0xb95   :  { %v1986_v20 = vadd.f32 %v8076_v11, %v1985_v16  ;;  %v9308_v10 = vpop.f32.mrb[87].mxu1 }
 0xb97   :  { %v2201_v21 = vpack.c.bf16 %v1986_v20, %v1983_v18 }
 0xb99   :  { %9361 = vmatprep.mubr.msk.bf16.mxu0 %vm807_vm2, %v2201_v21 }
 0xb9a   :  { %v1990_v12 = vpop.f32.mrb[88].mxu1 }
 0xb9b   :  { %v1991_v22 = vadd.f32 %v8076_v11, %v1990_v12  ;;  %v9311_v19 = vpop.f32.mrb[89].mxu1 }
 0xb9c   :  { %v1993_v23 = vpop.f32.mrb[90].mxu1 }
 0xb9d   :  { %v2202_v17 = vpack.c.bf16 %v1991_v22, %v1991_v22  ;;  %v9312_v26 = vpop.f32.mrb[91].mxu1  ;;  %v1994_v30 = vadd.f32 %v8076_v11, %v1993_v23 }
 0xb9f   :  { %9362 = vmatmul.mubr.msk.bf16.vlgmr.msra.gmra.mrb[68].mxu0 %vm807_vm2, %v2202_v17 }
 0xba0   :  { %9366 = vmatpush3.bf16.xpose.msra.mxu0 %v2276_v29 }
 0xba1   :  { %9948 = vmatprep.subr.msk.bf16.mxu0 %vm807_vm2, %v2208_v27 }
 0xba2   :  { %v1998_v25 = vpop.f32.mrb[92].mxu1 }
 0xba3   :  { %v1999_v31 = vadd.f32 %v8076_v11, %v1998_v25  ;;  %v9315_v9 = vpop.f32.mrb[93].mxu1 }
 0xba4   :  { %v2001_v32 = vpop.f32.mrb[94].mxu1 }
 0xba5   :  { %v2203_v33 = vpack.c.bf16 %v1999_v31, %v1994_v30  ;;  %v9316_v35 = vpop.f32.mrb[95].mxu1  ;;  %v2002_v38 = vadd.f32 %v8076_v11, %v2001_v32 }
 0xba7   :  { %9369 = vmatprep.mubr.msk.bf16.mxu0 %vm807_vm2, %v2203_v33  ;;  %v2204_v53 = vpack.c.bf16 %v2002_v38, %v2002_v38 }
 0xba8   :  { %9368 = vmatpush3.bf16.xpose.msra.mxu0 %v2279_v36 }
 0xbaa   :  { %v2178_v41 = vpop.f32.mrb[96].mxu1 }
 0xbab   :  { %v9347_v60 = vpop.f32.mrb[97].mxu1  ;;  %v2179_v56 = vadd.f32 %v8110_v40, %v2178_v41 }
 0xbac   :  { %v2181_v37 = vpop.f32.mrb[98].mxu1 }
 0xbad   :  { %v2182_v57 = vadd.f32 %v8110_v40, %v2181_v37  ;;  %v9348_v58 = vpop.f32.mrb[99].mxu1 }
 0xbaf   :  { %v2411_v59 = vpack.c.bf16 %v2182_v57, %v2179_v56  ;;  %9370 = vmatmul.mubr.msk.bf16.vlgmr.msra.gmra.mrb[72].mxu0 %vm807_vm2, %v2204_v53 }
 0xbb1   :  { %9373 = vmatprep.subr.bf16.mxu1 %v2411_v59 }
 0xbb2   :  { %v2186_v2 = vpop.f32.mrb[100].mxu1  ;;  %9374 = vmatpush3.bf16.msra.mxu1 %v2411_v59 }
 0xbb3   :  { %v2187_v42 = vadd.f32 %v8110_v40, %v2186_v2  ;;  %v9351_v44 = vpop.f32.mrb[101].mxu1 }
 0xbb4   :  { %v2189_v46 = vpop.f32.mrb[102].mxu1 }
 0xbb5   :  { %v2412_v48 = vpack.c.bf16 %v2187_v42, %v2187_v42  ;;  %v9352_v49 = vpop.f32.mrb[103].mxu1  ;;  %v2190_v52 = vadd.f32 %v8110_v40, %v2189_v46 }
 0xbb7   :  { %v2422_v54 = vsel %vm1021_vm3, %v2412_v48, 0  ;;  %9949 = vmatprep.subr.msk.bf16.mxu1 %vm1021_vm3, %v2412_v48 }
 0xbb8   :  { %9376 = vmatpush3.bf16.msra.mxu1 %v2422_v54 }
 0xbb9   :  { %9389 = vmatprep.subr.bf16.mxu1 %v10573_v34 }
 0xbba   :  { %v2194_v4 = vpop.f32.mrb[104].mxu1 }
 0xbbb   :  { %v2195_v8 = vadd.f32 %v8110_v40, %v2194_v4  ;;  %v9355_v62 = vpop.f32.mrb[105].mxu1 }
 0xbbc   :  { %v2197_v11 = vpop.f32.mrb[106].mxu1 }
 0xbbd   :  { %v2413_v5 = vpack.c.bf16 %v2195_v8, %v2190_v52  ;;  %v2198_v15 = vadd.f32 %v8110_v40, %v2197_v11  ;;  %v9356_v16 = vpop.f32.mrb[107].mxu1 }
 0xbbf   :  { %v2414_v18 = vpack.c.bf16 %v2198_v15, %v2198_v15  ;;  %9381 = vmatprep.subr.bf16.mxu0 %v2413_v5 }
 0xbc0   :  { %9382 = vmatpush3.bf16.msra.mxu0 %v2413_v5 }
 0xbc1   :  { %9950 = vmatprep.subr.msk.bf16.mxu0 %vm1021_vm3, %v2414_v18  ;;  %v2479_v20 = vsel %vm1021_vm3, %v2414_v18, 0 }
 0xbc4   :  { %9384 = vmatpush3.bf16.msra.mxu0 %v2479_v20 }
 0xbc5   :  { %9403 = vmatprep.subr.bf16.mxu0 %v10573_v34 }
 0xc72   :  { %v9363_v10 = vpop.f32.mrb[68].mxu0 }
 0xc73   :  { %v2255_v21 = vpop.f32.mrb[69].mxu0  ;;  %v2331_v12 = vmul.f32 0.25, %v9363_v10 }
 0xc74   :  { %v2329_v22 = vmul.f32 0.25, %v2255_v21  ;;  %v9364_v19 = vpop.f32.mrb[70].mxu0 }
 0xc75   :  { %v2258_v23 = vpop.f32.mrb[71].mxu0  ;;  %v2337_v25 = vadd.f32 %v2331_v12, %v11024_v14 }
 0xc76   :  { %v2330_v17 = vmul.f32 0.25, %v2258_v23  ;;  %v2335_v26 = vadd.f32 %v2329_v22, %v11024_v14 }
 0xc77   :  { %v2347_v31 = vsel %vm940_vm5, %v2337_v25, -inf }
 0xc78   :  { %v2341_v27 = vsel %vm940_vm5, %v2335_v26, -inf  ;;  %v2336_v29 = vadd.f32 %v2330_v17, %v11024_v14 }
 0xc79   :  { %2342 = vmax.xlane.f32.xlu0 %v2341_v27 }
 0xc7a   :  { %v2344_v30 = vsel %vm940_vm5, %v2336_v29, -inf }
 0xc7b   :  { %2345 = vmax.xlane.f32.xlu1 %v2344_v30 }
 0xc7d   :  { %2348 = vmax.xlane.f32.xlu0 %v2347_v31 }
 0xc82   :  { %v9371_v9 = vpop.f32.mrb[72].mxu0 }
 0xc83   :  { %v2315_v32 = vpop.f32.mrb[73].mxu0  ;;  %v2334_v33 = vmul.f32 0.25, %v9371_v9 }
 0xc84   :  { %v2332_v35 = vmul.f32 0.25, %v2315_v32  ;;  %v9372_v36 = vpop.f32.mrb[74].mxu0 }
 0xc85   :  { %v2318_v38 = vpop.f32.mrb[75].mxu0  ;;  %v2340_v53 = vadd.f32 %v2334_v33, %v11024_v14 }
 0xc86   :  { %v2333_v40 = vmul.f32 0.25, %v2318_v38  ;;  %v2338_v41 = vadd.f32 %v2332_v35, %v11024_v14 }
 0xc87   :  { %v2356_v57 = vsel %vm940_vm5, %v2340_v53, -inf }
 0xc88   :  { %v2350_v60 = vsel %vm940_vm5, %v2338_v41, -inf  ;;  %v2339_v37 = vadd.f32 %v2333_v40, %v11024_v14 }
 0xc89   :  { %2351 = vmax.xlane.f32.xlu1 %v2350_v60 }
 0xc8a   :  { %v2353_v56 = vsel %vm940_vm5, %v2339_v37, -inf }
 0xc8b   :  { %2354 = vmax.xlane.f32.xlu0 %v2353_v56 }
 0xc8d   :  { %2357 = vmax.xlane.f32.xlu1 %v2356_v57 }
 0xd06   :  { %v2343_v58 = vpop.xlane.xlu0 %2342 }
 0xd07   :  { %v2359_v59 = vsub.f32 %v2335_v26, %v2343_v58 }
 0xd08   :  { %v2346_v2 = vpop.xlane.xlu1 %2345 }
 0xd09   :  { %v2365_v42 = vmul.f32 1.442695, %v2359_v59  ;;  %v2360_v44 = vsub.f32 %v2336_v29, %v2346_v2 }
 0xd0a   :  { %v2349_v46 = vpop.xlane.xlu0 %2348 }
 0xd0b   :  { %10294 = vpow2.f32 %v2365_v42  ;;  %v2367_v48 = vmul.f32 1.442695, %v2360_v44  ;;  %v2361_v49 = vsub.f32 %v2337_v25, %v2349_v46 }
 0xd0d   :  { %10296 = vpow2.f32 %v2367_v48  ;;  %v2369_v54 = vmul.f32 1.442695, %v2361_v49  ;;  %v10044_v48 = vld [vmem:[%s12987_s7 + $0x60] sm:$0xff]  }
 0xd0f   :  { %10298 = vpow2.f32 %v2369_v54  ;;  %v10045_v54 = vld [vmem:[%s12987_s7 + $0x68] sm:$0xff]  }
 0xd15   :  { %v10295_v4 = vpop.eup %10294 }
 0xd16   :  { %v2352_v52 = vpop.xlane.xlu1 %2351  ;;  %v2377_v8 = vsel %vm940_vm5, %v10295_v4, 0.0 }
 0xd17   :  { %v10297_v62 = vpop.eup %10296  ;;  %v2362_v11 = vsub.f32 %v2338_v41, %v2352_v52  ;;  %2378 = vadd.xlane.f32.xlu0 %v2377_v8  ;;  %v10047_v52 = vld [vmem:[%s12987_s7 + $0x78] sm:$0xff]   ;;  %v10048_v8 = vld [vmem:[%s12991_s8 + $0x60] sm:$0xff]  }
 0xd18   :  { %v2355_v5 = vpop.xlane.xlu0 %2354  ;;  %v2380_v15 = vsel %vm940_vm5, %v10297_v62, 0.0 }
 0xd19   :  { %v10299_v16 = vpop.eup %10298  ;;  %v2371_v18 = vmul.f32 1.442695, %v2362_v11  ;;  %v2363_v20 = vsub.f32 %v2339_v37, %v2355_v5  ;;  %2381 = vadd.xlane.f32.xlu1 %v2380_v15  ;;  %v10050_v11 = vld [vmem:[%s12991_s8 + $0x70] sm:$0xff]   ;;  %v10051_v5 = vld [vmem:[%s12991_s8 + $0x78] sm:$0xff]  }
 0xd1a   :  { %v2358_v10 = vpop.xlane.xlu1 %2357  ;;  %v2383_v21 = vsel %vm940_vm5, %v10299_v16, 0.0  ;;  %v10052_v15 = vld [vmem:[%s12947_s13 + $0x10] sm:$0xff]  }
 0xd1b   :  { %10300 = vpow2.f32 %v2371_v18  ;;  %v2373_v12 = vmul.f32 1.442695, %v2363_v20  ;;  %v2364_v22 = vsub.f32 %v2340_v53, %v2358_v10  ;;  %2384 = vadd.xlane.f32.xlu0 %v2383_v21  ;;  %v10053_v21 = vld [vmem:[%s12990_s28 + $0x60] sm:$0xff]  }
 0xd1d   :  { %10302 = vpow2.f32 %v2373_v12  ;;  %v2375_v19 = vmul.f32 1.442695, %v2364_v22  ;;  %v10054_v22 = vld [vmem:[%s12990_s28 + $0x68] sm:$0xff]  }
 0xd1f   :  { %10304 = vpow2.f32 %v2375_v19  ;;  %v10055_v19 = vld [vmem:[%s12990_s28 + $0x70] sm:$0xff]  }
 0xd25   :  { %v10301_v23 = vpop.eup %10300 }
 0xd26   :  { %v2386_v17 = vsel %vm940_vm5, %v10301_v23, 0.0 }
 0xd27   :  { %v10303_v26 = vpop.eup %10302  ;;  %2387 = vadd.xlane.f32.xlu1 %v2386_v17 }
 0xd28   :  { %v2389_v27 = vsel %vm940_vm5, %v10303_v26, 0.0 }
 0xd29   :  { %v10305_v29 = vpop.eup %10304  ;;  %2390 = vadd.xlane.f32.xlu0 %v2389_v27 }
 0xd2a   :  { %v2392_v25 = vsel %vm940_vm5, %v10305_v29, 0.0 }
 0xd2b   :  { %2393 = vadd.xlane.f32.xlu1 %v2392_v25 }
 0xda4   :  { %v2379_v30 = vpop.xlane.xlu0 %2378 }
 0xda5   :  { %10306 = vrcp.f32 %v2379_v30 }
 0xda6   :  { %v2382_v31 = vpop.xlane.xlu1 %2381 }
 0xda7   :  { %10308 = vrcp.f32 %v2382_v31  ;;  %v8141_v31 = vld [vmem:[%s12992_s30 + $0x3] ss:$0 sm:$0xff] }
 0xda8   :  { %v2385_v9 = vpop.xlane.xlu0 %2384 }
 0xda9   :  { %10310 = vrcp.f32 %v2385_v9 }
 0xdaf   :  { %v10307_v32 = vpop.eup %10306 }
 0xdb0   :  { %v2401_v35 = vmul.f32 %v10307_v32, %v10295_v4  ;;  %v10046_v4 = vld [vmem:[%s12987_s7 + $0x70] sm:$0xff]  }
 0xdb1   :  { %v10309_v33 = vpop.eup %10308 }
 0xdb2   :  { %v2402_v36 = vmul.f32 %v10309_v33, %v10297_v62  ;;  %v10049_v62 = vld [vmem:[%s12991_s8 + $0x68] sm:$0xff]  }
 0xdb3   :  { %v10311_v38 = vpop.eup %10310 }
 0xdb4   :  { %v2403_v40 = vmul.f32 %v10311_v38, %v10299_v16  ;;  %v2388_v41 = vpop.xlane.xlu1 %2387  ;;  %v2407_v60 = vpack.c.bf16 %v2402_v36, %v2401_v35 }
 0xdb5   :  { %10312 = vrcp.f32 %v2388_v41 }
 0xdb6   :  { %v2408_v37 = vpack.c.bf16 %v2403_v40, %v2403_v40  ;;  %v2391_v53 = vpop.xlane.xlu0 %2390  ;;  %9377 = vmatprep.mubr.msk.bf16.mxu1 %vm940_vm5, %v2407_v60 }
 0xdb7   :  { %10314 = vrcp.f32 %v2391_v53 }
 0xdb8   :  { %v2394_v56 = vpop.xlane.xlu1 %2393  ;;  %9378 = vmatmul.mubr.msk.bf16.vlgmr.msra.gmra.mrb[108].mxu1 %vm940_vm5, %v2408_v37 }
 0xdb9   :  { %10316 = vrcp.f32 %v2394_v56  ;;  %9391 = vmatprep.mubr.msk.bf16.mxu1 %vm10574_vm1, %v10573_v34  ;;  %9390 = vmatpush3.bf16.msra.mxu1 %v10052_v15 }
 0xdba   :  { %9423 = vmatprep.subr.bf16.mxu1 %v10573_v34 }
 0xdbf   :  { %v10313_v57 = vpop.eup %10312 }
 0xdc0   :  { %v2404_v59 = vmul.f32 %v10313_v57, %v10301_v23  ;;  %v10056_v23 = vld [vmem:[%s12990_s28 + $0x78] sm:$0xff]  }
 0xdc1   :  { %v10315_v58 = vpop.eup %10314 }
 0xdc2   :  { %v2405_v2 = vmul.f32 %v10315_v58, %v10303_v26 }
 0xdc3   :  { %v10317_v42 = vpop.eup %10316 }
 0xdc4   :  { %v2409_v44 = vpack.c.bf16 %v2405_v2, %v2404_v59  ;;  %v2406_v46 = vmul.f32 %v10317_v42, %v10305_v29 }
 0xdc6   :  { %9385 = vmatprep.mubr.msk.bf16.mxu0 %vm940_vm5, %v2409_v44  ;;  %v2410_v49 = vpack.c.bf16 %v2406_v46, %v2406_v46 }
 0xdc8   :  { %9386 = vmatmul.mubr.msk.bf16.vlgmr.msra.gmra.mrb[76].mxu0 %vm940_vm5, %v2410_v49 }
 0xdc9   :  { %9404 = vmatpush3.bf16.msra.mxu0 %v10044_v48  ;;  %9411 = vmatprep.mubr.msk.bf16.mxu0 %vm10574_vm1, %v10573_v34 }
 0xdca   :  { %9405 = vmatprep.subr.bf16.mxu0 %v10573_v34 }
 0xdcd   :  { %9406 = vmatpush3.bf16.msra.mxu0 %v10045_v54 }
 0xdce   :  { %9407 = vmatprep.subr.bf16.mxu0 %v10573_v34 }
 0xdd1   :  { %9408 = vmatpush3.bf16.msra.mxu0 %v10046_v4 }
 0xdd2   :  { %9409 = vmatprep.subr.bf16.mxu0 %v10573_v34 }
 0xdd5   :  { %9410 = vmatpush3.bf16.msra.mxu0 %v10047_v52 }
 0xdd6   :  { %9443 = vmatprep.subr.bf16.mxu0 %v10573_v34 }
 0xdd8   :  { %9412 = vmatmul.mubr.msk.bf16.vlgmr.msra.gmra.mrb[80].mxu0 %vm219_vm0, %v10917_v13 }
 0xdd9   :  { %9415 = vmatprep.mubr.msk.bf16.mxu0 %vm10574_vm1, %v10573_v34  ;;  %9444 = vmatpush3.bf16.msra.mxu0 %v10048_v8 }
 0xdda   :  { %9445 = vmatprep.subr.bf16.mxu0 %v10573_v34 }
 0xddd   :  { %9446 = vmatpush3.bf16.msra.mxu0 %v10049_v62 }
 0xdde   :  { %9447 = vmatprep.subr.bf16.mxu0 %v10573_v34 }
 0xde0   :  { %9416 = vmatmul.mubr.msk.bf16.gmra.mrb[84].mxu0 %vm219_vm0, %v10932_v24 }
 0xde1   :  { %9419 = vmatprep.mubr.msk.bf16.mxu0 %vm10574_vm1, %v10573_v34  ;;  %9448 = vmatpush3.bf16.msra.mxu0 %v10050_v11 }
 0xde2   :  { %9449 = vmatprep.subr.bf16.mxu0 %v10573_v34 }
 0xde5   :  { %9450 = vmatpush3.bf16.msra.mxu0 %v10051_v5 }
 0xde8   :  { %9420 = vmatmul.mubr.msk.bf16.gmra.mrb[88].mxu0 %vm219_vm0, %v10944_v28 }
 0xde9   :  { %9451 = vmatprep.mubr.msk.bf16.mxu0 %vm10574_vm1, %v10573_v34 }
 0xdf0   :  { %9452 = vmatmul.mubr.msk.bf16.vlgmr.msra.gmra.mrb[92].mxu0 %vm219_vm0, %v10917_v13 }
 0xdf1   :  { %9455 = vmatprep.mubr.msk.bf16.mxu0 %vm10574_vm1, %v10573_v34 }
 0xdf8   :  { %9456 = vmatmul.mubr.msk.bf16.gmra.mrb[96].mxu0 %vm219_vm0, %v10932_v24 }
 0xdf9   :  { %9459 = vmatprep.mubr.msk.bf16.mxu0 %vm10574_vm1, %v10573_v34 }
 0xe00   :  { %9460 = vmatmul.mubr.msk.bf16.gmra.mrb[100].mxu0 %vm219_vm0, %v10944_v28 }
 0xe8b   :  { %v9379_v16 = vpop.f32.mrb[108].mxu1 }
 0xe8c   :  { %v2458_v18 = vpop.f32.mrb[109].mxu1 }
 0xe8d   :  { %v9380_v20 = vpop.f32.mrb[110].mxu1 }
 0xe8e   :  { %v2461_v10 = vpop.f32.mrb[111].mxu1 }
 0xe8f   :  { %v2529_v12 = vpack.c.bf16 %v2461_v10, %v2458_v18 }
 0xe91   :  { %9392 = vmatmul.mubr.msk.bf16.vlgmr.msra.gmra.mrb[112].mxu1 %vm807_vm2, %v2529_v12 }
 0xe92   :  { %9395 = vmatprep.mubr.msk.bf16.mxu1 %vm10574_vm1, %v10573_v34  ;;  %9424 = vmatpush3.bf16.msra.mxu1 %v10053_v21 }
 0xe93   :  { %9425 = vmatprep.subr.bf16.mxu1 %v10573_v34 }
 0xe96   :  { %9426 = vmatpush3.bf16.msra.mxu1 %v10054_v22 }
 0xe97   :  { %9427 = vmatprep.subr.bf16.mxu1 %v10573_v34 }
 0xe9a   :  { %9428 = vmatpush3.bf16.msra.mxu1 %v10055_v19 }
 0xe9b   :  { %v9387_v17 = vpop.f32.mrb[76].mxu0  ;;  %9429 = vmatprep.subr.bf16.mxu1 %v10573_v34 }
 0xe9c   :  { %v2515_v26 = vpop.f32.mrb[77].mxu0 }
 0xe9d   :  { %v2530_v27 = vpack.c.bf16 %v2515_v26, %v9379_v16  ;;  %v9388_v29 = vpop.f32.mrb[78].mxu0 }
 0xe9e   :  { %v2518_v25 = vpop.f32.mrb[79].mxu0  ;;  %9430 = vmatpush3.bf16.msra.mxu1 %v10056_v23 }
 0xe9f   :  { %v2531_v30 = vpack.c.bf16 %v9387_v17, %v2518_v25  ;;  %9396 = vmatmul.mubr.msk.bf16.gmra.mrb[116].mxu1 %vm807_vm2, %v2530_v27 }
 0xea0   :  { %9399 = vmatprep.mubr.msk.bf16.mxu1 %vm10574_vm1, %v10573_v34 }
 0xea7   :  { %9400 = vmatmul.mubr.msk.bf16.gmra.mrb[120].mxu1 %vm807_vm2, %v2531_v30 }
 0xea8   :  { %9431 = vmatprep.mubr.msk.bf16.mxu1 %vm10574_vm1, %v10573_v34 }
 0xeab   :  { %v2688_v9 = vpop.f32.mrb[80].mxu0 }
 0xeac   :  { %v9413_v32 = vpop.f32.mrb[81].mxu0  ;;  %v2689_v35 = vadd.f32 %v8141_v31, %v2688_v9 }
 0xead   :  { %v2691_v33 = vpop.f32.mrb[82].mxu0 }
 0xeae   :  { %v2692_v36 = vadd.f32 %v8141_v31, %v2691_v33  ;;  %v9414_v38 = vpop.f32.mrb[83].mxu0 }
 0xeaf   :  { %9432 = vmatmul.mubr.msk.bf16.vlgmr.msra.gmra.mrb[124].mxu1 %vm219_vm0, %v10917_v13 }
 0xeb0   :  { %v2907_v40 = vpack.c.bf16 %v2692_v36, %v2689_v35  ;;  %9435 = vmatprep.mubr.msk.bf16.mxu1 %vm10574_vm1, %v10573_v34 }
 0xeb3   :  { %v2696_v41 = vpop.f32.mrb[84].mxu0 }
 0xeb4   :  { %v11479_v60 = vadd.f32 %v8141_v31, %v2696_v41  ;;  %v9417_v37 = vpop.f32.mrb[85].mxu0 }
 0xeb5   :  { %v2699_v53 = vpop.f32.mrb[86].mxu0 }
 0xeb6   :  { %v9418_v56 = vpop.f32.mrb[87].mxu0  ;;  %v2700_v58 = vadd.f32 %v8141_v31, %v2699_v53 }
 0xeb7   :  { %9436 = vmatmul.mubr.msk.bf16.gmra.mrb[128].mxu1 %vm219_vm0, %v10932_v24  ;;  %v11494_v24 = vld [vmem:[%s12946_s12 + $0x3] ss:$0 sm:$0xff] }
 0xeb8   :  { %9439 = vmatprep.mubr.msk.bf16.mxu1 %vm10574_vm1, %v10573_v34 }
 0xebb   :  { %v2704_v57 = vpop.f32.mrb[88].mxu0 }
 0xebc   :  { %v2705_v59 = vadd.f32 %v8141_v31, %v2704_v57  ;;  %v9421_v13 = vpop.f32.mrb[89].mxu0 }
 0xebd   :  { %v2707_v2 = vpop.f32.mrb[90].mxu0 }
 0xebe   :  { %v2909_v42 = vpack.c.bf16 %v2705_v59, %v2700_v58  ;;  %v11485_v44 = vadd.f32 %v8141_v31, %v2707_v2  ;;  %v9422_v46 = vpop.f32.mrb[91].mxu0 }
 0xebf   :  { %9440 = vmatmul.mubr.msk.bf16.gmra.mrb[132].mxu1 %vm219_vm0, %v10944_v28 }
 0xec0   :  { %9475 = vmatprep.mubr.msk.bf16.mxu0 %vm807_vm2, %v2909_v42  ;;  %9467 = vmatprep.mubr.msk.bf16.mxu1 %vm807_vm2, %v2907_v40 }
 0xec3   :  { %v2884_v48 = vpop.f32.mrb[92].mxu0 }
 0xec4   :  { %v9453_v49 = vpop.f32.mrb[93].mxu0  ;;  %v2885_v4 = vadd.f32 %v11494_v24, %v2884_v48 }
 0xec5   :  { %v2887_v54 = vpop.f32.mrb[94].mxu0 }
 0xec6   :  { %v2888_v52 = vadd.f32 %v11494_v24, %v2887_v54  ;;  %v9454_v8 = vpop.f32.mrb[95].mxu0 }
 0xec8   :  { %v11498_v62 = vpack.c.bf16 %v2888_v52, %v2885_v4 }
 0xecb   :  { %v2892_v28 = vpop.f32.mrb[96].mxu0 }
 0xecc   :  { %v9457_v11 = vpop.f32.mrb[97].mxu0 }
 0xecd   :  { %v2895_v5 = vpop.f32.mrb[98].mxu0 }
 0xece   :  { %v9458_v15 = vpop.f32.mrb[99].mxu0  ;;  %v2896_v18 = vadd.f32 %v11494_v24, %v2895_v5  ;;  %v2893_v5 = vadd.f32 %v11494_v24, %v2892_v28  ;;  %v2910_v28 = vpack.c.bf16 %v11485_v44, %v11485_v44 }
 0xed3   :  { %v2900_v16 = vpop.f32.mrb[100].mxu0 }
 0xed4   :  { %v2901_v20 = vadd.f32 %v11494_v24, %v2900_v16  ;;  %v9461_v10 = vpop.f32.mrb[101].mxu0 }
 0xed5   :  { %v2903_v21 = vpop.f32.mrb[102].mxu0 }
 0xed6   :  { %v11502_v12 = vpack.c.bf16 %v2901_v20, %v2896_v18  ;;  %v11505_v22 = vadd.f32 %v11494_v24, %v2903_v21  ;;  %v9462_v19 = vpop.f32.mrb[103].mxu0  ;;  %v2908_v20 = vpack.c.bf16 %v11479_v60, %v11479_v60 }
 0xed7   :  { %v3118_v19 = vpack.c.bf16 %v2893_v5, %v2893_v5 }
 0xed9   :  { %v3128_v24 = vsel %vm1021_vm3, %v3118_v19, 0 }
 0xf64   :  { %v2584_v23 = vpop.f32.mrb[112].mxu1 }
 0xf65   :  { %v11508_v17 = vadd.f32 %v2584_v23, %v11331_v63  ;;  %v9393_v26 = vpop.f32.mrb[113].mxu1 }
 0xf66   :  { %v2587_v27 = vpop.f32.mrb[114].mxu1 }
 0xf67   :  { %v11511_v29 = vadd.f32 %v2587_v27, %v11334_v43  ;;  %v9394_v25 = vpop.f32.mrb[115].mxu1 }
 0xf72   :  { %v2592_v30 = vpop.f32.mrb[116].mxu1 }
 0xf73   :  { %v11514_v31 = vadd.f32 %v2592_v30, %v11337_v47  ;;  %v9397_v9 = vpop.f32.mrb[117].mxu1  ;;  %v8158_v47 = vld [vmem:[%s12945_s11 + $0x3] ss:$0 sm:$0xff] }
 0xf74   :  { %v2595_v32 = vpop.f32.mrb[118].mxu1 }
 0xf75   :  { %v11517_v33 = vadd.f32 %v2595_v32, %v11340_v51  ;;  %v9398_v35 = vpop.f32.mrb[119].mxu1 }
 0xf7a   :  { %v2600_v36 = vpop.f32.mrb[120].mxu1 }
 0xf7b   :  { %v11520_v63 = vadd.f32 %v2600_v36, %v11342_v7  ;;  %v9401_v38 = vpop.f32.mrb[121].mxu1 }
 0xf7c   :  { %v2603_v40 = vpop.f32.mrb[122].mxu1 }
 0xf7d   :  { %v11523_v43 = vadd.f32 %v2603_v40, %v11344_v3  ;;  %v9402_v41 = vpop.f32.mrb[123].mxu1 }
 0xf82   :  { %v2786_v37 = vpop.f32.mrb[124].mxu1 }
 0xf83   :  { %v9433_v53 = vpop.f32.mrb[125].mxu1  ;;  %v2787_v51 = vadd.f32 %v8158_v47, %v2786_v37 }
 0xf84   :  { %v2789_v56 = vpop.f32.mrb[126].mxu1 }
 0xf85   :  { %v2790_v57 = vadd.f32 %v8158_v47, %v2789_v56  ;;  %v9434_v58 = vpop.f32.mrb[127].mxu1 }
 0xf87   :  { %v2911_v59 = vpack.c.bf16 %v2790_v57, %v2787_v51 }
 0xf89   :  { %9951 = vmatprep.subr.msk.bf16.mxu1 %vm807_vm2, %v2911_v59  ;;  %v2922_v7 = vsel %vm807_vm2, %v2911_v59, 0 }
 0xf8a   :  { %v2794_v13 = vpop.f32.mrb[128].mxu1  ;;  %9464 = vmatpush3.bf16.xpose.msra.mxu1 %v2922_v7 }
 0xf8b   :  { %v2795_v3 = vadd.f32 %v8158_v47, %v2794_v13  ;;  %v9437_v2 = vpop.f32.mrb[129].mxu1 }
 0xf8c   :  { %v2797_v42 = vpop.f32.mrb[130].mxu1 }
 0xf8d   :  { %v2912_v46 = vpack.c.bf16 %v2795_v3, %v2795_v3  ;;  %v9438_v48 = vpop.f32.mrb[131].mxu1  ;;  %v2798_v4 = vadd.f32 %v8158_v47, %v2797_v42 }
 0xf8f   :  { %9952 = vmatprep.subr.msk.bf16.mxu1 %vm807_vm2, %v2912_v46  ;;  %v2925_v49 = vsel %vm807_vm2, %v2912_v46, 0 }
 0xf92   :  { %v2802_v54 = vpop.f32.mrb[132].mxu1  ;;  %9466 = vmatpush3.bf16.xpose.msra.mxu1 %v2925_v49 }
 0xf93   :  { %v2803_v52 = vadd.f32 %v8158_v47, %v2802_v54  ;;  %v9441_v8 = vpop.f32.mrb[133].mxu1  ;;  %9479 = vmatprep.subr.bf16.mxu1 %v11498_v62 }
 0xf94   :  { %v2805_v11 = vpop.f32.mrb[134].mxu1 }
 0xf95   :  { %v2913_v15 = vpack.c.bf16 %v2803_v52, %v2798_v4  ;;  %v2806_v16 = vadd.f32 %v8158_v47, %v2805_v11  ;;  %v9442_v18 = vpop.f32.mrb[135].mxu1 }
 0xf97   :  { %v2914_v10 = vpack.c.bf16 %v2806_v16, %v2806_v16  ;;  %9953 = vmatprep.subr.msk.bf16.mxu0 %vm807_vm2, %v2913_v15  ;;  %v2982_v21 = vsel %vm807_vm2, %v2913_v15, 0 }
 0xf98   :  { %9472 = vmatpush3.bf16.xpose.msra.mxu0 %v2982_v21 }
 0xf99   :  { %9468 = vmatmul.mubr.msk.bf16.vlgmr.msra.gmra.mrb[136].mxu1 %vm807_vm2, %v2908_v20  ;;  %9954 = vmatprep.subr.msk.bf16.mxu0 %vm807_vm2, %v2914_v10  ;;  %v2985_v60 = vsel %vm807_vm2, %v2914_v10, 0 }
 0xf9a   :  { %9480 = vmatpush3.bf16.msra.mxu1 %v11498_v62 }
 0xf9b   :  { %9955 = vmatprep.subr.msk.bf16.mxu1 %vm1021_vm3, %v3118_v19 }
 0xf9e   :  { %9482 = vmatpush3.bf16.msra.mxu1 %v3128_v24 }
 0xf9f   :  { %9487 = vmatprep.subr.bf16.mxu1 %v11502_v12 }
 0xfa0   :  { %9474 = vmatpush3.bf16.xpose.msra.mxu0 %v2985_v60 }
 0xfa1   :  { %9495 = vmatprep.subr.bf16.mxu0 %v10573_v34 }
 0xfa7   :  { %9476 = vmatmul.mubr.msk.bf16.vlgmr.msra.gmra.mrb[104].mxu0 %vm807_vm2, %v2910_v28 }
 0xfa8   :  { %9497 = vmatprep.mubr.msk.bf16.mxu0 %vm10574_vm1, %v10573_v34 }
0x106c   :  { %v9469_v62 = vpop.f32.mrb[136].mxu1 }
0x106d   :  { %v2961_v23 = vpop.f32.mrb[137].mxu1  ;;  %v3037_v26 = vmul.f32 0.25, %v9469_v62 }
0x106e   :  { %v3035_v27 = vmul.f32 0.25, %v2961_v23  ;;  %v9470_v25 = vpop.f32.mrb[138].mxu1 }
0x106f   :  { %v2964_v30 = vpop.f32.mrb[139].mxu1  ;;  %v3043_v44 = vadd.f32 %v3037_v26, %v11024_v14 }
0x1070   :  { %v3036_v9 = vmul.f32 0.25, %v2964_v30  ;;  %v3041_v32 = vadd.f32 %v3035_v27, %v11024_v14 }
0x1071   :  { %v3053_v40 = vsel %vm940_vm5, %v3043_v44, -inf }
0x1072   :  { %v3047_v35 = vsel %vm940_vm5, %v3041_v32, -inf  ;;  %v3042_v36 = vadd.f32 %v3036_v9, %v11024_v14 }
0x1073   :  { %3048 = vmax.xlane.f32.xlu0 %v3047_v35 }
0x1074   :  { %v3050_v38 = vsel %vm940_vm5, %v3042_v36, -inf }
0x1075   :  { %3051 = vmax.xlane.f32.xlu1 %v3050_v38 }
0x1077   :  { %3054 = vmax.xlane.f32.xlu0 %v3053_v40 }
0x107a   :  { %v9477_v41 = vpop.f32.mrb[104].mxu0 }
0x107b   :  { %v3021_v47 = vpop.f32.mrb[105].mxu0  ;;  %v3040_v37 = vmul.f32 0.25, %v9477_v41 }
0x107c   :  { %v3038_v53 = vmul.f32 0.25, %v3021_v47  ;;  %v9478_v56 = vpop.f32.mrb[106].mxu0 }
0x107d   :  { %v3024_v51 = vpop.f32.mrb[107].mxu0  ;;  %v3046_v13 = vadd.f32 %v3040_v37, %v11024_v14 }
0x107e   :  { %v3039_v57 = vmul.f32 0.25, %v3024_v51  ;;  %v3044_v58 = vadd.f32 %v3038_v53, %v11024_v14 }
0x107f   :  { %v3062_v2 = vsel %vm940_vm5, %v3046_v13, -inf }
0x1080   :  { %v3056_v59 = vsel %vm940_vm5, %v3044_v58, -inf  ;;  %v3045_v7 = vadd.f32 %v3039_v57, %v11024_v14 }
0x1081   :  { %3057 = vmax.xlane.f32.xlu1 %v3056_v59 }
0x1082   :  { %v3059_v3 = vsel %vm940_vm5, %v3045_v7, -inf }
0x1083   :  { %3060 = vmax.xlane.f32.xlu0 %v3059_v3  ;;  %v3120_v3 = vpack.c.bf16 %v11505_v22, %v11505_v22 }
0x1085   :  { %3063 = vmax.xlane.f32.xlu1 %v3062_v2  ;;  %v3185_v2 = vsel %vm1021_vm3, %v3120_v3, 0 }
0x1100   :  { %v3049_v42 = vpop.xlane.xlu0 %3048 }
0x1101   :  { %v3065_v46 = vsub.f32 %v3041_v32, %v3049_v42 }
0x1102   :  { %v3052_v48 = vpop.xlane.xlu1 %3051 }
0x1103   :  { %v3071_v49 = vmul.f32 1.442695, %v3065_v46  ;;  %v3066_v54 = vsub.f32 %v3042_v36, %v3052_v48 }
0x1104   :  { %v3055_v4 = vpop.xlane.xlu0 %3054 }
0x1105   :  { %10318 = vpow2.f32 %v3071_v49  ;;  %v3073_v52 = vmul.f32 1.442695, %v3066_v54  ;;  %v3067_v8 = vsub.f32 %v3043_v44, %v3055_v4 }
0x1107   :  { %10320 = vpow2.f32 %v3073_v52  ;;  %v3075_v11 = vmul.f32 1.442695, %v3067_v8 }
0x1109   :  { %10322 = vpow2.f32 %v3075_v11 }
0x110e   :  { %v3058_v5 = vpop.xlane.xlu1 %3057 }
0x110f   :  { %v10319_v15 = vpop.eup %10318  ;;  %v3068_v16 = vsub.f32 %v3044_v58, %v3058_v5 }
0x1110   :  { %v3061_v18 = vpop.xlane.xlu0 %3060  ;;  %v3083_v20 = vsel %vm940_vm5, %v10319_v15, 0.0 }
0x1111   :  { %v10321_v10 = vpop.eup %10320  ;;  %v3077_v21 = vmul.f32 1.442695, %v3068_v16  ;;  %v3069_v19 = vsub.f32 %v3045_v7, %v3061_v18  ;;  %3084 = vadd.xlane.f32.xlu0 %v3083_v20 }
0x1112   :  { %v3064_v24 = vpop.xlane.xlu1 %3063  ;;  %v3086_v60 = vsel %vm940_vm5, %v10321_v10, 0.0 }
0x1113   :  { %v10323_v28 = vpop.eup %10322  ;;  %10324 = vpow2.f32 %v3077_v21  ;;  %v3079_v62 = vmul.f32 1.442695, %v3069_v19  ;;  %v3070_v23 = vsub.f32 %v3046_v13, %v3064_v24  ;;  %3087 = vadd.xlane.f32.xlu1 %v3086_v60 }
0x1114   :  { %v3089_v26 = vsel %vm940_vm5, %v10323_v28, 0.0 }
0x1115   :  { %10326 = vpow2.f32 %v3079_v62  ;;  %v3081_v27 = vmul.f32 1.442695, %v3070_v23  ;;  %3090 = vadd.xlane.f32.xlu0 %v3089_v26  ;;  %v8197_v23 = vld [vmem:[%s12948_s14] ss:$0 sm:$0xff] }
0x1117   :  { %10328 = vpow2.f32 %v3081_v27 }
0x111d   :  { %v10325_v25 = vpop.eup %10324 }
0x111e   :  { %v3092_v30 = vsel %vm940_vm5, %v10325_v25, 0.0 }
0x111f   :  { %v10327_v9 = vpop.eup %10326  ;;  %3093 = vadd.xlane.f32.xlu1 %v3092_v30 }
0x1120   :  { %v3095_v32 = vsel %vm940_vm5, %v10327_v9, 0.0 }
0x1121   :  { %v10329_v35 = vpop.eup %10328  ;;  %3096 = vadd.xlane.f32.xlu0 %v3095_v32 }
0x1122   :  { %v3098_v36 = vsel %vm940_vm5, %v10329_v35, 0.0 }
0x1123   :  { %3099 = vadd.xlane.f32.xlu1 %v3098_v36 }
0x119e   :  { %v3085_v44 = vpop.xlane.xlu0 %3084 }
0x119f   :  { %10330 = vrcp.f32 %v3085_v44 }
0x11a0   :  { %v3088_v38 = vpop.xlane.xlu1 %3087 }
0x11a1   :  { %10332 = vrcp.f32 %v3088_v38 }
0x11a2   :  { %v3091_v40 = vpop.xlane.xlu0 %3090 }
0x11a3   :  { %10334 = vrcp.f32 %v3091_v40 }
0x11a9   :  { %v10331_v41 = vpop.eup %10330 }
0x11aa   :  { %v3107_v53 = vmul.f32 %v10331_v41, %v10319_v15 }
0x11ab   :  { %v10333_v47 = vpop.eup %10332 }
0x11ac   :  { %v3094_v37 = vpop.xlane.xlu1 %3093  ;;  %v3108_v56 = vmul.f32 %v10333_v47, %v10321_v10 }
0x11ad   :  { %v10335_v51 = vpop.eup %10334  ;;  %10336 = vrcp.f32 %v3094_v37 }
0x11ae   :  { %v3109_v57 = vmul.f32 %v10335_v51, %v10323_v28  ;;  %v3097_v58 = vpop.xlane.xlu0 %3096  ;;  %v3113_v59 = vpack.c.bf16 %v3108_v56, %v3107_v53 }
0x11af   :  { %10338 = vrcp.f32 %v3097_v58 }
0x11b0   :  { %9483 = vmatprep.mubr.msk.bf16.mxu1 %vm940_vm5, %v3113_v59  ;;  %v3100_v7 = vpop.xlane.xlu1 %3099  ;;  %v3114_v13 = vpack.c.bf16 %v3109_v57, %v3109_v57 }
0x11b1   :  { %10340 = vrcp.f32 %v3100_v7 }
0x11b2   :  { %9484 = vmatmul.mubr.msk.bf16.vlgmr.msra.gmra.mrb[140].mxu1 %vm940_vm5, %v3114_v13 }
0x11b3   :  { %9488 = vmatpush3.bf16.msra.mxu1 %v11502_v12  ;;  %v10057_v12 = vld [vmem:[%s12947_s13 + $0x18] sm:$0xff]  }
0x11b4   :  { %9956 = vmatprep.subr.msk.bf16.mxu1 %vm1021_vm3, %v3120_v3  ;;  %9496 = vmatpush3.bf16.msra.mxu0 %v10057_v12 }
0x11b7   :  { %v10337_v42 = vpop.eup %10336  ;;  %9490 = vmatpush3.bf16.msra.mxu1 %v3185_v2 }
0x11b8   :  { %v3110_v48 = vmul.f32 %v10337_v42, %v10325_v25 }
0x11b9   :  { %v10339_v46 = vpop.eup %10338 }
0x11ba   :  { %v3111_v49 = vmul.f32 %v10339_v46, %v10327_v9 }
0x11bb   :  { %v10341_v54 = vpop.eup %10340 }
0x11bc   :  { %v3112_v4 = vmul.f32 %v10341_v54, %v10329_v35  ;;  %v3115_v52 = vpack.c.bf16 %v3111_v49, %v3110_v48 }
0x11be   :  { %9491 = vmatprep.mubr.msk.bf16.mxu1 %vm940_vm5, %v3115_v52  ;;  %v3116_v8 = vpack.c.bf16 %v3112_v4, %v3112_v4 }
0x11c0   :  { %9492 = vmatmul.mubr.msk.bf16.vlgmr.msra.gmra.mrb[144].mxu1 %vm940_vm5, %v3116_v8 }
0x11c1   :  { %3546 = vmatprep.mubr.bf16.mxu1 %v10572_v0 }
0x1285   :  { %v9485_v22 = vpop.f32.mrb[140].mxu1 }
0x1286   :  { %v3164_v11 = vpop.f32.mrb[141].mxu1 }
0x1287   :  { %v9486_v5 = vpop.f32.mrb[142].mxu1 }
0x1288   :  { %v3167_v15 = vpop.f32.mrb[143].mxu1 }
0x1289   :  { %v3235_v16 = vpack.c.bf16 %v3167_v15, %v3164_v11 }
0x128b   :  { %9498 = vmatmul.mubr.msk.bf16.vlgmr.msra.gmra.mrb[108].mxu0 %vm807_vm2, %v3235_v16 }
0x128c   :  { %9501 = vmatprep.mubr.msk.bf16.mxu0 %vm10574_vm1, %v10573_v34 }
0x1293   :  { %v9493_v18 = vpop.f32.mrb[144].mxu1 }
0x1294   :  { %v3221_v20 = vpop.f32.mrb[145].mxu1 }
0x1295   :  { %v3236_v10 = vpack.c.bf16 %v3221_v20, %v9485_v22  ;;  %v9494_v21 = vpop.f32.mrb[146].mxu1 }
0x1296   :  { %v3224_v19 = vpop.f32.mrb[147].mxu1 }
0x1297   :  { %v3237_v24 = vpack.c.bf16 %v9493_v18, %v3224_v19  ;;  %9502 = vmatmul.mubr.msk.bf16.gmra.mrb[112].mxu0 %vm807_vm2, %v3236_v10 }
0x1298   :  { %9505 = vmatprep.mubr.msk.bf16.mxu0 %vm10574_vm1, %v10573_v34 }
0x129f   :  { %9506 = vmatmul.mubr.msk.bf16.gmra.mrb[116].mxu0 %vm807_vm2, %v3237_v24 }
0x135e   :  { %v3290_v60 = vpop.f32.mrb[108].mxu0 }
0x135f   :  { %v3313_v28 = vadd.f32 %v3290_v60, %v11508_v17  ;;  %v9499_v62 = vpop.f32.mrb[109].mxu0 }
0x1360   :  { %v3293_v26 = vpop.f32.mrb[110].mxu0 }
0x1361   :  { %v3319_v27 = vadd.f32 %v3313_v28, %v10824_v39  ;;  %v3314_v25 = vadd.f32 %v3293_v26, %v11511_v29  ;;  %v9500_v30 = vpop.f32.mrb[111].mxu0 }
0x1362   :  { %v10060_v30 = vld [vmem:[%s12949_s17 + $0x4] ss:$8 sps:$4 sm:$0xff]  }
0x1363   :  { %v11595_v9 = vadd.f32 %v8197_v23, %v3319_v27  ;;  %v3320_v32 = vadd.f32 %v3314_v25, %v10828_v45  ;;  %3514 = vmatprep.subr.bf16.mxu1 %v10060_v30 }
0x1365   :  { %v11598_v35 = vadd.f32 %v8197_v23, %v3320_v32  ;;  %v3340_v17 = vsel %vm219_vm0, %v11595_v9, 0.0  ;;  %v10058_v32 = vld [vmem:[%s12949_s17] ss:$8 sps:$4 sm:$0xff]  }
0x1366   :  { %3341 = vadd.xlane.f32.xlu0 %v3340_v17  ;;  %3515 = vmatpush1.bf16.msra.mxu1 %v10058_v32  ;;  %v10063_v17 = vld [vmem:[%s12949_s17 + $0x14] ss:$8 sps:$4 sm:$0xff]  }
0x1367   :  { %v3343_v36 = vsel %vm219_vm0, %v11598_v35, 0.0  ;;  %3516 = vmatprep.subr.bf16.mxu1 %v10063_v17 }
0x1368   :  { %3344 = vadd.xlane.f32.xlu1 %v3343_v36  ;;  %v10061_v36 = vld [vmem:[%s12949_s17 + $0x10] ss:$8 sps:$4 sm:$0xff]  }
0x136a   :  { %v3298_v44 = vpop.f32.mrb[112].mxu0  ;;  %3517 = vmatpush1.bf16.msra.mxu1 %v10061_v36  ;;  %v10072_v36 = vld [vmem:[%s12952_s19 + $0x48] sm:$0xff]  }
0x136b   :  { %v3315_v39 = vadd.f32 %v3298_v44, %v11514_v31  ;;  %v9503_v38 = vpop.f32.mrb[113].mxu0  ;;  %v10066_v44 = vld [vmem:[%s12949_s17 + $0x24] ss:$8 sps:$4 sm:$0xff]  }
0x136c   :  { %v3301_v29 = vpop.f32.mrb[114].mxu0  ;;  %3518 = vmatprep.subr.bf16.mxu1 %v10066_v44  ;;  %v10069_v38 = vld [vmem:[%s12949_s17 + $0x34] ss:$8 sps:$4 sm:$0xff]   ;;  %v10073_v44 = vld [vmem:[%s12952_s19 + $0x8] sm:$0xff]  }
0x136d   :  { %v3321_v40 = vadd.f32 %v3315_v39, %v10833_v50  ;;  %v3316_v41 = vadd.f32 %v3301_v29, %v11517_v33  ;;  %v9504_v45 = vpop.f32.mrb[115].mxu0  ;;  %v10064_v39 = vld [vmem:[%s12949_s17 + $0x20] ss:$8 sps:$4 sm:$0xff]   ;;  %v10067_v29 = vld [vmem:[%s12949_s17 + $0x30] ss:$8 sps:$4 sm:$0xff]  }
0x136e   :  { %3519 = vmatpush1.bf16.msra.mxu1 %v10064_v39  ;;  %v10074_v39 = vld [vmem:[%s12952_s19 + $0x50] sm:$0xff]  }
0x136f   :  { %v11607_v47 = vadd.f32 %v8197_v23, %v3321_v40  ;;  %v3322_v37 = vadd.f32 %v3316_v41, %v10838_v55  ;;  %3520 = vmatprep.subr.bf16.mxu1 %v10069_v38  ;;  %v10075_v38 = vld [vmem:[%s12952_s19 + $0x10] sm:$0xff]  }
0x1371   :  { %v11610_v53 = vadd.f32 %v8197_v23, %v3322_v37  ;;  %v3346_v56 = vsel %vm219_vm0, %v11607_v47, 0.0 }
0x1372   :  { %3347 = vadd.xlane.f32.xlu0 %v3346_v56  ;;  %v3306_v51 = vpop.f32.mrb[116].mxu0  ;;  %3521 = vmatpush1.bf16.msra.mxu1 %v10067_v29  ;;  %v10076_v29 = vld [vmem:[%s12952_s19 + $0x58] sm:$0xff]  }
0x1373   :  { %v3317_v31 = vadd.f32 %v3306_v51, %v11520_v63  ;;  %v9507_v57 = vpop.f32.mrb[117].mxu0  ;;  %v3349_v50 = vsel %vm219_vm0, %v11610_v53, 0.0  ;;  %9509 = vmatprep.subr.bf16.mxu1 %v10573_v34 }
0x1374   :  { %3350 = vadd.xlane.f32.xlu1 %v3349_v50  ;;  %v3309_v33 = vpop.f32.mrb[118].mxu0 }
0x1375   :  { %v3323_v58 = vadd.f32 %v3317_v31, %v10842_v61  ;;  %v3318_v59 = vadd.f32 %v3309_v33, %v11523_v43  ;;  %v9508_v55 = vpop.f32.mrb[119].mxu0 }
0x1377   :  { %v11619_v7 = vadd.f32 %v8197_v23, %v3323_v58  ;;  %v3324_v13 = vadd.f32 %v3318_v59, %v10846_v1  ;;  %v8198_v58 = vld [vmem:[%s12950_s15] ss:$0 sm:$0xff] }
0x1379   :  { %v11622_v3 = vadd.f32 %v8197_v23, %v3324_v13  ;;  %v3352_v63 = vsel %vm219_vm0, %v11619_v7, 0.0 }
0x137a   :  { %3353 = vadd.xlane.f32.xlu0 %v3352_v63 }
0x137b   :  { %v3355_v2 = vsel %vm219_vm0, %v11622_v3, 0.0 }
0x137c   :  { %3356 = vadd.xlane.f32.xlu1 %v3355_v2 }
0x13f3   :  { %v3342_v42 = vpop.xlane.xlu0 %3341 }
0x13f4   :  { %v3358_v46 = vmul.f32 0.015625, %v3342_v42 }
0x13f5   :  { %v3345_v61 = vpop.xlane.xlu1 %3344 }
0x13f6   :  { %v11629_v43 = vsub.f32 %v11595_v9, %v3358_v46  ;;  %v3359_v48 = vmul.f32 0.015625, %v3345_v61  ;;  %v8199_v61 = vld [vmem:[%s12951_s16] ss:$0 sm:$0xff] }
0x13f8   :  { %v11632_v49 = vsub.f32 %v11598_v35, %v3359_v48  ;;  %v3370_v1 = vmul.f32 %v11629_v43, %v11629_v43 }
0x13fa   :  { %v3376_v54 = vsel %vm219_vm0, %v3370_v1, 0.0  ;;  %v3371_v4 = vmul.f32 %v11632_v49, %v11632_v49 }
0x13fb   :  { %3377 = vadd.xlane.f32.xlu0 %v3376_v54 }
0x13fc   :  { %v3379_v52 = vsel %vm219_vm0, %v3371_v4, 0.0 }
0x13fd   :  { %3380 = vadd.xlane.f32.xlu1 %v3379_v52 }
0x13ff   :  { %v3348_v8 = vpop.xlane.xlu0 %3347 }
0x1400   :  { %v3360_v12 = vmul.f32 0.015625, %v3348_v8 }
0x1401   :  { %v3351_v22 = vpop.xlane.xlu1 %3350 }
0x1402   :  { %v11641_v11 = vsub.f32 %v11607_v47, %v3360_v12  ;;  %v3361_v5 = vmul.f32 0.015625, %v3351_v22 }
0x1404   :  { %v11644_v15 = vsub.f32 %v11610_v53, %v3361_v5  ;;  %v3372_v16 = vmul.f32 %v11641_v11, %v11641_v11 }
0x1406   :  { %v3382_v18 = vsel %vm219_vm0, %v3372_v16, 0.0  ;;  %v3373_v20 = vmul.f32 %v11644_v15, %v11644_v15 }
0x1407   :  { %3383 = vadd.xlane.f32.xlu0 %v3382_v18  ;;  %v3354_v10 = vpop.xlane.xlu0 %3353 }
0x1408   :  { %v3362_v21 = vmul.f32 0.015625, %v3354_v10  ;;  %v3385_v19 = vsel %vm219_vm0, %v3373_v20, 0.0 }
0x1409   :  { %3386 = vadd.xlane.f32.xlu1 %v3385_v19  ;;  %v3357_v24 = vpop.xlane.xlu1 %3356 }
0x140a   :  { %v11653_v60 = vsub.f32 %v11619_v7, %v3362_v21  ;;  %v3363_v28 = vmul.f32 0.015625, %v3357_v24 }
0x140c   :  { %v11656_v62 = vsub.f32 %v11622_v3, %v3363_v28  ;;  %v3374_v23 = vmul.f32 %v11653_v60, %v11653_v60 }
0x140e   :  { %v3388_v26 = vsel %vm219_vm0, %v3374_v23, 0.0  ;;  %v3375_v27 = vmul.f32 %v11656_v62, %v11656_v62 }
0x140f   :  { %3389 = vadd.xlane.f32.xlu0 %v3388_v26 }
0x1410   :  { %v3391_v25 = vsel %vm219_vm0, %v3375_v27, 0.0 }
0x1411   :  { %3392 = vadd.xlane.f32.xlu1 %v3391_v25 }
0x1488   :  { %v3378_v40 = vpop.xlane.xlu0 %3377 }
0x1489   :  { %v3394_v41 = vmul.f32 0.015625, %v3378_v40  ;;  %v10077_v40 = vld [vmem:[%s12952_s19 + $0x18] sm:$0xff]  }
0x148a   :  { %v3381_v45 = vpop.xlane.xlu1 %3380 }
0x148b   :  { %v3400_v37 = vadd.f32 1e-05, %v3394_v41  ;;  %v3395_v56 = vmul.f32 0.015625, %v3381_v45  ;;  %v10078_v41 = vld [vmem:[%s12952_s19 + $0x60] sm:$0xff]  }
0x148c   :  { %v10079_v45 = vld [vmem:[%s12952_s19 + $0x20] sm:$0xff]  }
0x148d   :  { %10342 = vrsqrt.f32 %v3400_v37  ;;  %v3401_v51 = vadd.f32 1e-05, %v3395_v56  ;;  %v10080_v37 = vld [vmem:[%s12952_s19 + $0x68] sm:$0xff]  }
0x148e   :  { %v10081_v56 = vld [vmem:[%s12952_s19 + $0x28] sm:$0xff]  }
0x148f   :  { %10344 = vrsqrt.f32 %v3401_v51  ;;  %v10082_v51 = vld [vmem:[%s12952_s19 + $0x70] sm:$0xff]  }
0x1494   :  { %v3384_v31 = vpop.xlane.xlu0 %3383 }
0x1495   :  { %v3396_v57 = vmul.f32 0.015625, %v3384_v31  ;;  %v10083_v31 = vld [vmem:[%s12952_s19 + $0x30] sm:$0xff]  }
0x1496   :  { %v3387_v50 = vpop.xlane.xlu1 %3386 }
0x1497   :  { %v10343_v33 = vpop.eup %10342  ;;  %v3402_v59 = vadd.f32 1e-05, %v3396_v57  ;;  %v3397_v55 = vmul.f32 0.015625, %v3387_v50  ;;  %v10084_v57 = vld [vmem:[%s12952_s19 + $0x78] sm:$0xff]  }
0x1498   :  { %v3412_v13 = vmul.f32 %v10343_v33, %v11629_v43  ;;  %v10085_v50 = vld [vmem:[%s12952_s19 + $0x38] sm:$0xff]   ;;  %v11758_v33 = vshrl.u32 %v391_v6, 7 }
0x1499   :  { %v10345_v63 = vpop.eup %10344  ;;  %10346 = vrsqrt.f32 %v3402_v59  ;;  %v3403_v2 = vadd.f32 1e-05, %v3397_v55  ;;  %v3453_v59 = vld [vmem:[%s12953_s18] sm:$0x3] }
0x149a   :  { %v3424_v42 = vmul.f32 %v8198_v58, %v3412_v13  ;;  %v3413_v46 = vmul.f32 %v10345_v63, %v11632_v49  ;;  %v3461_v55 = vsub.s32 1, %v11758_v33 }
0x149b   :  { %10348 = vrsqrt.f32 %v3403_v2 }
0x149c   :  { %v3425_v48 = vmul.f32 %v8198_v58, %v3413_v46  ;;  %v3390_v1 = vpop.xlane.xlu0 %3389  ;;  %v3436_v52 = vadd.f32 %v8199_v61, %v3424_v42  ;;  %v3462_v63 = vrot.slane %v3453_v59, %v3461_v55 }
0x149d   :  { %v3398_v54 = vmul.f32 0.015625, %v3390_v1 }
0x149e   :  { %v3393_v4 = vpop.xlane.xlu1 %3392  ;;  %v3437_v8 = vadd.f32 %v8199_v61, %v3425_v48 }
0x149f   :  { %v3404_v12 = vadd.f32 1e-05, %v3398_v54  ;;  %v3399_v22 = vmul.f32 0.015625, %v3393_v4 }
0x14a0   :  { %v3442_v43 = vpack.c.bf16 %v3437_v8, %v3436_v52 }
0x14a1   :  { %10350 = vrsqrt.f32 %v3404_v12  ;;  %v3405_v5 = vadd.f32 1e-05, %v3399_v22 }
0x14a2   :  { %8208 = vmatmul.mubr.msk.bf16.vlgmr.msra.gmra.mrb[148].mxu1 %vm219_vm0, %v3442_v43 }
0x14a3   :  { %v10347_v16 = vpop.eup %10346  ;;  %10352 = vrsqrt.f32 %v3405_v5  ;;  %3556 = vmatprep.mubr.bf16.mxu1 %v10572_v0 }
0x14a4   :  { %v3414_v49 = vmul.f32 %v10347_v16, %v11641_v11 }
0x14a5   :  { %v10349_v18 = vpop.eup %10348 }
0x14a6   :  { %v3415_v20 = vmul.f32 %v10349_v18, %v11644_v15  ;;  %v3426_v10 = vmul.f32 %v8198_v58, %v3414_v49 }
0x14a8   :  { %v3427_v21 = vmul.f32 %v8198_v58, %v3415_v20  ;;  %v3438_v19 = vadd.f32 %v8199_v61, %v3426_v10 }
0x14aa   :  { %v3439_v24 = vadd.f32 %v8199_v61, %v3427_v21 }
0x14ab   :  { %v10351_v28 = vpop.eup %10350 }
0x14ac   :  { %v3416_v23 = vmul.f32 %v10351_v28, %v11653_v60  ;;  %v3443_v26 = vpack.c.bf16 %v3439_v24, %v3438_v19  ;;  %v10070_v60 = vld [vmem:[%s12952_s19 + $0x40] sm:$0xff]  }
0x14ad   :  { %v10353_v27 = vpop.eup %10352  ;;  %8809 = vmatprep.subr.bf16.mxu0 %v10070_v60 }
0x14ae   :  { %v3417_v25 = vmul.f32 %v10353_v27, %v11656_v62  ;;  %8209 = vmatmul.mubr.msk.bf16.gmra.mrb[152].mxu1 %vm219_vm0, %v3443_v26  ;;  %v3428_v30 = vmul.f32 %v8198_v58, %v3416_v23  ;;  %v10071_v62 = vld [vmem:[%s12952_s19] sm:$0xff]  }
0x14af   :  { %3566 = vmatprep.mubr.bf16.mxu1 %v10572_v0  ;;  %8810 = vmatpush3.bf16.msra.mxu0 %v10071_v62 }
0x14b0   :  { %v3429_v11 = vmul.f32 %v8198_v58, %v3417_v25  ;;  %v3440_v32 = vadd.f32 %v8199_v61, %v3428_v30  ;;  %8811 = vmatprep.subr.bf16.mxu0 %v10072_v36  ;;  %v3457_v58 = vsub.s32 0, %v11758_v33 }
0x14b2   :  { %v3441_v17 = vadd.f32 %v8199_v61, %v3429_v11  ;;  %v3458_v13 = vrot.slane %v3453_v59, %v3457_v58 }
0x14b3   :  { %8812 = vmatpush3.bf16.msra.mxu0 %v10073_v44 }
0x14b4   :  { %v3444_v15 = vpack.c.bf16 %v3441_v17, %v3440_v32  ;;  %8813 = vmatprep.subr.bf16.mxu0 %v10074_v39 }
0x14b6   :  { %8210 = vmatmul.mubr.msk.bf16.gmra.mrb[156].mxu1 %vm219_vm0, %v3444_v15 }
0x14b7   :  { %9517 = vmatprep.mubr.msk.bf16.mxu1 %vm10574_vm1, %v10573_v34  ;;  %8814 = vmatpush3.bf16.msra.mxu0 %v10075_v38 }
0x14b8   :  { %8815 = vmatprep.subr.bf16.mxu0 %v10076_v29 }
0x14bb   :  { %8816 = vmatpush3.bf16.msra.mxu0 %v10077_v40 }
0x14bc   :  { %8817 = vmatprep.subr.bf16.mxu0 %v10078_v41 }
0x14bf   :  { %8818 = vmatpush3.bf16.msra.mxu0 %v10079_v45 }
0x14c0   :  { %8819 = vmatprep.subr.bf16.mxu0 %v10080_v37 }
0x14c3   :  { %8820 = vmatpush3.bf16.msra.mxu0 %v10081_v56 }
0x14c4   :  { %8821 = vmatprep.subr.bf16.mxu0 %v10082_v51 }
0x14c7   :  { %8822 = vmatpush3.bf16.msra.mxu0 %v10083_v31 }
0x14c8   :  { %8823 = vmatprep.subr.bf16.mxu0 %v10084_v57 }
0x14cb   :  { %8824 = vmatpush3.bf16.msra.mxu0 %v10085_v50 }
0x14cc   :  { %9529 = vmatprep.subr.bf16.mxu0 %v10573_v34 }
0x1575   :  { %v3548_v2 = vpop.f32.mrb[148].mxu1 }
0x1576   :  { %v11769_v42 = vadd.f32 %v3548_v2, %v3458_v13  ;;  %v3550_v46 = vpop.f32.mrb[149].mxu1 }
0x1577   :  { %v11771_v6 = vadd.f32 %v3550_v46, %v3462_v63  ;;  %v3552_v61 = vpop.f32.mrb[150].mxu1 }
0x1578   :  { %v8211_v48 = vmul.f32 -1.702, %v11769_v42  ;;  %v11774_v1 = vadd.f32 %v3552_v61, %v3458_v13  ;;  %v3554_v54 = vpop.f32.mrb[151].mxu1 }
0x1579   :  { %v8212_v4 = vmul.f32 -1.702, %v11771_v6  ;;  %v11777_v52 = vadd.f32 %v3554_v54, %v3462_v63 }
0x157a   :  { %v3601_v8 = vmul.f32 1.442695, %v8211_v48  ;;  %v8213_v12 = vmul.f32 -1.702, %v11774_v1 }
0x157b   :  { %v3603_v22 = vmul.f32 1.442695, %v8212_v4  ;;  %v8214_v43 = vmul.f32 -1.702, %v11777_v52 }
0x157c   :  { %10354 = vpow2.f32 %v3601_v8  ;;  %v3605_v5 = vmul.f32 1.442695, %v8213_v12 }
0x157d   :  { %10356 = vpow2.f32 %v3603_v22  ;;  %v3607_v16 = vmul.f32 1.442695, %v8214_v43 }
0x157e   :  { %10358 = vpow2.f32 %v3605_v5 }
0x157f   :  { %10360 = vpow2.f32 %v3607_v16 }
0x1581   :  { %v3558_v49 = vpop.f32.mrb[152].mxu1 }
0x1582   :  { %v11781_v18 = vadd.f32 %v3558_v49, %v3458_v13  ;;  %v3560_v20 = vpop.f32.mrb[153].mxu1 }
0x1583   :  { %v11783_v10 = vadd.f32 %v3560_v20, %v3462_v63  ;;  %v3562_v21 = vpop.f32.mrb[154].mxu1 }
0x1584   :  { %v8215_v19 = vmul.f32 -1.702, %v11781_v18  ;;  %v11786_v24 = vadd.f32 %v3562_v21, %v3458_v13  ;;  %v3564_v28 = vpop.f32.mrb[155].mxu1 }
0x1585   :  { %v8216_v23 = vmul.f32 -1.702, %v11783_v10  ;;  %v11789_v26 = vadd.f32 %v3564_v28, %v3462_v63 }
0x1586   :  { %v10355_v27 = vpop.eup %10354  ;;  %v3609_v25 = vmul.f32 1.442695, %v8215_v19  ;;  %v8217_v30 = vmul.f32 -1.702, %v11786_v24 }
0x1587   :  { %v10357_v11 = vpop.eup %10356  ;;  %v3625_v32 = vadd.f32 1.0, %v10355_v27  ;;  %v8218_v17 = vmul.f32 -1.702, %v11789_v26  ;;  %v3611_v44 = vmul.f32 1.442695, %v8216_v23 }
0x1588   :  { %v10359_v15 = vpop.eup %10358  ;;  %v3626_v60 = vadd.f32 1.0, %v10357_v11  ;;  %10362 = vpow2.f32 %v3609_v25  ;;  %v3613_v29 = vmul.f32 1.442695, %v8217_v30 }
0x1589   :  { %v10361_v62 = vpop.eup %10360  ;;  %10364 = vrcp.f32 %v3625_v32  ;;  %v3627_v36 = vadd.f32 1.0, %v10359_v15  ;;  %v3568_v39 = vpop.f32.mrb[156].mxu1  ;;  %v3615_v45 = vmul.f32 1.442695, %v8218_v17 }
0x158a   :  { %10366 = vrcp.f32 %v3626_v60  ;;  %v3628_v38 = vadd.f32 1.0, %v10361_v62  ;;  %v11793_v40 = vadd.f32 %v3568_v39, %v3458_v13  ;;  %v3570_v41 = vpop.f32.mrb[157].mxu1 }
0x158b   :  { %10368 = vrcp.f32 %v3627_v36  ;;  %v11795_v37 = vadd.f32 %v3570_v41, %v3462_v63  ;;  %v3572_v56 = vpop.f32.mrb[158].mxu1 }
0x158c   :  { %10370 = vrcp.f32 %v3628_v38  ;;  %v8219_v51 = vmul.f32 -1.702, %v11793_v40  ;;  %v11798_v31 = vadd.f32 %v3572_v56, %v3458_v13  ;;  %v3574_v57 = vpop.f32.mrb[159].mxu1 }
0x158d   :  { %10372 = vpow2.f32 %v3611_v44  ;;  %v8220_v50 = vmul.f32 -1.702, %v11795_v37  ;;  %v11801_v59 = vadd.f32 %v3574_v57, %v3462_v63 }
0x158e   :  { %10374 = vpow2.f32 %v3613_v29  ;;  %v3617_v2 = vmul.f32 1.442695, %v8219_v51  ;;  %v8221_v46 = vmul.f32 -1.702, %v11798_v31 }
0x158f   :  { %10376 = vpow2.f32 %v3615_v45  ;;  %v3619_v61 = vmul.f32 1.442695, %v8220_v50  ;;  %v8222_v48 = vmul.f32 -1.702, %v11801_v59 }
0x1590   :  { %10378 = vpow2.f32 %v3617_v2  ;;  %v3621_v54 = vmul.f32 1.442695, %v8221_v46 }
0x1591   :  { %10380 = vpow2.f32 %v3619_v61  ;;  %v3623_v4 = vmul.f32 1.442695, %v8222_v48 }
0x1592   :  { %v10363_v13 = vpop.eup %10362  ;;  %10382 = vpow2.f32 %v3621_v54 }
0x1593   :  { %v10365_v8 = vpop.eup %10364  ;;  %10384 = vpow2.f32 %v3623_v4  ;;  %v3629_v63 = vadd.f32 1.0, %v10363_v13 }
0x1594   :  { %v10367_v12 = vpop.eup %10366  ;;  %v3661_v5 = vmul.f32 %v10365_v8, %v11769_v42 }
0x1595   :  { %v10369_v22 = vpop.eup %10368  ;;  %v3662_v20 = vmul.f32 %v10367_v12, %v11771_v6  ;;  %10386 = vrcp.f32 %v3629_v63 }
0x1596   :  { %v10371_v43 = vpop.eup %10370  ;;  %v3663_v16 = vmul.f32 %v10369_v22, %v11774_v1 }
0x1597   :  { %v10373_v49 = vpop.eup %10372  ;;  %v3664_v21 = vmul.f32 %v10371_v43, %v11777_v52 }
0x1598   :  { %v10375_v19 = vpop.eup %10374  ;;  %v3673_v28 = vpack.c.bf16 %v3663_v16, %v3661_v5  ;;  %v3630_v23 = vadd.f32 1.0, %v10373_v49 }
0x1599   :  { %v10377_v27 = vpop.eup %10376  ;;  %v3631_v25 = vadd.f32 1.0, %v10375_v19  ;;  %v3674_v30 = vpack.c.bf16 %v3664_v21, %v3662_v20 }
0x159a   :  { %v10379_v11 = vpop.eup %10378  ;;  %10388 = vrcp.f32 %v3630_v23  ;;  %v3632_v32 = vadd.f32 1.0, %v10377_v27 }
0x159b   :  { %v10381_v17 = vpop.eup %10380  ;;  %10390 = vrcp.f32 %v3631_v25  ;;  %v3633_v42 = vadd.f32 1.0, %v10379_v11  ;;  %3839 = vmatprep.mubr.bf16.mxu0 %v3674_v30 }
0x159c   :  { %v10383_v1 = vpop.eup %10382  ;;  %10392 = vrcp.f32 %v3632_v32  ;;  %v3634_v15 = vadd.f32 1.0, %v10381_v17  ;;  %3840 = vmatmul.mubr.bf16.vlgmr.msra.gmra.mrb[120].mxu0 %v3673_v28 }
0x159d   :  { %v10385_v6 = vpop.eup %10384  ;;  %10394 = vrcp.f32 %v3633_v42  ;;  %v3635_v52 = vadd.f32 1.0, %v10383_v1 }
0x159e   :  { %10396 = vrcp.f32 %v3634_v15  ;;  %v3636_v60 = vadd.f32 1.0, %v10385_v6 }
0x159f   :  { %10398 = vrcp.f32 %v3635_v52  ;;  %v10387_v62 = vpop.eup %10386 }
0x15a0   :  { %10400 = vrcp.f32 %v3636_v60  ;;  %v3665_v38 = vmul.f32 %v10387_v62, %v11781_v18 }
0x15a4   :  { %v10389_v36 = vpop.eup %10388 }
0x15a5   :  { %v10391_v44 = vpop.eup %10390  ;;  %v3666_v45 = vmul.f32 %v10389_v36, %v11783_v10 }
0x15a6   :  { %v10393_v39 = vpop.eup %10392  ;;  %v3667_v29 = vmul.f32 %v10391_v44, %v11786_v24 }
0x15a7   :  { %v10395_v41 = vpop.eup %10394  ;;  %v3668_v56 = vmul.f32 %v10393_v39, %v11789_v26 }
0x15a8   :  { %v10397_v51 = vpop.eup %10396  ;;  %v3675_v57 = vpack.c.bf16 %v3667_v29, %v3665_v38  ;;  %v3669_v61 = vmul.f32 %v10395_v41, %v11793_v40  ;;  %v8239_v40 = vld [vmem:[%s12954_s20] ss:$0 sm:$0xff] }
0x15a9   :  { %v10399_v50 = vpop.eup %10398  ;;  %v3676_v2 = vpack.c.bf16 %v3668_v56, %v3666_v45  ;;  %v3670_v54 = vmul.f32 %v10397_v51, %v11795_v37 }
0x15aa   :  { %v10401_v46 = vpop.eup %10400  ;;  %v3671_v48 = vmul.f32 %v10399_v50, %v11798_v31 }
0x15ab   :  { %v3672_v18 = vmul.f32 %v10401_v46, %v11801_v59  ;;  %3847 = vmatprep.mubr.bf16.mxu0 %v3676_v2 }
0x15ac   :  { %3848 = vmatmul.mubr.bf16.gmra.mrb[124].mxu0 %v3675_v57  ;;  %v3677_v24 = vpack.c.bf16 %v3671_v48, %v3669_v61 }
0x15ad   :  { %v3678_v4 = vpack.c.bf16 %v3672_v18, %v3670_v54 }
0x15af   :  { %3855 = vmatprep.mubr.bf16.mxu0 %v3678_v4 }
0x15b4   :  { %3856 = vmatmul.mubr.bf16.gmra.mrb[128].mxu0 %v3677_v24 }
0x15b5   :  { %9537 = vmatprep.mubr.msk.bf16.mxu0 %vm10574_vm1, %v10573_v34 }
0x166f   :  { %v8825_v10 = vpop.f32.mrb[120].mxu0 }
0x1670   :  { %v8826_v26 = vpop.f32.mrb[121].mxu0 }
0x1671   :  { %v8827_v13 = vadd.f32 %v8826_v26, %v8825_v10  ;;  %v8828_v8 = vpop.f32.mrb[122].mxu0 }
0x1672   :  { %v8829_v37 = vpop.f32.mrb[123].mxu0 }
0x1673   :  { %v3864_v31 = vadd.f32 %v8827_v13, %v11595_v9  ;;  %v8830_v59 = vadd.f32 %v8829_v37, %v8828_v8 }
0x1675   :  { %v11823_v12 = vadd.f32 %v8239_v40, %v3864_v31  ;;  %v3865_v22 = vadd.f32 %v8830_v59, %v11598_v35 }
0x1677   :  { %v11826_v63 = vadd.f32 %v8239_v40, %v3865_v22  ;;  %v3887_v43 = vsel %vm219_vm0, %v11823_v12, 0.0 }
0x1678   :  { %3888 = vadd.xlane.f32.xlu0 %v3887_v43  ;;  %v10086_v43 = vld [vmem:[%s12987_s7 + $0x80] sm:$0xff]  }
0x1679   :  { %v3890_v5 = vsel %vm219_vm0, %v11826_v63, 0.0  ;;  %9510 = vmatpush3.bf16.msra.mxu1 %v10086_v43 }
0x167a   :  { %3891 = vadd.xlane.f32.xlu1 %v3890_v5  ;;  %v10087_v5 = vld [vmem:[%s12990_s28 + $0x80] sm:$0xff]   ;;  %9511 = vmatprep.subr.bf16.mxu1 %v10573_v34 }
0x167b   :  { %9530 = vmatpush3.bf16.msra.mxu0 %v10087_v5 }
0x167c   :  { %9531 = vmatprep.subr.bf16.mxu0 %v10573_v34 }
0x167f   :  { %v8831_v16 = vpop.f32.mrb[124].mxu0 }
0x1680   :  { %v8832_v49 = vpop.f32.mrb[125].mxu0 }
0x1681   :  { %v8833_v20 = vadd.f32 %v8832_v49, %v8831_v16  ;;  %v8834_v21 = vpop.f32.mrb[126].mxu0  ;;  %v10088_v16 = vld [vmem:[%s12987_s7 + $0x88] sm:$0xff]  }
0x1682   :  { %v8835_v9 = vpop.f32.mrb[127].mxu0  ;;  %v10089_v49 = vld [vmem:[%s12990_s28 + $0x88] sm:$0xff]   ;;  %9512 = vmatpush3.bf16.msra.mxu1 %v10088_v16 }
0x1683   :  { %v3866_v19 = vadd.f32 %v8833_v20, %v11607_v47  ;;  %v8836_v28 = vadd.f32 %v8835_v9, %v8834_v21  ;;  %9532 = vmatpush3.bf16.msra.mxu0 %v10089_v49  ;;  %9513 = vmatprep.subr.bf16.mxu1 %v10573_v34  ;;  %v10090_v20 = vld [vmem:[%s12987_s7 + $0x90] sm:$0xff]   ;;  %v10092_v9 = vld [vmem:[%s12987_s7 + $0x98] sm:$0xff]  }
0x1684   :  { %9533 = vmatprep.subr.bf16.mxu0 %v10573_v34  ;;  %v10091_v21 = vld [vmem:[%s12990_s28 + $0x90] sm:$0xff]  }
0x1685   :  { %v11833_v23 = vadd.f32 %v8239_v40, %v3866_v19  ;;  %v3867_v35 = vadd.f32 %v8836_v28, %v11610_v53  ;;  %v10093_v19 = vld [vmem:[%s12990_s28 + $0x98] sm:$0xff]  }
0x1686   :  { %9514 = vmatpush3.bf16.msra.mxu1 %v10090_v20 }
0x1687   :  { %v11836_v27 = vadd.f32 %v8239_v40, %v3867_v35  ;;  %v8837_v25 = vpop.f32.mrb[128].mxu0  ;;  %v3893_v30 = vsel %vm219_vm0, %v11833_v23, 0.0  ;;  %9534 = vmatpush3.bf16.msra.mxu0 %v10091_v21  ;;  %9515 = vmatprep.subr.bf16.mxu1 %v10573_v34 }
0x1688   :  { %3894 = vadd.xlane.f32.xlu0 %v3893_v30  ;;  %v8838_v11 = vpop.f32.mrb[129].mxu0  ;;  %9535 = vmatprep.subr.bf16.mxu0 %v10573_v34 }
0x1689   :  { %v8839_v32 = vadd.f32 %v8838_v11, %v8837_v25  ;;  %v8840_v17 = vpop.f32.mrb[130].mxu0  ;;  %v3896_v42 = vsel %vm219_vm0, %v11836_v27, 0.0 }
0x168a   :  { %3897 = vadd.xlane.f32.xlu1 %v3896_v42  ;;  %v8841_v47 = vpop.f32.mrb[131].mxu0  ;;  %9516 = vmatpush3.bf16.msra.mxu1 %v10092_v9  ;;  %v8242_v42 = vld [vmem:[%s12988_s2 + $0x1] ss:$0 sm:$0xff] }
0x168b   :  { %v3868_v1 = vadd.f32 %v8839_v32, %v11619_v7  ;;  %v8842_v15 = vadd.f32 %v8841_v47, %v8840_v17  ;;  %9536 = vmatpush3.bf16.msra.mxu0 %v10093_v19  ;;  %9549 = vmatprep.subr.bf16.mxu1 %v10573_v34 }
0x168d   :  { %v11843_v6 = vadd.f32 %v8239_v40, %v3868_v1  ;;  %v3869_v53 = vadd.f32 %v8842_v15, %v11622_v3 }
0x168f   :  { %v11846_v52 = vadd.f32 %v8239_v40, %v3869_v53  ;;  %v3899_v60 = vsel %vm219_vm0, %v11843_v6, 0.0 }
0x1690   :  { %3900 = vadd.xlane.f32.xlu0 %v3899_v60 }
0x1691   :  { %v3902_v62 = vsel %vm219_vm0, %v11846_v52, 0.0 }
0x1692   :  { %3903 = vadd.xlane.f32.xlu1 %v3902_v62 }
0x1705   :  { %v3889_v36 = vpop.xlane.xlu0 %3888 }
0x1706   :  { %v3905_v44 = vmul.f32 0.015625, %v3889_v36 }
0x1707   :  { %v3892_v39 = vpop.xlane.xlu1 %3891 }
0x1708   :  { %v11853_v7 = vsub.f32 %v11823_v12, %v3905_v44  ;;  %v3906_v38 = vmul.f32 0.015625, %v3892_v39  ;;  %v8243_v44 = vld [vmem:[%s12989_s0 + $0x1] ss:$0 sm:$0xff] }
0x170a   :  { %v11856_v29 = vsub.f32 %v11826_v63, %v3906_v38  ;;  %v3917_v3 = vmul.f32 %v11853_v7, %v11853_v7 }
0x170c   :  { %v3923_v41 = vsel %vm219_vm0, %v3917_v3, 0.0  ;;  %v3918_v45 = vmul.f32 %v11856_v29, %v11856_v29 }
0x170d   :  { %3924 = vadd.xlane.f32.xlu0 %v3923_v41 }
0x170e   :  { %v3926_v56 = vsel %vm219_vm0, %v3918_v45, 0.0 }
0x170f   :  { %3927 = vadd.xlane.f32.xlu1 %v3926_v56 }
0x1715   :  { %v3895_v51 = vpop.xlane.xlu0 %3894 }
0x1716   :  { %v3907_v57 = vmul.f32 0.015625, %v3895_v51 }
0x1717   :  { %v3898_v50 = vpop.xlane.xlu1 %3897 }
0x1718   :  { %v11865_v2 = vsub.f32 %v11833_v23, %v3907_v57  ;;  %v3908_v46 = vmul.f32 0.015625, %v3898_v50 }
0x171a   :  { %v11868_v61 = vsub.f32 %v11836_v27, %v3908_v46  ;;  %v3919_v48 = vmul.f32 %v11865_v2, %v11865_v2 }
0x171c   :  { %v3929_v54 = vsel %vm219_vm0, %v3919_v48, 0.0  ;;  %v3920_v18 = vmul.f32 %v11868_v61, %v11868_v61 }
0x171d   :  { %3930 = vadd.xlane.f32.xlu0 %v3929_v54  ;;  %v3901_v24 = vpop.xlane.xlu0 %3900  ;;  %v10095_v54 = vld [vmem:[%s12991_s8 + $0x88] sm:$0xff]  }
0x171e   :  { %v3909_v4 = vmul.f32 0.015625, %v3901_v24  ;;  %v3932_v10 = vsel %vm219_vm0, %v3920_v18, 0.0 }
0x171f   :  { %3933 = vadd.xlane.f32.xlu1 %v3932_v10  ;;  %v3904_v26 = vpop.xlane.xlu1 %3903  ;;  %v10096_v10 = vld [vmem:[%s12991_s8 + $0x90] sm:$0xff]  }
0x1720   :  { %v11877_v13 = vsub.f32 %v11843_v6, %v3909_v4  ;;  %v3910_v8 = vmul.f32 0.015625, %v3904_v26 }
0x1722   :  { %v11880_v40 = vsub.f32 %v11846_v52, %v3910_v8  ;;  %v3921_v37 = vmul.f32 %v11877_v13, %v11877_v13 }
0x1724   :  { %v3935_v31 = vsel %vm219_vm0, %v3921_v37, 0.0  ;;  %v3922_v59 = vmul.f32 %v11880_v40, %v11880_v40 }
0x1725   :  { %3936 = vadd.xlane.f32.xlu0 %v3935_v31 }
0x1726   :  { %v3938_v22 = vsel %vm219_vm0, %v3922_v59, 0.0  ;;  %v10097_v59 = vld [vmem:[%s12991_s8 + $0x98] sm:$0xff]  }
0x1727   :  { %3939 = vadd.xlane.f32.xlu1 %v3938_v22 }
0x179a   :  { %v3925_v28 = vpop.xlane.xlu0 %3924 }
0x179b   :  { %v3941_v35 = vmul.f32 0.015625, %v3925_v28 }
0x179c   :  { %v3928_v25 = vpop.xlane.xlu1 %3927 }
0x179d   :  { %v3947_v30 = vadd.f32 1e-05, %v3941_v35  ;;  %v3942_v11 = vmul.f32 0.015625, %v3928_v25  ;;  %v8270_v35 = vld [vmem:[%s12945_s11 + $0x4] ss:$0 sm:$0xff] }
0x179f   :  { %10402 = vrsqrt.f32 %v3947_v30  ;;  %v3948_v32 = vadd.f32 1e-05, %v3942_v11 }
0x17a1   :  { %10404 = vrsqrt.f32 %v3948_v32 }
0x17a9   :  { %v10403_v17 = vpop.eup %10402 }
0x17aa   :  { %v3959_v47 = vmul.f32 %v10403_v17, %v11853_v7  ;;  %v3931_v1 = vpop.xlane.xlu0 %3930 }
0x17ab   :  { %v10405_v15 = vpop.eup %10404  ;;  %v3943_v53 = vmul.f32 0.015625, %v3931_v1 }
0x17ac   :  { %v3971_v60 = vmul.f32 %v8242_v42, %v3959_v47  ;;  %v3960_v62 = vmul.f32 %v10405_v15, %v11856_v29  ;;  %v3934_v36 = vpop.xlane.xlu1 %3933  ;;  %v10094_v29 = vld [vmem:[%s12991_s8 + $0x80] sm:$0xff]  }
0x17ad   :  { %v3949_v39 = vadd.f32 1e-05, %v3943_v53  ;;  %v3944_v38 = vmul.f32 0.015625, %v3934_v36 }
0x17ae   :  { %v3972_v3 = vmul.f32 %v8242_v42, %v3960_v62  ;;  %v3983_v45 = vadd.f32 %v8243_v44, %v3971_v60 }
0x17af   :  { %10406 = vrsqrt.f32 %v3949_v39  ;;  %v3950_v41 = vadd.f32 1e-05, %v3944_v38 }
0x17b0   :  { %v3984_v56 = vadd.f32 %v8243_v44, %v3972_v3 }
0x17b1   :  { %10408 = vrsqrt.f32 %v3950_v41 }
0x17b2   :  { %v11927_v7 = vpack.c.bf16 %v3984_v56, %v3983_v45  ;;  %v3937_v51 = vpop.xlane.xlu0 %3936 }
0x17b3   :  { %v3945_v57 = vmul.f32 0.015625, %v3937_v51 }
0x17b4   :  { %v3940_v50 = vpop.xlane.xlu1 %3939  ;;  %9518 = vmatmul.mubr.msk.bf16.vlgmr.msra.gmra.mrb[160].mxu1 %vm219_vm0, %v11927_v7  ;;  %9538 = vmatmul.mubr.msk.bf16.vlgmr.msra.gmra.mrb[132].mxu0 %vm219_vm0, %v11927_v7 }
0x17b5   :  { %v3951_v46 = vadd.f32 1e-05, %v3945_v57  ;;  %v3946_v48 = vmul.f32 0.015625, %v3940_v50  ;;  %9521 = vmatprep.mubr.msk.bf16.mxu1 %vm10574_vm1, %v10573_v34  ;;  %9541 = vmatprep.mubr.msk.bf16.mxu0 %vm10574_vm1, %v10573_v34 }
0x17b6   :  { %9550 = vmatpush3.bf16.msra.mxu1 %v10094_v29 }
0x17b7   :  { %10410 = vrsqrt.f32 %v3951_v46  ;;  %v3952_v18 = vadd.f32 1e-05, %v3946_v48  ;;  %9551 = vmatprep.subr.bf16.mxu1 %v10573_v34 }
0x17b9   :  { %v10407_v24 = vpop.eup %10406  ;;  %10412 = vrsqrt.f32 %v3952_v18 }
0x17ba   :  { %v3961_v4 = vmul.f32 %v10407_v24, %v11865_v2  ;;  %9552 = vmatpush3.bf16.msra.mxu1 %v10095_v54 }
0x17bb   :  { %v10409_v26 = vpop.eup %10408  ;;  %9553 = vmatprep.subr.bf16.mxu1 %v10573_v34 }
0x17bc   :  { %v3973_v8 = vmul.f32 %v8242_v42, %v3961_v4  ;;  %v3962_v37 = vmul.f32 %v10409_v26, %v11868_v61 }
0x17be   :  { %v3974_v31 = vmul.f32 %v8242_v42, %v3962_v37  ;;  %9554 = vmatpush3.bf16.msra.mxu1 %v10096_v10  ;;  %v3985_v2 = vadd.f32 %v8243_v44, %v3973_v8 }
0x17bf   :  { %9555 = vmatprep.subr.bf16.mxu1 %v10573_v34 }
0x17c0   :  { %v3986_v22 = vadd.f32 %v8243_v44, %v3974_v31 }
0x17c1   :  { %v10411_v43 = vpop.eup %10410 }
0x17c2   :  { %v11954_v5 = vpack.c.bf16 %v3986_v22, %v3985_v2  ;;  %v3963_v16 = vmul.f32 %v10411_v43, %v11877_v13  ;;  %9556 = vmatpush3.bf16.msra.mxu1 %v10097_v59 }
0x17c3   :  { %v10413_v49 = vpop.eup %10412 }
0x17c4   :  { %v3975_v20 = vmul.f32 %v8242_v42, %v3963_v16  ;;  %v3964_v61 = vmul.f32 %v10413_v49, %v11880_v40  ;;  %9522 = vmatmul.mubr.msk.bf16.gmra.mrb[164].mxu1 %vm219_vm0, %v11954_v5  ;;  %9542 = vmatmul.mubr.msk.bf16.gmra.mrb[136].mxu0 %vm219_vm0, %v11954_v5  ;;  %v11987_v40 = vld [vmem:[%s12992_s30 + $0x4] ss:$0 sm:$0xff] }
0x17c5   :  { %9525 = vmatprep.mubr.msk.bf16.mxu1 %vm10574_vm1, %v10573_v34  ;;  %9545 = vmatprep.mubr.msk.bf16.mxu0 %vm10574_vm1, %v10573_v34 }
0x17c6   :  { %v3976_v21 = vmul.f32 %v8242_v42, %v3964_v61  ;;  %v3987_v9 = vadd.f32 %v8243_v44, %v3975_v20 }
0x17c8   :  { %v3988_v13 = vadd.f32 %v8243_v44, %v3976_v21 }
0x17ca   :  { %v11966_v19 = vpack.c.bf16 %v3988_v13, %v3987_v9  ;;  %v8287_v9 = vld [vmem:[%s12946_s12 + $0x4] ss:$0 sm:$0xff] }
0x17cc   :  { %9526 = vmatmul.mubr.msk.bf16.gmra.mrb[168].mxu1 %vm219_vm0, %v11966_v19  ;;  %9546 = vmatmul.mubr.msk.bf16.gmra.mrb[140].mxu0 %vm219_vm0, %v11966_v19 }
0x17cd   :  { %9557 = vmatprep.mubr.msk.bf16.mxu1 %vm10574_vm1, %v10573_v34 }
0x17d4   :  { %9558 = vmatmul.mubr.msk.bf16.vlgmr.msra.gmra.mrb[172].mxu1 %vm219_vm0, %v11927_v7 }
0x17d5   :  { %9561 = vmatprep.mubr.msk.bf16.mxu1 %vm10574_vm1, %v10573_v34 }
0x17dc   :  { %9562 = vmatmul.mubr.msk.bf16.gmra.mrb[176].mxu1 %vm219_vm0, %v11954_v5 }
0x17dd   :  { %9565 = vmatprep.mubr.msk.bf16.mxu1 %vm10574_vm1, %v10573_v34 }
0x17e4   :  { %9566 = vmatmul.mubr.msk.bf16.gmra.mrb[180].mxu1 %vm219_vm0, %v11966_v19 }
0x1887   :  { %v4076_v28 = vpop.f32.mrb[160].mxu1  ;;  %v4174_v25 = vpop.f32.mrb[132].mxu0 }
0x1888   :  { %v9519_v30 = vpop.f32.mrb[161].mxu1  ;;  %v9539_v11 = vpop.f32.mrb[133].mxu0  ;;  %v4077_v42 = vadd.f32 %v11987_v40, %v4076_v28  ;;  %v4175_v47 = vadd.f32 %v8270_v35, %v4174_v25 }
0x1889   :  { %v4079_v32 = vpop.f32.mrb[162].mxu1  ;;  %v4177_v17 = vpop.f32.mrb[134].mxu0 }
0x188a   :  { %v4080_v1 = vadd.f32 %v11987_v40, %v4079_v32  ;;  %v4178_v15 = vadd.f32 %v8270_v35, %v4177_v17  ;;  %v9520_v53 = vpop.f32.mrb[163].mxu1  ;;  %v9540_v60 = vpop.f32.mrb[135].mxu0 }
0x188c   :  { %v4295_v62 = vpack.c.bf16 %v4080_v1, %v4077_v42  ;;  %v4299_v36 = vpack.c.bf16 %v4178_v15, %v4175_v47 }
0x188e   :  { %9957 = vmatprep.subr.msk.bf16.mxu0 %vm807_vm2, %v4299_v36  ;;  %9573 = vmatprep.mubr.msk.bf16.mxu0 %vm807_vm2, %v4295_v62  ;;  %v4310_v44 = vsel %vm807_vm2, %v4299_v36, 0 }
0x188f   :  { %9570 = vmatpush3.bf16.xpose.msra.mxu0 %v4310_v44 }
0x1897   :  { %v4084_v39 = vpop.f32.mrb[164].mxu1  ;;  %v4182_v38 = vpop.f32.mrb[136].mxu0 }
0x1898   :  { %v4183_v3 = vadd.f32 %v8270_v35, %v4182_v38  ;;  %v9523_v41 = vpop.f32.mrb[165].mxu1  ;;  %v9543_v45 = vpop.f32.mrb[137].mxu0  ;;  %v4085_v48 = vadd.f32 %v11987_v40, %v4084_v39 }
0x1899   :  { %v4087_v56 = vpop.f32.mrb[166].mxu1  ;;  %v4185_v51 = vpop.f32.mrb[138].mxu0 }
0x189a   :  { %v4300_v29 = vpack.c.bf16 %v4183_v3, %v4183_v3  ;;  %v9524_v57 = vpop.f32.mrb[167].mxu1  ;;  %v9544_v50 = vpop.f32.mrb[139].mxu0  ;;  %v4088_v24 = vadd.f32 %v11987_v40, %v4087_v56  ;;  %v4186_v4 = vadd.f32 %v8270_v35, %v4185_v51  ;;  %v4296_v2 = vpack.c.bf16 %v4085_v48, %v4085_v48 }
0x189c   :  { %v4313_v46 = vsel %vm807_vm2, %v4300_v29, 0  ;;  %9958 = vmatprep.subr.msk.bf16.mxu0 %vm807_vm2, %v4300_v29 }
0x189d   :  { %9572 = vmatpush3.bf16.xpose.msra.mxu0 %v4313_v46 }
0x189f   :  { %v4092_v54 = vpop.f32.mrb[168].mxu1  ;;  %v4190_v18 = vpop.f32.mrb[140].mxu0 }
0x18a0   :  { %v4093_v10 = vadd.f32 %v11987_v40, %v4092_v54  ;;  %v4191_v26 = vadd.f32 %v8270_v35, %v4190_v18  ;;  %v9527_v8 = vpop.f32.mrb[169].mxu1  ;;  %v9547_v37 = vpop.f32.mrb[141].mxu0 }
0x18a1   :  { %v4095_v31 = vpop.f32.mrb[170].mxu1  ;;  %v4193_v59 = vpop.f32.mrb[142].mxu0 }
0x18a2   :  { %v4297_v22 = vpack.c.bf16 %v4093_v10, %v4088_v24  ;;  %v4301_v43 = vpack.c.bf16 %v4191_v26, %v4186_v4  ;;  %v4194_v16 = vadd.f32 %v8270_v35, %v4193_v59  ;;  %v9528_v49 = vpop.f32.mrb[171].mxu1  ;;  %v9548_v20 = vpop.f32.mrb[143].mxu0  ;;  %v4096_v42 = vadd.f32 %v11987_v40, %v4095_v31 }
0x18a4   :  { %v4302_v61 = vpack.c.bf16 %v4194_v16, %v4194_v16  ;;  %9574 = vmatmul.mubr.msk.bf16.vlgmr.msra.gmra.mrb[144].mxu0 %vm807_vm2, %v4296_v2  ;;  %9959 = vmatprep.subr.msk.bf16.mxu1 %vm807_vm2, %v4301_v43  ;;  %v4370_v21 = vsel %vm807_vm2, %v4301_v43, 0  ;;  %v4298_v60 = vpack.c.bf16 %v4096_v42, %v4096_v42 }
0x18a5   :  { %9581 = vmatprep.mubr.msk.bf16.mxu1 %vm807_vm2, %v4297_v22  ;;  %9578 = vmatpush3.bf16.xpose.msra.mxu1 %v4370_v21 }
0x18a6   :  { %9960 = vmatprep.subr.msk.bf16.mxu1 %vm807_vm2, %v4302_v61  ;;  %v4373_v32 = vsel %vm807_vm2, %v4302_v61, 0 }
0x18a7   :  { %v4272_v13 = vpop.f32.mrb[172].mxu1 }
0x18a8   :  { %v9559_v28 = vpop.f32.mrb[173].mxu1  ;;  %v4273_v25 = vadd.f32 %v8287_v9, %v4272_v13 }
0x18a9   :  { %v4275_v35 = vpop.f32.mrb[174].mxu1 }
0x18aa   :  { %v4276_v30 = vadd.f32 %v8287_v9, %v4275_v35  ;;  %v9560_v11 = vpop.f32.mrb[175].mxu1 }
0x18ac   :  { %v4505_v17 = vpack.c.bf16 %v4276_v30, %v4273_v25 }
0x18ad   :  { %9580 = vmatpush3.bf16.xpose.msra.mxu1 %v4373_v32 }
0x18ae   :  { %9585 = vmatprep.subr.bf16.mxu0 %v4505_v17 }
0x18af   :  { %v4280_v47 = vpop.f32.mrb[176].mxu1  ;;  %9586 = vmatpush3.bf16.msra.mxu0 %v4505_v17 }
0x18b0   :  { %v4281_v1 = vadd.f32 %v8287_v9, %v4280_v47  ;;  %v9563_v15 = vpop.f32.mrb[177].mxu1 }
0x18b1   :  { %v4283_v53 = vpop.f32.mrb[178].mxu1 }
0x18b2   :  { %v4506_v62 = vpack.c.bf16 %v4281_v1, %v4281_v1  ;;  %v9564_v36 = vpop.f32.mrb[179].mxu1  ;;  %v4284_v40 = vadd.f32 %v8287_v9, %v4283_v53 }
0x18b4   :  { %v4516_v44 = vsel %vm1021_vm3, %v4506_v62, 0  ;;  %9582 = vmatmul.mubr.msk.bf16.vlgmr.msra.gmra.mrb[184].mxu1 %vm807_vm2, %v4298_v60  ;;  %9961 = vmatprep.subr.msk.bf16.mxu0 %vm1021_vm3, %v4506_v62 }
0x18b5   :  { %9588 = vmatpush3.bf16.msra.mxu0 %v4516_v44 }
0x18b6   :  { %9601 = vmatprep.subr.bf16.mxu0 %v10573_v34 }
0x18b7   :  { %v4288_v39 = vpop.f32.mrb[180].mxu1 }
0x18b8   :  { %v4289_v38 = vadd.f32 %v8287_v9, %v4288_v39  ;;  %v9567_v3 = vpop.f32.mrb[181].mxu1 }
0x18b9   :  { %v4291_v41 = vpop.f32.mrb[182].mxu1 }
0x18ba   :  { %v4507_v45 = vpack.c.bf16 %v4289_v38, %v4284_v40  ;;  %v4292_v56 = vadd.f32 %v8287_v9, %v4291_v41  ;;  %v9568_v51 = vpop.f32.mrb[183].mxu1 }
0x18bc   :  { %v4508_v29 = vpack.c.bf16 %v4292_v56, %v4292_v56  ;;  %9593 = vmatprep.subr.bf16.mxu1 %v4507_v45 }
0x18bd   :  { %9594 = vmatpush3.bf16.msra.mxu1 %v4507_v45 }
0x18be   :  { %9962 = vmatprep.subr.msk.bf16.mxu1 %vm1021_vm3, %v4508_v29  ;;  %v4573_v57 = vsel %vm1021_vm3, %v4508_v29, 0 }
0x18c1   :  { %9596 = vmatpush3.bf16.msra.mxu1 %v4573_v57 }
0x18c2   :  { %9621 = vmatprep.subr.bf16.mxu1 %v10573_v34 }
0x1977   :  { %v9575_v50 = vpop.f32.mrb[144].mxu0 }
0x1978   :  { %v4349_v46 = vpop.f32.mrb[145].mxu0  ;;  %v4425_v49 = vmul.f32 0.25, %v9575_v50 }
0x1979   :  { %v9576_v48 = vpop.f32.mrb[146].mxu0  ;;  %v4423_v37 = vmul.f32 0.25, %v4349_v46 }
0x197a   :  { %v4352_v54 = vpop.f32.mrb[147].mxu0  ;;  %v4431_v13 = vadd.f32 %v4425_v49, %v11024_v14 }
0x197b   :  { %v4424_v2 = vmul.f32 0.25, %v4352_v54  ;;  %v4429_v20 = vadd.f32 %v4423_v37, %v11024_v14 }
0x197c   :  { %v4441_v25 = vsel %vm940_vm5, %v4431_v13, -inf }
0x197d   :  { %v4430_v21 = vadd.f32 %v4424_v2, %v11024_v14  ;;  %v4435_v28 = vsel %vm940_vm5, %v4429_v20, -inf }
0x197f   :  { %v4438_v35 = vsel %vm940_vm5, %v4430_v21, -inf }
0x1987   :  { %v9583_v18 = vpop.f32.mrb[184].mxu1 }
0x1988   :  { %v4409_v24 = vpop.f32.mrb[185].mxu1  ;;  %v4428_v4 = vmul.f32 0.25, %v9583_v18 }
0x1989   :  { %v4426_v10 = vmul.f32 0.25, %v4409_v24  ;;  %v9584_v26 = vpop.f32.mrb[186].mxu1 }
0x198a   :  { %v4412_v8 = vpop.f32.mrb[187].mxu1  ;;  %v4434_v22 = vadd.f32 %v4428_v4, %v11024_v14 }
0x198b   :  { %v4427_v31 = vmul.f32 0.25, %v4412_v8  ;;  %v4432_v59 = vadd.f32 %v4426_v10, %v11024_v14 }
0x198c   :  { %v4450_v9 = vsel %vm940_vm5, %v4434_v22, -inf }
0x198d   :  { %v4444_v43 = vsel %vm940_vm5, %v4432_v59, -inf  ;;  %v4433_v16 = vadd.f32 %v4427_v31, %v11024_v14 }
0x198e   :  { %4445 = vmax.xlane.f32.xlu0 %v4444_v43 }
0x198f   :  { %v4447_v61 = vsel %vm940_vm5, %v4433_v16, -inf }
0x1990   :  { %4448 = vmax.xlane.f32.xlu1 %v4447_v61 }
0x1992   :  { %4451 = vmax.xlane.f32.xlu0 %v4450_v9  ;;  %v10098_v9 = vld [vmem:[%s12990_s28 + $0xa0] sm:$0xff]  }
0x1994   :  { %4436 = vmax.xlane.f32.xlu1 %v4435_v28 }
0x1996   :  { %4439 = vmax.xlane.f32.xlu0 %v4438_v35 }
0x1998   :  { %4442 = vmax.xlane.f32.xlu1 %v4441_v25 }
0x1a1b   :  { %v4446_v30 = vpop.xlane.xlu0 %4445 }
0x1a1c   :  { %v4456_v11 = vsub.f32 %v4432_v59, %v4446_v30 }
0x1a1d   :  { %v4449_v32 = vpop.xlane.xlu1 %4448 }
0x1a1e   :  { %v4465_v17 = vmul.f32 1.442695, %v4456_v11  ;;  %v4457_v42 = vsub.f32 %v4433_v16, %v4449_v32  ;;  %v10099_v11 = vld [vmem:[%s12990_s28 + $0xa8] sm:$0xff]  }
0x1a1f   :  { %v4452_v47 = vpop.xlane.xlu0 %4451 }
0x1a20   :  { %10414 = vpow2.f32 %v4465_v17  ;;  %v4467_v1 = vmul.f32 1.442695, %v4457_v42  ;;  %v4458_v15 = vsub.f32 %v4434_v22, %v4452_v47  ;;  %v10100_v42 = vld [vmem:[%s12987_s7 + $0xa0] sm:$0xff]  }
0x1a21   :  { %v4437_v53 = vpop.xlane.xlu1 %4436 }
0x1a22   :  { %10416 = vpow2.f32 %v4467_v1  ;;  %v4469_v60 = vmul.f32 1.442695, %v4458_v15  ;;  %v4453_v62 = vsub.f32 %v4429_v20, %v4437_v53  ;;  %v10101_v1 = vld [vmem:[%s12990_s28 + $0xb0] sm:$0xff]   ;;  %v10102_v15 = vld [vmem:[%s12987_s7 + $0xa8] sm:$0xff]   ;;  %v10103_v53 = vld [vmem:[%s12990_s28 + $0xb8] sm:$0xff]  }
0x1a23   :  { %v4440_v36 = vpop.xlane.xlu0 %4439 }
0x1a24   :  { %10418 = vpow2.f32 %v4469_v60  ;;  %v4459_v44 = vmul.f32 1.442695, %v4453_v62  ;;  %v4454_v39 = vsub.f32 %v4430_v21, %v4440_v36  ;;  %v10104_v60 = vld [vmem:[%s12987_s7 + $0xb0] sm:$0xff]   ;;  %v10105_v62 = vld [vmem:[%s12987_s7 + $0xb8] sm:$0xff]   ;;  %v10106_v36 = vld [vmem:[%s12991_s8 + $0xa0] sm:$0xff]  }
0x1a25   :  { %v4443_v40 = vpop.xlane.xlu1 %4442 }
0x1a26   :  { %10420 = vpow2.f32 %v4459_v44  ;;  %v4461_v38 = vmul.f32 1.442695, %v4454_v39  ;;  %v4455_v3 = vsub.f32 %v4431_v13, %v4443_v40  ;;  %v10107_v44 = vld [vmem:[%s12991_s8 + $0xa8] sm:$0xff]   ;;  %v10108_v39 = vld [vmem:[%s12991_s8 + $0xb0] sm:$0xff]   ;;  %v10109_v40 = vld [vmem:[%s12991_s8 + $0xb8] sm:$0xff]  }
0x1a28   :  { %10422 = vpow2.f32 %v4461_v38  ;;  %v4463_v41 = vmul.f32 1.442695, %v4455_v3 }
0x1a2a   :  { %v10415_v45 = vpop.eup %10414  ;;  %10424 = vpow2.f32 %v4463_v41 }
0x1a2b   :  { %v4480_v56 = vsel %vm940_vm5, %v10415_v45, 0.0 }
0x1a2c   :  { %v10417_v51 = vpop.eup %10416  ;;  %4481 = vadd.xlane.f32.xlu0 %v4480_v56 }
0x1a2d   :  { %v4483_v29 = vsel %vm940_vm5, %v10417_v51, 0.0 }
0x1a2e   :  { %v10419_v57 = vpop.eup %10418  ;;  %4484 = vadd.xlane.f32.xlu1 %v4483_v29 }
0x1a2f   :  { %v4486_v50 = vsel %vm940_vm5, %v10419_v57, 0.0 }
0x1a30   :  { %v10421_v46 = vpop.eup %10420  ;;  %4487 = vadd.xlane.f32.xlu0 %v4486_v50 }
0x1a31   :  { %v4471_v48 = vsel %vm940_vm5, %v10421_v46, 0.0 }
0x1a32   :  { %v10423_v54 = vpop.eup %10422  ;;  %4472 = vadd.xlane.f32.xlu1 %v4471_v48 }
0x1a33   :  { %v4474_v18 = vsel %vm940_vm5, %v10423_v54, 0.0 }
0x1a34   :  { %v10425_v24 = vpop.eup %10424  ;;  %4475 = vadd.xlane.f32.xlu0 %v4474_v18 }
0x1a35   :  { %v4477_v4 = vsel %vm940_vm5, %v10425_v24, 0.0 }
0x1a36   :  { %4478 = vadd.xlane.f32.xlu1 %v4477_v4 }
0x1ab9   :  { %v4482_v10 = vpop.xlane.xlu0 %4481 }
0x1aba   :  { %10426 = vrcp.f32 %v4482_v10 }
0x1abb   :  { %v4485_v26 = vpop.xlane.xlu1 %4484 }
0x1abc   :  { %10428 = vrcp.f32 %v4485_v26 }
0x1abd   :  { %v4488_v8 = vpop.xlane.xlu0 %4487 }
0x1abe   :  { %10430 = vrcp.f32 %v4488_v8 }
0x1abf   :  { %v4473_v37 = vpop.xlane.xlu1 %4472 }
0x1ac0   :  { %10432 = vrcp.f32 %v4473_v37 }
0x1ac1   :  { %v4476_v31 = vpop.xlane.xlu0 %4475 }
0x1ac2   :  { %10434 = vrcp.f32 %v4476_v31  ;;  %v8314_v31 = vld [vmem:[%s12992_s30 + $0x5] ss:$0 sm:$0xff] }
0x1ac3   :  { %v4479_v59 = vpop.xlane.xlu1 %4478 }
0x1ac4   :  { %v10427_v2 = vpop.eup %10426  ;;  %10436 = vrcp.f32 %v4479_v59 }
0x1ac5   :  { %v4498_v43 = vmul.f32 %v10427_v2, %v10415_v45 }
0x1ac6   :  { %v10429_v22 = vpop.eup %10428 }
0x1ac7   :  { %v4499_v16 = vmul.f32 %v10429_v22, %v10417_v51 }
0x1ac8   :  { %v10431_v49 = vpop.eup %10430 }
0x1ac9   :  { %v4500_v20 = vmul.f32 %v10431_v49, %v10419_v57  ;;  %v4503_v61 = vpack.c.bf16 %v4499_v16, %v4498_v43 }
0x1aca   :  { %v10433_v21 = vpop.eup %10432 }
0x1acb   :  { %9597 = vmatprep.mubr.msk.bf16.mxu1 %vm940_vm5, %v4503_v61  ;;  %v4504_v13 = vpack.c.bf16 %v4500_v20, %v4500_v20  ;;  %v4495_v35 = vmul.f32 %v10433_v21, %v10421_v46 }
0x1acc   :  { %v10435_v28 = vpop.eup %10434 }
0x1acd   :  { %9598 = vmatmul.mubr.msk.bf16.vlgmr.msra.gmra.mrb[188].mxu1 %vm940_vm5, %v4504_v13  ;;  %v4496_v25 = vmul.f32 %v10435_v28, %v10423_v54  ;;  %v8331_v54 = vld [vmem:[%s12945_s11 + $0x5] ss:$0 sm:$0xff] }
0x1ace   :  { %v10437_v30 = vpop.eup %10436  ;;  %9622 = vmatpush3.bf16.msra.mxu1 %v10098_v9  ;;  %9629 = vmatprep.mubr.msk.bf16.mxu1 %vm10574_vm1, %v10573_v34 }
0x1acf   :  { %v4497_v32 = vmul.f32 %v10437_v30, %v10425_v24  ;;  %9623 = vmatprep.subr.bf16.mxu1 %v10573_v34  ;;  %v4501_v17 = vpack.c.bf16 %v4496_v25, %v4495_v35 }
0x1ad1   :  { %9589 = vmatprep.mubr.msk.bf16.mxu0 %vm940_vm5, %v4501_v17  ;;  %v4502_v47 = vpack.c.bf16 %v4497_v32, %v4497_v32 }
0x1ad2   :  { %9624 = vmatpush3.bf16.msra.mxu1 %v10099_v11 }
0x1ad3   :  { %9590 = vmatmul.mubr.msk.bf16.vlgmr.msra.gmra.mrb[148].mxu0 %vm940_vm5, %v4502_v47  ;;  %9625 = vmatprep.subr.bf16.mxu1 %v10573_v34 }
0x1ad4   :  { %9602 = vmatpush3.bf16.msra.mxu0 %v10100_v42  ;;  %9609 = vmatprep.mubr.msk.bf16.mxu0 %vm10574_vm1, %v10573_v34 }
0x1ad5   :  { %9603 = vmatprep.subr.bf16.mxu0 %v10573_v34 }
0x1ad6   :  { %9626 = vmatpush3.bf16.msra.mxu1 %v10101_v1 }
0x1ad7   :  { %9627 = vmatprep.subr.bf16.mxu1 %v10573_v34 }
0x1ad8   :  { %9604 = vmatpush3.bf16.msra.mxu0 %v10102_v15 }
0x1ad9   :  { %9605 = vmatprep.subr.bf16.mxu0 %v10573_v34 }
0x1ada   :  { %9628 = vmatpush3.bf16.msra.mxu1 %v10103_v53 }
0x1adc   :  { %9606 = vmatpush3.bf16.msra.mxu0 %v10104_v60 }
0x1add   :  { %9630 = vmatmul.mubr.msk.bf16.vlgmr.msra.gmra.mrb[192].mxu1 %vm219_vm0, %v11927_v7  ;;  %9607 = vmatprep.subr.bf16.mxu0 %v10573_v34 }
0x1ade   :  { %9633 = vmatprep.mubr.msk.bf16.mxu1 %vm10574_vm1, %v10573_v34 }
0x1ae0   :  { %9608 = vmatpush3.bf16.msra.mxu0 %v10105_v62 }
0x1ae1   :  { %9641 = vmatprep.subr.bf16.mxu0 %v10573_v34 }
0x1ae3   :  { %9610 = vmatmul.mubr.msk.bf16.vlgmr.msra.gmra.mrb[152].mxu0 %vm219_vm0, %v11927_v7 }
0x1ae4   :  { %9613 = vmatprep.mubr.msk.bf16.mxu0 %vm10574_vm1, %v10573_v34  ;;  %9642 = vmatpush3.bf16.msra.mxu0 %v10106_v36 }
0x1ae5   :  { %9634 = vmatmul.mubr.msk.bf16.gmra.mrb[196].mxu1 %vm219_vm0, %v11954_v5  ;;  %9643 = vmatprep.subr.bf16.mxu0 %v10573_v34 }
0x1ae6   :  { %9637 = vmatprep.mubr.msk.bf16.mxu1 %vm10574_vm1, %v10573_v34 }
0x1ae8   :  { %9644 = vmatpush3.bf16.msra.mxu0 %v10107_v44 }
0x1ae9   :  { %9645 = vmatprep.subr.bf16.mxu0 %v10573_v34 }
0x1aeb   :  { %9614 = vmatmul.mubr.msk.bf16.gmra.mrb[156].mxu0 %vm219_vm0, %v11954_v5 }
0x1aec   :  { %9617 = vmatprep.mubr.msk.bf16.mxu0 %vm10574_vm1, %v10573_v34  ;;  %9646 = vmatpush3.bf16.msra.mxu0 %v10108_v39 }
0x1aed   :  { %9638 = vmatmul.mubr.msk.bf16.gmra.mrb[200].mxu1 %vm219_vm0, %v11966_v19  ;;  %9647 = vmatprep.subr.bf16.mxu0 %v10573_v34 }
0x1af0   :  { %9648 = vmatpush3.bf16.msra.mxu0 %v10109_v40 }
0x1af3   :  { %9618 = vmatmul.mubr.msk.bf16.gmra.mrb[160].mxu0 %vm219_vm0, %v11966_v19 }
0x1af4   :  { %9649 = vmatprep.mubr.msk.bf16.mxu0 %vm10574_vm1, %v10573_v34 }
0x1afb   :  { %9650 = vmatmul.mubr.msk.bf16.vlgmr.msra.gmra.mrb[164].mxu0 %vm219_vm0, %v11927_v7 }
0x1afc   :  { %9653 = vmatprep.mubr.msk.bf16.mxu0 %vm10574_vm1, %v10573_v34 }
0x1b03   :  { %9654 = vmatmul.mubr.msk.bf16.gmra.mrb[168].mxu0 %vm219_vm0, %v11954_v5 }
0x1b04   :  { %9657 = vmatprep.mubr.msk.bf16.mxu0 %vm10574_vm1, %v10573_v34 }
0x1b0b   :  { %9658 = vmatmul.mubr.msk.bf16.gmra.mrb[172].mxu0 %vm219_vm0, %v11966_v19 }
0x1ba0   :  { %v12123_v38 = vpop.f32.mrb[188].mxu1 }
0x1ba1   :  { %v12125_v3 = vpop.f32.mrb[189].mxu1 }
0x1ba2   :  { %v9600_v41 = vpop.f32.mrb[190].mxu1 }
0x1ba3   :  { %v12127_v45 = vpop.f32.mrb[191].mxu1 }
0x1ba4   :  { %v4625_v56 = vpack.c.bf16 %v12123_v38, %v12127_v45  ;;  %v10115_v38 = vld [vmem:[%s12947_s13 + $0x28] sm:$0xff]  }
0x1ba6   :  { %v12131_v51 = vpop.f32.mrb[148].mxu0 }
0x1ba7   :  { %v4624_v29 = vpack.c.bf16 %v12125_v3, %v12131_v51  ;;  %v12135_v57 = vpop.f32.mrb[149].mxu0 }
0x1ba8   :  { %v9592_v50 = vpop.f32.mrb[150].mxu0 }
0x1ba9   :  { %v12137_v46 = vpop.f32.mrb[151].mxu0 }
0x1baa   :  { %v4623_v48 = vpack.c.bf16 %v12137_v46, %v12135_v57  ;;  %v10114_v57 = vld [vmem:[%s12990_s28 + $0xd8] sm:$0xff]  }
0x1bb0   :  { %v4802_v18 = vpop.f32.mrb[192].mxu1 }
0x1bb1   :  { %v9631_v24 = vpop.f32.mrb[193].mxu1  ;;  %v4803_v10 = vadd.f32 %v8331_v54, %v4802_v18 }
0x1bb2   :  { %v4805_v4 = vpop.f32.mrb[194].mxu1 }
0x1bb3   :  { %v4806_v26 = vadd.f32 %v8331_v54, %v4805_v4  ;;  %v9632_v8 = vpop.f32.mrb[195].mxu1 }
0x1bb5   :  { %v4927_v37 = vpack.c.bf16 %v4806_v26, %v4803_v10 }
0x1bb6   :  { %v4704_v59 = vpop.f32.mrb[152].mxu0 }
0x1bb7   :  { %v9611_v2 = vpop.f32.mrb[153].mxu0  ;;  %9963 = vmatprep.subr.msk.bf16.mxu1 %vm807_vm2, %v4927_v37  ;;  %v4938_v22 = vsel %vm807_vm2, %v4927_v37, 0  ;;  %v4705_v49 = vadd.f32 %v8314_v31, %v4704_v59 }
0x1bb8   :  { %v4707_v43 = vpop.f32.mrb[154].mxu0  ;;  %v4810_v16 = vpop.f32.mrb[196].mxu1  ;;  %9662 = vmatpush3.bf16.xpose.msra.mxu1 %v4938_v22 }
0x1bb9   :  { %v4708_v20 = vadd.f32 %v8314_v31, %v4707_v43  ;;  %v4811_v61 = vadd.f32 %v8331_v54, %v4810_v16  ;;  %v9612_v21 = vpop.f32.mrb[155].mxu0  ;;  %v9635_v9 = vpop.f32.mrb[197].mxu1 }
0x1bba   :  { %v4813_v13 = vpop.f32.mrb[198].mxu1 }
0x1bbb   :  { %v4923_v28 = vpack.c.bf16 %v4708_v20, %v4705_v49  ;;  %v4928_v35 = vpack.c.bf16 %v4811_v61, %v4811_v61  ;;  %v9636_v25 = vpop.f32.mrb[199].mxu1  ;;  %v4814_v47 = vadd.f32 %v8331_v54, %v4813_v13 }
0x1bbd   :  { %9964 = vmatprep.subr.msk.bf16.mxu1 %vm807_vm2, %v4928_v35  ;;  %9665 = vmatprep.mubr.msk.bf16.mxu1 %vm807_vm2, %v4923_v28  ;;  %v4941_v11 = vsel %vm807_vm2, %v4928_v35, 0 }
0x1bbe   :  { %v4712_v30 = vpop.f32.mrb[156].mxu0 }
0x1bbf   :  { %v9615_v32 = vpop.f32.mrb[157].mxu0  ;;  %v4713_v1 = vadd.f32 %v8314_v31, %v4712_v30 }
0x1bc0   :  { %v4715_v17 = vpop.f32.mrb[158].mxu0  ;;  %v4818_v42 = vpop.f32.mrb[200].mxu1  ;;  %9664 = vmatpush3.bf16.xpose.msra.mxu1 %v4941_v11 }
0x1bc1   :  { %v4819_v15 = vadd.f32 %v8331_v54, %v4818_v42  ;;  %v9616_v53 = vpop.f32.mrb[159].mxu0  ;;  %v9639_v60 = vpop.f32.mrb[201].mxu1  ;;  %v4924_v40 = vpack.c.bf16 %v4713_v1, %v4713_v1  ;;  %v4716_v50 = vadd.f32 %v8314_v31, %v4715_v17 }
0x1bc2   :  { %v4821_v62 = vpop.f32.mrb[202].mxu1 }
0x1bc3   :  { %v4929_v36 = vpack.c.bf16 %v4819_v15, %v4814_v47  ;;  %v4822_v44 = vadd.f32 %v8331_v54, %v4821_v62  ;;  %v9640_v39 = vpop.f32.mrb[203].mxu1  ;;  %v8348_v54 = vld [vmem:[%s12946_s12 + $0x5] ss:$0 sm:$0xff] }
0x1bc5   :  { %9965 = vmatprep.subr.msk.bf16.mxu1 %vm807_vm2, %v4929_v36  ;;  %v4930_v18 = vpack.c.bf16 %v4822_v44, %v4822_v44  ;;  %v4998_v10 = vsel %vm807_vm2, %v4929_v36, 0 }
0x1bc6   :  { %v4720_v41 = vpop.f32.mrb[160].mxu0 }
0x1bc7   :  { %v4721_v24 = vadd.f32 %v8314_v31, %v4720_v41  ;;  %v9619_v4 = vpop.f32.mrb[161].mxu0  ;;  %9666 = vmatmul.mubr.msk.bf16.vlgmr.msra.gmra.mrb[204].mxu1 %vm807_vm2, %v4924_v40  ;;  %v5001_v2 = vsel %vm807_vm2, %v4930_v18, 0 }
0x1bc8   :  { %v4723_v26 = vpop.f32.mrb[162].mxu0  ;;  %9670 = vmatpush3.bf16.xpose.msra.mxu1 %v4998_v10 }
0x1bc9   :  { %v4925_v8 = vpack.c.bf16 %v4721_v24, %v4716_v50  ;;  %v9620_v37 = vpop.f32.mrb[163].mxu0  ;;  %9966 = vmatprep.subr.msk.bf16.mxu1 %vm807_vm2, %v4930_v18  ;;  %v4724_v16 = vadd.f32 %v8314_v31, %v4723_v26 }
0x1bcb   :  { %9673 = vmatprep.mubr.msk.bf16.mxu1 %vm807_vm2, %v4925_v8  ;;  %v4926_v9 = vpack.c.bf16 %v4724_v16, %v4724_v16 }
0x1bce   :  { %v4900_v59 = vpop.f32.mrb[164].mxu0 }
0x1bcf   :  { %v9651_v22 = vpop.f32.mrb[165].mxu0  ;;  %v4901_v49 = vadd.f32 %v8348_v54, %v4900_v59 }
0x1bd0   :  { %v4903_v43 = vpop.f32.mrb[166].mxu0  ;;  %9672 = vmatpush3.bf16.xpose.msra.mxu1 %v5001_v2 }
0x1bd1   :  { %v4904_v20 = vadd.f32 %v8348_v54, %v4903_v43  ;;  %v9652_v61 = vpop.f32.mrb[167].mxu0 }
0x1bd3   :  { %v5133_v21 = vpack.c.bf16 %v4904_v20, %v4901_v49 }
0x1bd5   :  { %9677 = vmatprep.subr.bf16.mxu0 %v5133_v21 }
0x1bd6   :  { %v4908_v13 = vpop.f32.mrb[168].mxu0  ;;  %9678 = vmatpush3.bf16.msra.mxu0 %v5133_v21 }
0x1bd7   :  { %v4909_v28 = vadd.f32 %v8348_v54, %v4908_v13  ;;  %v9655_v35 = vpop.f32.mrb[169].mxu0  ;;  %9674 = vmatmul.mubr.msk.bf16.vlgmr.msra.gmra.mrb[208].mxu1 %vm807_vm2, %v4926_v9 }
0x1bd8   :  { %v4911_v25 = vpop.f32.mrb[170].mxu0 }
0x1bd9   :  { %v5134_v30 = vpack.c.bf16 %v4909_v28, %v4909_v28  ;;  %v9656_v11 = vpop.f32.mrb[171].mxu0  ;;  %v4912_v17 = vadd.f32 %v8348_v54, %v4911_v25 }
0x1bdb   :  { %v5144_v32 = vsel %vm1021_vm3, %v5134_v30, 0  ;;  %9967 = vmatprep.subr.msk.bf16.mxu0 %vm1021_vm3, %v5134_v30 }
0x1bdc   :  { %9680 = vmatpush3.bf16.msra.mxu0 %v5144_v32 }
0x1bdd   :  { %9693 = vmatprep.subr.bf16.mxu0 %v10573_v34 }
0x1bde   :  { %v4916_v31 = vpop.f32.mrb[172].mxu0 }
0x1bdf   :  { %v4917_v42 = vadd.f32 %v8348_v54, %v4916_v31  ;;  %v9659_v47 = vpop.f32.mrb[173].mxu0 }
0x1be0   :  { %v4919_v1 = vpop.f32.mrb[174].mxu0 }
0x1be1   :  { %v5135_v15 = vpack.c.bf16 %v4917_v42, %v4912_v17  ;;  %v4920_v53 = vadd.f32 %v8348_v54, %v4919_v1  ;;  %v9660_v60 = vpop.f32.mrb[175].mxu0 }
0x1be3   :  { %v5136_v62 = vpack.c.bf16 %v4920_v53, %v4920_v53  ;;  %9685 = vmatprep.subr.bf16.mxu1 %v5135_v15 }
0x1be4   :  { %9686 = vmatpush3.bf16.msra.mxu1 %v5135_v15 }
0x1be5   :  { %9968 = vmatprep.subr.msk.bf16.mxu1 %vm1021_vm3, %v5136_v62  ;;  %v5201_v36 = vsel %vm1021_vm3, %v5136_v62, 0 }
0x1be8   :  { %9688 = vmatpush3.bf16.msra.mxu1 %v5201_v36 }
0x1be9   :  { %9707 = vmatprep.subr.bf16.mxu1 %v10573_v34 }
0x1c9a   :  { %v9667_v44 = vpop.f32.mrb[204].mxu1 }
0x1c9b   :  { %v4977_v39 = vpop.f32.mrb[205].mxu1  ;;  %v5053_v40 = vmul.f32 0.25, %v9667_v44 }
0x1c9c   :  { %v5051_v41 = vmul.f32 0.25, %v4977_v39  ;;  %v9668_v50 = vpop.f32.mrb[206].mxu1 }
0x1c9d   :  { %v4980_v18 = vpop.f32.mrb[207].mxu1  ;;  %v5059_v10 = vadd.f32 %v5053_v40, %v11024_v14 }
0x1c9e   :  { %v5057_v24 = vadd.f32 %v5051_v41, %v11024_v14  ;;  %v5052_v4 = vmul.f32 0.25, %v4980_v18 }
0x1c9f   :  { %v5069_v54 = vsel %vm940_vm5, %v5059_v10, -inf }
0x1ca0   :  { %v5058_v26 = vadd.f32 %v5052_v4, %v11024_v14  ;;  %v5063_v8 = vsel %vm940_vm5, %v5057_v24, -inf }
0x1ca1   :  { %5064 = vmax.xlane.f32.xlu0 %v5063_v8 }
0x1ca2   :  { %v5066_v37 = vsel %vm940_vm5, %v5058_v26, -inf }
0x1ca3   :  { %5067 = vmax.xlane.f32.xlu1 %v5066_v37 }
0x1ca5   :  { %5070 = vmax.xlane.f32.xlu0 %v5069_v54 }
0x1caa   :  { %v9675_v59 = vpop.f32.mrb[208].mxu1 }
0x1cab   :  { %v5037_v2 = vpop.f32.mrb[209].mxu1  ;;  %v5056_v22 = vmul.f32 0.25, %v9675_v59 }
0x1cac   :  { %v5054_v43 = vmul.f32 0.25, %v5037_v2  ;;  %v9676_v16 = vpop.f32.mrb[210].mxu1 }
0x1cad   :  { %v5040_v49 = vpop.f32.mrb[211].mxu1  ;;  %v5062_v21 = vadd.f32 %v5056_v22, %v11024_v14 }
0x1cae   :  { %v5060_v20 = vadd.f32 %v5054_v43, %v11024_v14  ;;  %v5055_v61 = vmul.f32 0.25, %v5040_v49 }
0x1caf   :  { %v5078_v35 = vsel %vm940_vm5, %v5062_v21, -inf }
0x1cb0   :  { %v5061_v9 = vadd.f32 %v5055_v61, %v11024_v14  ;;  %v5072_v13 = vsel %vm940_vm5, %v5060_v20, -inf }
0x1cb1   :  { %5073 = vmax.xlane.f32.xlu1 %v5072_v13 }
0x1cb2   :  { %v5075_v28 = vsel %vm940_vm5, %v5061_v9, -inf }
0x1cb3   :  { %5076 = vmax.xlane.f32.xlu0 %v5075_v28 }
0x1cb5   :  { %5079 = vmax.xlane.f32.xlu1 %v5078_v35 }
0x1d2e   :  { %v5065_v25 = vpop.xlane.xlu0 %5064 }
0x1d2f   :  { %v5081_v30 = vsub.f32 %v5057_v24, %v5065_v25 }
0x1d30   :  { %v5068_v11 = vpop.xlane.xlu1 %5067 }
0x1d31   :  { %v5087_v32 = vmul.f32 1.442695, %v5081_v30  ;;  %v5082_v31 = vsub.f32 %v5058_v26, %v5068_v11 }
0x1d32   :  { %v5071_v17 = vpop.xlane.xlu0 %5070 }
0x1d33   :  { %10438 = vpow2.f32 %v5087_v32  ;;  %v5089_v42 = vmul.f32 1.442695, %v5082_v31  ;;  %v5083_v47 = vsub.f32 %v5059_v10, %v5071_v17 }
0x1d35   :  { %10440 = vpow2.f32 %v5089_v42  ;;  %v5091_v1 = vmul.f32 1.442695, %v5083_v47 }
0x1d37   :  { %10442 = vpow2.f32 %v5091_v1 }
0x1d3d   :  { %v10439_v15 = vpop.eup %10438 }
0x1d3e   :  { %v5074_v53 = vpop.xlane.xlu1 %5073  ;;  %v5099_v60 = vsel %vm940_vm5, %v10439_v15, 0.0 }
0x1d3f   :  { %v10441_v62 = vpop.eup %10440  ;;  %v5084_v36 = vsub.f32 %v5060_v20, %v5074_v53  ;;  %5100 = vadd.xlane.f32.xlu0 %v5099_v60  ;;  %v10110_v60 = vld [vmem:[%s12947_s13 + $0x20] sm:$0xff]  }
0x1d40   :  { %v5077_v44 = vpop.xlane.xlu0 %5076  ;;  %v5102_v39 = vsel %vm940_vm5, %v10441_v62, 0.0 }
0x1d41   :  { %v10443_v40 = vpop.eup %10442  ;;  %v5093_v41 = vmul.f32 1.442695, %v5084_v36  ;;  %v5085_v50 = vsub.f32 %v5061_v9, %v5077_v44  ;;  %5103 = vadd.xlane.f32.xlu1 %v5102_v39  ;;  %v10111_v36 = vld [vmem:[%s12990_s28 + $0xc0] sm:$0xff]   ;;  %v10112_v44 = vld [vmem:[%s12990_s28 + $0xc8] sm:$0xff]   ;;  %v10113_v39 = vld [vmem:[%s12990_s28 + $0xd0] sm:$0xff]  }
0x1d42   :  { %v5080_v18 = vpop.xlane.xlu1 %5079  ;;  %v5105_v24 = vsel %vm940_vm5, %v10443_v40, 0.0 }
0x1d43   :  { %10444 = vpow2.f32 %v5093_v41  ;;  %v5095_v4 = vmul.f32 1.442695, %v5085_v50  ;;  %v5086_v10 = vsub.f32 %v5062_v21, %v5080_v18  ;;  %5106 = vadd.xlane.f32.xlu0 %v5105_v24  ;;  %v10119_v41 = vld [vmem:[%s12987_s7 + $0xd8] sm:$0xff]  }
0x1d45   :  { %10446 = vpow2.f32 %v5095_v4  ;;  %v5097_v26 = vmul.f32 1.442695, %v5086_v10 }
0x1d47   :  { %10448 = vpow2.f32 %v5097_v26 }
0x1d4d   :  { %v10445_v8 = vpop.eup %10444 }
0x1d4e   :  { %v5108_v37 = vsel %vm940_vm5, %v10445_v8, 0.0 }
0x1d4f   :  { %v10447_v54 = vpop.eup %10446  ;;  %5109 = vadd.xlane.f32.xlu1 %v5108_v37 }
0x1d50   :  { %v5111_v59 = vsel %vm940_vm5, %v10447_v54, 0.0 }
0x1d51   :  { %v10449_v2 = vpop.eup %10448  ;;  %5112 = vadd.xlane.f32.xlu0 %v5111_v59 }
0x1d52   :  { %v5114_v22 = vsel %vm940_vm5, %v10449_v2, 0.0 }
0x1d53   :  { %5115 = vadd.xlane.f32.xlu1 %v5114_v22 }
0x1dcc   :  { %v5101_v43 = vpop.xlane.xlu0 %5100 }
0x1dcd   :  { %10450 = vrcp.f32 %v5101_v43  ;;  %v10120_v43 = vld [vmem:[%s12991_s8 + $0xc0] sm:$0xff]  }
0x1dce   :  { %v5104_v16 = vpop.xlane.xlu1 %5103 }
0x1dcf   :  { %10452 = vrcp.f32 %v5104_v16 }
0x1dd0   :  { %v5107_v49 = vpop.xlane.xlu0 %5106 }
0x1dd1   :  { %10454 = vrcp.f32 %v5107_v49 }
0x1dd7   :  { %v10451_v20 = vpop.eup %10450 }
0x1dd8   :  { %v5123_v21 = vmul.f32 %v10451_v20, %v10439_v15  ;;  %v10121_v20 = vld [vmem:[%s12991_s8 + $0xc8] sm:$0xff]  }
0x1dd9   :  { %v10453_v61 = vpop.eup %10452 }
0x1dda   :  { %v5124_v9 = vmul.f32 %v10453_v61, %v10441_v62 }
0x1ddb   :  { %v10455_v13 = vpop.eup %10454 }
0x1ddc   :  { %v5125_v28 = vmul.f32 %v10455_v13, %v10443_v40  ;;  %v5110_v35 = vpop.xlane.xlu1 %5109  ;;  %v5129_v25 = vpack.c.bf16 %v5124_v9, %v5123_v21  ;;  %v10118_v40 = vld [vmem:[%s12987_s7 + $0xd0] sm:$0xff]  }
0x1ddd   :  { %10456 = vrcp.f32 %v5110_v35  ;;  %v10122_v9 = vld [vmem:[%s12991_s8 + $0xd0] sm:$0xff]   ;;  %v10123_v35 = vld [vmem:[%s12991_s8 + $0xd8] sm:$0xff]  }
0x1dde   :  { %v5130_v30 = vpack.c.bf16 %v5125_v28, %v5125_v28  ;;  %9681 = vmatprep.mubr.msk.bf16.mxu0 %vm940_vm5, %v5129_v25  ;;  %v5113_v11 = vpop.xlane.xlu0 %5112  ;;  %v8400_v25 = vld [vmem:[%s12945_s11 + $0x6] ss:$0 sm:$0xff] }
0x1ddf   :  { %10458 = vrcp.f32 %v5113_v11 }
0x1de0   :  { %v5116_v32 = vpop.xlane.xlu1 %5115  ;;  %9682 = vmatmul.mubr.msk.bf16.vlgmr.msra.gmra.mrb[176].mxu0 %vm940_vm5, %v5130_v30 }
0x1de1   :  { %10460 = vrcp.f32 %v5116_v32  ;;  %9695 = vmatprep.mubr.msk.bf16.mxu0 %vm10574_vm1, %v10573_v34  ;;  %9694 = vmatpush3.bf16.msra.mxu0 %v10115_v38 }
0x1de2   :  { %9721 = vmatprep.subr.bf16.mxu0 %v10573_v34 }
0x1de7   :  { %v10457_v31 = vpop.eup %10456 }
0x1de8   :  { %v5126_v42 = vmul.f32 %v10457_v31, %v10445_v8 }
0x1de9   :  { %v10459_v17 = vpop.eup %10458 }
0x1dea   :  { %v5127_v47 = vmul.f32 %v10459_v17, %v10447_v54 }
0x1deb   :  { %v10461_v1 = vpop.eup %10460 }
0x1dec   :  { %v5128_v15 = vmul.f32 %v10461_v1, %v10449_v2  ;;  %v5131_v53 = vpack.c.bf16 %v5127_v47, %v5126_v42 }
0x1dee   :  { %9689 = vmatprep.mubr.msk.bf16.mxu1 %vm940_vm5, %v5131_v53  ;;  %v5132_v62 = vpack.c.bf16 %v5128_v15, %v5128_v15 }
0x1df0   :  { %9690 = vmatmul.mubr.msk.bf16.vlgmr.msra.gmra.mrb[212].mxu1 %vm940_vm5, %v5132_v62 }
0x1df1   :  { %9708 = vmatpush3.bf16.msra.mxu1 %v10110_v60  ;;  %9709 = vmatprep.mubr.msk.bf16.mxu1 %vm10574_vm1, %v10573_v34 }
0x1df2   :  { %9741 = vmatprep.subr.bf16.mxu1 %v10573_v34 }
0x1df8   :  { %9710 = vmatmul.mubr.msk.bf16.vlgmr.msra.gmra.mrb[216].mxu1 %vm807_vm2, %v4623_v48  ;;  %v10117_v48 = vld [vmem:[%s12987_s7 + $0xc8] sm:$0xff]  }
0x1df9   :  { %9713 = vmatprep.mubr.msk.bf16.mxu1 %vm10574_vm1, %v10573_v34  ;;  %9742 = vmatpush3.bf16.msra.mxu1 %v10111_v36 }
0x1dfa   :  { %9743 = vmatprep.subr.bf16.mxu1 %v10573_v34 }
0x1dfd   :  { %9744 = vmatpush3.bf16.msra.mxu1 %v10112_v44 }
0x1dfe   :  { %9745 = vmatprep.subr.bf16.mxu1 %v10573_v34 }
0x1e00   :  { %9714 = vmatmul.mubr.msk.bf16.gmra.mrb[220].mxu1 %vm807_vm2, %v4624_v29  ;;  %v10116_v29 = vld [vmem:[%s12987_s7 + $0xc0] sm:$0xff]  }
0x1e01   :  { %9717 = vmatprep.mubr.msk.bf16.mxu1 %vm10574_vm1, %v10573_v34  ;;  %9746 = vmatpush3.bf16.msra.mxu1 %v10113_v39 }
0x1e02   :  { %9747 = vmatprep.subr.bf16.mxu1 %v10573_v34 }
0x1e05   :  { %9748 = vmatpush3.bf16.msra.mxu1 %v10114_v57 }
0x1e08   :  { %9718 = vmatmul.mubr.msk.bf16.gmra.mrb[224].mxu1 %vm807_vm2, %v4625_v56 }
0x1e09   :  { %9749 = vmatprep.mubr.msk.bf16.mxu1 %vm10574_vm1, %v10573_v34 }
0x1e10   :  { %9750 = vmatmul.mubr.msk.bf16.vlgmr.msra.gmra.mrb[228].mxu1 %vm219_vm0, %v11927_v7 }
0x1e11   :  { %9753 = vmatprep.mubr.msk.bf16.mxu1 %vm10574_vm1, %v10573_v34 }
0x1e18   :  { %9754 = vmatmul.mubr.msk.bf16.gmra.mrb[232].mxu1 %vm219_vm0, %v11954_v5 }
0x1e19   :  { %9757 = vmatprep.mubr.msk.bf16.mxu1 %vm10574_vm1, %v10573_v34 }
0x1e20   :  { %9758 = vmatmul.mubr.msk.bf16.gmra.mrb[236].mxu1 %vm219_vm0, %v11966_v19 }
0x1eb3   :  { %v9683_v3 = vpop.f32.mrb[176].mxu0 }
0x1eb4   :  { %v5180_v45 = vpop.f32.mrb[177].mxu0 }
0x1eb5   :  { %v9684_v56 = vpop.f32.mrb[178].mxu0 }
0x1eb6   :  { %v5183_v51 = vpop.f32.mrb[179].mxu0 }
0x1eb7   :  { %v5251_v46 = vpack.c.bf16 %v5183_v51, %v5180_v45 }
0x1eb9   :  { %9696 = vmatmul.mubr.msk.bf16.vlgmr.msra.gmra.mrb[180].mxu0 %vm807_vm2, %v5251_v46 }
0x1eba   :  { %9699 = vmatprep.mubr.msk.bf16.mxu0 %vm10574_vm1, %v10573_v34  ;;  %9722 = vmatpush3.bf16.msra.mxu0 %v10116_v29 }
0x1ebb   :  { %9723 = vmatprep.subr.bf16.mxu0 %v10573_v34 }
0x1ebe   :  { %9724 = vmatpush3.bf16.msra.mxu0 %v10117_v48 }
0x1ebf   :  { %9725 = vmatprep.subr.bf16.mxu0 %v10573_v34 }
0x1ec2   :  { %9726 = vmatpush3.bf16.msra.mxu0 %v10118_v40 }
0x1ec3   :  { %v9691_v50 = vpop.f32.mrb[212].mxu1  ;;  %9727 = vmatprep.subr.bf16.mxu0 %v10573_v34 }
0x1ec4   :  { %v5237_v18 = vpop.f32.mrb[213].mxu1 }
0x1ec5   :  { %v5252_v24 = vpack.c.bf16 %v5237_v18, %v9683_v3  ;;  %v9692_v4 = vpop.f32.mrb[214].mxu1 }
0x1ec6   :  { %v5240_v10 = vpop.f32.mrb[215].mxu1  ;;  %9728 = vmatpush3.bf16.msra.mxu0 %v10119_v41 }
0x1ec7   :  { %v5253_v26 = vpack.c.bf16 %v9691_v50, %v5240_v10  ;;  %9700 = vmatmul.mubr.msk.bf16.gmra.mrb[184].mxu0 %vm807_vm2, %v5252_v24  ;;  %9761 = vmatprep.subr.bf16.mxu0 %v10573_v34 }
0x1ec8   :  { %9703 = vmatprep.mubr.msk.bf16.mxu0 %vm10574_vm1, %v10573_v34 }
0x1ecb   :  { %v12267_v8 = vpop.f32.mrb[216].mxu1 }
0x1ecc   :  { %v9711_v37 = vpop.f32.mrb[217].mxu1 }
0x1ecd   :  { %v12269_v54 = vpop.f32.mrb[218].mxu1 }
0x1ece   :  { %v9712_v59 = vpop.f32.mrb[219].mxu1 }
0x1ecf   :  { %9704 = vmatmul.mubr.msk.bf16.gmra.mrb[188].mxu0 %vm807_vm2, %v5253_v26 }
0x1ed0   :  { %9729 = vmatprep.mubr.msk.bf16.mxu0 %vm10574_vm1, %v10573_v34 }
0x1ed3   :  { %v12274_v2 = vpop.f32.mrb[220].mxu1 }
0x1ed4   :  { %v9715_v22 = vpop.f32.mrb[221].mxu1 }
0x1ed5   :  { %v12279_v16 = vpop.f32.mrb[222].mxu1 }
0x1ed6   :  { %v9716_v49 = vpop.f32.mrb[223].mxu1 }
0x1ed7   :  { %9730 = vmatmul.mubr.msk.bf16.vlgmr.msra.gmra.mrb[192].mxu0 %vm219_vm0, %v11927_v7 }
0x1ed8   :  { %9733 = vmatprep.mubr.msk.bf16.mxu0 %vm10574_vm1, %v10573_v34  ;;  %9762 = vmatpush3.bf16.msra.mxu0 %v10120_v43 }
0x1ed9   :  { %9763 = vmatprep.subr.bf16.mxu0 %v10573_v34 }
0x1edb   :  { %v5394_v61 = vpop.f32.mrb[224].mxu1 }
0x1edc   :  { %v9719_v21 = vpop.f32.mrb[225].mxu1  ;;  %9764 = vmatpush3.bf16.msra.mxu0 %v10121_v20 }
0x1edd   :  { %v5397_v13 = vpop.f32.mrb[226].mxu1  ;;  %9765 = vmatprep.subr.bf16.mxu0 %v10573_v34 }
0x1ede   :  { %v9720_v28 = vpop.f32.mrb[227].mxu1 }
0x1edf   :  { %9734 = vmatmul.mubr.msk.bf16.gmra.mrb[196].mxu0 %vm219_vm0, %v11954_v5 }
0x1ee0   :  { %9737 = vmatprep.mubr.msk.bf16.mxu0 %vm10574_vm1, %v10573_v34  ;;  %9766 = vmatpush3.bf16.msra.mxu0 %v10122_v9  ;;  %v8383_v9 = vld [vmem:[%s12992_s30 + $0x6] ss:$0 sm:$0xff] }
0x1ee1   :  { %9767 = vmatprep.subr.bf16.mxu0 %v10573_v34 }
0x1ee3   :  { %v5574_v30 = vpop.f32.mrb[228].mxu1 }
0x1ee4   :  { %v9751_v11 = vpop.f32.mrb[229].mxu1  ;;  %9768 = vmatpush3.bf16.msra.mxu0 %v10123_v35  ;;  %v5575_v31 = vadd.f32 %v8400_v25, %v5574_v30 }
0x1ee5   :  { %v5577_v32 = vpop.f32.mrb[230].mxu1 }
0x1ee6   :  { %v5578_v17 = vadd.f32 %v8400_v25, %v5577_v32  ;;  %v9752_v42 = vpop.f32.mrb[231].mxu1 }
0x1ee7   :  { %9738 = vmatmul.mubr.msk.bf16.gmra.mrb[200].mxu0 %vm219_vm0, %v11966_v19 }
0x1ee8   :  { %v5699_v47 = vpack.c.bf16 %v5578_v17, %v5575_v31  ;;  %9769 = vmatprep.mubr.msk.bf16.mxu0 %vm10574_vm1, %v10573_v34 }
0x1eea   :  { %9969 = vmatprep.subr.msk.bf16.mxu1 %vm807_vm2, %v5699_v47  ;;  %v5710_v1 = vsel %vm807_vm2, %v5699_v47, 0 }
0x1eeb   :  { %v5582_v15 = vpop.f32.mrb[232].mxu1  ;;  %9782 = vmatpush3.bf16.xpose.msra.mxu1 %v5710_v1 }
0x1eec   :  { %v5583_v53 = vadd.f32 %v8400_v25, %v5582_v15  ;;  %v9755_v60 = vpop.f32.mrb[233].mxu1 }
0x1eed   :  { %v5585_v62 = vpop.f32.mrb[234].mxu1 }
0x1eee   :  { %v5700_v36 = vpack.c.bf16 %v5583_v53, %v5583_v53  ;;  %v9756_v44 = vpop.f32.mrb[235].mxu1  ;;  %v5586_v38 = vadd.f32 %v8400_v25, %v5585_v62 }
0x1eef   :  { %9770 = vmatmul.mubr.msk.bf16.vlgmr.msra.gmra.mrb[204].mxu0 %vm219_vm0, %v11927_v7 }
0x1ef0   :  { %9970 = vmatprep.subr.msk.bf16.mxu1 %vm807_vm2, %v5700_v36  ;;  %9773 = vmatprep.mubr.msk.bf16.mxu0 %vm10574_vm1, %v10573_v34  ;;  %v5713_v39 = vsel %vm807_vm2, %v5700_v36, 0 }
0x1ef3   :  { %v5590_v57 = vpop.f32.mrb[236].mxu1  ;;  %9784 = vmatpush3.bf16.xpose.msra.mxu1 %v5713_v39 }
0x1ef4   :  { %v5591_v3 = vadd.f32 %v8400_v25, %v5590_v57  ;;  %v9759_v45 = vpop.f32.mrb[237].mxu1 }
0x1ef5   :  { %v5593_v56 = vpop.f32.mrb[238].mxu1 }
0x1ef6   :  { %v5701_v51 = vpack.c.bf16 %v5591_v3, %v5586_v38  ;;  %v5594_v29 = vadd.f32 %v8400_v25, %v5593_v56  ;;  %v9760_v46 = vpop.f32.mrb[239].mxu1  ;;  %v8417_v3 = vld [vmem:[%s12946_s12 + $0x6] ss:$0 sm:$0xff] }
0x1ef7   :  { %9774 = vmatmul.mubr.msk.bf16.gmra.mrb[208].mxu0 %vm219_vm0, %v11954_v5 }
0x1ef8   :  { %9971 = vmatprep.subr.msk.bf16.mxu1 %vm807_vm2, %v5701_v51  ;;  %9777 = vmatprep.mubr.msk.bf16.mxu0 %vm10574_vm1, %v10573_v34  ;;  %v5702_v47 = vpack.c.bf16 %v5594_v29, %v5594_v29  ;;  %v5770_v1 = vsel %vm807_vm2, %v5701_v51, 0 }
0x1efa   :  { %v5773_v57 = vsel %vm807_vm2, %v5702_v47, 0 }
0x1eff   :  { %9778 = vmatmul.mubr.msk.bf16.gmra.mrb[212].mxu0 %vm219_vm0, %v11966_v19 }
0x1f8c   :  { %v5306_v48 = vpop.f32.mrb[180].mxu0 }
0x1f8d   :  { %v12324_v40 = vadd.f32 %v12267_v8, %v5306_v48  ;;  %v9697_v41 = vpop.f32.mrb[181].mxu0 }
0x1f8e   :  { %v5309_v50 = vpop.f32.mrb[182].mxu0 }
0x1f8f   :  { %v12327_v18 = vadd.f32 %v12269_v54, %v5309_v50  ;;  %v9698_v24 = vpop.f32.mrb[183].mxu0 }
0x1f9a   :  { %v5314_v4 = vpop.f32.mrb[184].mxu0 }
0x1f9b   :  { %v12330_v10 = vadd.f32 %v12274_v2, %v5314_v4  ;;  %v9701_v26 = vpop.f32.mrb[185].mxu0 }
0x1f9c   :  { %v5317_v37 = vpop.f32.mrb[186].mxu0 }
0x1f9d   :  { %v12333_v59 = vadd.f32 %v12279_v16, %v5317_v37  ;;  %v9702_v22 = vpop.f32.mrb[187].mxu0 }
0x1fa2   :  { %v5322_v43 = vpop.f32.mrb[188].mxu0 }
0x1fa3   :  { %v12335_v49 = vadd.f32 %v5394_v61, %v5322_v43  ;;  %v9705_v8 = vpop.f32.mrb[189].mxu0 }
0x1fa4   :  { %v5325_v20 = vpop.f32.mrb[190].mxu0 }
0x1fa5   :  { %v12337_v21 = vadd.f32 %v5397_v13, %v5325_v20  ;;  %v9706_v54 = vpop.f32.mrb[191].mxu0 }
0x1faa   :  { %v5476_v2 = vpop.f32.mrb[192].mxu0 }
0x1fab   :  { %v9731_v28 = vpop.f32.mrb[193].mxu0  ;;  %v5477_v25 = vadd.f32 %v8383_v9, %v5476_v2 }
0x1fac   :  { %v5479_v35 = vpop.f32.mrb[194].mxu0 }
0x1fad   :  { %v5480_v30 = vadd.f32 %v8383_v9, %v5479_v35  ;;  %v9732_v16 = vpop.f32.mrb[195].mxu0 }
0x1faf   :  { %v5695_v11 = vpack.c.bf16 %v5480_v30, %v5477_v25 }
0x1fb1   :  { %9785 = vmatprep.mubr.msk.bf16.mxu1 %vm807_vm2, %v5695_v11 }
0x1fb2   :  { %v5484_v61 = vpop.f32.mrb[196].mxu0 }
0x1fb3   :  { %v5485_v32 = vadd.f32 %v8383_v9, %v5484_v61  ;;  %v9735_v31 = vpop.f32.mrb[197].mxu0 }
0x1fb4   :  { %v5487_v17 = vpop.f32.mrb[198].mxu0 }
0x1fb5   :  { %v5696_v13 = vpack.c.bf16 %v5485_v32, %v5485_v32  ;;  %v9736_v42 = vpop.f32.mrb[199].mxu0  ;;  %v5488_v53 = vadd.f32 %v8383_v9, %v5487_v17 }
0x1fb7   :  { %9786 = vmatmul.mubr.msk.bf16.vlgmr.msra.gmra.mrb[240].mxu1 %vm807_vm2, %v5696_v13 }
0x1fb8   :  { %9790 = vmatpush3.bf16.xpose.msra.mxu1 %v5770_v1 }
0x1fb9   :  { %9972 = vmatprep.subr.msk.bf16.mxu1 %vm807_vm2, %v5702_v47 }
0x1fba   :  { %v5492_v15 = vpop.f32.mrb[200].mxu0 }
0x1fbb   :  { %v5493_v60 = vadd.f32 %v8383_v9, %v5492_v15  ;;  %v9739_v62 = vpop.f32.mrb[201].mxu0 }
0x1fbc   :  { %v5495_v36 = vpop.f32.mrb[202].mxu0 }
0x1fbd   :  { %v5697_v44 = vpack.c.bf16 %v5493_v60, %v5488_v53  ;;  %v9740_v39 = vpop.f32.mrb[203].mxu0  ;;  %v5496_v38 = vadd.f32 %v8383_v9, %v5495_v36 }
0x1fbf   :  { %9793 = vmatprep.mubr.msk.bf16.mxu1 %vm807_vm2, %v5697_v44  ;;  %v5698_v29 = vpack.c.bf16 %v5496_v38, %v5496_v38 }
0x1fc0   :  { %9792 = vmatpush3.bf16.xpose.msra.mxu1 %v5773_v57 }
0x1fc2   :  { %v5672_v45 = vpop.f32.mrb[204].mxu0 }
0x1fc3   :  { %v9771_v56 = vpop.f32.mrb[205].mxu0  ;;  %v5673_v46 = vadd.f32 %v8417_v3, %v5672_v45 }
0x1fc4   :  { %v5675_v51 = vpop.f32.mrb[206].mxu0 }
0x1fc5   :  { %v5676_v48 = vadd.f32 %v8417_v3, %v5675_v51  ;;  %v9772_v41 = vpop.f32.mrb[207].mxu0 }
0x1fc7   :  { %v5905_v50 = vpack.c.bf16 %v5676_v48, %v5673_v46  ;;  %9794 = vmatmul.mubr.msk.bf16.vlgmr.msra.gmra.mrb[244].mxu1 %vm807_vm2, %v5698_v29 }
0x1fc9   :  { %9797 = vmatprep.subr.bf16.mxu0 %v5905_v50 }
0x1fca   :  { %v5680_v24 = vpop.f32.mrb[208].mxu0  ;;  %9798 = vmatpush3.bf16.msra.mxu0 %v5905_v50 }
0x1fcb   :  { %v5681_v4 = vadd.f32 %v8417_v3, %v5680_v24  ;;  %v9775_v26 = vpop.f32.mrb[209].mxu0 }
0x1fcc   :  { %v5683_v37 = vpop.f32.mrb[210].mxu0 }
0x1fcd   :  { %v5906_v22 = vpack.c.bf16 %v5681_v4, %v5681_v4  ;;  %v9776_v43 = vpop.f32.mrb[211].mxu0  ;;  %v5684_v54 = vadd.f32 %v8417_v3, %v5683_v37 }
0x1fcf   :  { %v5916_v8 = vsel %vm1021_vm3, %v5906_v22, 0  ;;  %9973 = vmatprep.subr.msk.bf16.mxu0 %vm1021_vm3, %v5906_v22 }
0x1fd0   :  { %9800 = vmatpush3.bf16.msra.mxu0 %v5916_v8 }
0x1fd1   :  { %9813 = vmatprep.subr.bf16.mxu0 %v10573_v34 }
0x1fd2   :  { %v5688_v20 = vpop.f32.mrb[212].mxu0 }
0x1fd3   :  { %v5689_v9 = vadd.f32 %v8417_v3, %v5688_v20  ;;  %v9779_v2 = vpop.f32.mrb[213].mxu0 }
0x1fd4   :  { %v5691_v28 = vpop.f32.mrb[214].mxu0 }
0x1fd5   :  { %v5907_v35 = vpack.c.bf16 %v5689_v9, %v5684_v54  ;;  %v5692_v25 = vadd.f32 %v8417_v3, %v5691_v28  ;;  %v9780_v30 = vpop.f32.mrb[215].mxu0 }
0x1fd7   :  { %v5908_v16 = vpack.c.bf16 %v5692_v25, %v5692_v25  ;;  %9805 = vmatprep.subr.bf16.mxu1 %v5907_v35 }
0x1fd8   :  { %9806 = vmatpush3.bf16.msra.mxu1 %v5907_v35 }
0x1fd9   :  { %9974 = vmatprep.subr.msk.bf16.mxu1 %vm1021_vm3, %v5908_v16  ;;  %v5973_v11 = vsel %vm1021_vm3, %v5908_v16, 0 }
0x1fdc   :  { %9808 = vmatpush3.bf16.msra.mxu1 %v5973_v11 }
0x1fdd   :  { %9827 = vmatprep.subr.bf16.mxu1 %v10573_v34 }
0x208a   :  { %v9787_v61 = vpop.f32.mrb[240].mxu1 }
0x208b   :  { %v5749_v32 = vpop.f32.mrb[241].mxu1  ;;  %v5825_v31 = vmul.f32 0.25, %v9787_v61 }
0x208c   :  { %v5823_v17 = vmul.f32 0.25, %v5749_v32  ;;  %v9788_v13 = vpop.f32.mrb[242].mxu1 }
0x208d   :  { %v5752_v42 = vpop.f32.mrb[243].mxu1  ;;  %v5831_v15 = vadd.f32 %v5825_v31, %v11024_v14 }
0x208e   :  { %v5829_v47 = vadd.f32 %v5823_v17, %v11024_v14  ;;  %v5824_v1 = vmul.f32 0.25, %v5752_v42 }
0x208f   :  { %v5841_v36 = vsel %vm940_vm5, %v5831_v15, -inf }
0x2090   :  { %v5830_v53 = vadd.f32 %v5824_v1, %v11024_v14  ;;  %v5835_v60 = vsel %vm940_vm5, %v5829_v47, -inf }
0x2091   :  { %5836 = vmax.xlane.f32.xlu0 %v5835_v60 }
0x2092   :  { %v5838_v62 = vsel %vm940_vm5, %v5830_v53, -inf }
0x2093   :  { %5839 = vmax.xlane.f32.xlu1 %v5838_v62 }
0x2095   :  { %5842 = vmax.xlane.f32.xlu0 %v5841_v36 }
0x209a   :  { %v9795_v44 = vpop.f32.mrb[244].mxu1 }
0x209b   :  { %v5809_v39 = vpop.f32.mrb[245].mxu1  ;;  %v5828_v57 = vmul.f32 0.25, %v9795_v44 }
0x209c   :  { %v5826_v38 = vmul.f32 0.25, %v5809_v39  ;;  %v9796_v3 = vpop.f32.mrb[246].mxu1 }
0x209d   :  { %v5812_v45 = vpop.f32.mrb[247].mxu1  ;;  %v5834_v29 = vadd.f32 %v5828_v57, %v11024_v14 }
0x209e   :  { %v5832_v56 = vadd.f32 %v5826_v38, %v11024_v14  ;;  %v5827_v51 = vmul.f32 0.25, %v5812_v45 }
0x209f   :  { %v5850_v50 = vsel %vm940_vm5, %v5834_v29, -inf }
0x20a0   :  { %v5833_v46 = vadd.f32 %v5827_v51, %v11024_v14  ;;  %v5844_v48 = vsel %vm940_vm5, %v5832_v56, -inf }
0x20a1   :  { %5845 = vmax.xlane.f32.xlu1 %v5844_v48 }
0x20a2   :  { %v5847_v41 = vsel %vm940_vm5, %v5833_v46, -inf }
0x20a3   :  { %5848 = vmax.xlane.f32.xlu0 %v5847_v41 }
0x20a5   :  { %5851 = vmax.xlane.f32.xlu1 %v5850_v50 }
0x211e   :  { %v5837_v24 = vpop.xlane.xlu0 %5836 }
0x211f   :  { %v5853_v4 = vsub.f32 %v5829_v47, %v5837_v24 }
0x2120   :  { %v5840_v26 = vpop.xlane.xlu1 %5839 }
0x2121   :  { %v5859_v37 = vmul.f32 1.442695, %v5853_v4  ;;  %v5854_v22 = vsub.f32 %v5830_v53, %v5840_v26 }
0x2122   :  { %v5843_v43 = vpop.xlane.xlu0 %5842 }
0x2123   :  { %10462 = vpow2.f32 %v5859_v37  ;;  %v5861_v8 = vmul.f32 1.442695, %v5854_v22  ;;  %v5855_v20 = vsub.f32 %v5831_v15, %v5843_v43 }
0x2125   :  { %10464 = vpow2.f32 %v5861_v8  ;;  %v5863_v54 = vmul.f32 1.442695, %v5855_v20 }
0x2127   :  { %10466 = vpow2.f32 %v5863_v54  ;;  %v10124_v54 = vld [vmem:[%s12987_s7 + $0xe0] sm:$0xff]  }
0x212d   :  { %v10463_v9 = vpop.eup %10462 }
0x212e   :  { %v5846_v2 = vpop.xlane.xlu1 %5845  ;;  %v5871_v28 = vsel %vm940_vm5, %v10463_v9, 0.0 }
0x212f   :  { %v10465_v35 = vpop.eup %10464  ;;  %v5856_v25 = vsub.f32 %v5832_v56, %v5846_v2  ;;  %5872 = vadd.xlane.f32.xlu0 %v5871_v28  ;;  %v10125_v2 = vld [vmem:[%s12987_s7 + $0xe8] sm:$0xff]   ;;  %v10126_v28 = vld [vmem:[%s12987_s7 + $0xf0] sm:$0xff]  }
0x2130   :  { %v5849_v30 = vpop.xlane.xlu0 %5848  ;;  %v5874_v16 = vsel %vm940_vm5, %v10465_v35, 0.0 }
0x2131   :  { %v10467_v11 = vpop.eup %10466  ;;  %v5865_v61 = vmul.f32 1.442695, %v5856_v25  ;;  %v5857_v32 = vsub.f32 %v5833_v46, %v5849_v30  ;;  %5875 = vadd.xlane.f32.xlu1 %v5874_v16  ;;  %v10128_v25 = vld [vmem:[%s12991_s8 + $0xe0] sm:$0xff]   ;;  %v10129_v30 = vld [vmem:[%s12991_s8 + $0xe8] sm:$0xff]   ;;  %v10130_v16 = vld [vmem:[%s12991_s8 + $0xf0] sm:$0xff]  }
0x2132   :  { %v5852_v31 = vpop.xlane.xlu1 %5851  ;;  %v5877_v17 = vsel %vm940_vm5, %v10467_v11, 0.0 }
0x2133   :  { %10468 = vpow2.f32 %v5865_v61  ;;  %v5867_v13 = vmul.f32 1.442695, %v5857_v32  ;;  %v5858_v42 = vsub.f32 %v5834_v29, %v5852_v31  ;;  %5878 = vadd.xlane.f32.xlu0 %v5877_v17  ;;  %v10132_v61 = vld [vmem:[%s12947_s13 + $0x30] sm:$0xff]  }
0x2135   :  { %10470 = vpow2.f32 %v5867_v13  ;;  %v5869_v47 = vmul.f32 1.442695, %v5858_v42  ;;  %v10133_v42 = vld [vmem:[%s12990_s28 + $0xe0] sm:$0xff]  }
0x2137   :  { %10472 = vpow2.f32 %v5869_v47 }
0x213d   :  { %v10469_v1 = vpop.eup %10468 }
0x213e   :  { %v5880_v15 = vsel %vm940_vm5, %v10469_v1, 0.0 }
0x213f   :  { %v10471_v53 = vpop.eup %10470  ;;  %5881 = vadd.xlane.f32.xlu1 %v5880_v15  ;;  %v10135_v15 = vld [vmem:[%s12990_s28 + $0xf0] sm:$0xff]  }
0x2140   :  { %v5883_v60 = vsel %vm940_vm5, %v10471_v53, 0.0 }
0x2141   :  { %v10473_v62 = vpop.eup %10472  ;;  %5884 = vadd.xlane.f32.xlu0 %v5883_v60 }
0x2142   :  { %v5886_v36 = vsel %vm940_vm5, %v10473_v62, 0.0 }
0x2143   :  { %5887 = vadd.xlane.f32.xlu1 %v5886_v36 }
0x21bc   :  { %v5873_v44 = vpop.xlane.xlu0 %5872 }
0x21bd   :  { %10474 = vrcp.f32 %v5873_v44 }
0x21be   :  { %v5876_v39 = vpop.xlane.xlu1 %5875 }
0x21bf   :  { %10476 = vrcp.f32 %v5876_v39 }
0x21c0   :  { %v5879_v57 = vpop.xlane.xlu0 %5878 }
0x21c1   :  { %10478 = vrcp.f32 %v5879_v57 }
0x21c7   :  { %v10475_v38 = vpop.eup %10474 }
0x21c8   :  { %v5895_v45 = vmul.f32 %v10475_v38, %v10463_v9  ;;  %v8448_v38 = vld [vmem:[%s12992_s30 + $0x7] ss:$0 sm:$0xff] }
0x21c9   :  { %v10477_v3 = vpop.eup %10476 }
0x21ca   :  { %v5896_v56 = vmul.f32 %v10477_v3, %v10465_v35  ;;  %v10127_v35 = vld [vmem:[%s12987_s7 + $0xf8] sm:$0xff]  }
0x21cb   :  { %v10479_v51 = vpop.eup %10478 }
0x21cc   :  { %v5897_v29 = vmul.f32 %v10479_v51, %v10467_v11  ;;  %v5882_v46 = vpop.xlane.xlu1 %5881  ;;  %v5901_v48 = vpack.c.bf16 %v5896_v56, %v5895_v45  ;;  %v10131_v11 = vld [vmem:[%s12991_s8 + $0xf8] sm:$0xff]  }
0x21cd   :  { %10480 = vrcp.f32 %v5882_v46 }
0x21ce   :  { %v5902_v41 = vpack.c.bf16 %v5897_v29, %v5897_v29  ;;  %v5885_v50 = vpop.xlane.xlu0 %5884  ;;  %9801 = vmatprep.mubr.msk.bf16.mxu0 %vm940_vm5, %v5901_v48 }
0x21cf   :  { %10482 = vrcp.f32 %v5885_v50 }
0x21d0   :  { %v5888_v24 = vpop.xlane.xlu1 %5887  ;;  %9802 = vmatmul.mubr.msk.bf16.vlgmr.msra.gmra.mrb[216].mxu0 %vm940_vm5, %v5902_v41 }
0x21d1   :  { %10484 = vrcp.f32 %v5888_v24  ;;  %9815 = vmatprep.mubr.msk.bf16.mxu0 %vm10574_vm1, %v10573_v34  ;;  %9814 = vmatpush3.bf16.msra.mxu0 %v10132_v61 }
0x21d2   :  { %9847 = vmatprep.subr.bf16.mxu0 %v10573_v34 }
0x21d7   :  { %v10481_v4 = vpop.eup %10480 }
0x21d8   :  { %v5898_v37 = vmul.f32 %v10481_v4, %v10469_v1  ;;  %v10134_v1 = vld [vmem:[%s12990_s28 + $0xe8] sm:$0xff]  }
0x21d9   :  { %v10483_v26 = vpop.eup %10482 }
0x21da   :  { %v5899_v22 = vmul.f32 %v10483_v26, %v10471_v53  ;;  %v10136_v53 = vld [vmem:[%s12990_s28 + $0xf8] sm:$0xff]  }
0x21db   :  { %v10485_v43 = vpop.eup %10484 }
0x21dc   :  { %v5900_v8 = vmul.f32 %v10485_v43, %v10473_v62  ;;  %v5903_v20 = vpack.c.bf16 %v5899_v22, %v5898_v37 }
0x21de   :  { %9809 = vmatprep.mubr.msk.bf16.mxu1 %vm940_vm5, %v5903_v20  ;;  %v5904_v9 = vpack.c.bf16 %v5900_v8, %v5900_v8 }
0x21e0   :  { %9810 = vmatmul.mubr.msk.bf16.vlgmr.msra.gmra.mrb[248].mxu1 %vm940_vm5, %v5904_v9 }
0x21e1   :  { %9828 = vmatpush3.bf16.msra.mxu1 %v10124_v54  ;;  %9835 = vmatprep.mubr.msk.bf16.mxu1 %vm10574_vm1, %v10573_v34 }
0x21e2   :  { %9829 = vmatprep.subr.bf16.mxu1 %v10573_v34 }
0x21e5   :  { %9830 = vmatpush3.bf16.msra.mxu1 %v10125_v2 }
0x21e6   :  { %9831 = vmatprep.subr.bf16.mxu1 %v10573_v34 }
0x21e9   :  { %9832 = vmatpush3.bf16.msra.mxu1 %v10126_v28 }
0x21ea   :  { %9833 = vmatprep.subr.bf16.mxu1 %v10573_v34 }
0x21ed   :  { %9834 = vmatpush3.bf16.msra.mxu1 %v10127_v35 }
0x21ee   :  { %9867 = vmatprep.subr.bf16.mxu1 %v10573_v34 }
0x21f0   :  { %9836 = vmatmul.mubr.msk.bf16.vlgmr.msra.gmra.mrb[252].mxu1 %vm219_vm0, %v11927_v7 }
0x21f1   :  { %9839 = vmatprep.mubr.msk.bf16.mxu1 %vm10574_vm1, %v10573_v34  ;;  %9868 = vmatpush3.bf16.msra.mxu1 %v10128_v25 }
0x21f2   :  { %9869 = vmatprep.subr.bf16.mxu1 %v10573_v34 }
0x21f5   :  { %9870 = vmatpush3.bf16.msra.mxu1 %v10129_v30 }
0x21f6   :  { %9871 = vmatprep.subr.bf16.mxu1 %v10573_v34 }
0x21f8   :  { %9840 = vmatmul.mubr.msk.bf16.gmra.mrb[0].mxu1 %vm219_vm0, %v11954_v5 }
0x21f9   :  { %9843 = vmatprep.mubr.msk.bf16.mxu1 %vm10574_vm1, %v10573_v34  ;;  %9872 = vmatpush3.bf16.msra.mxu1 %v10130_v16 }
0x21fa   :  { %9873 = vmatprep.subr.bf16.mxu1 %v10573_v34 }
0x21fd   :  { %9874 = vmatpush3.bf16.msra.mxu1 %v10131_v11 }
0x2200   :  { %9844 = vmatmul.mubr.msk.bf16.gmra.mrb[4].mxu1 %vm219_vm0, %v11966_v19 }
0x2201   :  { %9875 = vmatprep.mubr.msk.bf16.mxu1 %vm10574_vm1, %v10573_v34 }
0x2208   :  { %9876 = vmatmul.mubr.msk.bf16.vlgmr.msra.gmra.mrb[8].mxu1 %vm219_vm0, %v11927_v7 }
0x2209   :  { %9879 = vmatprep.mubr.msk.bf16.mxu1 %vm10574_vm1, %v10573_v34 }
0x2210   :  { %9880 = vmatmul.mubr.msk.bf16.gmra.mrb[12].mxu1 %vm219_vm0, %v11954_v5 }
0x2211   :  { %9883 = vmatprep.mubr.msk.bf16.mxu1 %vm10574_vm1, %v10573_v34 }
0x2218   :  { %9884 = vmatmul.mubr.msk.bf16.gmra.mrb[16].mxu1 %vm219_vm0, %v11966_v19 }
0x22a3   :  { %v9803_v32 = vpop.f32.mrb[216].mxu0 }
0x22a4   :  { %v5952_v31 = vpop.f32.mrb[217].mxu0 }
0x22a5   :  { %v9804_v17 = vpop.f32.mrb[218].mxu0 }
0x22a6   :  { %v5955_v13 = vpop.f32.mrb[219].mxu0 }
0x22a7   :  { %v6023_v47 = vpack.c.bf16 %v5955_v13, %v5952_v31 }
0x22a9   :  { %9816 = vmatmul.mubr.msk.bf16.vlgmr.msra.gmra.mrb[220].mxu0 %vm807_vm2, %v6023_v47 }
0x22aa   :  { %9819 = vmatprep.mubr.msk.bf16.mxu0 %vm10574_vm1, %v10573_v34  ;;  %9848 = vmatpush3.bf16.msra.mxu0 %v10133_v42 }
0x22ab   :  { %9849 = vmatprep.subr.bf16.mxu0 %v10573_v34 }
0x22ae   :  { %9850 = vmatpush3.bf16.msra.mxu0 %v10134_v1 }
0x22af   :  { %9851 = vmatprep.subr.bf16.mxu0 %v10573_v34 }
0x22b2   :  { %9852 = vmatpush3.bf16.msra.mxu0 %v10135_v15 }
0x22b3   :  { %v9811_v60 = vpop.f32.mrb[248].mxu1  ;;  %9853 = vmatprep.subr.bf16.mxu0 %v10573_v34 }
0x22b4   :  { %v6009_v62 = vpop.f32.mrb[249].mxu1 }
0x22b5   :  { %v6024_v36 = vpack.c.bf16 %v6009_v62, %v9803_v32  ;;  %v9812_v44 = vpop.f32.mrb[250].mxu1 }
0x22b6   :  { %v6012_v39 = vpop.f32.mrb[251].mxu1  ;;  %9854 = vmatpush3.bf16.msra.mxu0 %v10136_v53 }
0x22b7   :  { %v6025_v57 = vpack.c.bf16 %v9811_v60, %v6012_v39  ;;  %9820 = vmatmul.mubr.msk.bf16.gmra.mrb[224].mxu0 %vm807_vm2, %v6024_v36 }
0x22b8   :  { %9823 = vmatprep.mubr.msk.bf16.mxu0 %vm10574_vm1, %v10573_v34 }
0x22bf   :  { %9824 = vmatmul.mubr.msk.bf16.gmra.mrb[228].mxu0 %vm807_vm2, %v6025_v57 }
0x22c0   :  { %9855 = vmatprep.mubr.msk.bf16.mxu0 %vm10574_vm1, %v10573_v34 }
0x22c3   :  { %v6182_v3 = vpop.f32.mrb[252].mxu1 }
0x22c4   :  { %v9837_v45 = vpop.f32.mrb[253].mxu1  ;;  %v6183_v51 = vadd.f32 %v8448_v38, %v6182_v3 }
0x22c5   :  { %v6185_v56 = vpop.f32.mrb[254].mxu1 }
0x22c6   :  { %v6186_v29 = vadd.f32 %v8448_v38, %v6185_v56  ;;  %v9838_v46 = vpop.f32.mrb[255].mxu1 }
0x22c7   :  { %9856 = vmatmul.mubr.msk.bf16.vlgmr.msra.gmra.mrb[232].mxu0 %vm219_vm0, %v11927_v7 }
0x22c8   :  { %v6401_v48 = vpack.c.bf16 %v6186_v29, %v6183_v51  ;;  %9859 = vmatprep.mubr.msk.bf16.mxu0 %vm10574_vm1, %v10573_v34 }
0x22cb   :  { %v6190_v41 = vpop.f32.mrb[0].mxu1 }
0x22cc   :  { %v12472_v50 = vadd.f32 %v8448_v38, %v6190_v41  ;;  %v9841_v24 = vpop.f32.mrb[1].mxu1 }
0x22cd   :  { %v6193_v4 = vpop.f32.mrb[2].mxu1 }
0x22ce   :  { %v9842_v26 = vpop.f32.mrb[3].mxu1  ;;  %v6194_v22 = vadd.f32 %v8448_v38, %v6193_v4 }
0x22cf   :  { %9860 = vmatmul.mubr.msk.bf16.gmra.mrb[236].mxu0 %vm219_vm0, %v11954_v5  ;;  %v12487_v5 = vld [vmem:[%s12946_s12 + $0x7] ss:$0 sm:$0xff] }
0x22d0   :  { %9863 = vmatprep.mubr.msk.bf16.mxu0 %vm10574_vm1, %v10573_v34 }
0x22d3   :  { %v6198_v37 = vpop.f32.mrb[4].mxu1 }
0x22d4   :  { %v6199_v43 = vadd.f32 %v8448_v38, %v6198_v37  ;;  %v9845_v7 = vpop.f32.mrb[5].mxu1 }
0x22d5   :  { %v6201_v8 = vpop.f32.mrb[6].mxu1 }
0x22d6   :  { %v6403_v20 = vpack.c.bf16 %v6199_v43, %v6194_v22  ;;  %v12478_v54 = vadd.f32 %v8448_v38, %v6201_v8  ;;  %v9846_v9 = vpop.f32.mrb[7].mxu1 }
0x22d7   :  { %9864 = vmatmul.mubr.msk.bf16.gmra.mrb[240].mxu0 %vm219_vm0, %v11966_v19 }
0x22d8   :  { %9899 = vmatprep.mubr.msk.bf16.mxu1 %vm807_vm2, %v6403_v20  ;;  %9891 = vmatprep.mubr.msk.bf16.mxu0 %vm807_vm2, %v6401_v48 }
0x22db   :  { %v6378_v2 = vpop.f32.mrb[8].mxu1 }
0x22dc   :  { %v9877_v28 = vpop.f32.mrb[9].mxu1  ;;  %v6379_v25 = vadd.f32 %v12487_v5, %v6378_v2 }
0x22dd   :  { %v6381_v35 = vpop.f32.mrb[10].mxu1 }
0x22de   :  { %v6382_v30 = vadd.f32 %v12487_v5, %v6381_v35  ;;  %v9878_v16 = vpop.f32.mrb[11].mxu1 }
0x22e0   :  { %v12491_v11 = vpack.c.bf16 %v6382_v30, %v6379_v25 }
0x22e3   :  { %v6386_v19 = vpop.f32.mrb[12].mxu1 }
0x22e4   :  { %v9881_v61 = vpop.f32.mrb[13].mxu1 }
0x22e5   :  { %v6389_v32 = vpop.f32.mrb[14].mxu1 }
0x22e6   :  { %v9882_v31 = vpop.f32.mrb[15].mxu1  ;;  %v6390_v13 = vadd.f32 %v12487_v5, %v6389_v32 }
0x22eb   :  { %v6394_v17 = vpop.f32.mrb[16].mxu1 }
0x22ec   :  { %v6395_v42 = vadd.f32 %v12487_v5, %v6394_v17  ;;  %v9885_v47 = vpop.f32.mrb[17].mxu1  ;;  %v6387_v17 = vadd.f32 %v12487_v5, %v6386_v19  ;;  %v6404_v19 = vpack.c.bf16 %v12478_v54, %v12478_v54 }
0x22ed   :  { %v6397_v1 = vpop.f32.mrb[18].mxu1 }
0x22ee   :  { %v12495_v15 = vpack.c.bf16 %v6395_v42, %v6390_v13  ;;  %v12498_v53 = vadd.f32 %v12487_v5, %v6397_v1  ;;  %v9886_v60 = vpop.f32.mrb[19].mxu1  ;;  %v6402_v1 = vpack.c.bf16 %v12472_v50, %v12472_v50 }
0x237c   :  { %v6078_v62 = vpop.f32.mrb[220].mxu0 }
0x237d   :  { %v12501_v36 = vadd.f32 %v6078_v62, %v12324_v40  ;;  %v9817_v44 = vpop.f32.mrb[221].mxu0 }
0x237e   :  { %v6081_v39 = vpop.f32.mrb[222].mxu0  ;;  %v6612_v44 = vpack.c.bf16 %v6387_v17, %v6387_v17 }
0x237f   :  { %v12504_v57 = vadd.f32 %v6081_v39, %v12327_v18  ;;  %v9818_v38 = vpop.f32.mrb[223].mxu0 }
0x2380   :  { %v6622_v5 = vsel %vm1021_vm3, %v6612_v44, 0 }
0x238a   :  { %v6086_v3 = vpop.f32.mrb[224].mxu0 }
0x238b   :  { %v12507_v45 = vadd.f32 %v6086_v3, %v12330_v10  ;;  %v9821_v56 = vpop.f32.mrb[225].mxu0  ;;  %v8465_v10 = vld [vmem:[%s12945_s11 + $0x7] ss:$0 sm:$0xff] }
0x238c   :  { %v6089_v51 = vpop.f32.mrb[226].mxu0 }
0x238d   :  { %v12510_v29 = vadd.f32 %v6089_v51, %v12333_v59  ;;  %v9822_v46 = vpop.f32.mrb[227].mxu0 }
0x2392   :  { %v6094_v48 = vpop.f32.mrb[228].mxu0 }
0x2393   :  { %v12513_v40 = vadd.f32 %v6094_v48, %v12335_v49  ;;  %v9825_v41 = vpop.f32.mrb[229].mxu0 }
0x2394   :  { %v6097_v24 = vpop.f32.mrb[230].mxu0 }
0x2395   :  { %v12516_v18 = vadd.f32 %v6097_v24, %v12337_v21  ;;  %v9826_v4 = vpop.f32.mrb[231].mxu0 }
0x239a   :  { %v6280_v26 = vpop.f32.mrb[232].mxu0 }
0x239b   :  { %v9857_v37 = vpop.f32.mrb[233].mxu0  ;;  %v6281_v59 = vadd.f32 %v8465_v10, %v6280_v26 }
0x239c   :  { %v6283_v22 = vpop.f32.mrb[234].mxu0 }
0x239d   :  { %v6284_v43 = vadd.f32 %v8465_v10, %v6283_v22  ;;  %v9858_v7 = vpop.f32.mrb[235].mxu0 }
0x239f   :  { %v6405_v8 = vpack.c.bf16 %v6284_v43, %v6281_v59 }
0x23a1   :  { %9975 = vmatprep.subr.msk.bf16.mxu0 %vm807_vm2, %v6405_v8  ;;  %v6416_v49 = vsel %vm807_vm2, %v6405_v8, 0 }
0x23a2   :  { %v6288_v20 = vpop.f32.mrb[236].mxu0  ;;  %9888 = vmatpush3.bf16.xpose.msra.mxu0 %v6416_v49 }
0x23a3   :  { %v6289_v21 = vadd.f32 %v8465_v10, %v6288_v20  ;;  %v9861_v9 = vpop.f32.mrb[237].mxu0 }
0x23a4   :  { %v6291_v2 = vpop.f32.mrb[238].mxu0 }
0x23a5   :  { %v6406_v28 = vpack.c.bf16 %v6289_v21, %v6289_v21  ;;  %v9862_v35 = vpop.f32.mrb[239].mxu0  ;;  %v6292_v16 = vadd.f32 %v8465_v10, %v6291_v2 }
0x23a7   :  { %9976 = vmatprep.subr.msk.bf16.mxu0 %vm807_vm2, %v6406_v28  ;;  %v6419_v25 = vsel %vm807_vm2, %v6406_v28, 0 }
0x23aa   :  { %v6296_v30 = vpop.f32.mrb[240].mxu0  ;;  %9890 = vmatpush3.bf16.xpose.msra.mxu0 %v6419_v25 }
0x23ab   :  { %v6297_v61 = vadd.f32 %v8465_v10, %v6296_v30  ;;  %v9865_v32 = vpop.f32.mrb[241].mxu0  ;;  %9903 = vmatprep.subr.bf16.mxu0 %v12491_v11 }
0x23ac   :  { %v6299_v31 = vpop.f32.mrb[242].mxu0 }
0x23ad   :  { %v6407_v13 = vpack.c.bf16 %v6297_v61, %v6292_v16  ;;  %v6300_v42 = vadd.f32 %v8465_v10, %v6299_v31  ;;  %v9866_v47 = vpop.f32.mrb[243].mxu0 }
0x23af   :  { %v6408_v60 = vpack.c.bf16 %v6300_v42, %v6300_v42  ;;  %9977 = vmatprep.subr.msk.bf16.mxu1 %vm807_vm2, %v6407_v13  ;;  %v6476_v62 = vsel %vm807_vm2, %v6407_v13, 0 }
0x23b0   :  { %9896 = vmatpush3.bf16.xpose.msra.mxu1 %v6476_v62 }
0x23b1   :  { %9892 = vmatmul.mubr.msk.bf16.vlgmr.msra.gmra.mrb[244].mxu0 %vm807_vm2, %v6402_v1  ;;  %9978 = vmatprep.subr.msk.bf16.mxu1 %vm807_vm2, %v6408_v60  ;;  %v6479_v50 = vsel %vm807_vm2, %v6408_v60, 0 }
0x23b2   :  { %9904 = vmatpush3.bf16.msra.mxu0 %v12491_v11 }
0x23b3   :  { %9979 = vmatprep.subr.msk.bf16.mxu0 %vm1021_vm3, %v6612_v44 }
0x23b6   :  { %9906 = vmatpush3.bf16.msra.mxu0 %v6622_v5 }
0x23b7   :  { %9911 = vmatprep.subr.bf16.mxu0 %v12495_v15 }
0x23b8   :  { %9898 = vmatpush3.bf16.xpose.msra.mxu1 %v6479_v50 }
0x23b9   :  { %9919 = vmatprep.subr.bf16.mxu1 %v10573_v34 }
0x23bf   :  { %9900 = vmatmul.mubr.msk.bf16.vlgmr.msra.gmra.mrb[20].mxu1 %vm807_vm2, %v6404_v19 }
0x23c0   :  { %9921 = vmatprep.mubr.msk.bf16.mxu1 %vm10574_vm1, %v10573_v34 }
0x2484   :  { %v9893_v11 = vpop.f32.mrb[244].mxu0 }
0x2485   :  { %v6455_v39 = vpop.f32.mrb[245].mxu0  ;;  %v6531_v38 = vmul.f32 0.25, %v9893_v11 }
0x2486   :  { %v6529_v3 = vmul.f32 0.25, %v6455_v39  ;;  %v9894_v56 = vpop.f32.mrb[246].mxu0 }
0x2487   :  { %v6458_v51 = vpop.f32.mrb[247].mxu0  ;;  %v6537_v41 = vadd.f32 %v6531_v38, %v11024_v14 }
0x2488   :  { %v6535_v46 = vadd.f32 %v6529_v3, %v11024_v14  ;;  %v6530_v48 = vmul.f32 0.25, %v6458_v51 }
0x2489   :  { %v6547_v10 = vsel %vm940_vm5, %v6537_v41, -inf }
0x248a   :  { %v6536_v24 = vadd.f32 %v6530_v48, %v11024_v14  ;;  %v6541_v54 = vsel %vm940_vm5, %v6535_v46, -inf }
0x248b   :  { %6542 = vmax.xlane.f32.xlu0 %v6541_v54 }
0x248c   :  { %v6544_v4 = vsel %vm940_vm5, %v6536_v24, -inf }
0x248d   :  { %6545 = vmax.xlane.f32.xlu1 %v6544_v4 }
0x248f   :  { %6548 = vmax.xlane.f32.xlu0 %v6547_v10 }
0x2492   :  { %v9901_v26 = vpop.f32.mrb[20].mxu1 }
0x2493   :  { %v6515_v37 = vpop.f32.mrb[21].mxu1  ;;  %v6534_v22 = vmul.f32 0.25, %v9901_v26 }
0x2494   :  { %v6532_v59 = vmul.f32 0.25, %v6515_v37  ;;  %v9902_v43 = vpop.f32.mrb[22].mxu1 }
0x2495   :  { %v6518_v7 = vpop.f32.mrb[23].mxu1  ;;  %v6540_v20 = vadd.f32 %v6534_v22, %v11024_v14 }
0x2496   :  { %v6538_v8 = vadd.f32 %v6532_v59, %v11024_v14  ;;  %v6533_v49 = vmul.f32 0.25, %v6518_v7 }
0x2497   :  { %v6556_v28 = vsel %vm940_vm5, %v6540_v20, -inf }
0x2498   :  { %v6539_v21 = vadd.f32 %v6533_v49, %v11024_v14  ;;  %v6550_v9 = vsel %vm940_vm5, %v6538_v8, -inf }
0x2499   :  { %6551 = vmax.xlane.f32.xlu1 %v6550_v9 }
0x249a   :  { %v6553_v2 = vsel %vm940_vm5, %v6539_v21, -inf }
0x249b   :  { %6554 = vmax.xlane.f32.xlu0 %v6553_v2 }
0x249d   :  { %6557 = vmax.xlane.f32.xlu1 %v6556_v28  ;;  %v6614_v28 = vpack.c.bf16 %v12498_v53, %v12498_v53 }
0x2518   :  { %v6543_v35 = vpop.xlane.xlu0 %6542 }
0x2519   :  { %v6559_v25 = vsub.f32 %v6535_v46, %v6543_v35  ;;  %v6679_v35 = vsel %vm1021_vm3, %v6614_v28, 0 }
0x251a   :  { %v6546_v30 = vpop.xlane.xlu1 %6545 }
0x251b   :  { %v6565_v16 = vmul.f32 1.442695, %v6559_v25  ;;  %v6560_v61 = vsub.f32 %v6536_v24, %v6546_v30 }
0x251c   :  { %v6549_v32 = vpop.xlane.xlu0 %6548 }
0x251d   :  { %10486 = vpow2.f32 %v6565_v16  ;;  %v6567_v31 = vmul.f32 1.442695, %v6560_v61  ;;  %v6561_v17 = vsub.f32 %v6537_v41, %v6549_v32 }
0x251f   :  { %10488 = vpow2.f32 %v6567_v31  ;;  %v6569_v14 = vmul.f32 1.442695, %v6561_v17 }
0x2521   :  { %10490 = vpow2.f32 %v6569_v14 }
0x2526   :  { %v6552_v13 = vpop.xlane.xlu1 %6551 }
0x2527   :  { %v10487_v42 = vpop.eup %10486  ;;  %v6562_v47 = vsub.f32 %v6538_v8, %v6552_v13 }
0x2528   :  { %v6555_v1 = vpop.xlane.xlu0 %6554  ;;  %v6577_v60 = vsel %vm940_vm5, %v10487_v42, 0.0 }
0x2529   :  { %v10489_v62 = vpop.eup %10488  ;;  %v6571_v44 = vmul.f32 1.442695, %v6562_v47  ;;  %v6563_v5 = vsub.f32 %v6539_v21, %v6555_v1  ;;  %6578 = vadd.xlane.f32.xlu0 %v6577_v60 }
0x252a   :  { %v6558_v50 = vpop.xlane.xlu1 %6557  ;;  %v6580_v19 = vsel %vm940_vm5, %v10489_v62, 0.0 }
0x252b   :  { %v10491_v11 = vpop.eup %10490  ;;  %10492 = vpow2.f32 %v6571_v44  ;;  %v6573_v39 = vmul.f32 1.442695, %v6563_v5  ;;  %v6564_v38 = vsub.f32 %v6540_v20, %v6558_v50  ;;  %6581 = vadd.xlane.f32.xlu1 %v6580_v19 }
0x252c   :  { %v6583_v3 = vsel %vm940_vm5, %v10491_v11, 0.0 }
0x252d   :  { %10494 = vpow2.f32 %v6573_v39  ;;  %v6575_v56 = vmul.f32 1.442695, %v6564_v38  ;;  %6584 = vadd.xlane.f32.xlu0 %v6583_v3  ;;  %v8505_v3 = vld [vmem:[%s12948_s14 + $0x1] ss:$0 sm:$0xff] }
0x252f   :  { %10496 = vpow2.f32 %v6575_v56 }
0x2535   :  { %v10493_v51 = vpop.eup %10492 }
0x2536   :  { %v6586_v46 = vsel %vm940_vm5, %v10493_v51, 0.0 }
0x2537   :  { %v10495_v48 = vpop.eup %10494  ;;  %6587 = vadd.xlane.f32.xlu1 %v6586_v46 }
0x2538   :  { %v6589_v41 = vsel %vm940_vm5, %v10495_v48, 0.0 }
0x2539   :  { %v10497_v24 = vpop.eup %10496  ;;  %6590 = vadd.xlane.f32.xlu0 %v6589_v41 }
0x253a   :  { %v6592_v54 = vsel %vm940_vm5, %v10497_v24, 0.0 }
0x253b   :  { %6593 = vadd.xlane.f32.xlu1 %v6592_v54 }
0x25b6   :  { %v6579_v4 = vpop.xlane.xlu0 %6578 }
0x25b7   :  { %10498 = vrcp.f32 %v6579_v4 }
0x25b8   :  { %v6582_v10 = vpop.xlane.xlu1 %6581 }
0x25b9   :  { %10500 = vrcp.f32 %v6582_v10 }
0x25ba   :  { %v6585_v26 = vpop.xlane.xlu0 %6584 }
0x25bb   :  { %10502 = vrcp.f32 %v6585_v26 }
0x25c1   :  { %v10499_v37 = vpop.eup %10498 }
0x25c2   :  { %v6601_v43 = vmul.f32 %v10499_v37, %v10487_v42 }
0x25c3   :  { %v10501_v22 = vpop.eup %10500 }
0x25c4   :  { %v6588_v59 = vpop.xlane.xlu1 %6587  ;;  %v6602_v7 = vmul.f32 %v10501_v22, %v10489_v62 }
0x25c5   :  { %v10503_v8 = vpop.eup %10502  ;;  %10504 = vrcp.f32 %v6588_v59 }
0x25c6   :  { %v6603_v49 = vmul.f32 %v10503_v8, %v10491_v11  ;;  %v6591_v20 = vpop.xlane.xlu0 %6590  ;;  %v6607_v21 = vpack.c.bf16 %v6602_v7, %v6601_v43 }
0x25c7   :  { %10506 = vrcp.f32 %v6591_v20 }
0x25c8   :  { %9907 = vmatprep.mubr.msk.bf16.mxu0 %vm940_vm5, %v6607_v21  ;;  %v6594_v9 = vpop.xlane.xlu1 %6593  ;;  %v6608_v2 = vpack.c.bf16 %v6603_v49, %v6603_v49 }
0x25c9   :  { %10508 = vrcp.f32 %v6594_v9 }
0x25ca   :  { %9908 = vmatmul.mubr.msk.bf16.vlgmr.msra.gmra.mrb[248].mxu0 %vm940_vm5, %v6608_v2 }
0x25cb   :  { %9912 = vmatpush3.bf16.msra.mxu0 %v12495_v15  ;;  %v10137_v15 = vld [vmem:[%s12947_s13 + $0x38] sm:$0xff]  }
0x25cc   :  { %9980 = vmatprep.subr.msk.bf16.mxu0 %vm1021_vm3, %v6614_v28  ;;  %9920 = vmatpush3.bf16.msra.mxu1 %v10137_v15 }
0x25cf   :  { %v10505_v25 = vpop.eup %10504  ;;  %9914 = vmatpush3.bf16.msra.mxu0 %v6679_v35 }
0x25d0   :  { %v6604_v16 = vmul.f32 %v10505_v25, %v10493_v51 }
0x25d1   :  { %v10507_v30 = vpop.eup %10506 }
0x25d2   :  { %v6605_v61 = vmul.f32 %v10507_v30, %v10495_v48 }
0x25d3   :  { %v10509_v32 = vpop.eup %10508 }
0x25d4   :  { %v6606_v31 = vmul.f32 %v10509_v32, %v10497_v24  ;;  %v6609_v17 = vpack.c.bf16 %v6605_v61, %v6604_v16 }
0x25d6   :  { %9915 = vmatprep.mubr.msk.bf16.mxu0 %vm940_vm5, %v6609_v17  ;;  %v6610_v14 = vpack.c.bf16 %v6606_v31, %v6606_v31 }
0x25d8   :  { %9916 = vmatmul.mubr.msk.bf16.vlgmr.msra.gmra.mrb[252].mxu0 %vm940_vm5, %v6610_v14 }
0x25d9   :  { %7045 = vmatprep.mubr.bf16.mxu0 %v10572_v0 }
0x269d   :  { %v9909_v53 = vpop.f32.mrb[248].mxu0 }
0x269e   :  { %v6658_v13 = vpop.f32.mrb[249].mxu0 }
0x269f   :  { %v9910_v42 = vpop.f32.mrb[250].mxu0 }
0x26a0   :  { %v6661_v47 = vpop.f32.mrb[251].mxu0 }
0x26a1   :  { %v6729_v1 = vpack.c.bf16 %v6661_v47, %v6658_v13 }
0x26a3   :  { %9922 = vmatmul.mubr.msk.bf16.vlgmr.msra.gmra.mrb[24].mxu1 %vm807_vm2, %v6729_v1 }
0x26a4   :  { %9925 = vmatprep.mubr.msk.bf16.mxu1 %vm10574_vm1, %v10573_v34 }
0x26ab   :  { %v9917_v60 = vpop.f32.mrb[252].mxu0 }
0x26ac   :  { %v6715_v62 = vpop.f32.mrb[253].mxu0 }
0x26ad   :  { %v6730_v44 = vpack.c.bf16 %v6715_v62, %v9909_v53  ;;  %v9918_v5 = vpop.f32.mrb[254].mxu0 }
0x26ae   :  { %v6718_v50 = vpop.f32.mrb[255].mxu0  ;;  %v10140_v5 = vld [vmem:[%s12949_s17 + $0x44] ss:$8 sps:$4 sm:$0xff]  }
0x26af   :  { %v6731_v19 = vpack.c.bf16 %v9917_v60, %v6718_v50  ;;  %9926 = vmatmul.mubr.msk.bf16.gmra.mrb[28].mxu1 %vm807_vm2, %v6730_v44  ;;  %v10138_v50 = vld [vmem:[%s12949_s17 + $0x40] ss:$8 sps:$4 sm:$0xff]   ;;  %7013 = vmatprep.subr.bf16.mxu0 %v10140_v5  ;;  %v10162_v5 = vld [vmem:[%s12952_s19 + $0xf0] sm:$0xff]  }
0x26b0   :  { %9929 = vmatprep.mubr.msk.bf16.mxu1 %vm10574_vm1, %v10573_v34  ;;  %7014 = vmatpush1.bf16.msra.mxu0 %v10138_v50  ;;  %v10163_v50 = vld [vmem:[%s12952_s19 + $0xb0] sm:$0xff]  }
0x26b7   :  { %9930 = vmatmul.mubr.msk.bf16.gmra.mrb[32].mxu1 %vm807_vm2, %v6731_v19  ;;  %v10143_v19 = vld [vmem:[%s12949_s17 + $0x54] ss:$8 sps:$4 sm:$0xff]  }
0x26b8   :  { %7015 = vmatprep.subr.bf16.mxu0 %v10143_v19  ;;  %v10164_v19 = vld [vmem:[%s12952_s19 + $0xf8] sm:$0xff]  }
0x2776   :  { %v6784_v11 = vpop.f32.mrb[24].mxu1 }
0x2777   :  { %v6807_v39 = vadd.f32 %v6784_v11, %v12501_v36  ;;  %v9923_v38 = vpop.f32.mrb[25].mxu1  ;;  %v10141_v11 = vld [vmem:[%s12949_s17 + $0x50] ss:$8 sps:$4 sm:$0xff]  }
0x2778   :  { %v6787_v56 = vpop.f32.mrb[26].mxu1  ;;  %7016 = vmatpush1.bf16.msra.mxu0 %v10141_v11  ;;  %v10144_v38 = vld [vmem:[%s12949_s17 + $0x60] ss:$8 sps:$4 sm:$0xff]   ;;  %v10165_v11 = vld [vmem:[%s12952_s19 + $0xb8] sm:$0xff]  }
0x2779   :  { %v6813_v51 = vadd.f32 %v6807_v39, %v11823_v12  ;;  %v6808_v46 = vadd.f32 %v6787_v56, %v12504_v57  ;;  %v9924_v48 = vpop.f32.mrb[27].mxu1  ;;  %v10146_v39 = vld [vmem:[%s12949_s17 + $0x64] ss:$8 sps:$4 sm:$0xff]   ;;  %v10147_v56 = vld [vmem:[%s12949_s17 + $0x70] ss:$8 sps:$4 sm:$0xff]  }
0x277a   :  { %7017 = vmatprep.subr.bf16.mxu0 %v10146_v39  ;;  %v8518_v39 = vld [vmem:[%s12953_s18 + $0x2] sm:$0x3] }
0x277b   :  { %v12588_v41 = vadd.f32 %v8505_v3, %v6813_v51  ;;  %v6814_v34 = vadd.f32 %v6808_v46, %v11826_v63 }
0x277c   :  { %7018 = vmatpush1.bf16.msra.mxu0 %v10144_v38  ;;  %v12736_v38 = vrot.slane %v8518_v39, %v3457_v58 }
0x277d   :  { %v6837_v24 = vsel %vm219_vm0, %v12588_v41, 0.0  ;;  %v6828_v54 = vadd.f32 %v8505_v3, %v6814_v34 }
0x277e   :  { %6838 = vadd.xlane.f32.xlu0 %v6837_v24 }
0x277f   :  { %v6840_v36 = vsel %vm219_vm0, %v6828_v54, 0.0 }
0x2780   :  { %6841 = vadd.xlane.f32.xlu1 %v6840_v36 }
0x2782   :  { %v6792_v4 = vpop.f32.mrb[28].mxu1 }
0x2783   :  { %v6809_v10 = vadd.f32 %v6792_v4, %v12507_v45  ;;  %v9927_v26 = vpop.f32.mrb[29].mxu1 }
0x2784   :  { %v6795_v12 = vpop.f32.mrb[30].mxu1 }
0x2785   :  { %v6815_v57 = vadd.f32 %v6809_v10, %v11833_v23  ;;  %v6810_v37 = vadd.f32 %v6795_v12, %v12510_v29  ;;  %v9928_v22 = vpop.f32.mrb[31].mxu1  ;;  %v12656_v12 = vld [vmem:[%s12950_s15 + $0x1] ss:$0 sm:$0xff] }
0x2787   :  { %v6816_v63 = vadd.f32 %v6810_v37, %v11836_v27  ;;  %v6829_v59 = vadd.f32 %v8505_v3, %v6815_v57 }
0x2789   :  { %v12598_v43 = vadd.f32 %v8505_v3, %v6816_v63  ;;  %v6843_v7 = vsel %vm219_vm0, %v6829_v59, 0.0 }
0x278a   :  { %6844 = vadd.xlane.f32.xlu0 %v6843_v7  ;;  %v6800_v8 = vpop.f32.mrb[32].mxu1 }
0x278b   :  { %v6811_v49 = vadd.f32 %v6800_v8, %v12513_v40  ;;  %v9931_v20 = vpop.f32.mrb[33].mxu1  ;;  %v6846_v45 = vsel %vm219_vm0, %v12598_v43, 0.0 }
0x278c   :  { %6847 = vadd.xlane.f32.xlu1 %v6846_v45  ;;  %v6803_v23 = vpop.f32.mrb[34].mxu1  ;;  %v12662_v45 = vld [vmem:[%s12951_s16 + $0x1] ss:$0 sm:$0xff] }
0x278d   :  { %v6817_v29 = vadd.f32 %v6811_v49, %v11843_v6  ;;  %v6812_v21 = vadd.f32 %v6803_v23, %v12516_v18  ;;  %v9932_v27 = vpop.f32.mrb[35].mxu1 }
0x278f   :  { %v6818_v9 = vadd.f32 %v6812_v21, %v11846_v52  ;;  %v12607_v2 = vadd.f32 %v8505_v3, %v6817_v29 }
0x2791   :  { %v12609_v28 = vadd.f32 %v8505_v3, %v6818_v9  ;;  %v6849_v62 = vsel %vm219_vm0, %v12607_v2, 0.0  ;;  %v10149_v3 = vld [vmem:[%s12949_s17 + $0x74] ss:$8 sps:$4 sm:$0xff]  }
0x2792   :  { %7019 = vmatprep.subr.bf16.mxu0 %v10149_v3  ;;  %v12740_v3 = vrot.slane %v8518_v39, %v3461_v55 }
0x2793   :  { %v6852_v44 = vsel %vm219_vm0, %v12609_v28, 0.0  ;;  %7020 = vmatpush1.bf16.msra.mxu0 %v10147_v56 }
0x280b   :  { %v6839_v35 = vpop.xlane.xlu0 %6838 }
0x280c   :  { %v6855_v25 = vmul.f32 0.015625, %v6839_v35 }
0x280d   :  { %v6842_v40 = vpop.xlane.xlu1 %6841 }
0x280e   :  { %v6861_v30 = vsub.f32 %v12588_v41, %v6855_v25  ;;  %v6856_v16 = vmul.f32 0.015625, %v6842_v40 }
0x2810   :  { %v6862_v61 = vsub.f32 %v6828_v54, %v6856_v16  ;;  %v6867_v32 = vmul.f32 %v6861_v30, %v6861_v30 }
0x2812   :  { %v6873_v31 = vsel %vm219_vm0, %v6867_v32, 0.0  ;;  %v6868_v6 = vmul.f32 %v6862_v61, %v6862_v61 }
0x2813   :  { %6874 = vadd.xlane.f32.xlu0 %v6873_v31 }
0x2814   :  { %v6876_v18 = vsel %vm219_vm0, %v6868_v6, 0.0 }
0x2815   :  { %6877 = vadd.xlane.f32.xlu1 %v6876_v18 }
0x2817   :  { %v6845_v52 = vpop.xlane.xlu0 %6844 }
0x2818   :  { %v6857_v17 = vmul.f32 0.015625, %v6845_v52  ;;  %v10150_v52 = vld [vmem:[%s12952_s19 + $0xc0] sm:$0xff]  }
0x2819   :  { %v6848_v14 = vpop.xlane.xlu1 %6847  ;;  %9007 = vmatprep.subr.bf16.mxu1 %v10150_v52 }
0x281a   :  { %v12614_v15 = vsub.f32 %v6829_v59, %v6857_v17  ;;  %v6858_v53 = vmul.f32 0.015625, %v6848_v14  ;;  %v10151_v17 = vld [vmem:[%s12952_s19 + $0x80] sm:$0xff]   ;;  %v10152_v14 = vld [vmem:[%s12952_s19 + $0xc8] sm:$0xff]  }
0x281b   :  { %9008 = vmatpush3.bf16.msra.mxu1 %v10151_v17 }
0x281c   :  { %v12617_v13 = vsub.f32 %v12598_v43, %v6858_v53  ;;  %v6869_v42 = vmul.f32 %v12614_v15, %v12614_v15  ;;  %9009 = vmatprep.subr.bf16.mxu1 %v10152_v14  ;;  %v10154_v53 = vld [vmem:[%s12952_s19 + $0xd0] sm:$0xff]  }
0x281e   :  { %v6879_v47 = vsel %vm219_vm0, %v6869_v42, 0.0  ;;  %v6870_v1 = vmul.f32 %v12617_v13, %v12617_v13  ;;  %v10156_v42 = vld [vmem:[%s12952_s19 + $0xd8] sm:$0xff]  }
0x281f   :  { %6880 = vadd.xlane.f32.xlu0 %v6879_v47  ;;  %v10157_v47 = vld [vmem:[%s12952_s19 + $0x98] sm:$0xff]  }
0x2820   :  { %v6882_v60 = vsel %vm219_vm0, %v6870_v1, 0.0  ;;  %v10158_v1 = vld [vmem:[%s12952_s19 + $0xe0] sm:$0xff]  }
0x2821   :  { %6883 = vadd.xlane.f32.xlu1 %v6882_v60  ;;  %v10159_v60 = vld [vmem:[%s12952_s19 + $0xa0] sm:$0xff]  }
0x2823   :  { %6850 = vadd.xlane.f32.xlu0 %v6849_v62  ;;  %v10160_v62 = vld [vmem:[%s12952_s19 + $0xe8] sm:$0xff]  }
0x2825   :  { %6853 = vadd.xlane.f32.xlu1 %v6852_v44  ;;  %v10161_v44 = vld [vmem:[%s12952_s19 + $0xa8] sm:$0xff]  }
0x28a0   :  { %v6875_v51 = vpop.xlane.xlu0 %6874 }
0x28a1   :  { %v6891_v46 = vmul.f32 0.015625, %v6875_v51 }
0x28a2   :  { %v6878_v48 = vpop.xlane.xlu1 %6877 }
0x28a3   :  { %v6897_v34 = vadd.f32 1e-05, %v6891_v46  ;;  %v6892_v24 = vmul.f32 0.015625, %v6878_v48 }
0x28a5   :  { %10510 = vrsqrt.f32 %v6897_v34  ;;  %v6898_v54 = vadd.f32 1e-05, %v6892_v24 }
0x28a7   :  { %10512 = vrsqrt.f32 %v6898_v54 }
0x28ac   :  { %v6881_v36 = vpop.xlane.xlu0 %6880 }
0x28ad   :  { %v6893_v4 = vmul.f32 0.015625, %v6881_v36 }
0x28ae   :  { %v6884_v10 = vpop.xlane.xlu1 %6883 }
0x28af   :  { %v10511_v26 = vpop.eup %10510  ;;  %v6899_v57 = vadd.f32 1e-05, %v6893_v4  ;;  %v6894_v37 = vmul.f32 0.015625, %v6884_v10 }
0x28b0   :  { %v6909_v22 = vmul.f32 %v10511_v26, %v6861_v30  ;;  %v6851_v63 = vpop.xlane.xlu0 %6850 }
0x28b1   :  { %v10513_v59 = vpop.eup %10512  ;;  %10514 = vrsqrt.f32 %v6899_v57  ;;  %v6900_v7 = vadd.f32 1e-05, %v6894_v37  ;;  %v6859_v8 = vmul.f32 0.015625, %v6851_v63 }
0x28b2   :  { %v6921_v49 = vmul.f32 %v12656_v12, %v6909_v22  ;;  %v6910_v20 = vmul.f32 %v10513_v59, %v6862_v61 }
0x28b3   :  { %10516 = vrsqrt.f32 %v6900_v7  ;;  %v12665_v23 = vsub.f32 %v12607_v2, %v6859_v8 }
0x28b4   :  { %v6922_v29 = vmul.f32 %v12656_v12, %v6910_v20  ;;  %v6933_v27 = vadd.f32 %v12662_v45, %v6921_v49 }
0x28b5   :  { %v6871_v21 = vmul.f32 %v12665_v23, %v12665_v23 }
0x28b6   :  { %v6934_v9 = vadd.f32 %v12662_v45, %v6922_v29 }
0x28b7   :  { %v6885_v35 = vsel %vm219_vm0, %v6871_v21, 0.0 }
0x28b8   :  { %v6939_v25 = vpack.c.bf16 %v6934_v9, %v6933_v27  ;;  %6886 = vadd.xlane.f32.xlu1 %v6885_v35 }
0x28ba   :  { %8527 = vmatmul.mubr.msk.bf16.vlgmr.msra.gmra.mrb[0].mxu0 %vm219_vm0, %v6939_v25 }
0x28bb   :  { %v10515_v40 = vpop.eup %10514  ;;  %7055 = vmatprep.mubr.bf16.mxu0 %v10572_v0 }
0x28bc   :  { %v6911_v2 = vmul.f32 %v10515_v40, %v12614_v15  ;;  %v10153_v15 = vld [vmem:[%s12952_s19 + $0x88] sm:$0xff]  }
0x28bd   :  { %v10517_v30 = vpop.eup %10516  ;;  %9010 = vmatpush3.bf16.msra.mxu1 %v10153_v15 }
0x28be   :  { %v6923_v16 = vmul.f32 %v12656_v12, %v6911_v2  ;;  %v6912_v61 = vmul.f32 %v10517_v30, %v12617_v13  ;;  %v10155_v13 = vld [vmem:[%s12952_s19 + $0x90] sm:$0xff]   ;;  %9011 = vmatprep.subr.bf16.mxu1 %v10154_v53 }
0x28c0   :  { %v6924_v32 = vmul.f32 %v12656_v12, %v6912_v61  ;;  %v6935_v31 = vadd.f32 %v12662_v45, %v6923_v16 }
0x28c1   :  { %9012 = vmatpush3.bf16.msra.mxu1 %v10155_v13 }
0x28c2   :  { %v6936_v6 = vadd.f32 %v12662_v45, %v6924_v32  ;;  %9013 = vmatprep.subr.bf16.mxu1 %v10156_v42 }
0x28c4   :  { %v6940_v18 = vpack.c.bf16 %v6936_v6, %v6935_v31 }
0x28c5   :  { %9014 = vmatpush3.bf16.msra.mxu1 %v10157_v47 }
0x28c6   :  { %8528 = vmatmul.mubr.msk.bf16.gmra.mrb[4].mxu0 %vm219_vm0, %v6940_v18  ;;  %9015 = vmatprep.subr.bf16.mxu1 %v10158_v1 }
0x28c7   :  { %7065 = vmatprep.mubr.bf16.mxu0 %v10572_v0 }
0x28c9   :  { %9016 = vmatpush3.bf16.msra.mxu1 %v10159_v60 }
0x28ca   :  { %9017 = vmatprep.subr.bf16.mxu1 %v10160_v62 }
0x28cd   :  { %9018 = vmatpush3.bf16.msra.mxu1 %v10161_v44 }
0x28ce   :  { %9019 = vmatprep.subr.bf16.mxu1 %v10162_v5 }
0x28d1   :  { %9020 = vmatpush3.bf16.msra.mxu1 %v10163_v50 }
0x28d2   :  { %9021 = vmatprep.subr.bf16.mxu1 %v10164_v19 }
0x28d5   :  { %9022 = vmatpush3.bf16.msra.mxu1 %v10165_v11 }
0x298d   :  { %v7047_v56 = vpop.f32.mrb[0].mxu0 }
0x298e   :  { %v7048_v51 = vadd.f32 %v7047_v56, %v12736_v38  ;;  %v7049_v46 = vpop.f32.mrb[1].mxu0 }
0x298f   :  { %v7050_v48 = vadd.f32 %v7049_v46, %v12740_v3  ;;  %v7051_v34 = vpop.f32.mrb[2].mxu0 }
0x2990   :  { %v8530_v24 = vmul.f32 -1.702, %v7048_v51  ;;  %v7052_v54 = vadd.f32 %v7051_v34, %v12736_v38  ;;  %v7053_v36 = vpop.f32.mrb[3].mxu0 }
0x2991   :  { %v8531_v4 = vmul.f32 -1.702, %v7050_v48  ;;  %v7054_v10 = vadd.f32 %v7053_v36, %v12740_v3 }
0x2992   :  { %v7100_v58 = vmul.f32 1.442695, %v8530_v24  ;;  %v8532_v26 = vmul.f32 -1.702, %v7052_v54 }
0x2993   :  { %v7102_v57 = vmul.f32 1.442695, %v8531_v4  ;;  %v8533_v33 = vmul.f32 -1.702, %v7054_v10 }
0x2994   :  { %10518 = vpow2.f32 %v7100_v58  ;;  %v7104_v55 = vmul.f32 1.442695, %v8532_v26 }
0x2995   :  { %10520 = vpow2.f32 %v7102_v57  ;;  %v7106_v37 = vmul.f32 1.442695, %v8533_v33 }
0x2996   :  { %10522 = vpow2.f32 %v7104_v55 }
0x2997   :  { %10524 = vpow2.f32 %v7106_v37 }
0x2999   :  { %v7057_v22 = vpop.f32.mrb[4].mxu0 }
0x299a   :  { %v7058_v63 = vadd.f32 %v7057_v22, %v12736_v38  ;;  %v7059_v59 = vpop.f32.mrb[5].mxu0 }
0x299b   :  { %v7060_v7 = vadd.f32 %v7059_v59, %v12740_v3  ;;  %v7061_v8 = vpop.f32.mrb[6].mxu0 }
0x299c   :  { %v8534_v49 = vmul.f32 -1.702, %v7058_v63  ;;  %v7062_v20 = vadd.f32 %v7061_v8, %v12736_v38  ;;  %v7063_v29 = vpop.f32.mrb[7].mxu0 }
0x299d   :  { %v8535_v21 = vmul.f32 -1.702, %v7060_v7  ;;  %v7064_v27 = vadd.f32 %v7063_v29, %v12740_v3  ;;  %v6854_v29 = vpop.xlane.xlu1 %6853 }
0x299e   :  { %v10519_v9 = vpop.eup %10518  ;;  %v7108_v35 = vmul.f32 1.442695, %v8534_v49  ;;  %v8536_v25 = vmul.f32 -1.702, %v7062_v20 }
0x299f   :  { %v10521_v40 = vpop.eup %10520  ;;  %v7124_v2 = vadd.f32 1.0, %v10519_v9  ;;  %v8537_v30 = vmul.f32 -1.702, %v7064_v27  ;;  %v7110_v6 = vmul.f32 1.442695, %v8535_v21 }
0x29a0   :  { %v10523_v16 = vpop.eup %10522  ;;  %v7125_v61 = vadd.f32 1.0, %v10521_v40  ;;  %10526 = vpow2.f32 %v7108_v35  ;;  %v7112_v52 = vmul.f32 1.442695, %v8536_v25  ;;  %v6860_v25 = vmul.f32 0.015625, %v6854_v29 }
0x29a1   :  { %v10525_v32 = vpop.eup %10524  ;;  %10528 = vrcp.f32 %v7124_v2  ;;  %v7126_v31 = vadd.f32 1.0, %v10523_v16  ;;  %v7114_v17 = vmul.f32 1.442695, %v8537_v30 }
0x29a2   :  { %10530 = vrcp.f32 %v7125_v61  ;;  %v7127_v18 = vadd.f32 1.0, %v10525_v32  ;;  %v6866_v40 = vsub.f32 %v12609_v28, %v6860_v25 }
0x29a3   :  { %10532 = vrcp.f32 %v7126_v31 }
0x29a4   :  { %10534 = vrcp.f32 %v7127_v18  ;;  %v6872_v32 = vmul.f32 %v6866_v40, %v6866_v40 }
0x29a5   :  { %10536 = vpow2.f32 %v7110_v6 }
0x29a6   :  { %10538 = vpow2.f32 %v7112_v52 }
0x29a7   :  { %10540 = vpow2.f32 %v7114_v17 }
0x29aa   :  { %v10527_v14 = vpop.eup %10526 }
0x29ab   :  { %v10529_v15 = vpop.eup %10528  ;;  %v7128_v42 = vadd.f32 1.0, %v10527_v14 }
0x29ac   :  { %v10531_v53 = vpop.eup %10530  ;;  %v7160_v1 = vmul.f32 %v10529_v15, %v7048_v51 }
0x29ad   :  { %v10533_v13 = vpop.eup %10532  ;;  %v7161_v44 = vmul.f32 %v10531_v53, %v7050_v48  ;;  %10542 = vrcp.f32 %v7128_v42 }
0x29ae   :  { %v10535_v47 = vpop.eup %10534  ;;  %v7162_v60 = vmul.f32 %v10533_v13, %v7052_v54 }
0x29af   :  { %v10537_v62 = vpop.eup %10536  ;;  %v7163_v5 = vmul.f32 %v10535_v47, %v7054_v10 }
0x29b0   :  { %v10539_v50 = vpop.eup %10538  ;;  %v7172_v19 = vpack.c.bf16 %v7162_v60, %v7160_v1  ;;  %v7129_v11 = vadd.f32 1.0, %v10537_v62 }
0x29b1   :  { %v10541_v39 = vpop.eup %10540  ;;  %v7130_v56 = vadd.f32 1.0, %v10539_v50  ;;  %v7173_v46 = vpack.c.bf16 %v7163_v5, %v7161_v44 }
0x29b2   :  { %10544 = vrcp.f32 %v7129_v11  ;;  %v7131_v34 = vadd.f32 1.0, %v10541_v39  ;;  %v10168_v11 = vld [vmem:[%s12955_s23 + $0x4] ss:$16 sps:$4 sm:$0xff]   ;;  %v10166_v39 = vld [vmem:[%s12955_s23] ss:$16 sps:$4 sm:$0xff]  }
0x29b3   :  { %10546 = vrcp.f32 %v7130_v56  ;;  %7339 = vmatprep.mubr.bf16.mxu1 %v7173_v46  ;;  %7507 = vmatprep.subr.bf16.mxu0 %v10168_v11  ;;  %v10172_v56 = vld [vmem:[%s12955_s23 + $0x40] ss:$16 sps:$4 sm:$0xff]   ;;  %v10177_v46 = vld [vmem:[%s12955_s23 + $0x64] ss:$16 sps:$4 sm:$0xff]   ;;  %v10210_v11 = vld [vmem:[%s12956_s24 + $0xd8] sm:$0xff]  }
0x29b4   :  { %10548 = vrcp.f32 %v7131_v34  ;;  %7340 = vmatmul.mubr.bf16.vlgmr.msra.gmra.mrb[36].mxu1 %v7172_v19  ;;  %7508 = vmatpush1.bf16.msra.mxu0 %v10166_v39  ;;  %v10175_v34 = vld [vmem:[%s12955_s23 + $0x60] ss:$16 sps:$4 sm:$0xff]  }
0x29b7   :  { %v10543_v24 = vpop.eup %10542 }
0x29b8   :  { %v7164_v4 = vmul.f32 %v10543_v24, %v7058_v63  ;;  %v10180_v24 = vld [vmem:[%s12955_s23 + $0xc] ss:$16 sps:$4 sm:$0xff]  }
0x29bc   :  { %v10545_v36 = vpop.eup %10544 }
0x29bd   :  { %v10547_v51 = vpop.eup %10546  ;;  %v7165_v10 = vmul.f32 %v10545_v36, %v7060_v7 }
0x29be   :  { %v10549_v54 = vpop.eup %10548  ;;  %v7166_v48 = vmul.f32 %v10547_v51, %v7062_v20  ;;  %v8591_v20 = vld [vmem:[%s12954_s20 + $0x1] ss:$0 sm:$0xff] }
0x29bf   :  { %v7167_v58 = vmul.f32 %v10549_v54, %v7064_v27  ;;  %v10190_v54 = vld [vmem:[%s12956_s24 + $0x40] sm:$0xff]  }
0x29c0   :  { %v7174_v26 = vpack.c.bf16 %v7166_v48, %v7164_v4  ;;  %9041 = vmatprep.subr.bf16.mxu1 %v10190_v54  ;;  %v10191_v48 = vld [vmem:[%s12956_s24] sm:$0xff]  }
0x29c1   :  { %v7175_v57 = vpack.c.bf16 %v7167_v58, %v7165_v10  ;;  %v10192_v10 = vld [vmem:[%s12956_s24 + $0x48] sm:$0xff]   ;;  %9042 = vmatpush3.bf16.msra.mxu1 %v10191_v48  ;;  %v10215_v54 = vld [vmem:[%s12956_s24 + $0xa0] sm:$0xff]  }
0x29c2   :  { %v10193_v58 = vld [vmem:[%s12956_s24 + $0x8] sm:$0xff]   ;;  %9043 = vmatprep.subr.bf16.mxu1 %v10192_v10  ;;  %v10218_v10 = vld [vmem:[%s12956_s24 + $0xf0] sm:$0xff]  }
0x29c3   :  { %7346 = vmatprep.mubr.bf16.mxu1 %v7175_v57  ;;  %v10195_v57 = vld [vmem:[%s12956_s24 + $0x10] sm:$0xff]   ;;  %v10217_v48 = vld [vmem:[%s12956_s24 + $0xa8] sm:$0xff]  }
0x29c4   :  { %7347 = vmatmul.mubr.bf16.gmra.mrb[40].mxu1 %v7174_v26  ;;  %v10194_v26 = vld [vmem:[%s12956_s24 + $0x50] sm:$0xff]  }
0x29c5   :  { %9044 = vmatpush3.bf16.msra.mxu1 %v10193_v58  ;;  %v10219_v58 = vld [vmem:[%s12956_s24 + $0xb0] sm:$0xff]  }
0x29c6   :  { %9045 = vmatprep.subr.bf16.mxu1 %v10194_v26 }
0x29c9   :  { %9046 = vmatpush3.bf16.msra.mxu1 %v10195_v57 }
0x2a87   :  { %v9023_v33 = vpop.f32.mrb[36].mxu1 }
0x2a88   :  { %v9024_v55 = vpop.f32.mrb[37].mxu1 }
0x2a89   :  { %v9025_v37 = vadd.f32 %v9024_v55, %v9023_v33  ;;  %v9026_v22 = vpop.f32.mrb[38].mxu1  ;;  %v10196_v33 = vld [vmem:[%s12956_s24 + $0x58] sm:$0xff]   ;;  %v8592_v55 = vld [vmem:[%s12957_s21] ss:$0 sm:$0xff] }
0x2a8a   :  { %v9027_v59 = vpop.f32.mrb[39].mxu1  ;;  %9047 = vmatprep.subr.bf16.mxu1 %v10196_v33 }
0x2a8b   :  { %v7360_v63 = vadd.f32 %v9025_v37, %v12588_v41  ;;  %v6888_v41 = vsel %vm219_vm0, %v6872_v32, 0.0  ;;  %v10197_v37 = vld [vmem:[%s12956_s24 + $0x18] sm:$0xff]   ;;  %v10199_v59 = vld [vmem:[%s12956_s24 + $0x60] sm:$0xff]  }
0x2a8c   :  { %9048 = vmatpush3.bf16.msra.mxu1 %v10197_v37  ;;  %v10187_v32 = vld [vmem:[%s12955_s23 + $0x68] ss:$16 sps:$4 sm:$0xff]  }
0x2a8d   :  { %v7370_v2 = vadd.f32 %v8591_v20, %v7360_v63  ;;  %9049 = vmatprep.subr.bf16.mxu1 %v10199_v59  ;;  %v10183_v63 = vld [vmem:[%s12955_s23 + $0x2c] ss:$16 sps:$4 sm:$0xff]  }
0x2a97   :  { %v9029_v8 = vpop.f32.mrb[40].mxu1 }
0x2a98   :  { %v9030_v49 = vpop.f32.mrb[41].mxu1 }
0x2a99   :  { %v9032_v21 = vpop.f32.mrb[42].mxu1  ;;  %v8593_v49 = vld [vmem:[%s12958_s22] ss:$0 sm:$0xff] }
0x2a9a   :  { %v9033_v9 = vpop.f32.mrb[43].mxu1 }
0x2a9b   :  { %v9034_v35 = vadd.f32 %v9033_v9, %v9032_v21  ;;  %v10201_v21 = vld [vmem:[%s12956_s24 + $0x20] sm:$0xff]   ;;  %v10178_v9 = vld [vmem:[%s12955_s23 + $0x8] ss:$16 sps:$4 sm:$0xff]  }
0x2a9c   :  { %9050 = vmatpush3.bf16.msra.mxu1 %v10201_v21 }
0x2a9d   :  { %v7361_v7 = vadd.f32 %v9034_v35, %v12598_v43  ;;  %v6887_v43 = vpop.xlane.xlu1 %6886  ;;  %v10203_v35 = vld [vmem:[%s12956_s24 + $0x68] sm:$0xff]  }
0x2a9e   :  { %v6895_v31 = vmul.f32 0.015625, %v6887_v43  ;;  %9051 = vmatprep.subr.bf16.mxu1 %v10203_v35  ;;  %v10202_v43 = vld [vmem:[%s12956_s24 + $0xc8] sm:$0xff]  }
0x2a9f   :  { %v7371_v27 = vadd.f32 %v8591_v20, %v7361_v7  ;;  %v10205_v7 = vld [vmem:[%s12956_s24 + $0x28] sm:$0xff]  }
0x2aa0   :  { %v6901_v6 = vadd.f32 1e-05, %v6895_v31  ;;  %9052 = vmatpush3.bf16.msra.mxu1 %v10205_v7  ;;  %v10204_v31 = vld [vmem:[%s12956_s24 + $0x88] sm:$0xff]  }
0x2aa1   :  { %v7373_v30 = vrot.slane %v7371_v27, 7  ;;  %v10207_v27 = vld [vmem:[%s12956_s24 + $0x70] sm:$0xff]  }
0x2aa2   :  { %10550 = vrsqrt.f32 %v6901_v6  ;;  %9053 = vmatprep.subr.bf16.mxu1 %v10207_v27  ;;  %v10206_v6 = vld [vmem:[%s12956_s24 + $0xd0] sm:$0xff]  }
0x2aa3   :  { %v7376_v16 = vsel %vm7375_vm6, %v7370_v2, %v7373_v30  ;;  %v10186_v2 = vld [vmem:[%s12955_s23 + $0x4c] ss:$16 sps:$4 sm:$0xff]   ;;  %v10209_v30 = vld [vmem:[%s12956_s24 + $0x30] sm:$0xff]  }
0x2aa4   :  { %v7380_v61 = vsel %vm7379_vm7, %v7376_v16, 0.0  ;;  %9054 = vmatpush3.bf16.msra.mxu1 %v10209_v30 }
0x2aa5   :  { %7381 = vadd.xlane.f32.xlu0 %v7380_v61  ;;  %v10189_v61 = vld [vmem:[%s12955_s23 + $0x6c] ss:$16 sps:$4 sm:$0xff]  }
0x2aa9   :  { %6889 = vadd.xlane.f32.xlu0 %v6888_v41  ;;  %v10200_v41 = vld [vmem:[%s12956_s24 + $0x80] sm:$0xff]  }
0x2aac   :  { %v10551_v42 = vpop.eup %10550 }
0x2aad   :  { %v6913_v47 = vmul.f32 %v10551_v42, %v12665_v23  ;;  %v10174_v23 = vld [vmem:[%s12955_s23 + $0x44] ss:$16 sps:$4 sm:$0xff]  }
0x2aaf   :  { %v6925_v60 = vmul.f32 %v12656_v12, %v6913_v47 }
0x2ab1   :  { %v6937_v5 = vadd.f32 %v12662_v45, %v6925_v60 }
0x2b32   :  { %v7382_v18 = vpop.xlane.xlu0 %7381 }
0x2b33   :  { %v7383_v52 = vmul.f32 0.015625, %v7382_v18  ;;  %v10208_v18 = vld [vmem:[%s12956_s24 + $0x90] sm:$0xff]  }
0x2b35   :  { %v12758_v17 = vsub.f32 %v7376_v16, %v7383_v52  ;;  %v10184_v16 = vld [vmem:[%s12955_s23 + $0x48] ss:$16 sps:$4 sm:$0xff]  }
0x2b36   :  { %v6890_v28 = vpop.xlane.xlu0 %6889 }
0x2b37   :  { %v6896_v14 = vmul.f32 0.015625, %v6890_v28  ;;  %v7385_v15 = vmul.f32 %v12758_v17, %v12758_v17 }
0x2b39   :  { %v6902_v53 = vadd.f32 1e-05, %v6896_v14  ;;  %v7386_v13 = vsel %vm7379_vm7, %v7385_v15, 0.0 }
0x2b3a   :  { %7387 = vadd.xlane.f32.xlu1 %v7386_v13 }
0x2b3b   :  { %10552 = vrsqrt.f32 %v6902_v53 }
0x2b45   :  { %v10553_v1 = vpop.eup %10552 }
0x2b46   :  { %v6914_v62 = vmul.f32 %v10553_v1, %v6866_v40  ;;  %v10181_v40 = vld [vmem:[%s12955_s23 + $0x28] ss:$16 sps:$4 sm:$0xff]  }
0x2b48   :  { %v6926_v44 = vmul.f32 %v12656_v12, %v6914_v62  ;;  %v10171_v12 = vld [vmem:[%s12955_s23 + $0x24] ss:$16 sps:$4 sm:$0xff]  }
0x2b49   :  { %7509 = vmatprep.subr.bf16.mxu0 %v10171_v12 }
0x2b4a   :  { %v6938_v50 = vadd.f32 %v12662_v45, %v6926_v44  ;;  %v10169_v45 = vld [vmem:[%s12955_s23 + $0x20] ss:$16 sps:$4 sm:$0xff]  }
0x2b4b   :  { %7510 = vmatpush1.bf16.msra.mxu0 %v10169_v45 }
0x2b4c   :  { %v6941_v19 = vpack.c.bf16 %v6938_v50, %v6937_v5  ;;  %7511 = vmatprep.subr.bf16.mxu0 %v10174_v23  ;;  %v10213_v23 = vld [vmem:[%s12956_s24 + $0x38] sm:$0xff]  }
0x2b4e   :  { %8529 = vmatmul.mubr.msk.bf16.gmra.mrb[8].mxu0 %vm219_vm0, %v6941_v19 }
0x2b4f   :  { %7539 = vmatprep.mubr.bf16.mxu0 %v10572_v0  ;;  %7512 = vmatpush1.bf16.msra.mxu0 %v10172_v56 }
0x2b50   :  { %7513 = vmatprep.subr.bf16.mxu0 %v10177_v46 }
0x2b53   :  { %7514 = vmatpush1.bf16.msra.mxu0 %v10175_v34 }
0x2b54   :  { %7548 = vmatprep.subr.bf16.mxu0 %v10180_v24 }
0x2bc7   :  { %v7388_v36 = vpop.xlane.xlu1 %7387 }
0x2bc8   :  { %v7389_v51 = vmul.f32 0.015625, %v7388_v36  ;;  %v10214_v36 = vld [vmem:[%s12956_s24 + $0xe0] sm:$0xff]  }
0x2bca   :  { %v7390_v4 = vadd.f32 1e-05, %v7389_v51 }
0x2bcc   :  { %10554 = vrsqrt.f32 %v7390_v4  ;;  %v10216_v4 = vld [vmem:[%s12956_s24 + $0xe8] sm:$0xff]  }
0x2bd6   :  { %v10555_v22 = vpop.eup %10554 }
0x2bd7   :  { %v7392_v8 = vmul.f32 %v10555_v22, %v12758_v17 }
0x2bd9   :  { %v7399_v29 = vmul.f32 %v8592_v55, %v7392_v8  ;;  %v10220_v55 = vld [vmem:[%s12956_s24 + $0xf8] sm:$0xff]  }
0x2bda   :  { %v10221_v8 = vld [vmem:[%s12956_s24 + $0xb8] sm:$0xff]  }
0x2bdb   :  { %v7406_v25 = vadd.f32 %v8593_v49, %v7399_v29 }
0x2bdd   :  { %v7407_v20 = vpack.c.bf16 %v7406_v25, %v7406_v25 }
0x2bdf   :  { %8610 = vmatmul.mubr.msk.bf16.vlgmr.msra.gmra.mrb[12].mxu0 %vm219_vm0, %v7407_v20 }
0x2be0   :  { %7549 = vmatpush1.bf16.msra.mxu0 %v10178_v9  ;;  %7580 = vmatprep.mubr.bf16.mxu0 %v10572_v0  ;;  %v10198_v0 = vld [vmem:[%s12956_s24 + $0xc0] sm:$0xff]  }
0x2be1   :  { %7550 = vmatprep.subr.bf16.mxu0 %v10183_v63 }
0x2be4   :  { %7551 = vmatpush1.bf16.msra.mxu0 %v10181_v40 }
0x2be5   :  { %7552 = vmatprep.subr.bf16.mxu0 %v10186_v2 }
0x2be8   :  { %7553 = vmatpush1.bf16.msra.mxu0 %v10184_v16 }
0x2be9   :  { %7554 = vmatprep.subr.bf16.mxu0 %v10189_v61 }
0x2bec   :  { %7555 = vmatpush1.bf16.msra.mxu0 %v10187_v32 }
0x2bed   :  { %9063 = vmatprep.subr.bf16.mxu0 %v10198_v0 }
0x2bef   :  { %8611 = vmatmul.mubr.msk.bf16.vlgmr.msra.gmra.mrb[16].mxu0 %vm219_vm0, %v7407_v20 }
0x2bf0   :  { %9064 = vmatpush3.bf16.msra.mxu0 %v10200_v41 }
0x2bf1   :  { %9065 = vmatprep.subr.bf16.mxu0 %v10202_v43 }
0x2bf4   :  { %9066 = vmatpush3.bf16.msra.mxu0 %v10204_v31 }
0x2bf5   :  { %9067 = vmatprep.subr.bf16.mxu0 %v10206_v6 }
0x2bf8   :  { %9068 = vmatpush3.bf16.msra.mxu0 %v10208_v18 }
0x2bf9   :  { %9069 = vmatprep.subr.bf16.mxu0 %v10210_v11 }
0x2c21   :  { %v7067_v52 = vpop.f32.mrb[8].mxu0 }
0x2c22   :  { %v7068_v17 = vadd.f32 %v7067_v52, %v12736_v38  ;;  %v7069_v28 = vpop.f32.mrb[9].mxu0 }
0x2c23   :  { %v7070_v14 = vadd.f32 %v7069_v28, %v12740_v3  ;;  %v7071_v15 = vpop.f32.mrb[10].mxu0 }
0x2c24   :  { %v8538_v53 = vmul.f32 -1.702, %v7068_v17  ;;  %v7072_v13 = vadd.f32 %v7071_v15, %v12736_v38  ;;  %v7073_v42 = vpop.f32.mrb[11].mxu0  ;;  %v10211_v38 = vld [vmem:[%s12956_s24 + $0x78] sm:$0xff]  }
0x2c25   :  { %v8539_v47 = vmul.f32 -1.702, %v7070_v14  ;;  %v7074_v1 = vadd.f32 %v7073_v42, %v12740_v3  ;;  %v10212_v3 = vld [vmem:[%s12956_s24 + $0x98] sm:$0xff]   ;;  %9055 = vmatprep.subr.bf16.mxu1 %v10211_v38 }
0x2c26   :  { %v7116_v60 = vmul.f32 1.442695, %v8538_v53  ;;  %v8540_v62 = vmul.f32 -1.702, %v7072_v13  ;;  %9070 = vmatpush3.bf16.msra.mxu0 %v10212_v3  ;;  %9056 = vmatpush3.bf16.msra.mxu1 %v10213_v23 }
0x2c27   :  { %v7118_v44 = vmul.f32 1.442695, %v8539_v47  ;;  %v8541_v5 = vmul.f32 -1.702, %v7074_v1  ;;  %9071 = vmatprep.subr.bf16.mxu0 %v10214_v36 }
0x2c28   :  { %10556 = vpow2.f32 %v7116_v60  ;;  %v7120_v50 = vmul.f32 1.442695, %v8540_v62 }
0x2c29   :  { %10558 = vpow2.f32 %v7118_v44  ;;  %v7122_v19 = vmul.f32 1.442695, %v8541_v5 }
0x2c2a   :  { %10560 = vpow2.f32 %v7120_v50  ;;  %9072 = vmatpush3.bf16.msra.mxu0 %v10215_v54 }
0x2c2b   :  { %10562 = vpow2.f32 %v7122_v19  ;;  %9073 = vmatprep.subr.bf16.mxu0 %v10216_v4 }
0x2c2e   :  { %9074 = vmatpush3.bf16.msra.mxu0 %v10217_v48 }
0x2c2f   :  { %9075 = vmatprep.subr.bf16.mxu0 %v10218_v10 }
0x2c32   :  { %v10557_v39 = vpop.eup %10556  ;;  %9076 = vmatpush3.bf16.msra.mxu0 %v10219_v58 }
0x2c33   :  { %v10559_v12 = vpop.eup %10558  ;;  %v7132_v45 = vadd.f32 1.0, %v10557_v39  ;;  %9077 = vmatprep.subr.bf16.mxu0 %v10220_v55 }
0x2c34   :  { %v10561_v56 = vpop.eup %10560  ;;  %v7133_v46 = vadd.f32 1.0, %v10559_v12 }
0x2c35   :  { %v10563_v34 = vpop.eup %10562  ;;  %10564 = vrcp.f32 %v7132_v45  ;;  %v7134_v24 = vadd.f32 1.0, %v10561_v56 }
0x2c36   :  { %10566 = vrcp.f32 %v7133_v46  ;;  %v7135_v51 = vadd.f32 1.0, %v10563_v34  ;;  %9078 = vmatpush3.bf16.msra.mxu0 %v10221_v8 }
0x2c37   :  { %10568 = vrcp.f32 %v7134_v24 }
0x2c38   :  { %10570 = vrcp.f32 %v7135_v51 }
0x2c3f   :  { %v10565_v26 = vpop.eup %10564 }
0x2c40   :  { %v10567_v57 = vpop.eup %10566  ;;  %v7168_v22 = vmul.f32 %v10565_v26, %v7068_v17 }
0x2c41   :  { %v10569_v33 = vpop.eup %10568  ;;  %v7169_v49 = vmul.f32 %v10567_v57, %v7070_v14  ;;  %v8612_v14 = vld [vmem:[%s12959_s25] ss:$0 sm:$0xff] }
0x2c42   :  { %v10571_v37 = vpop.eup %10570  ;;  %v7170_v59 = vmul.f32 %v10569_v33, %v7072_v13 }
0x2c43   :  { %v7171_v29 = vmul.f32 %v10571_v37, %v7074_v1 }
0x2c44   :  { %v7176_v21 = vpack.c.bf16 %v7170_v59, %v7168_v22 }
0x2c45   :  { %v7177_v9 = vpack.c.bf16 %v7171_v29, %v7169_v49 }
0x2c47   :  { %7353 = vmatprep.mubr.bf16.mxu1 %v7177_v9 }
0x2c48   :  { %7354 = vmatmul.mubr.bf16.gmra.mrb[44].mxu1 %v7176_v21 }
0x2cb2   :  { %v7541_v35 = vpop.f32.mrb[12].mxu0 }
0x2cb3   :  { %v7543_v25 = vpop.f32.mrb[13].mxu0  ;;  %v7589_v20 = vpack.c.bf16 %v7541_v35, %v7541_v35 }
0x2cb4   :  { %v7590_v63 = vpack.c.bf16 %v7543_v25, %v7543_v25  ;;  %v7545_v7 = vpop.f32.mrb[14].mxu0 }
0x2cb5   :  { %v7546_v27 = vpop.f32.mrb[15].mxu0 }
0x2cb6   :  { %7888 = vmatprep.mubr.bf16.mxu1 %v7590_v63 }
0x2cb7   :  { %7889 = vmatmul.mubr.bf16.vlgmr.msra.gmra.mrb[48].mxu1 %v7589_v20 }
0x2cc2   :  { %v7582_v40 = vpop.f32.mrb[16].mxu0 }
0x2cc3   :  { %v7584_v2 = vpop.f32.mrb[17].mxu0  ;;  %v7591_v61 = vpack.c.bf16 %v7582_v40, %v7582_v40 }
0x2cc4   :  { %v7592_v30 = vpack.c.bf16 %v7584_v2, %v7584_v2  ;;  %v7586_v16 = vpop.f32.mrb[18].mxu0 }
0x2cc5   :  { %v7587_v32 = vpop.f32.mrb[19].mxu0 }
0x2cc6   :  { %7928 = vmatprep.mubr.bf16.mxu0 %v7592_v30 }
0x2cc7   :  { %7929 = vmatmul.mubr.bf16.vlgmr.msra.gmra.mrb[20].mxu0 %v7591_v61 }
0x2d1b   :  { %v9035_v0 = vpop.f32.mrb[44].mxu1 }
0x2d1c   :  { %v9036_v41 = vpop.f32.mrb[45].mxu1 }
0x2d1d   :  { %v9038_v43 = vpop.f32.mrb[46].mxu1 }
0x2d1e   :  { %v9039_v31 = vpop.f32.mrb[47].mxu1 }
0x2d8a   :  { %v9057_v6 = vpop.f32.mrb[48].mxu1 }
0x2d8b   :  { %v9058_v18 = vpop.f32.mrb[49].mxu1 }
0x2d8c   :  { %v9059_v52 = vadd.f32 %v9058_v18, %v9057_v6  ;;  %v9060_v17 = vpop.f32.mrb[50].mxu1 }
0x2d8d   :  { %v9061_v28 = vpop.f32.mrb[51].mxu1 }
0x2d8e   :  { %v7891_v13 = vadd.f32 %v9059_v52, %v8612_v14 }
0x2d9a   :  { %v9079_v15 = vpop.f32.mrb[20].mxu0 }
0x2d9b   :  { %v9080_v53 = vpop.f32.mrb[21].mxu0 }
0x2d9c   :  { %v9081_v42 = vadd.f32 %v9080_v53, %v9079_v15  ;;  %v9082_v47 = vpop.f32.mrb[22].mxu0 }
0x2d9d   :  { %v9083_v1 = vpop.f32.mrb[23].mxu0 }
0x2d9e   :  { %v7931_v60 = vadd.f32 %v9081_v42, %v7891_v13 }
0x2da0   :  { %7936 = vst [vmem:[%s12993_s10] sm:$0x3] %v7931_v60 }

</bundles_post_ra>
